<compile_context>
chip_gen: v7x
topology: tpu7x:2x2x1
jax: 0.10.0
libtpu: 0.0.40
codegen_flags: <defaults>
</compile_context>

<pallas_src>
import numpy as np
import jax
import jax.numpy as jnp
from jax.experimental import pallas as pl
from jax.experimental.pallas import tpu as pltpu

_NPIX = 225      # 15*15 pixels per conv1 parity plane
_NOUT = 209      # flat (15-stride) pooled indices 0..208 = 14x14 valid + garbage columns
_NFEAT = 196     # 14*14 valid pooled pixels per channel
_C1, _C2 = 32, 64
_FC1_IN, _FC1_OUT, _NCLS = 12544, 128, 6


# ----------------------------- Pallas kernels -----------------------------

def _conv_stack_kernel(p1_ref, w1_ref, b1_ref, w2_ref, b2_ref, sel_ref, o_ref, h_ref):
    # p1_ref : (1, 4, 9, 225) conv1 im2col patches, one 15x15 plane per 2x2-pool parity
    # w1_ref : (32, 9)    conv1 weight          b1_ref : (32, 1)
    # w2_ref : (9, 64, 32) conv2 weight per tap (co, ci)   b2_ref : (64, 1)
    # sel_ref: (209, 196) constant 0/1 matrix dropping 15-stride garbage columns
    # o_ref  : (1, 64, 196) pooled conv2 output, channel-major == torch NCHW-flatten order
    # h_ref  : (4, 32, 225) VMEM scratch: relu(conv1) per parity plane, channel-major
    w1 = w1_ref[...]
    b1 = b1_ref[...]
    for q in range(4):                               # conv1 + ReLU on each parity plane
        h_ref[q] = jnp.maximum(
            jnp.dot(w1, p1_ref[0, q], preferred_element_type=jnp.float32) + b1, 0.0)

    b2 = b2_ref[...]
    pooled = None
    for r in range(2):                               # fused conv2 + bias + 2x2 max-pool
        for s in range(2):
            acc = jnp.zeros((_C2, _NOUT), jnp.float32)
            for di in range(3):
                for dj in range(3):
                    a, b = r + di, s + dj
                    q = (a % 2) * 2 + (b % 2)
                    start = (a // 2) * 15 + (b // 2)     # in {0, 1, 15, 16}
                    acc = acc + jnp.dot(w2_ref[di * 3 + dj],
                                        h_ref[q, :, start:start + _NOUT],
                                        preferred_element_type=jnp.float32)
            acc = acc + b2                           # bias constant over the pool window
            pooled = acc if pooled is None else jnp.maximum(pooled, acc)

    # drop garbage columns -> (64, 196); row-major flatten matches torch.flatten(x, 1)
    o_ref[0] = jnp.dot(pooled, sel_ref[...], preferred_element_type=jnp.float32)


def _fc_head_kernel(x_ref, w1_ref, b1_ref, w2_ref, b2_ref, o_ref):
    # x: (B, 12544) f32   w1: (12544, 128) bf16   b1: (1,128)   w2: (128, 6)   b2: (1,6)
    h = jnp.dot(x_ref[...].astype(jnp.bfloat16), w1_ref[...],
                preferred_element_type=jnp.float32) + b1_ref[...]
    h = jnp.maximum(h, 0.0)                          # fc1 + ReLU (dropout2 = identity)
    logits = jnp.dot(h, w2_ref[...], preferred_element_type=jnp.float32) + b2_ref[...]
    z = logits - jnp.max(logits, axis=1, keepdims=True)
    o_ref[...] = jnp.exp(z - jnp.log(jnp.sum(jnp.exp(z), axis=1, keepdims=True)))


# ----------------------------- pallas_call wrappers -----------------------------

def _conv_stack(p1, cp):
    B = p1.shape[0]
    return pl.pallas_call(
        _conv_stack_kernel,
        out_shape=jax.ShapeDtypeStruct((B, _C2, _NFEAT), jnp.float32),
        grid=(B,),
        in_specs=[
            pl.BlockSpec((1, 4, 9, _NPIX), lambda i: (i, 0, 0, 0)),
            pl.BlockSpec((_C1, 9), lambda i: (0, 0)),
            pl.BlockSpec((_C1, 1), lambda i: (0, 0)),
            pl.BlockSpec((9, _C2, _C1), lambda i: (0, 0, 0)),
            pl.BlockSpec((_C2, 1), lambda i: (0, 0)),
            pl.BlockSpec((_NOUT, _NFEAT), lambda i: (0, 0)),
        ],
        out_specs=pl.BlockSpec((1, _C2, _NFEAT), lambda i: (i, 0, 0)),
        scratch_shapes=[pltpu.VMEM((4, _C1, _NPIX), jnp.float32)],
        compiler_params=pltpu.CompilerParams(dimension_semantics=("parallel",)),
    )(p1, cp["w1"], cp["b1"], cp["w2"], cp["b2"], cp["sel"])


def _fc_head(feats, cp):
    B = feats.shape[0]
    return pl.pallas_call(
        _fc_head_kernel,
        out_shape=jax.ShapeDtypeStruct((B, _NCLS), jnp.float32),
        grid=(1,),
        in_specs=[
            pl.BlockSpec((B, _FC1_IN), lambda i: (0, 0)),
            pl.BlockSpec((_FC1_IN, _FC1_OUT), lambda i: (0, 0)),
            pl.BlockSpec((1, _FC1_OUT), lambda i: (0, 0)),
            pl.BlockSpec((_FC1_OUT, _NCLS), lambda i: (0, 0)),
            pl.BlockSpec((1, _NCLS), lambda i: (0, 0)),
        ],
        out_specs=pl.BlockSpec((B, _NCLS), lambda i: (0, 0)),
        compiler_params=pltpu.CompilerParams(dimension_semantics=("arbitrary",)),
    )(feats, cp["fc1_w"], cp["fc1_b"], cp["fc2_w"], cp["fc2_b"])


# ----------------------------- param prep (outside jit, one time) -----------------------------

def _pool_selection_matrix():
    sel = np.zeros((_NOUT, _NFEAT), np.float32)
    for pi in range(14):
        for pj in range(14):
            sel[pi * 15 + pj, pi * 14 + pj] = 1.0
    return jnp.asarray(sel)


def prepare_params(params):
    """One-time weight re-layout so the jitted forward performs zero transposes/copies."""
    return dict(
        w1=params["conv1_w"].reshape(_C1, 9),                                   # (32, 9)
        b1=params["conv1_b"].reshape(_C1, 1),
        w2=jnp.transpose(params["conv2_w"], (2, 3, 0, 1)).reshape(9, _C2, _C1),  # (9, 64, 32)
        b2=params["conv2_b"].reshape(_C2, 1),
        fc1_w=jnp.asarray(params["fc1_w"].T, jnp.bfloat16),                     # (12544, 128)
        fc1_b=params["fc1_b"].reshape(1, _FC1_OUT),
        fc2_w=params["fc2_w"].T,                                                # (128, 6)
        fc2_b=params["fc2_b"].reshape(1, _NCLS),
        sel=_pool_selection_matrix(),                                           # (209, 196)
    )


# ----------------------------- forward -----------------------------

def lenet_forward(x, cp):
    """x: [B, 1, 32, 32] float32 NCHW. Returns (softmax probs [B, 6], features [B, 12544])."""
    B = x.shape[0]
    img = x[:, 0]                                          # (B, 32, 32)
    # conv1 im2col grouped by the 2x2-pool parity of the conv1 output pixel (tiny, ~65 KB):
    # p1[b, al*2+bl, d*3+e, ii*15+jj] = x[b, 0, 2*ii+al+d, 2*jj+bl+e]
    planes = []
    for al in range(2):
        for bl in range(2):
            taps = [img[:, al + d:al + d + 29:2, bl + e:bl + e + 29:2].reshape(B, _NPIX)
                    for d in range(3) for e in range(3)]
            planes.append(jnp.stack(taps, axis=1))         # (B, 9, 225)
    p1 = jnp.stack(planes, axis=1)                         # (B, 4, 9, 225)

    pooled = _conv_stack(p1, cp)                           # (B, 64, 196) channel-major
    features = pooled.reshape(B, _FC1_IN)                  # free reshape == torch.flatten NCHW
    # dropout1 / dropout2 are identity at inference time.
    probs = _fc_head(features, cp)                         # (B, 6)
    return probs, features


# ----------------------------- main -----------------------------

if __name__ == "__main__":
    key = jax.random.PRNGKey(0)
    ks = jax.random.split(key, 9)
    params = dict(
        conv1_w=jax.random.normal(ks[0], (32, 1, 3, 3), jnp.float32) * 0.10,
        conv1_b=jax.random.normal(ks[1], (32,), jnp.float32) * 0.10,
        conv2_w=jax.random.normal(ks[2], (64, 32, 3, 3), jnp.float32) * 0.05,
        conv2_b=jax.random.normal(ks[3], (64,), jnp.float32) * 0.05,
        fc1_w=jax.random.normal(ks[4], (128, 12544), jnp.float32) * 0.01,
        fc1_b=jax.random.normal(ks[5], (128,), jnp.float32) * 0.01,
        fc2_w=jax.random.normal(ks[6], (6, 128), jnp.float32) * 0.05,
        fc2_b=jax.random.normal(ks[7], (6,), jnp.float32) * 0.05,
    )
    # Input consistent with the module (fc1's 12544 = 64*14*14 implies 1x32x32): [B=2,1,32,32]
    x = jax.random.normal(ks[8], (2, 1, 32, 32), jnp.float32)

    cp = prepare_params(params)                            # one-time re-layout, outside jit
    fwd = jax.jit(lenet_forward)
    probs, feats = fwd(x, cp)
    jax.block_until_ready(probs)
    jax.block_until_ready(feats)

    assert probs.shape == (2, 6) and probs.dtype == jnp.float32
    assert feats.shape == (2, 12544) and feats.dtype == jnp.float32
    # softmax rows must sum to 1
    assert bool(jnp.allclose(jnp.sum(probs, axis=1), 1.0, atol=1e-3))

    print("KERNEL_OK")
</pallas_src>

<mosaic_0001>
module attributes {stable_mosaic.version = 11 : i64} {
  func.func @_fc_head_kernel(%arg0: i32, %arg1: memref<2x12544xf32, #tpu.memory_space<vmem>>, %arg2: memref<12544x128xbf16, #tpu.memory_space<vmem>>, %arg3: memref<1x128xf32, #tpu.memory_space<vmem>>, %arg4: memref<128x6xf32, #tpu.memory_space<vmem>>, %arg5: memref<1x6xf32, #tpu.memory_space<vmem>>, %arg6: memref<2x6xf32, #tpu.memory_space<vmem>>) attributes {dimension_semantics = [#tpu.dimension_semantics<arbitrary>], iteration_bounds = array<i64: 1>, scalar_prefetch = 0 : i64, scratch_operands = 0 : i64, tpu.core_type = #tpu.core_type<tc>, window_params = [{pipeline_mode = #tpu.pipeline_mode<synchronous>, transform_indices = @transform_0, window_bounds = array<i64: 2, 12544>}, {pipeline_mode = #tpu.pipeline_mode<synchronous>, transform_indices = @transform_1, window_bounds = array<i64: 12544, 128>}, {pipeline_mode = #tpu.pipeline_mode<synchronous>, transform_indices = @transform_2, window_bounds = array<i64: 1, 128>}, {pipeline_mode = #tpu.pipeline_mode<synchronous>, transform_indices = @transform_3, window_bounds = array<i64: 128, 6>}, {pipeline_mode = #tpu.pipeline_mode<synchronous>, transform_indices = @transform_4, window_bounds = array<i64: 1, 6>}, {pipeline_mode = #tpu.pipeline_mode<synchronous>, transform_indices = @transform_5, window_bounds = array<i64: 2, 6>}]} {
    %c0 = arith.constant 0 : index
    %c0_0 = arith.constant 0 : index
    %0 = vector.load %arg1[%c0, %c0_0] : memref<2x12544xf32, #tpu.memory_space<vmem>>, vector<2x12544xf32>
    %1 = arith.truncf %0 : vector<2x12544xf32> to vector<2x12544xbf16>
    %c0_1 = arith.constant 0 : index
    %c0_2 = arith.constant 0 : index
    %2 = vector.load %arg2[%c0_1, %c0_2] : memref<12544x128xbf16, #tpu.memory_space<vmem>>, vector<12544x128xbf16>
    %cst = arith.constant dense<0.000000e+00> : vector<2x128xf32>
    %3 = tpu.matmul %1, %2, %cst {dimension_numbers = #tpu.dot_dimension_numbers<[1], [0], [0], [1], [0, 0, 1, 1], [], []>} : vector<2x12544xbf16>, vector<12544x128xbf16>, vector<2x128xf32> -> vector<2x128xf32>
    %c0_3 = arith.constant 0 : index
    %c0_4 = arith.constant 0 : index
    %4 = vector.load %arg3[%c0_3, %c0_4] : memref<1x128xf32, #tpu.memory_space<vmem>>, vector<1x128xf32>
    %5 = vector.broadcast %4 : vector<1x128xf32> to vector<2x128xf32>
    %6 = arith.addf %3, %5 : vector<2x128xf32>
    %cst_5 = arith.constant 0.000000e+00 : f32
    %7 = vector.broadcast %cst_5 : f32 to vector<2x128xf32>
    %8 = arith.maximumf %6, %7 : vector<2x128xf32>
    %c0_6 = arith.constant 0 : index
    %c0_7 = arith.constant 0 : index
    %9 = vector.load %arg4[%c0_6, %c0_7] : memref<128x6xf32, #tpu.memory_space<vmem>>, vector<128x6xf32>
    %cst_8 = arith.constant dense<0.000000e+00> : vector<2x6xf32>
    %10 = tpu.matmul %8, %9, %cst_8 {dimension_numbers = #tpu.dot_dimension_numbers<[1], [0], [0], [1], [0, 0, 1, 1], [], []>} : vector<2x128xf32>, vector<128x6xf32>, vector<2x6xf32> -> vector<2x6xf32>
    %c0_9 = arith.constant 0 : index
    %c0_10 = arith.constant 0 : index
    %11 = vector.load %arg5[%c0_9, %c0_10] : memref<1x6xf32, #tpu.memory_space<vmem>>, vector<1x6xf32>
    %12 = vector.broadcast %11 : vector<1x6xf32> to vector<2x6xf32>
    %13 = arith.addf %10, %12 : vector<2x6xf32>
    %cst_11 = arith.constant dense<0xFF800000> : vector<2xf32>
    %14 = vector.multi_reduction <maximumf>, %13, %cst_11 [1] : vector<2x6xf32> to vector<2xf32>
    %15 = vector.shape_cast %14 : vector<2xf32> to vector<2x1xf32>
    %16 = vector.broadcast %15 : vector<2x1xf32> to vector<2x6xf32>
    %17 = arith.subf %13, %16 : vector<2x6xf32>
    %18 = math.exp %17 : vector<2x6xf32>
    %cst_12 = arith.constant dense<0.000000e+00> : vector<2xf32>
    %19 = vector.multi_reduction <add>, %18, %cst_12 [1] : vector<2x6xf32> to vector<2xf32>
    %20 = vector.shape_cast %19 : vector<2xf32> to vector<2x1xf32>
    %21 = math.log %20 : vector<2x1xf32>
    %22 = vector.broadcast %21 : vector<2x1xf32> to vector<2x6xf32>
    %23 = arith.subf %17, %22 : vector<2x6xf32>
    %24 = math.exp %23 : vector<2x6xf32>
    %c0_13 = arith.constant 0 : index
    %c0_14 = arith.constant 0 : index
    %25 = vector.load %arg6[%c0_13, %c0_14] : memref<2x6xf32, #tpu.memory_space<vmem>>, vector<2x6xf32>
    tpu.vector_store %arg6[%c0_13, %c0_14], %24 {strides = array<i32>} : memref<2x6xf32, #tpu.memory_space<vmem>>, vector<2x6xf32>,
    return
  }
  func.func @transform_0(%arg0: i32) -> (i32, i32) {
    %c0_i32 = arith.constant 0 : i32
    %c0_i32_0 = arith.constant 0 : i32
    %c0_i32_1 = arith.constant 0 : i32
    return %c0_i32, %c0_i32_0 : i32, i32
  }
  func.func @transform_1(%arg0: i32) -> (i32, i32) {
    %c0_i32 = arith.constant 0 : i32
    %c0_i32_0 = arith.constant 0 : i32
    %c0_i32_1 = arith.constant 0 : i32
    return %c0_i32, %c0_i32_0 : i32, i32
  }
  func.func @transform_2(%arg0: i32) -> (i32, i32) {
    %c0_i32 = arith.constant 0 : i32
    %c0_i32_0 = arith.constant 0 : i32
    %c0_i32_1 = arith.constant 0 : i32
    return %c0_i32, %c0_i32_0 : i32, i32
  }
  func.func @transform_3(%arg0: i32) -> (i32, i32) {
    %c0_i32 = arith.constant 0 : i32
    %c0_i32_0 = arith.constant 0 : i32
    %c0_i32_1 = arith.constant 0 : i32
    return %c0_i32, %c0_i32_0 : i32, i32
  }
  func.func @transform_4(%arg0: i32) -> (i32, i32) {
    %c0_i32 = arith.constant 0 : i32
    %c0_i32_0 = arith.constant 0 : i32
    %c0_i32_1 = arith.constant 0 : i32
    return %c0_i32, %c0_i32_0 : i32, i32
  }
  func.func @transform_5(%arg0: i32) -> (i32, i32) {
    %c0_i32 = arith.constant 0 : i32
    %c0_i32_0 = arith.constant 0 : i32
    %c0_i32_1 = arith.constant 0 : i32
    return %c0_i32, %c0_i32_0 : i32, i32
  }
}

module attributes {stable_mosaic.version = 11 : i64} {
  func.func @_conv_stack_kernel(%arg0: i32, %arg1: memref<1x4x9x225xf32, #tpu.memory_space<vmem>>, %arg2: memref<32x9xf32, #tpu.memory_space<vmem>>, %arg3: memref<32x1xf32, #tpu.memory_space<vmem>>, %arg4: memref<9x64x32xf32, #tpu.memory_space<vmem>>, %arg5: memref<64x1xf32, #tpu.memory_space<vmem>>, %arg6: memref<209x196xf32, #tpu.memory_space<vmem>>, %arg7: memref<1x64x196xf32, #tpu.memory_space<vmem>>, %arg8: memref<4x32x225xf32, #tpu.memory_space<vmem>>) attributes {dimension_semantics = [#tpu.dimension_semantics<parallel>], iteration_bounds = array<i64: 2>, scalar_prefetch = 0 : i64, scratch_operands = 1 : i64, tpu.core_type = #tpu.core_type<tc>, window_params = [{transform_indices = @transform_0, window_bounds = array<i64: 1, 4, 9, 225>}, {pipeline_mode = #tpu.pipeline_mode<synchronous>, transform_indices = @transform_1, window_bounds = array<i64: 32, 9>}, {pipeline_mode = #tpu.pipeline_mode<synchronous>, transform_indices = @transform_2, window_bounds = array<i64: 32, 1>}, {pipeline_mode = #tpu.pipeline_mode<synchronous>, transform_indices = @transform_3, window_bounds = array<i64: 9, 64, 32>}, {pipeline_mode = #tpu.pipeline_mode<synchronous>, transform_indices = @transform_4, window_bounds = array<i64: 64, 1>}, {pipeline_mode = #tpu.pipeline_mode<synchronous>, transform_indices = @transform_5, window_bounds = array<i64: 209, 196>}, {transform_indices = @transform_6, window_bounds = array<i64: 1, 64, 196>}]} {
    %c0 = arith.constant 0 : index
    %c0_0 = arith.constant 0 : index
    %0 = vector.load %arg2[%c0, %c0_0] : memref<32x9xf32, #tpu.memory_space<vmem>>, vector<32x9xf32>
    %c0_1 = arith.constant 0 : index
    %c0_2 = arith.constant 0 : index
    %1 = vector.load %arg3[%c0_1, %c0_2] : memref<32x1xf32, #tpu.memory_space<vmem>>, vector<32x1xf32>
    %c0_3 = arith.constant 0 : index
    %c0_4 = arith.constant 0 : index
    %c0_5 = arith.constant 0 : index
    %c0_6 = arith.constant 0 : index
    %2 = vector.load %arg1[%c0_3, %c0_4, %c0_5, %c0_6] : memref<1x4x9x225xf32, #tpu.memory_space<vmem>>, vector<1x1x9x225xf32>
    %3 = vector.shape_cast %2 : vector<1x1x9x225xf32> to vector<9x225xf32>
    %cst = arith.constant dense<0.000000e+00> : vector<32x225xf32>
    %4 = tpu.matmul %0, %3, %cst {dimension_numbers = #tpu.dot_dimension_numbers<[1], [0], [0], [1], [0, 0, 1, 1], [], []>} : vector<32x9xf32>, vector<9x225xf32>, vector<32x225xf32> -> vector<32x225xf32>
    %5 = vector.broadcast %1 : vector<32x1xf32> to vector<32x225xf32>
    %6 = arith.addf %4, %5 : vector<32x225xf32>
    %cst_7 = arith.constant 0.000000e+00 : f32
    %7 = vector.broadcast %cst_7 : f32 to vector<32x225xf32>
    %8 = arith.maximumf %6, %7 : vector<32x225xf32>
    %c0_8 = arith.constant 0 : index
    %c0_9 = arith.constant 0 : index
    %c0_10 = arith.constant 0 : index
    %9 = vector.load %arg8[%c0_8, %c0_9, %c0_10] : memref<4x32x225xf32, #tpu.memory_space<vmem>>, vector<1x32x225xf32>
    %10 = vector.shape_cast %9 : vector<1x32x225xf32> to vector<32x225xf32>
    %11 = vector.shape_cast %8 : vector<32x225xf32> to vector<1x32x225xf32>
    tpu.vector_store %arg8[%c0_8, %c0_9, %c0_10], %11 {strides = array<i32>} : memref<4x32x225xf32, #tpu.memory_space<vmem>>, vector<1x32x225xf32>,
    %c0_11 = arith.constant 0 : index
    %c1 = arith.constant 1 : index
    %c0_12 = arith.constant 0 : index
    %c0_13 = arith.constant 0 : index
    %12 = vector.load %arg1[%c0_11, %c1, %c0_12, %c0_13] : memref<1x4x9x225xf32, #tpu.memory_space<vmem>>, vector<1x1x9x225xf32>
    %13 = vector.shape_cast %12 : vector<1x1x9x225xf32> to vector<9x225xf32>
    %cst_14 = arith.constant dense<0.000000e+00> : vector<32x225xf32>
    %14 = tpu.matmul %0, %13, %cst_14 {dimension_numbers = #tpu.dot_dimension_numbers<[1], [0], [0], [1], [0, 0, 1, 1], [], []>} : vector<32x9xf32>, vector<9x225xf32>, vector<32x225xf32> -> vector<32x225xf32>
    %15 = vector.broadcast %1 : vector<32x1xf32> to vector<32x225xf32>
    %16 = arith.addf %14, %15 : vector<32x225xf32>
    %cst_15 = arith.constant 0.000000e+00 : f32
    %17 = vector.broadcast %cst_15 : f32 to vector<32x225xf32>
    %18 = arith.maximumf %16, %17 : vector<32x225xf32>
    %c1_16 = arith.constant 1 : index
    %c0_17 = arith.constant 0 : index
    %c0_18 = arith.constant 0 : index
    %19 = vector.load %arg8[%c1_16, %c0_17, %c0_18] : memref<4x32x225xf32, #tpu.memory_space<vmem>>, vector<1x32x225xf32>
    %20 = vector.shape_cast %19 : vector<1x32x225xf32> to vector<32x225xf32>
    %21 = vector.shape_cast %18 : vector<32x225xf32> to vector<1x32x225xf32>
    tpu.vector_store %arg8[%c1_16, %c0_17, %c0_18], %21 {strides = array<i32>} : memref<4x32x225xf32, #tpu.memory_space<vmem>>, vector<1x32x225xf32>,
    %c0_19 = arith.constant 0 : index
    %c2 = arith.constant 2 : index
    %c0_20 = arith.constant 0 : index
    %c0_21 = arith.constant 0 : index
    %22 = vector.load %arg1[%c0_19, %c2, %c0_20, %c0_21] : memref<1x4x9x225xf32, #tpu.memory_space<vmem>>, vector<1x1x9x225xf32>
    %23 = vector.shape_cast %22 : vector<1x1x9x225xf32> to vector<9x225xf32>
    %cst_22 = arith.constant dense<0.000000e+00> : vector<32x225xf32>
    %24 = tpu.matmul %0, %23, %cst_22 {dimension_numbers = #tpu.dot_dimension_numbers<[1], [0], [0], [1], [0, 0, 1, 1], [], []>} : vector<32x9xf32>, vector<9x225xf32>, vector<32x225xf32> -> vector<32x225xf32>
    %25 = vector.broadcast %1 : vector<32x1xf32> to vector<32x225xf32>
    %26 = arith.addf %24, %25 : vector<32x225xf32>
    %cst_23 = arith.constant 0.000000e+00 : f32
    %27 = vector.broadcast %cst_23 : f32 to vector<32x225xf32>
    %28 = arith.maximumf %26, %27 : vector<32x225xf32>
    %c2_24 = arith.constant 2 : index
    %c0_25 = arith.constant 0 : index
    %c0_26 = arith.constant 0 : index
    %29 = vector.load %arg8[%c2_24, %c0_25, %c0_26] : memref<4x32x225xf32, #tpu.memory_space<vmem>>, vector<1x32x225xf32>
    %30 = vector.shape_cast %29 : vector<1x32x225xf32> to vector<32x225xf32>
    %31 = vector.shape_cast %28 : vector<32x225xf32> to vector<1x32x225xf32>
    tpu.vector_store %arg8[%c2_24, %c0_25, %c0_26], %31 {strides = array<i32>} : memref<4x32x225xf32, #tpu.memory_space<vmem>>, vector<1x32x225xf32>,
    %c0_27 = arith.constant 0 : index
    %c3 = arith.constant 3 : index
    %c0_28 = arith.constant 0 : index
    %c0_29 = arith.constant 0 : index
    %32 = vector.load %arg1[%c0_27, %c3, %c0_28, %c0_29] : memref<1x4x9x225xf32, #tpu.memory_space<vmem>>, vector<1x1x9x225xf32>
    %33 = vector.shape_cast %32 : vector<1x1x9x225xf32> to vector<9x225xf32>
    %cst_30 = arith.constant dense<0.000000e+00> : vector<32x225xf32>
    %34 = tpu.matmul %0, %33, %cst_30 {dimension_numbers = #tpu.dot_dimension_numbers<[1], [0], [0], [1], [0, 0, 1, 1], [], []>} : vector<32x9xf32>, vector<9x225xf32>, vector<32x225xf32> -> vector<32x225xf32>
    %35 = vector.broadcast %1 : vector<32x1xf32> to vector<32x225xf32>
    %36 = arith.addf %34, %35 : vector<32x225xf32>
    %cst_31 = arith.constant 0.000000e+00 : f32
    %37 = vector.broadcast %cst_31 : f32 to vector<32x225xf32>
    %38 = arith.maximumf %36, %37 : vector<32x225xf32>
    %c3_32 = arith.constant 3 : index
    %c0_33 = arith.constant 0 : index
    %c0_34 = arith.constant 0 : index
    %39 = vector.load %arg8[%c3_32, %c0_33, %c0_34] : memref<4x32x225xf32, #tpu.memory_space<vmem>>, vector<1x32x225xf32>
    %40 = vector.shape_cast %39 : vector<1x32x225xf32> to vector<32x225xf32>
    %41 = vector.shape_cast %38 : vector<32x225xf32> to vector<1x32x225xf32>
    tpu.vector_store %arg8[%c3_32, %c0_33, %c0_34], %41 {strides = array<i32>} : memref<4x32x225xf32, #tpu.memory_space<vmem>>, vector<1x32x225xf32>,
    %c0_35 = arith.constant 0 : index
    %c0_36 = arith.constant 0 : index
    %42 = vector.load %arg5[%c0_35, %c0_36] : memref<64x1xf32, #tpu.memory_space<vmem>>, vector<64x1xf32>
    %cst_37 = arith.constant 0.000000e+00 : f32
    %43 = vector.broadcast %cst_37 : f32 to vector<64x209xf32>
    %c0_38 = arith.constant 0 : index
    %c0_39 = arith.constant 0 : index
    %c0_40 = arith.constant 0 : index
    %44 = vector.load %arg4[%c0_38, %c0_39, %c0_40] : memref<9x64x32xf32, #tpu.memory_space<vmem>>, vector<1x64x32xf32>
    %45 = vector.shape_cast %44 : vector<1x64x32xf32> to vector<64x32xf32>
    %c0_41 = arith.constant 0 : index
    %c0_42 = arith.constant 0 : index
    %c0_43 = arith.constant 0 : index
    %46 = vector.load %arg8[%c0_41, %c0_42, %c0_43] : memref<4x32x225xf32, #tpu.memory_space<vmem>>, vector<1x32x209xf32>
    %47 = vector.shape_cast %46 : vector<1x32x209xf32> to vector<32x209xf32>
    %cst_44 = arith.constant dense<0.000000e+00> : vector<64x209xf32>
    %48 = tpu.matmul %45, %47, %cst_44 {dimension_numbers = #tpu.dot_dimension_numbers<[1], [0], [0], [1], [0, 0, 1, 1], [], []>} : vector<64x32xf32>, vector<32x209xf32>, vector<64x209xf32> -> vector<64x209xf32>
    %49 = arith.addf %43, %48 : vector<64x209xf32>
    %c1_45 = arith.constant 1 : index
    %c0_46 = arith.constant 0 : index
    %c0_47 = arith.constant 0 : index
    %50 = vector.load %arg4[%c1_45, %c0_46, %c0_47] : memref<9x64x32xf32, #tpu.memory_space<vmem>>, vector<1x64x32xf32>
    %51 = vector.shape_cast %50 : vector<1x64x32xf32> to vector<64x32xf32>
    %c1_48 = arith.constant 1 : index
    %c0_49 = arith.constant 0 : index
    %c0_50 = arith.constant 0 : index
    %52 = vector.load %arg8[%c1_48, %c0_49, %c0_50] : memref<4x32x225xf32, #tpu.memory_space<vmem>>, vector<1x32x209xf32>
    %53 = vector.shape_cast %52 : vector<1x32x209xf32> to vector<32x209xf32>
    %cst_51 = arith.constant dense<0.000000e+00> : vector<64x209xf32>
    %54 = tpu.matmul %51, %53, %cst_51 {dimension_numbers = #tpu.dot_dimension_numbers<[1], [0], [0], [1], [0, 0, 1, 1], [], []>} : vector<64x32xf32>, vector<32x209xf32>, vector<64x209xf32> -> vector<64x209xf32>
    %55 = arith.addf %49, %54 : vector<64x209xf32>
    %c2_52 = arith.constant 2 : index
    %c0_53 = arith.constant 0 : index
    %c0_54 = arith.constant 0 : index
    %56 = vector.load %arg4[%c2_52, %c0_53, %c0_54] : memref<9x64x32xf32, #tpu.memory_space<vmem>>, vector<1x64x32xf32>
    %57 = vector.shape_cast %56 : vector<1x64x32xf32> to vector<64x32xf32>
    %c0_55 = arith.constant 0 : index
    %c0_56 = arith.constant 0 : index
    %c1_57 = arith.constant 1 : index
    %58 = vector.load %arg8[%c0_55, %c0_56, %c1_57] : memref<4x32x225xf32, #tpu.memory_space<vmem>>, vector<1x32x209xf32>
    %59 = vector.shape_cast %58 : vector<1x32x209xf32> to vector<32x209xf32>
    %cst_58 = arith.constant dense<0.000000e+00> : vector<64x209xf32>
    %60 = tpu.matmul %57, %59, %cst_58 {dimension_numbers = #tpu.dot_dimension_numbers<[1], [0], [0], [1], [0, 0, 1, 1], [], []>} : vector<64x32xf32>, vector<32x209xf32>, vector<64x209xf32> -> vector<64x209xf32>
    %61 = arith.addf %55, %60 : vector<64x209xf32>
    %c3_59 = arith.constant 3 : index
    %c0_60 = arith.constant 0 : index
    %c0_61 = arith.constant 0 : index
    %62 = vector.load %arg4[%c3_59, %c0_60, %c0_61] : memref<9x64x32xf32, #tpu.memory_space<vmem>>, vector<1x64x32xf32>
    %63 = vector.shape_cast %62 : vector<1x64x32xf32> to vector<64x32xf32>
    %c2_62 = arith.constant 2 : index
    %c0_63 = arith.constant 0 : index
    %c0_64 = arith.constant 0 : index
    %64 = vector.load %arg8[%c2_62, %c0_63, %c0_64] : memref<4x32x225xf32, #tpu.memory_space<vmem>>, vector<1x32x209xf32>
    %65 = vector.shape_cast %64 : vector<1x32x209xf32> to vector<32x209xf32>
    %cst_65 = arith.constant dense<0.000000e+00> : vector<64x209xf32>
    %66 = tpu.matmul %63, %65, %cst_65 {dimension_numbers = #tpu.dot_dimension_numbers<[1], [0], [0], [1], [0, 0, 1, 1], [], []>} : vector<64x32xf32>, vector<32x209xf32>, vector<64x209xf32> -> vector<64x209xf32>
    %67 = arith.addf %61, %66 : vector<64x209xf32>
    %c4 = arith.constant 4 : index
    %c0_66 = arith.constant 0 : index
    %c0_67 = arith.constant 0 : index
    %68 = vector.load %arg4[%c4, %c0_66, %c0_67] : memref<9x64x32xf32, #tpu.memory_space<vmem>>, vector<1x64x32xf32>
    %69 = vector.shape_cast %68 : vector<1x64x32xf32> to vector<64x32xf32>
    %c3_68 = arith.constant 3 : index
    %c0_69 = arith.constant 0 : index
    %c0_70 = arith.constant 0 : index
    %70 = vector.load %arg8[%c3_68, %c0_69, %c0_70] : memref<4x32x225xf32, #tpu.memory_space<vmem>>, vector<1x32x209xf32>
    %71 = vector.shape_cast %70 : vector<1x32x209xf32> to vector<32x209xf32>
    %cst_71 = arith.constant dense<0.000000e+00> : vector<64x209xf32>
    %72 = tpu.matmul %69, %71, %cst_71 {dimension_numbers = #tpu.dot_dimension_numbers<[1], [0], [0], [1], [0, 0, 1, 1], [], []>} : vector<64x32xf32>, vector<32x209xf32>, vector<64x209xf32> -> vector<64x209xf32>
    %73 = arith.addf %67, %72 : vector<64x209xf32>
    %c5 = arith.constant 5 : index
    %c0_72 = arith.constant 0 : index
    %c0_73 = arith.constant 0 : index
    %74 = vector.load %arg4[%c5, %c0_72, %c0_73] : memref<9x64x32xf32, #tpu.memory_space<vmem>>, vector<1x64x32xf32>
    %75 = vector.shape_cast %74 : vector<1x64x32xf32> to vector<64x32xf32>
    %c2_74 = arith.constant 2 : index
    %c0_75 = arith.constant 0 : index
    %c1_76 = arith.constant 1 : index
    %76 = vector.load %arg8[%c2_74, %c0_75, %c1_76] : memref<4x32x225xf32, #tpu.memory_space<vmem>>, vector<1x32x209xf32>
    %77 = vector.shape_cast %76 : vector<1x32x209xf32> to vector<32x209xf32>
    %cst_77 = arith.constant dense<0.000000e+00> : vector<64x209xf32>
    %78 = tpu.matmul %75, %77, %cst_77 {dimension_numbers = #tpu.dot_dimension_numbers<[1], [0], [0], [1], [0, 0, 1, 1], [], []>} : vector<64x32xf32>, vector<32x209xf32>, vector<64x209xf32> -> vector<64x209xf32>
    %79 = arith.addf %73, %78 : vector<64x209xf32>
    %c6 = arith.constant 6 : index
    %c0_78 = arith.constant 0 : index
    %c0_79 = arith.constant 0 : index
    %80 = vector.load %arg4[%c6, %c0_78, %c0_79] : memref<9x64x32xf32, #tpu.memory_space<vmem>>, vector<1x64x32xf32>
    %81 = vector.shape_cast %80 : vector<1x64x32xf32> to vector<64x32xf32>
    %c0_80 = arith.constant 0 : index
    %c0_81 = arith.constant 0 : index
    %c15 = arith.constant 15 : index
    %82 = vector.load %arg8[%c0_80, %c0_81, %c15] : memref<4x32x225xf32, #tpu.memory_space<vmem>>, vector<1x32x209xf32>
    %83 = vector.shape_cast %82 : vector<1x32x209xf32> to vector<32x209xf32>
    %cst_82 = arith.constant dense<0.000000e+00> : vector<64x209xf32>
    %84 = tpu.matmul %81, %83, %cst_82 {dimension_numbers = #tpu.dot_dimension_numbers<[1], [0], [0], [1], [0, 0, 1, 1], [], []>} : vector<64x32xf32>, vector<32x209xf32>, vector<64x209xf32> -> vector<64x209xf32>
    %85 = arith.addf %79, %84 : vector<64x209xf32>
    %c7 = arith.constant 7 : index
    %c0_83 = arith.constant 0 : index
    %c0_84 = arith.constant 0 : index
    %86 = vector.load %arg4[%c7, %c0_83, %c0_84] : memref<9x64x32xf32, #tpu.memory_space<vmem>>, vector<1x64x32xf32>
    %87 = vector.shape_cast %86 : vector<1x64x32xf32> to vector<64x32xf32>
    %c1_85 = arith.constant 1 : index
    %c0_86 = arith.constant 0 : index
    %c15_87 = arith.constant 15 : index
    %88 = vector.load %arg8[%c1_85, %c0_86, %c15_87] : memref<4x32x225xf32, #tpu.memory_space<vmem>>, vector<1x32x209xf32>
    %89 = vector.shape_cast %88 : vector<1x32x209xf32> to vector<32x209xf32>
    %cst_88 = arith.constant dense<0.000000e+00> : vector<64x209xf32>
    %90 = tpu.matmul %87, %89, %cst_88 {dimension_numbers = #tpu.dot_dimension_numbers<[1], [0], [0], [1], [0, 0, 1, 1], [], []>} : vector<64x32xf32>, vector<32x209xf32>, vector<64x209xf32> -> vector<64x209xf32>
    %91 = arith.addf %85, %90 : vector<64x209xf32>
    %c8 = arith.constant 8 : index
    %c0_89 = arith.constant 0 : index
    %c0_90 = arith.constant 0 : index
    %92 = vector.load %arg4[%c8, %c0_89, %c0_90] : memref<9x64x32xf32, #tpu.memory_space<vmem>>, vector<1x64x32xf32>
    %93 = vector.shape_cast %92 : vector<1x64x32xf32> to vector<64x32xf32>
    %c0_91 = arith.constant 0 : index
    %c0_92 = arith.constant 0 : index
    %c16 = arith.constant 16 : index
    %94 = vector.load %arg8[%c0_91, %c0_92, %c16] : memref<4x32x225xf32, #tpu.memory_space<vmem>>, vector<1x32x209xf32>
    %95 = vector.shape_cast %94 : vector<1x32x209xf32> to vector<32x209xf32>
    %cst_93 = arith.constant dense<0.000000e+00> : vector<64x209xf32>
    %96 = tpu.matmul %93, %95, %cst_93 {dimension_numbers = #tpu.dot_dimension_numbers<[1], [0], [0], [1], [0, 0, 1, 1], [], []>} : vector<64x32xf32>, vector<32x209xf32>, vector<64x209xf32> -> vector<64x209xf32>
    %97 = arith.addf %91, %96 : vector<64x209xf32>
    %98 = vector.broadcast %42 : vector<64x1xf32> to vector<64x209xf32>
    %99 = arith.addf %97, %98 : vector<64x209xf32>
    %cst_94 = arith.constant 0.000000e+00 : f32
    %100 = vector.broadcast %cst_94 : f32 to vector<64x209xf32>
    %c0_95 = arith.constant 0 : index
    %c0_96 = arith.constant 0 : index
    %c0_97 = arith.constant 0 : index
    %101 = vector.load %arg4[%c0_95, %c0_96, %c0_97] : memref<9x64x32xf32, #tpu.memory_space<vmem>>, vector<1x64x32xf32>
    %102 = vector.shape_cast %101 : vector<1x64x32xf32> to vector<64x32xf32>
    %c1_98 = arith.constant 1 : index
    %c0_99 = arith.constant 0 : index
    %c0_100 = arith.constant 0 : index
    %103 = vector.load %arg8[%c1_98, %c0_99, %c0_100] : memref<4x32x225xf32, #tpu.memory_space<vmem>>, vector<1x32x209xf32>
    %104 = vector.shape_cast %103 : vector<1x32x209xf32> to vector<32x209xf32>
    %cst_101 = arith.constant dense<0.000000e+00> : vector<64x209xf32>
    %105 = tpu.matmul %102, %104, %cst_101 {dimension_numbers = #tpu.dot_dimension_numbers<[1], [0], [0], [1], [0, 0, 1, 1], [], []>} : vector<64x32xf32>, vector<32x209xf32>, vector<64x209xf32> -> vector<64x209xf32>
    %106 = arith.addf %100, %105 : vector<64x209xf32>
    %c1_102 = arith.constant 1 : index
    %c0_103 = arith.constant 0 : index
    %c0_104 = arith.constant 0 : index
    %107 = vector.load %arg4[%c1_102, %c0_103, %c0_104] : memref<9x64x32xf32, #tpu.memory_space<vmem>>, vector<1x64x32xf32>
    %108 = vector.shape_cast %107 : vector<1x64x32xf32> to vector<64x32xf32>
    %c0_105 = arith.constant 0 : index
    %c0_106 = arith.constant 0 : index
    %c1_107 = arith.constant 1 : index
    %109 = vector.load %arg8[%c0_105, %c0_106, %c1_107] : memref<4x32x225xf32, #tpu.memory_space<vmem>>, vector<1x32x209xf32>
    %110 = vector.shape_cast %109 : vector<1x32x209xf32> to vector<32x209xf32>
    %cst_108 = arith.constant dense<0.000000e+00> : vector<64x209xf32>
    %111 = tpu.matmul %108, %110, %cst_108 {dimension_numbers = #tpu.dot_dimension_numbers<[1], [0], [0], [1], [0, 0, 1, 1], [], []>} : vector<64x32xf32>, vector<32x209xf32>, vector<64x209xf32> -> vector<64x209xf32>
    %112 = arith.addf %106, %111 : vector<64x209xf32>
    %c2_109 = arith.constant 2 : index
    %c0_110 = arith.constant 0 : index
    %c0_111 = arith.constant 0 : index
    %113 = vector.load %arg4[%c2_109, %c0_110, %c0_111] : memref<9x64x32xf32, #tpu.memory_space<vmem>>, vector<1x64x32xf32>
    %114 = vector.shape_cast %113 : vector<1x64x32xf32> to vector<64x32xf32>
    %c1_112 = arith.constant 1 : index
    %c0_113 = arith.constant 0 : index
    %c1_114 = arith.constant 1 : index
    %115 = vector.load %arg8[%c1_112, %c0_113, %c1_114] : memref<4x32x225xf32, #tpu.memory_space<vmem>>, vector<1x32x209xf32>
    %116 = vector.shape_cast %115 : vector<1x32x209xf32> to vector<32x209xf32>
    %cst_115 = arith.constant dense<0.000000e+00> : vector<64x209xf32>
    %117 = tpu.matmul %114, %116, %cst_115 {dimension_numbers = #tpu.dot_dimension_numbers<[1], [0], [0], [1], [0, 0, 1, 1], [], []>} : vector<64x32xf32>, vector<32x209xf32>, vector<64x209xf32> -> vector<64x209xf32>
    %118 = arith.addf %112, %117 : vector<64x209xf32>
    %c3_116 = arith.constant 3 : index
    %c0_117 = arith.constant 0 : index
    %c0_118 = arith.constant 0 : index
    %119 = vector.load %arg4[%c3_116, %c0_117, %c0_118] : memref<9x64x32xf32, #tpu.memory_space<vmem>>, vector<1x64x32xf32>
    %120 = vector.shape_cast %119 : vector<1x64x32xf32> to vector<64x32xf32>
    %c3_119 = arith.constant 3 : index
    %c0_120 = arith.constant 0 : index
    %c0_121 = arith.constant 0 : index
    %121 = vector.load %arg8[%c3_119, %c0_120, %c0_121] : memref<4x32x225xf32, #tpu.memory_space<vmem>>, vector<1x32x209xf32>
    %122 = vector.shape_cast %121 : vector<1x32x209xf32> to vector<32x209xf32>
    %cst_122 = arith.constant dense<0.000000e+00> : vector<64x209xf32>
    %123 = tpu.matmul %120, %122, %cst_122 {dimension_numbers = #tpu.dot_dimension_numbers<[1], [0], [0], [1], [0, 0, 1, 1], [], []>} : vector<64x32xf32>, vector<32x209xf32>, vector<64x209xf32> -> vector<64x209xf32>
    %124 = arith.addf %118, %123 : vector<64x209xf32>
    %c4_123 = arith.constant 4 : index
    %c0_124 = arith.constant 0 : index
    %c0_125 = arith.constant 0 : index
    %125 = vector.load %arg4[%c4_123, %c0_124, %c0_125] : memref<9x64x32xf32, #tpu.memory_space<vmem>>, vector<1x64x32xf32>
    %126 = vector.shape_cast %125 : vector<1x64x32xf32> to vector<64x32xf32>
    %c2_126 = arith.constant 2 : index
    %c0_127 = arith.constant 0 : index
    %c1_128 = arith.constant 1 : index
    %127 = vector.load %arg8[%c2_126, %c0_127, %c1_128] : memref<4x32x225xf32, #tpu.memory_space<vmem>>, vector<1x32x209xf32>
    %128 = vector.shape_cast %127 : vector<1x32x209xf32> to vector<32x209xf32>
    %cst_129 = arith.constant dense<0.000000e+00> : vector<64x209xf32>
    %129 = tpu.matmul %126, %128, %cst_129 {dimension_numbers = #tpu.dot_dimension_numbers<[1], [0], [0], [1], [0, 0, 1, 1], [], []>} : vector<64x32xf32>, vector<32x209xf32>, vector<64x209xf32> -> vector<64x209xf32>
    %130 = arith.addf %124, %129 : vector<64x209xf32>
    %c5_130 = arith.constant 5 : index
    %c0_131 = arith.constant 0 : index
    %c0_132 = arith.constant 0 : index
    %131 = vector.load %arg4[%c5_130, %c0_131, %c0_132] : memref<9x64x32xf32, #tpu.memory_space<vmem>>, vector<1x64x32xf32>
    %132 = vector.shape_cast %131 : vector<1x64x32xf32> to vector<64x32xf32>
    %c3_133 = arith.constant 3 : index
    %c0_134 = arith.constant 0 : index
    %c1_135 = arith.constant 1 : index
    %133 = vector.load %arg8[%c3_133, %c0_134, %c1_135] : memref<4x32x225xf32, #tpu.memory_space<vmem>>, vector<1x32x209xf32>
    %134 = vector.shape_cast %133 : vector<1x32x209xf32> to vector<32x209xf32>
    %cst_136 = arith.constant dense<0.000000e+00> : vector<64x209xf32>
    %135 = tpu.matmul %132, %134, %cst_136 {dimension_numbers = #tpu.dot_dimension_numbers<[1], [0], [0], [1], [0, 0, 1, 1], [], []>} : vector<64x32xf32>, vector<32x209xf32>, vector<64x209xf32> -> vector<64x209xf32>
    %136 = arith.addf %130, %135 : vector<64x209xf32>
    %c6_137 = arith.constant 6 : index
    %c0_138 = arith.constant 0 : index
    %c0_139 = arith.constant 0 : index
    %137 = vector.load %arg4[%c6_137, %c0_138, %c0_139] : memref<9x64x32xf32, #tpu.memory_space<vmem>>, vector<1x64x32xf32>
    %138 = vector.shape_cast %137 : vector<1x64x32xf32> to vector<64x32xf32>
    %c1_140 = arith.constant 1 : index
    %c0_141 = arith.constant 0 : index
    %c15_142 = arith.constant 15 : index
    %139 = vector.load %arg8[%c1_140, %c0_141, %c15_142] : memref<4x32x225xf32, #tpu.memory_space<vmem>>, vector<1x32x209xf32>
    %140 = vector.shape_cast %139 : vector<1x32x209xf32> to vector<32x209xf32>
    %cst_143 = arith.constant dense<0.000000e+00> : vector<64x209xf32>
    %141 = tpu.matmul %138, %140, %cst_143 {dimension_numbers = #tpu.dot_dimension_numbers<[1], [0], [0], [1], [0, 0, 1, 1], [], []>} : vector<64x32xf32>, vector<32x209xf32>, vector<64x209xf32> -> vector<64x209xf32>
    %142 = arith.addf %136, %141 : vector<64x209xf32>
    %c7_144 = arith.constant 7 : index
    %c0_145 = arith.constant 0 : index
    %c0_146 = arith.constant 0 : index
    %143 = vector.load %arg4[%c7_144, %c0_145, %c0_146] : memref<9x64x32xf32, #tpu.memory_space<vmem>>, vector<1x64x32xf32>
    %144 = vector.shape_cast %143 : vector<1x64x32xf32> to vector<64x32xf32>
    %c0_147 = arith.constant 0 : index
    %c0_148 = arith.constant 0 : index
    %c16_149 = arith.constant 16 : index
    %145 = vector.load %arg8[%c0_147, %c0_148, %c16_149] : memref<4x32x225xf32, #tpu.memory_space<vmem>>, vector<1x32x209xf32>
    %146 = vector.shape_cast %145 : vector<1x32x209xf32> to vector<32x209xf32>
    %cst_150 = arith.constant dense<0.000000e+00> : vector<64x209xf32>
    %147 = tpu.matmul %144, %146, %cst_150 {dimension_numbers = #tpu.dot_dimension_numbers<[1], [0], [0], [1], [0, 0, 1, 1], [], []>} : vector<64x32xf32>, vector<32x209xf32>, vector<64x209xf32> -> vector<64x209xf32>
    %148 = arith.addf %142, %147 : vector<64x209xf32>
    %c8_151 = arith.constant 8 : index
    %c0_152 = arith.constant 0 : index
    %c0_153 = arith.constant 0 : index
    %149 = vector.load %arg4[%c8_151, %c0_152, %c0_153] : memref<9x64x32xf32, #tpu.memory_space<vmem>>, vector<1x64x32xf32>
    %150 = vector.shape_cast %149 : vector<1x64x32xf32> to vector<64x32xf32>
    %c1_154 = arith.constant 1 : index
    %c0_155 = arith.constant 0 : index
    %c16_156 = arith.constant 16 : index
    %151 = vector.load %arg8[%c1_154, %c0_155, %c16_156] : memref<4x32x225xf32, #tpu.memory_space<vmem>>, vector<1x32x209xf32>
    %152 = vector.shape_cast %151 : vector<1x32x209xf32> to vector<32x209xf32>
    %cst_157 = arith.constant dense<0.000000e+00> : vector<64x209xf32>
    %153 = tpu.matmul %150, %152, %cst_157 {dimension_numbers = #tpu.dot_dimension_numbers<[1], [0], [0], [1], [0, 0, 1, 1], [], []>} : vector<64x32xf32>, vector<32x209xf32>, vector<64x209xf32> -> vector<64x209xf32>
    %154 = arith.addf %148, %153 : vector<64x209xf32>
    %155 = vector.broadcast %42 : vector<64x1xf32> to vector<64x209xf32>
    %156 = arith.addf %154, %155 : vector<64x209xf32>
    %157 = arith.maximumf %99, %156 : vector<64x209xf32>
    %cst_158 = arith.constant 0.000000e+00 : f32
    %158 = vector.broadcast %cst_158 : f32 to vector<64x209xf32>
    %c0_159 = arith.constant 0 : index
    %c0_160 = arith.constant 0 : index
    %c0_161 = arith.constant 0 : index
    %159 = vector.load %arg4[%c0_159, %c0_160, %c0_161] : memref<9x64x32xf32, #tpu.memory_space<vmem>>, vector<1x64x32xf32>
    %160 = vector.shape_cast %159 : vector<1x64x32xf32> to vector<64x32xf32>
    %c2_162 = arith.constant 2 : index
    %c0_163 = arith.constant 0 : index
    %c0_164 = arith.constant 0 : index
    %161 = vector.load %arg8[%c2_162, %c0_163, %c0_164] : memref<4x32x225xf32, #tpu.memory_space<vmem>>, vector<1x32x209xf32>
    %162 = vector.shape_cast %161 : vector<1x32x209xf32> to vector<32x209xf32>
    %cst_165 = arith.constant dense<0.000000e+00> : vector<64x209xf32>
    %163 = tpu.matmul %160, %162, %cst_165 {dimension_numbers = #tpu.dot_dimension_numbers<[1], [0], [0], [1], [0, 0, 1, 1], [], []>} : vector<64x32xf32>, vector<32x209xf32>, vector<64x209xf32> -> vector<64x209xf32>
    %164 = arith.addf %158, %163 : vector<64x209xf32>
    %c1_166 = arith.constant 1 : index
    %c0_167 = arith.constant 0 : index
    %c0_168 = arith.constant 0 : index
    %165 = vector.load %arg4[%c1_166, %c0_167, %c0_168] : memref<9x64x32xf32, #tpu.memory_space<vmem>>, vector<1x64x32xf32>
    %166 = vector.shape_cast %165 : vector<1x64x32xf32> to vector<64x32xf32>
    %c3_169 = arith.constant 3 : index
    %c0_170 = arith.constant 0 : index
    %c0_171 = arith.constant 0 : index
    %167 = vector.load %arg8[%c3_169, %c0_170, %c0_171] : memref<4x32x225xf32, #tpu.memory_space<vmem>>, vector<1x32x209xf32>
    %168 = vector.shape_cast %167 : vector<1x32x209xf32> to vector<32x209xf32>
    %cst_172 = arith.constant dense<0.000000e+00> : vector<64x209xf32>
    %169 = tpu.matmul %166, %168, %cst_172 {dimension_numbers = #tpu.dot_dimension_numbers<[1], [0], [0], [1], [0, 0, 1, 1], [], []>} : vector<64x32xf32>, vector<32x209xf32>, vector<64x209xf32> -> vector<64x209xf32>
    %170 = arith.addf %164, %169 : vector<64x209xf32>
    %c2_173 = arith.constant 2 : index
    %c0_174 = arith.constant 0 : index
    %c0_175 = arith.constant 0 : index
    %171 = vector.load %arg4[%c2_173, %c0_174, %c0_175] : memref<9x64x32xf32, #tpu.memory_space<vmem>>, vector<1x64x32xf32>
    %172 = vector.shape_cast %171 : vector<1x64x32xf32> to vector<64x32xf32>
    %c2_176 = arith.constant 2 : index
    %c0_177 = arith.constant 0 : index
    %c1_178 = arith.constant 1 : index
    %173 = vector.load %arg8[%c2_176, %c0_177, %c1_178] : memref<4x32x225xf32, #tpu.memory_space<vmem>>, vector<1x32x209xf32>
    %174 = vector.shape_cast %173 : vector<1x32x209xf32> to vector<32x209xf32>
    %cst_179 = arith.constant dense<0.000000e+00> : vector<64x209xf32>
    %175 = tpu.matmul %172, %174, %cst_179 {dimension_numbers = #tpu.dot_dimension_numbers<[1], [0], [0], [1], [0, 0, 1, 1], [], []>} : vector<64x32xf32>, vector<32x209xf32>, vector<64x209xf32> -> vector<64x209xf32>
    %176 = arith.addf %170, %175 : vector<64x209xf32>
    %c3_180 = arith.constant 3 : index
    %c0_181 = arith.constant 0 : index
    %c0_182 = arith.constant 0 : index
    %177 = vector.load %arg4[%c3_180, %c0_181, %c0_182] : memref<9x64x32xf32, #tpu.memory_space<vmem>>, vector<1x64x32xf32>
    %178 = vector.shape_cast %177 : vector<1x64x32xf32> to vector<64x32xf32>
    %c0_183 = arith.constant 0 : index
    %c0_184 = arith.constant 0 : index
    %c15_185 = arith.constant 15 : index
    %179 = vector.load %arg8[%c0_183, %c0_184, %c15_185] : memref<4x32x225xf32, #tpu.memory_space<vmem>>, vector<1x32x209xf32>
    %180 = vector.shape_cast %179 : vector<1x32x209xf32> to vector<32x209xf32>
    %cst_186 = arith.constant dense<0.000000e+00> : vector<64x209xf32>
    %181 = tpu.matmul %178, %180, %cst_186 {dimension_numbers = #tpu.dot_dimension_numbers<[1], [0], [0], [1], [0, 0, 1, 1], [], []>} : vector<64x32xf32>, vector<32x209xf32>, vector<64x209xf32> -> vector<64x209xf32>
    %182 = arith.addf %176, %181 : vector<64x209xf32>
    %c4_187 = arith.constant 4 : index
    %c0_188 = arith.constant 0 : index
    %c0_189 = arith.constant 0 : index
    %183 = vector.load %arg4[%c4_187, %c0_188, %c0_189] : memref<9x64x32xf32, #tpu.memory_space<vmem>>, vector<1x64x32xf32>
    %184 = vector.shape_cast %183 : vector<1x64x32xf32> to vector<64x32xf32>
    %c1_190 = arith.constant 1 : index
    %c0_191 = arith.constant 0 : index
    %c15_192 = arith.constant 15 : index
    %185 = vector.load %arg8[%c1_190, %c0_191, %c15_192] : memref<4x32x225xf32, #tpu.memory_space<vmem>>, vector<1x32x209xf32>
    %186 = vector.shape_cast %185 : vector<1x32x209xf32> to vector<32x209xf32>
    %cst_193 = arith.constant dense<0.000000e+00> : vector<64x209xf32>
    %187 = tpu.matmul %184, %186, %cst_193 {dimension_numbers = #tpu.dot_dimension_numbers<[1], [0], [0], [1], [0, 0, 1, 1], [], []>} : vector<64x32xf32>, vector<32x209xf32>, vector<64x209xf32> -> vector<64x209xf32>
    %188 = arith.addf %182, %187 : vector<64x209xf32>
    %c5_194 = arith.constant 5 : index
    %c0_195 = arith.constant 0 : index
    %c0_196 = arith.constant 0 : index
    %189 = vector.load %arg4[%c5_194, %c0_195, %c0_196] : memref<9x64x32xf32, #tpu.memory_space<vmem>>, vector<1x64x32xf32>
    %190 = vector.shape_cast %189 : vector<1x64x32xf32> to vector<64x32xf32>
    %c0_197 = arith.constant 0 : index
    %c0_198 = arith.constant 0 : index
    %c16_199 = arith.constant 16 : index
    %191 = vector.load %arg8[%c0_197, %c0_198, %c16_199] : memref<4x32x225xf32, #tpu.memory_space<vmem>>, vector<1x32x209xf32>
    %192 = vector.shape_cast %191 : vector<1x32x209xf32> to vector<32x209xf32>
    %cst_200 = arith.constant dense<0.000000e+00> : vector<64x209xf32>
    %193 = tpu.matmul %190, %192, %cst_200 {dimension_numbers = #tpu.dot_dimension_numbers<[1], [0], [0], [1], [0, 0, 1, 1], [], []>} : vector<64x32xf32>, vector<32x209xf32>, vector<64x209xf32> -> vector<64x209xf32>
    %194 = arith.addf %188, %193 : vector<64x209xf32>
    %c6_201 = arith.constant 6 : index
    %c0_202 = arith.constant 0 : index
    %c0_203 = arith.constant 0 : index
    %195 = vector.load %arg4[%c6_201, %c0_202, %c0_203] : memref<9x64x32xf32, #tpu.memory_space<vmem>>, vector<1x64x32xf32>
    %196 = vector.shape_cast %195 : vector<1x64x32xf32> to vector<64x32xf32>
    %c2_204 = arith.constant 2 : index
    %c0_205 = arith.constant 0 : index
    %c15_206 = arith.constant 15 : index
    %197 = vector.load %arg8[%c2_204, %c0_205, %c15_206] : memref<4x32x225xf32, #tpu.memory_space<vmem>>, vector<1x32x209xf32>
    %198 = vector.shape_cast %197 : vector<1x32x209xf32> to vector<32x209xf32>
    %cst_207 = arith.constant dense<0.000000e+00> : vector<64x209xf32>
    %199 = tpu.matmul %196, %198, %cst_207 {dimension_numbers = #tpu.dot_dimension_numbers<[1], [0], [0], [1], [0, 0, 1, 1], [], []>} : vector<64x32xf32>, vector<32x209xf32>, vector<64x209xf32> -> vector<64x209xf32>
    %200 = arith.addf %194, %199 : vector<64x209xf32>
    %c7_208 = arith.constant 7 : index
    %c0_209 = arith.constant 0 : index
    %c0_210 = arith.constant 0 : index
    %201 = vector.load %arg4[%c7_208, %c0_209, %c0_210] : memref<9x64x32xf32, #tpu.memory_space<vmem>>, vector<1x64x32xf32>
    %202 = vector.shape_cast %201 : vector<1x64x32xf32> to vector<64x32xf32>
    %c3_211 = arith.constant 3 : index
    %c0_212 = arith.constant 0 : index
    %c15_213 = arith.constant 15 : index
    %203 = vector.load %arg8[%c3_211, %c0_212, %c15_213] : memref<4x32x225xf32, #tpu.memory_space<vmem>>, vector<1x32x209xf32>
    %204 = vector.shape_cast %203 : vector<1x32x209xf32> to vector<32x209xf32>
    %cst_214 = arith.constant dense<0.000000e+00> : vector<64x209xf32>
    %205 = tpu.matmul %202, %204, %cst_214 {dimension_numbers = #tpu.dot_dimension_numbers<[1], [0], [0], [1], [0, 0, 1, 1], [], []>} : vector<64x32xf32>, vector<32x209xf32>, vector<64x209xf32> -> vector<64x209xf32>
    %206 = arith.addf %200, %205 : vector<64x209xf32>
    %c8_215 = arith.constant 8 : index
    %c0_216 = arith.constant 0 : index
    %c0_217 = arith.constant 0 : index
    %207 = vector.load %arg4[%c8_215, %c0_216, %c0_217] : memref<9x64x32xf32, #tpu.memory_space<vmem>>, vector<1x64x32xf32>
    %208 = vector.shape_cast %207 : vector<1x64x32xf32> to vector<64x32xf32>
    %c2_218 = arith.constant 2 : index
    %c0_219 = arith.constant 0 : index
    %c16_220 = arith.constant 16 : index
    %209 = vector.load %arg8[%c2_218, %c0_219, %c16_220] : memref<4x32x225xf32, #tpu.memory_space<vmem>>, vector<1x32x209xf32>
    %210 = vector.shape_cast %209 : vector<1x32x209xf32> to vector<32x209xf32>
    %cst_221 = arith.constant dense<0.000000e+00> : vector<64x209xf32>
    %211 = tpu.matmul %208, %210, %cst_221 {dimension_numbers = #tpu.dot_dimension_numbers<[1], [0], [0], [1], [0, 0, 1, 1], [], []>} : vector<64x32xf32>, vector<32x209xf32>, vector<64x209xf32> -> vector<64x209xf32>
    %212 = arith.addf %206, %211 : vector<64x209xf32>
    %213 = vector.broadcast %42 : vector<64x1xf32> to vector<64x209xf32>
    %214 = arith.addf %212, %213 : vector<64x209xf32>
    %215 = arith.maximumf %157, %214 : vector<64x209xf32>
    %cst_222 = arith.constant 0.000000e+00 : f32
    %216 = vector.broadcast %cst_222 : f32 to vector<64x209xf32>
    %c0_223 = arith.constant 0 : index
    %c0_224 = arith.constant 0 : index
    %c0_225 = arith.constant 0 : index
    %217 = vector.load %arg4[%c0_223, %c0_224, %c0_225] : memref<9x64x32xf32, #tpu.memory_space<vmem>>, vector<1x64x32xf32>
    %218 = vector.shape_cast %217 : vector<1x64x32xf32> to vector<64x32xf32>
    %c3_226 = arith.constant 3 : index
    %c0_227 = arith.constant 0 : index
    %c0_228 = arith.constant 0 : index
    %219 = vector.load %arg8[%c3_226, %c0_227, %c0_228] : memref<4x32x225xf32, #tpu.memory_space<vmem>>, vector<1x32x209xf32>
    %220 = vector.shape_cast %219 : vector<1x32x209xf32> to vector<32x209xf32>
    %cst_229 = arith.constant dense<0.000000e+00> : vector<64x209xf32>
    %221 = tpu.matmul %218, %220, %cst_229 {dimension_numbers = #tpu.dot_dimension_numbers<[1], [0], [0], [1], [0, 0, 1, 1], [], []>} : vector<64x32xf32>, vector<32x209xf32>, vector<64x209xf32> -> vector<64x209xf32>
    %222 = arith.addf %216, %221 : vector<64x209xf32>
    %c1_230 = arith.constant 1 : index
    %c0_231 = arith.constant 0 : index
    %c0_232 = arith.constant 0 : index
    %223 = vector.load %arg4[%c1_230, %c0_231, %c0_232] : memref<9x64x32xf32, #tpu.memory_space<vmem>>, vector<1x64x32xf32>
    %224 = vector.shape_cast %223 : vector<1x64x32xf32> to vector<64x32xf32>
    %c2_233 = arith.constant 2 : index
    %c0_234 = arith.constant 0 : index
    %c1_235 = arith.constant 1 : index
    %225 = vector.load %arg8[%c2_233, %c0_234, %c1_235] : memref<4x32x225xf32, #tpu.memory_space<vmem>>, vector<1x32x209xf32>
    %226 = vector.shape_cast %225 : vector<1x32x209xf32> to vector<32x209xf32>
    %cst_236 = arith.constant dense<0.000000e+00> : vector<64x209xf32>
    %227 = tpu.matmul %224, %226, %cst_236 {dimension_numbers = #tpu.dot_dimension_numbers<[1], [0], [0], [1], [0, 0, 1, 1], [], []>} : vector<64x32xf32>, vector<32x209xf32>, vector<64x209xf32> -> vector<64x209xf32>
    %228 = arith.addf %222, %227 : vector<64x209xf32>
    %c2_237 = arith.constant 2 : index
    %c0_238 = arith.constant 0 : index
    %c0_239 = arith.constant 0 : index
    %229 = vector.load %arg4[%c2_237, %c0_238, %c0_239] : memref<9x64x32xf32, #tpu.memory_space<vmem>>, vector<1x64x32xf32>
    %230 = vector.shape_cast %229 : vector<1x64x32xf32> to vector<64x32xf32>
    %c3_240 = arith.constant 3 : index
    %c0_241 = arith.constant 0 : index
    %c1_242 = arith.constant 1 : index
    %231 = vector.load %arg8[%c3_240, %c0_241, %c1_242] : memref<4x32x225xf32, #tpu.memory_space<vmem>>, vector<1x32x209xf32>
    %232 = vector.shape_cast %231 : vector<1x32x209xf32> to vector<32x209xf32>
    %cst_243 = arith.constant dense<0.000000e+00> : vector<64x209xf32>
    %233 = tpu.matmul %230, %232, %cst_243 {dimension_numbers = #tpu.dot_dimension_numbers<[1], [0], [0], [1], [0, 0, 1, 1], [], []>} : vector<64x32xf32>, vector<32x209xf32>, vector<64x209xf32> -> vector<64x209xf32>
    %234 = arith.addf %228, %233 : vector<64x209xf32>
    %c3_244 = arith.constant 3 : index
    %c0_245 = arith.constant 0 : index
    %c0_246 = arith.constant 0 : index
    %235 = vector.load %arg4[%c3_244, %c0_245, %c0_246] : memref<9x64x32xf32, #tpu.memory_space<vmem>>, vector<1x64x32xf32>
    %236 = vector.shape_cast %235 : vector<1x64x32xf32> to vector<64x32xf32>
    %c1_247 = arith.constant 1 : index
    %c0_248 = arith.constant 0 : index
    %c15_249 = arith.constant 15 : index
    %237 = vector.load %arg8[%c1_247, %c0_248, %c15_249] : memref<4x32x225xf32, #tpu.memory_space<vmem>>, vector<1x32x209xf32>
    %238 = vector.shape_cast %237 : vector<1x32x209xf32> to vector<32x209xf32>
    %cst_250 = arith.constant dense<0.000000e+00> : vector<64x209xf32>
    %239 = tpu.matmul %236, %238, %cst_250 {dimension_numbers = #tpu.dot_dimension_numbers<[1], [0], [0], [1], [0, 0, 1, 1], [], []>} : vector<64x32xf32>, vector<32x209xf32>, vector<64x209xf32> -> vector<64x209xf32>
    %240 = arith.addf %234, %239 : vector<64x209xf32>
    %c4_251 = arith.constant 4 : index
    %c0_252 = arith.constant 0 : index
    %c0_253 = arith.constant 0 : index
    %241 = vector.load %arg4[%c4_251, %c0_252, %c0_253] : memref<9x64x32xf32, #tpu.memory_space<vmem>>, vector<1x64x32xf32>
    %242 = vector.shape_cast %241 : vector<1x64x32xf32> to vector<64x32xf32>
    %c0_254 = arith.constant 0 : index
    %c0_255 = arith.constant 0 : index
    %c16_256 = arith.constant 16 : index
    %243 = vector.load %arg8[%c0_254, %c0_255, %c16_256] : memref<4x32x225xf32, #tpu.memory_space<vmem>>, vector<1x32x209xf32>
    %244 = vector.shape_cast %243 : vector<1x32x209xf32> to vector<32x209xf32>
    %cst_257 = arith.constant dense<0.000000e+00> : vector<64x209xf32>
    %245 = tpu.matmul %242, %244, %cst_257 {dimension_numbers = #tpu.dot_dimension_numbers<[1], [0], [0], [1], [0, 0, 1, 1], [], []>} : vector<64x32xf32>, vector<32x209xf32>, vector<64x209xf32> -> vector<64x209xf32>
    %246 = arith.addf %240, %245 : vector<64x209xf32>
    %c5_258 = arith.constant 5 : index
    %c0_259 = arith.constant 0 : index
    %c0_260 = arith.constant 0 : index
    %247 = vector.load %arg4[%c5_258, %c0_259, %c0_260] : memref<9x64x32xf32, #tpu.memory_space<vmem>>, vector<1x64x32xf32>
    %248 = vector.shape_cast %247 : vector<1x64x32xf32> to vector<64x32xf32>
    %c1_261 = arith.constant 1 : index
    %c0_262 = arith.constant 0 : index
    %c16_263 = arith.constant 16 : index
    %249 = vector.load %arg8[%c1_261, %c0_262, %c16_263] : memref<4x32x225xf32, #tpu.memory_space<vmem>>, vector<1x32x209xf32>
    %250 = vector.shape_cast %249 : vector<1x32x209xf32> to vector<32x209xf32>
    %cst_264 = arith.constant dense<0.000000e+00> : vector<64x209xf32>
    %251 = tpu.matmul %248, %250, %cst_264 {dimension_numbers = #tpu.dot_dimension_numbers<[1], [0], [0], [1], [0, 0, 1, 1], [], []>} : vector<64x32xf32>, vector<32x209xf32>, vector<64x209xf32> -> vector<64x209xf32>
    %252 = arith.addf %246, %251 : vector<64x209xf32>
    %c6_265 = arith.constant 6 : index
    %c0_266 = arith.constant 0 : index
    %c0_267 = arith.constant 0 : index
    %253 = vector.load %arg4[%c6_265, %c0_266, %c0_267] : memref<9x64x32xf32, #tpu.memory_space<vmem>>, vector<1x64x32xf32>
    %254 = vector.shape_cast %253 : vector<1x64x32xf32> to vector<64x32xf32>
    %c3_268 = arith.constant 3 : index
    %c0_269 = arith.constant 0 : index
    %c15_270 = arith.constant 15 : index
    %255 = vector.load %arg8[%c3_268, %c0_269, %c15_270] : memref<4x32x225xf32, #tpu.memory_space<vmem>>, vector<1x32x209xf32>
    %256 = vector.shape_cast %255 : vector<1x32x209xf32> to vector<32x209xf32>
    %cst_271 = arith.constant dense<0.000000e+00> : vector<64x209xf32>
    %257 = tpu.matmul %254, %256, %cst_271 {dimension_numbers = #tpu.dot_dimension_numbers<[1], [0], [0], [1], [0, 0, 1, 1], [], []>} : vector<64x32xf32>, vector<32x209xf32>, vector<64x209xf32> -> vector<64x209xf32>
    %258 = arith.addf %252, %257 : vector<64x209xf32>
    %c7_272 = arith.constant 7 : index
    %c0_273 = arith.constant 0 : index
    %c0_274 = arith.constant 0 : index
    %259 = vector.load %arg4[%c7_272, %c0_273, %c0_274] : memref<9x64x32xf32, #tpu.memory_space<vmem>>, vector<1x64x32xf32>
    %260 = vector.shape_cast %259 : vector<1x64x32xf32> to vector<64x32xf32>
    %c2_275 = arith.constant 2 : index
    %c0_276 = arith.constant 0 : index
    %c16_277 = arith.constant 16 : index
    %261 = vector.load %arg8[%c2_275, %c0_276, %c16_277] : memref<4x32x225xf32, #tpu.memory_space<vmem>>, vector<1x32x209xf32>
    %262 = vector.shape_cast %261 : vector<1x32x209xf32> to vector<32x209xf32>
    %cst_278 = arith.constant dense<0.000000e+00> : vector<64x209xf32>
    %263 = tpu.matmul %260, %262, %cst_278 {dimension_numbers = #tpu.dot_dimension_numbers<[1], [0], [0], [1], [0, 0, 1, 1], [], []>} : vector<64x32xf32>, vector<32x209xf32>, vector<64x209xf32> -> vector<64x209xf32>
    %264 = arith.addf %258, %263 : vector<64x209xf32>
    %c8_279 = arith.constant 8 : index
    %c0_280 = arith.constant 0 : index
    %c0_281 = arith.constant 0 : index
    %265 = vector.load %arg4[%c8_279, %c0_280, %c0_281] : memref<9x64x32xf32, #tpu.memory_space<vmem>>, vector<1x64x32xf32>
    %266 = vector.shape_cast %265 : vector<1x64x32xf32> to vector<64x32xf32>
    %c3_282 = arith.constant 3 : index
    %c0_283 = arith.constant 0 : index
    %c16_284 = arith.constant 16 : index
    %267 = vector.load %arg8[%c3_282, %c0_283, %c16_284] : memref<4x32x225xf32, #tpu.memory_space<vmem>>, vector<1x32x209xf32>
    %268 = vector.shape_cast %267 : vector<1x32x209xf32> to vector<32x209xf32>
    %cst_285 = arith.constant dense<0.000000e+00> : vector<64x209xf32>
    %269 = tpu.matmul %266, %268, %cst_285 {dimension_numbers = #tpu.dot_dimension_numbers<[1], [0], [0], [1], [0, 0, 1, 1], [], []>} : vector<64x32xf32>, vector<32x209xf32>, vector<64x209xf32> -> vector<64x209xf32>
    %270 = arith.addf %264, %269 : vector<64x209xf32>
    %271 = vector.broadcast %42 : vector<64x1xf32> to vector<64x209xf32>
    %272 = arith.addf %270, %271 : vector<64x209xf32>
    %273 = arith.maximumf %215, %272 : vector<64x209xf32>
    %c0_286 = arith.constant 0 : index
    %c0_287 = arith.constant 0 : index
    %274 = vector.load %arg6[%c0_286, %c0_287] : memref<209x196xf32, #tpu.memory_space<vmem>>, vector<209x196xf32>
    %cst_288 = arith.constant dense<0.000000e+00> : vector<64x196xf32>
    %275 = tpu.matmul %273, %274, %cst_288 {dimension_numbers = #tpu.dot_dimension_numbers<[1], [0], [0], [1], [0, 0, 1, 1], [], []>} : vector<64x209xf32>, vector<209x196xf32>, vector<64x196xf32> -> vector<64x196xf32>
    %c0_289 = arith.constant 0 : index
    %c0_290 = arith.constant 0 : index
    %c0_291 = arith.constant 0 : index
    %276 = vector.load %arg7[%c0_289, %c0_290, %c0_291] : memref<1x64x196xf32, #tpu.memory_space<vmem>>, vector<1x64x196xf32>
    %277 = vector.shape_cast %276 : vector<1x64x196xf32> to vector<64x196xf32>
    %278 = vector.shape_cast %275 : vector<64x196xf32> to vector<1x64x196xf32>
    tpu.vector_store %arg7[%c0_289, %c0_290, %c0_291], %278 {strides = array<i32>} : memref<1x64x196xf32, #tpu.memory_space<vmem>>, vector<1x64x196xf32>,
    return
  }
  func.func @transform_0(%arg0: i32) -> (i32, i32, i32, i32) {
    %c0_i32 = arith.constant 0 : i32
    %c0_i32_0 = arith.constant 0 : i32
    %c0_i32_1 = arith.constant 0 : i32
    %c0_i32_2 = arith.constant 0 : i32
    return %arg0, %c0_i32, %c0_i32_0, %c0_i32_1 : i32, i32, i32, i32
  }
  func.func @transform_1(%arg0: i32) -> (i32, i32) {
    %c0_i32 = arith.constant 0 : i32
    %c0_i32_0 = arith.constant 0 : i32
    %c0_i32_1 = arith.constant 0 : i32
    return %c0_i32, %c0_i32_0 : i32, i32
  }
  func.func @transform_2(%arg0: i32) -> (i32, i32) {
    %c0_i32 = arith.constant 0 : i32
    %c0_i32_0 = arith.constant 0 : i32
    %c0_i32_1 = arith.constant 0 : i32
    return %c0_i32, %c0_i32_0 : i32, i32
  }
  func.func @transform_3(%arg0: i32) -> (i32, i32, i32) {
    %c0_i32 = arith.constant 0 : i32
    %c0_i32_0 = arith.constant 0 : i32
    %c0_i32_1 = arith.constant 0 : i32
    %c0_i32_2 = arith.constant 0 : i32
    return %c0_i32, %c0_i32_0, %c0_i32_1 : i32, i32, i32
  }
  func.func @transform_4(%arg0: i32) -> (i32, i32) {
    %c0_i32 = arith.constant 0 : i32
    %c0_i32_0 = arith.constant 0 : i32
    %c0_i32_1 = arith.constant 0 : i32
    return %c0_i32, %c0_i32_0 : i32, i32
  }
  func.func @transform_5(%arg0: i32) -> (i32, i32) {
    %c0_i32 = arith.constant 0 : i32
    %c0_i32_0 = arith.constant 0 : i32
    %c0_i32_1 = arith.constant 0 : i32
    return %c0_i32, %c0_i32_0 : i32, i32
  }
  func.func @transform_6(%arg0: i32) -> (i32, i32, i32) {
    %c0_i32 = arith.constant 0 : i32
    %c0_i32_0 = arith.constant 0 : i32
    %c0_i32_1 = arith.constant 0 : i32
    return %arg0, %c0_i32, %c0_i32_0 : i32, i32, i32
  }
}

</mosaic_0001>

<bundles_post_ra>
// kernel: lenet_forward.2
= control target key start
LH: loop header
LB: loop body
LE: loop exit
PB: predicated region body
PF: predicated region fallthrough
CT: control target
= control target key end

     0   :  { %s8075_s21 = smov 0   ;;  %s10884_s0 = inlined_call_operand.vmem [shape: f32[2,4,9,225], index: 0, kind: input, shape index: {}]   ;;  %s10885_s1 = inlined_call_operand.vmem [shape: f32[32,9], index: 1, kind: input, shape index: {}]   ;;  %s10886_s2 = inlined_call_operand.vmem [shape: f32[32,1], index: 2, kind: input, shape index: {}]   ;;  %s10887_s3 = inlined_call_operand.vmem [shape: f32[9,64,32], index: 3, kind: input, shape index: {}]   ;;  %s10888_s4 = inlined_call_operand.vmem [shape: f32[64,1], index: 4, kind: input, shape index: {}]   ;;  %s10889_s5 = inlined_call_operand.vmem [shape: f32[209,196], index: 5, kind: input, shape index: {}]   ;;  %s10890_s6 = inlined_call_operand.vmem [shape: f32[2,64,196], index: 6, kind: output, shape index: {}]  }
   0x1 LB: > { %s6407_s22 = sadd.s32 4294967295, %s8032_s21   ;;  %p6411_p0 = scmp.ge.s32.totalorder %s8032_s21, 1  ;;  %s8032_s21 = sphi %s8075_s21, %s16_s21  }
   0x2   : > { %p212_p1 = scmp.lt.s32.totalorder %s8032_s21, 3 }
   0x4   : > { %p213_p2 = pnand %p6411_p0, %p212_p1 }
   0x6   : > { %216 = sbr.rel (%p213_p2) target bundleno = 1391 (0x56f), region = 44 }
   0xd   : > { %p242_p3 = scmp.lt.s32.totalorder %s6407_s22, 1  ;;  %v10892_v0 = vmov 0.0   ;;  %vm297_vm0 = vcmask 1040384   ;;  %v8035_v1 = vmov 0   ;;  %v256_v2 = vld [vmem:[%s10886_s2] sm:$0xff]  ;;  %v258_v3 = vld [vmem:[%s10886_s2 + $0x10] sm:$0xff] }
   0xe   : > { %368 = vmatprep.mubr.f32.mxu0 %v10892_v0  ;;  %485 = vmatprep.mubr.f32.mxu1 %v10892_v0  ;;  %v257_v4 = vld [vmem:[%s10886_s2 + $0x8] sm:$0xff]  ;;  %vm8036_vm1 = vmmov 1   ;;  %v259_v6 = vld [vmem:[%s10886_s2 + $0x18] sm:$0xff]  ;;  %v252_v18 = vld [vmem:[%s10885_s1] sm:$0xff]  ;;  %vm284_vm3 = vcmask 72704   ;;  %vm402_vm4 = vcmask 793600  }
   0xf   : > { %s11001_s22 = smov (!%p242_p3, %s6407_s22), 1  ;;  %7712 = vset.pattern.permute.xlu0 %v8035_v1  ;;  %7713 = vset.pattern.permute.xlu1 %v8035_v1  ;;  %vm8105_vm2 = vmpackc.low %vm297_vm0, %vm8036_vm1  ;;  %v253_v32 = vld [vmem:[%s10885_s1 + $0x8] sm:$0xff]  ;;  %v254_v33 = vld [vmem:[%s10885_s1 + $0x10] sm:$0xff]  ;;  %s8037_s19 = smov 127   ;;  %vm802_vm5 = vcmask 261120   ;;  %vm1110_vm6 = vcmask 1039360  }
  0x10   : > { %266 = vperm.xlu0 %7712, %v256_v2   ;;  %s6816_s27 = sshll.u32 %s11001_s22, 7  ;;  %276 = vperm.xlu1 %7713, %v258_v3   ;;  %v255_v34 = vld [vmem:[%s10885_s1 + $0x18] sm:$0xff]  ;;  %s8038_s26 = smov 113   ;;  %vm1839_vm7 = vcmask 924672   ;;  %vm2228_vm8 = vcmask 916480   ;;  %vm6191_vm9 = vcmask 662528  }
  0x11   : > { %s8102_s8 = scalar_lea.vmem %s10884_s0, %s6816_s27  ;;  %s8039_s11 = smov 112   ;;  %vm6336_vm10 = vcmask 556032  }
  0x12   : > { %v261_v7 = vld [vmem:[%s8102_s8 + $0x8] sm:$0xff]  ;;  %v263_v8 = vld [vmem:[%s8102_s8 + $0x18] sm:$0x1]  ;;  %v260_v12 = vld [vmem:[%s8102_s8] sm:$0xff]  ;;  %s10855_s16 = scalar_lea.vmem %s10890_s6, %s6816_s27 }
  0x13   : > { %v6423_v9 = vld [vmem:[%s8102_s8 + $0x28] sm:$0xff]  ;;  %v6818_v10 = vpack.c.bf16 %v263_v8, %v261_v7  ;;  %v6425_v11 = vld [vmem:[%s8102_s8 + $0x38] sm:$0x1]  ;;  %v262_v13 = vld [vmem:[%s8102_s8 + $0x10] sm:$0x1] }
  0x14   : > { %271 = vperm.xlu0 %7712, %v257_v4   ;;  %v6824_v14 = vpack.c.bf16 %v6425_v11, %v6423_v9  ;;  %v6821_v15 = vpack.c.bf16 %v262_v13, %v260_v12  ;;  %v6422_v16 = vld [vmem:[%s8102_s8 + $0x20] sm:$0xff]  ;;  %v6424_v17 = vld [vmem:[%s8102_s8 + $0x30] sm:$0x1]  ;;  %v6433_v19 = vld [vmem:[%s8102_s8 + $0x48] sm:$0xff]  ;;  %281 = vperm.xlu1 %7713, %v259_v6  }
  0x15   : > { %6820 = vmatprep.subr.msk.bf16.mxu0 %vm8105_vm2, %v6818_v10  ;;  %v6827_v20 = vpack.c.bf16 %v6424_v17, %v6422_v16  ;;  %v6435_v21 = vld [vmem:[%s8102_s8 + $0x58] sm:$0x1]  ;;  %v6443_v22 = vld [vmem:[%s8102_s8 + $0x68] sm:$0xff]  ;;  %v6432_v26 = vld [vmem:[%s8102_s8 + $0x40] sm:$0xff] }
  0x16   : > { %v6445_v23 = vld [vmem:[%s8102_s8 + $0x78] sm:$0x1]  ;;  %6826 = vmatprep.subr.msk.bf16.mxu1 %vm8105_vm2, %v6824_v14  ;;  %6823 = vmatpush1.bf16.msk.msra.mxu0 %vm8105_vm2, %v6821_v15  ;;  %v6830_v24 = vpack.c.bf16 %v6435_v21, %v6433_v19  ;;  %v6434_v27 = vld [vmem:[%s8102_s8 + $0x50] sm:$0x1]  ;;  %v6442_v28 = vld [vmem:[%s8102_s8 + $0x60] sm:$0xff] }
  0x17   : > { %v6836_v25 = vpack.c.bf16 %v6445_v23, %v6443_v22  ;;  %6829 = vmatpush1.bf16.msk.msra.mxu1 %vm8105_vm2, %v6827_v20  ;;  %v6833_v29 = vpack.c.bf16 %v6434_v27, %v6432_v26  ;;  %v6444_v30 = vld [vmem:[%s8102_s8 + $0x70] sm:$0x1] }
  0x18   : > { %6832 = vmatprep.subr.msk.bf16.mxu0 %vm8105_vm2, %v6830_v24  ;;  %v6839_v31 = vpack.c.bf16 %v6444_v30, %v6442_v28 }
  0x19   : > { %6838 = vmatprep.subr.msk.bf16.mxu1 %vm8105_vm2, %v6836_v25  ;;  %6418 = vmatmul.mubr.msk.f32.vlgmr.msra.gmra.mrb[0].mxu0 %vm284_vm3, %v252_v18 }
  0x1a   : > { %6428 = vmatmul.mubr.msk.f32.vlgmr.msra.gmra.mrb[0].mxu1 %vm284_vm3, %v252_v18  ;;  %374 = vmatprep.mubr.f32.mxu0 %v10892_v0 }
  0x1b   : > { %491 = vmatprep.mubr.f32.mxu1 %v10892_v0  ;;  %6835 = vmatpush1.bf16.msk.msra.mxu0 %vm8105_vm2, %v6833_v29 }
  0x1c   : > { %6841 = vmatpush1.bf16.msk.msra.mxu1 %vm8105_vm2, %v6839_v31 }
  0x1d   : > { %6419 = vmatmul.mubr.msk.f32.gmra.mrb[2].mxu0 %vm284_vm3, %v253_v32 }
  0x1e   : > { %6429 = vmatmul.mubr.msk.f32.gmra.mrb[2].mxu1 %vm284_vm3, %v253_v32  ;;  %380 = vmatprep.mubr.f32.mxu0 %v10892_v0 }
  0x1f   : > { %497 = vmatprep.mubr.f32.mxu1 %v10892_v0 }
  0x21   : > { %6420 = vmatmul.mubr.msk.f32.gmra.mrb[4].mxu0 %vm284_vm3, %v254_v33 }
  0x22   : > { %6430 = vmatmul.mubr.msk.f32.gmra.mrb[4].mxu1 %vm284_vm3, %v254_v33  ;;  %386 = vmatprep.mubr.f32.mxu0 %v10892_v0 }
  0x23   : > { %503 = vmatprep.mubr.f32.mxu1 %v10892_v0 }
  0x25   : > { %6421 = vmatmul.mubr.msk.f32.gmra.mrb[6].mxu0 %vm284_vm3, %v255_v34 }
  0x26   : > { %6431 = vmatmul.mubr.msk.f32.gmra.mrb[6].mxu1 %vm284_vm3, %v255_v34  ;;  %602 = vmatprep.mubr.f32.mxu0 %v10892_v0 }
  0x27   : > { %719 = vmatprep.mubr.f32.mxu1 %v10892_v0 }
  0x29   : > { %6438 = vmatmul.mubr.msk.f32.vlgmr.msra.gmra.mrb[8].mxu0 %vm284_vm3, %v252_v18 }
  0x2a   : > { %6448 = vmatmul.mubr.msk.f32.vlgmr.msra.gmra.mrb[8].mxu1 %vm284_vm3, %v252_v18  ;;  %608 = vmatprep.mubr.f32.mxu0 %v10892_v0 }
  0x2b   : > { %725 = vmatprep.mubr.f32.mxu1 %v10892_v0 }
  0x2d   : > { %6439 = vmatmul.mubr.msk.f32.gmra.mrb[10].mxu0 %vm284_vm3, %v253_v32 }
  0x2e   : > { %6449 = vmatmul.mubr.msk.f32.gmra.mrb[10].mxu1 %vm284_vm3, %v253_v32  ;;  %614 = vmatprep.mubr.f32.mxu0 %v10892_v0 }
  0x2f   : > { %731 = vmatprep.mubr.f32.mxu1 %v10892_v0 }
  0x31   : > { %6440 = vmatmul.mubr.msk.f32.gmra.mrb[12].mxu0 %vm284_vm3, %v254_v33 }
  0x32   : > { %6450 = vmatmul.mubr.msk.f32.gmra.mrb[12].mxu1 %vm284_vm3, %v254_v33  ;;  %620 = vmatprep.mubr.f32.mxu0 %v10892_v0 }
  0x33   : > { %737 = vmatprep.mubr.f32.mxu1 %v10892_v0 }
  0x35   : > { %6441 = vmatmul.mubr.msk.f32.gmra.mrb[14].mxu0 %vm284_vm3, %v255_v34 }
  0x36   : > { %6451 = vmatmul.mubr.msk.f32.gmra.mrb[14].mxu1 %vm284_vm3, %v255_v34  ;;  %891 = vmatprep.mubr.f32.mxu0 %v10892_v0 }
  0x37   : > { %903 = vmatprep.mubr.f32.mxu1 %v10892_v0 }
  0x8f   : > { %v8188_v35 = vpop.permute.xlu0 %266  ;;  %v8205_v56 = vpop.permute.xlu1 %276 }
  0x93   : > { %v8194_v41 = vpop.permute.xlu0 %271  ;;  %v8230_v12 = vpop.permute.xlu1 %281 }
  0xec   : > { %v370_v36 = vpop.f32.mrb[0].mxu0 }
  0xed   : > { %v371_v37 = vadd.f32 %v370_v36, %v8188_v35  ;;  %v487_v38 = vpop.f32.mrb[0].mxu1  ;;  %v372_v39 = vpop.f32.mrb[1].mxu0 }
  0xee   : > { %v8192_v40 = vadd.f32 %v487_v38, %v8188_v35  ;;  %v373_v42 = vadd.f32 %v372_v39, %v8188_v35  ;;  %v489_v43 = vpop.f32.mrb[1].mxu1 }
  0xef   : > { %v393_v44 = vmax.f32 %v371_v37, 0.0  ;;  %v490_v45 = vadd.f32 %v489_v43, %v8188_v35 }
  0xf0   : > { %v510_v46 = vmax.f32 %v8192_v40, 0.0  ;;  %v394_v47 = vmax.f32 %v373_v42, 0.0  ;;  %v376_v48 = vpop.f32.mrb[2].mxu0 }
  0xf1   : > { %v511_v49 = vmax.f32 %v490_v45, 0.0  ;;  %v377_v50 = vadd.f32 %v376_v48, %v8194_v41  ;;  %v493_v51 = vpop.f32.mrb[2].mxu1  ;;  %v378_v52 = vpop.f32.mrb[3].mxu0 }
  0xf2   : > { %403 = vst.msk [vmem:[#allocation2 + $0x8] sm:$0xff] %vm402_vm4, %v394_v47  ;;  %v8202_v53 = vadd.f32 %v493_v51, %v8194_v41  ;;  %v379_v54 = vadd.f32 %v378_v52, %v8194_v41  ;;  %v495_v55 = vpop.f32.mrb[3].mxu1 }
  0xf3   : > { %520 = vst.msk [vmem:[#allocation2 + $0x48] sm:$0xff] %vm402_vm4, %v511_v49  ;;  %v395_v57 = vmax.f32 %v377_v50, 0.0  ;;  %v496_v58 = vadd.f32 %v495_v55, %v8194_v41 }
  0xf4   : > { %v512_v59 = vmax.f32 %v8202_v53, 0.0  ;;  %v396_v60 = vmax.f32 %v379_v54, 0.0  ;;  %v382_v61 = vpop.f32.mrb[4].mxu0  ;;  %v8371_v53 = vld [vmem:[%s10887_s3 + $0x40] sm:$0xff] }
  0xf5   : > { %v513_v62 = vmax.f32 %v496_v58, 0.0  ;;  %v8211_v63 = vadd.f32 %v382_v61, %v8205_v56  ;;  %v384_v1 = vpop.f32.mrb[5].mxu0  ;;  %v499_v2 = vpop.f32.mrb[4].mxu1  ;;  %v8213_v3 = vpack.c.bf16 %v395_v57, %v393_v44 }
  0xf6   : > { %405 = vst.msk [vmem:[#allocation2 + $0x18] sm:$0xff] %vm402_vm4, %v396_v60  ;;  %v385_v4 = vadd.f32 %v384_v1, %v8205_v56  ;;  %v8218_v5 = vadd.f32 %v499_v2, %v8205_v56  ;;  %v501_v6 = vpop.f32.mrb[5].mxu1  ;;  %v8224_v7 = vpack.c.bf16 %v512_v59, %v510_v46 }
  0xf7   : > { %522 = vst.msk [vmem:[#allocation2 + $0x58] sm:$0xff] %vm402_vm4, %v513_v62  ;;  %v397_v8 = vmax.f32 %v8211_v63, 0.0  ;;  %v502_v9 = vadd.f32 %v501_v6, %v8205_v56 }
  0xf8   : > { %v398_v10 = vmax.f32 %v385_v4, 0.0  ;;  %v514_v11 = vmax.f32 %v8218_v5, 0.0  ;;  %v388_v13 = vpop.f32.mrb[6].mxu0 }
  0xf9   : > { %v515_v14 = vmax.f32 %v502_v9, 0.0  ;;  %v8233_v15 = vadd.f32 %v388_v13, %v8230_v12  ;;  %v505_v16 = vpop.f32.mrb[6].mxu1  ;;  %v390_v17 = vpop.f32.mrb[7].mxu0  ;;  %v8235_v18 = vld [vmem:[#allocation2 + $0x8] sm:$0xff] }
  0xfa   : > { %407 = vst.msk [vmem:[#allocation2 + $0x28] sm:$0xff] %vm402_vm4, %v398_v10  ;;  %v8239_v19 = vadd.f32 %v505_v16, %v8230_v12  ;;  %v391_v20 = vadd.f32 %v390_v17, %v8230_v12  ;;  %v507_v21 = vpop.f32.mrb[7].mxu1  ;;  %v8243_v22 = vpack.i.bf16 %v8235_v18, %v393_v44  ;;  %v795_v38 = vld [vmem:[#allocation2 + $0x48] sm:$0xff] }
  0xfb   : > { %524 = vst.msk [vmem:[#allocation2 + $0x68] sm:$0xff] %vm402_vm4, %v515_v14  ;;  %v399_v23 = vmax.f32 %v8233_v15, 0.0  ;;  %v508_v24 = vadd.f32 %v507_v21, %v8230_v12 }
  0xfc   : > { %v516_v25 = vmax.f32 %v8239_v19, 0.0  ;;  %v400_v26 = vmax.f32 %v391_v20, 0.0  ;;  %v604_v27 = vpop.f32.mrb[8].mxu0  ;;  %7715 = vrot.lane.b32.xlu0 %v8243_v22, %s8037_s19 }
  0xfd   : > { %v517_v28 = vmax.f32 %v508_v24, 0.0  ;;  %v8252_v29 = vadd.f32 %v604_v27, %v8188_v35  ;;  %v721_v30 = vpop.f32.mrb[8].mxu1  ;;  %v606_v31 = vpop.f32.mrb[9].mxu0  ;;  %v8254_v32 = vld [vmem:[#allocation2 + $0x18] sm:$0xff]  ;;  %v8256_v33 = vpack.c.bf16 %v399_v23, %v397_v8  ;;  %v8327_v24 = vpack.i.bf16 %v795_v38, %v510_v46 }
  0xfe   : > { %409 = vst.msk [vmem:[#allocation2 + $0x38] sm:$0xff] %vm402_vm4, %v400_v26  ;;  %v8260_v34 = vadd.f32 %v721_v30, %v8188_v35  ;;  %v607_v36 = vadd.f32 %v606_v31, %v8188_v35  ;;  %v723_v37 = vpop.f32.mrb[9].mxu1  ;;  %v8263_v39 = vld [vmem:[#allocation2 + $0x58] sm:$0xff]  ;;  %v8266_v42 = vpack.i.bf16 %v8254_v32, %v395_v57  ;;  %v8272_v43 = vpack.c.bf16 %v516_v25, %v514_v11 }
  0xff   : > { %526 = vst.msk [vmem:[#allocation2 + $0x78] sm:$0xff] %vm402_vm4, %v517_v28  ;;  %v627_v44 = vmax.f32 %v8252_v29, 0.0  ;;  %v724_v45 = vadd.f32 %v723_v37, %v8188_v35  ;;  %v8278_v47 = vpack.c.bf16 %v8263_v39, %v795_v38  ;;  %v6850_v38 = vpack.c.bf16 %v8254_v32, %v8235_v18 }
 0x100   : > { %v744_v48 = vmax.f32 %v8260_v34, 0.0  ;;  %v628_v49 = vmax.f32 %v607_v36, 0.0  ;;  %v610_v50 = vpop.f32.mrb[10].mxu0  ;;  %7720 = vrot.lane.b32.xlu1 %v8266_v42, %s8037_s19 }
 0x101   : > { %v745_v51 = vmax.f32 %v724_v45, 0.0  ;;  %v8284_v52 = vadd.f32 %v610_v50, %v8194_v41  ;;  %v727_v54 = vpop.f32.mrb[10].mxu1  ;;  %6843 = vmatprep.subr.bf16.mxu0 %v8278_v47  ;;  %7182 = vmatprep.subr.bf16.mxu1 %v8278_v47  ;;  %v612_v35 = vpop.f32.mrb[11].mxu0  ;;  %v8288_v55 = vld [vmem:[#allocation2 + $0x28] sm:$0xff]  ;;  %v8355_v45 = vpack.i.bf16 %v8263_v39, %v512_v59  ;;  %v8376_v59 = vld [vmem:[%s10887_s3 + $0x50] sm:$0xff] }
 0x102   : > { %637 = vst.msk [vmem:[#allocation2 + $0x88] sm:$0xff] %vm402_vm4, %v628_v49  ;;  %v8292_v57 = vadd.f32 %v727_v54, %v8194_v41  ;;  %v613_v58 = vadd.f32 %v612_v35, %v8194_v41  ;;  %v729_v60 = vpop.f32.mrb[11].mxu1  ;;  %6845 = vmatpush1.bf16.msra.mxu0 %v8224_v7  ;;  %7184 = vmatpush1.bf16.msra.mxu1 %v8224_v7  ;;  %v799_v17 = vld [vmem:[#allocation2 + $0x68] sm:$0xff] }
 0x103   : > { %v8298_v61 = vpack.i.bf16 %v8288_v55, %v397_v8  ;;  %754 = vst.msk [vmem:[#allocation2 + $0xc8] sm:$0xff] %vm402_vm4, %v745_v51  ;;  %v629_v62 = vmax.f32 %v8284_v52, 0.0  ;;  %v730_v63 = vadd.f32 %v729_v60, %v8194_v41  ;;  %v8366_v18 = vpack.i.bf16 %v799_v17, %v514_v11  ;;  %v8467_v52 = vld [vmem:[%s10887_s3 + $0x8] sm:$0xff] }
 0x104   : > { %v746_v1 = vmax.f32 %v8292_v57, 0.0  ;;  %v630_v2 = vmax.f32 %v613_v58, 0.0  ;;  %v616_v4 = vpop.f32.mrb[12].mxu0 }
 0x105   : > { %7725 = vrot.lane.b32.xlu0 %v8298_v61, %s8037_s19  ;;  %v747_v6 = vmax.f32 %v730_v63, 0.0  ;;  %v8307_v9 = vadd.f32 %v616_v4, %v8205_v56  ;;  %v733_v10 = vpop.f32.mrb[12].mxu1  ;;  %v618_v8 = vpop.f32.mrb[13].mxu0  ;;  %v8309_v13 = vld [vmem:[#allocation2 + $0x38] sm:$0xff]  ;;  %v8315_v41 = vpack.c.bf16 %v629_v62, %v627_v44  ;;  %v8397_v63 = vld [vmem:[%s10887_s3 + $0x48] sm:$0xff] }
 0x106   : > { %639 = vst.msk [vmem:[#allocation2 + $0x98] sm:$0xff] %vm402_vm4, %v630_v2  ;;  %v8319_v14 = vadd.f32 %v733_v10, %v8205_v56  ;;  %v619_v15 = vadd.f32 %v618_v8, %v8205_v56  ;;  %v735_v16 = vpop.f32.mrb[13].mxu1  ;;  %v801_v20 = vld [vmem:[#allocation2 + $0x78] sm:$0xff]  ;;  %v8323_v21 = vpack.i.bf16 %v8309_v13, %v399_v23  ;;  %v8343_v40 = vpack.c.bf16 %v746_v1, %v744_v48 }
 0x107   : > { %756 = vst.msk [vmem:[#allocation2 + $0xd8] sm:$0xff] %vm402_vm4, %v747_v6  ;;  %v631_v26 = vmax.f32 %v8307_v9, 0.0  ;;  %v736_v27 = vadd.f32 %v735_v16, %v8205_v56  ;;  %v8332_v28 = vpack.c.bf16 %v801_v20, %v799_v17  ;;  %v6854_v58 = vpack.c.bf16 %v8309_v13, %v8288_v55  ;;  %v8415_v4 = vld [vmem:[%s10887_s3 + $0x58] sm:$0xff]  ;;  %v8450_v13 = vld [vmem:[%s10887_s3] sm:$0xff] }
 0x108   : > { %v748_v30 = vmax.f32 %v8319_v14, 0.0  ;;  %v632_v31 = vmax.f32 %v619_v15, 0.0  ;;  %v622_v36 = vpop.f32.mrb[14].mxu0  ;;  %7730 = vrot.lane.b32.xlu1 %v8323_v21, %s8037_s19  ;;  %v8455_v15 = vld [vmem:[%s10887_s3 + $0x60] sm:$0xff]  ;;  %v8530_v14 = vld [vmem:[%s10887_s3 + $0x78] sm:$0xff] }
 0x109   : > { %7735 = vrot.lane.b32.xlu0 %v8327_v24, %s8037_s19  ;;  %v749_v46 = vmax.f32 %v736_v27, 0.0  ;;  %v8346_v56 = vadd.f32 %v622_v36, %v8230_v12  ;;  %v739_v23 = vpop.f32.mrb[14].mxu1  ;;  %6847 = vmatprep.subr.bf16.mxu0 %v8332_v28  ;;  %v624_v37 = vpop.f32.mrb[15].mxu0  ;;  %v1286_v5 = vld [vmem:[#allocation2 + $0x88] sm:$0xff]  ;;  %v8510_v36 = vld [vmem:[%s10887_s3 + $0x70] sm:$0xff] }
 0x10a   : > { %7183 = vmatprep.subr.bf16.mxu1 %v8332_v28  ;;  %641 = vst.msk [vmem:[#allocation2 + $0xa8] sm:$0xff] %vm402_vm4, %v632_v31  ;;  %v8359_v49 = vadd.f32 %v739_v23, %v8230_v12  ;;  %v625_v50 = vadd.f32 %v624_v37, %v8230_v12  ;;  %v741_v51 = vpop.f32.mrb[15].mxu1  ;;  %6849 = vmatpush1.bf16.msra.mxu0 %v8272_v43  ;;  %v8504_v31 = vld [vmem:[%s10887_s3 + $0x10] sm:$0xff]  ;;  %v8580_v23 = vld [vmem:[%s10887_s3 + $0x38] sm:$0xff]  ;;  %v766_v37 = vld [vmem:[%s10888_s4 + $0x28] sm:$0xff] }
 0x10b   : > { %7185 = vmatpush1.bf16.msra.mxu1 %v8272_v43  ;;  %758 = vst.msk [vmem:[#allocation2 + $0xe8] sm:$0xff] %vm402_vm4, %v749_v46  ;;  %v633_v32 = vmax.f32 %v8346_v56, 0.0  ;;  %v742_v39 = vadd.f32 %v741_v51, %v8230_v12  ;;  %6851 = vmatprep.subr.bf16.mxu0 %v6850_v38  ;;  %v8392_v12 = vpack.i.bf16 %v801_v20, %v516_v25  ;;  %v1456_v25 = vld [vmem:[#allocation2 + $0xc8] sm:$0xff]  ;;  %v8568_v56 = vld [vmem:[%s10887_s3 + $0x30] sm:$0xff] }
 0x10c   : > { %v750_v11 = vmax.f32 %v8359_v49, 0.0  ;;  %v634_v54 = vmax.f32 %v625_v50, 0.0  ;;  %7740 = vrot.lane.b32.xlu1 %v8355_v45, %s8037_s19  ;;  %v8409_v19 = vpack.i.bf16 %v1286_v5, %v627_v44  ;;  %v8475_v9 = vpack.i.bf16 %v1456_v25, %v744_v48  ;;  %v8482_v20 = vld [vmem:[%s10887_s3 + $0x68] sm:$0xff]  ;;  %v767_v38 = vld [vmem:[%s10888_s4 + $0x30] sm:$0xff] }
 0x10d   : > { %7745 = vrot.lane.b32.xlu0 %v8366_v18, %s8037_s19  ;;  %v751_v35 = vmax.f32 %v742_v39, 0.0  ;;  %6460 = vmatmul.mubr.msk.f32.vlgmr.msra.gmra.mrb[16].mxu0 %vm802_vm5, %v8371_v53  ;;  %v1288_v60 = vld [vmem:[#allocation2 + $0x98] sm:$0xff]  ;;  %v8403_v2 = vpack.c.bf16 %v633_v32, %v631_v26  ;;  %v8556_v46 = vld [vmem:[%s10887_s3 + $0x28] sm:$0xff] }
 0x10e   : > { %6462 = vmatmul.mubr.msk.f32.vlgmr.msra.gmra.mrb[16].mxu1 %vm802_vm5, %v8376_v59  ;;  %643 = vst.msk [vmem:[#allocation2 + $0xb8] sm:$0xff] %vm402_vm4, %v634_v54  ;;  %6853 = vmatpush1.bf16.msra.mxu0 %v8213_v3  ;;  %v1458_v55 = vld [vmem:[#allocation2 + $0xd8] sm:$0xff]  ;;  %v8417_v6 = vpack.c.bf16 %v1288_v60, %v1286_v5  ;;  %v8423_v3 = vpack.c.bf16 %v750_v11, %v748_v30 }
 0x10f   : > { %897 = vmatprep.mubr.f32.mxu0 %v10892_v0  ;;  %760 = vst.msk [vmem:[#allocation2 + $0xf8] sm:$0xff] %vm402_vm4, %v751_v35  ;;  %6855 = vmatprep.subr.bf16.mxu0 %v6854_v58  ;;  %v8427_v29 = vpack.c.bf16 %v1458_v55, %v1456_v25  ;;  %v8440_v10 = vpack.i.bf16 %v1288_v60, %v629_v62 }
 0x110   : > { %909 = vmatprep.mubr.f32.mxu1 %v10892_v0  ;;  %7750 = vrot.lane.b32.xlu1 %v8392_v12, %s8037_s19  ;;  %v7779_v34 = vpack.i.bf16 %v1458_v55, %v746_v1  ;;  %v8524_v1 = vld [vmem:[%s10887_s3 + $0x18] sm:$0xff] }
 0x111   : > { %7755 = vrot.lane.b32.xlu0 %v8409_v19, %s8037_s19  ;;  %v1290_v44 = vld [vmem:[#allocation2 + $0xa8] sm:$0xff]  ;;  %6461 = vmatmul.mubr.msk.f32.gmra.mrb[18].mxu0 %vm802_vm5, %v8397_v63 }
 0x112   : > { %6463 = vmatmul.mubr.msk.f32.gmra.mrb[18].mxu1 %vm802_vm5, %v8415_v4  ;;  %6857 = vmatpush1.bf16.msra.mxu0 %v8256_v33  ;;  %v8444_v8 = vpack.i.bf16 %v1290_v44, %v631_v26  ;;  %v1460_v16 = vld [vmem:[#allocation2 + $0xe8] sm:$0xff] }
 0x113   : > { %1028 = vmatprep.mubr.f32.mxu0 %v10892_v0  ;;  %915 = vmatprep.mubr.f32.mxu1 %v10892_v0  ;;  %v7784_v48 = vpack.i.bf16 %v1460_v16, %v748_v30  ;;  %v8543_v30 = vld [vmem:[%s10887_s3 + $0x20] sm:$0xff] }
 0x114   : > { %7760 = vrot.lane.b32.xlu1 %v8440_v10, %s8037_s19 }
 0x115   : > { %7765 = vrot.lane.b32.xlu0 %v8444_v8, %s8037_s19  ;;  %v1292_v33 = vld [vmem:[#allocation2 + $0xb8] sm:$0xff]  ;;  %6468 = vmatmul.mubr.msk.f32.vlgmr.msra.gmra.mrb[16].mxu0 %vm802_vm5, %v8450_v13 }
 0x116   : > { %6464 = vmatmul.mubr.msk.f32.gmra.mrb[20].mxu1 %vm802_vm5, %v8455_v15  ;;  %v8471_v62 = vpack.i.bf16 %v1292_v33, %v633_v32  ;;  %v1462_v17 = vld [vmem:[#allocation2 + $0xf8] sm:$0xff]  ;;  %1034 = vmatprep.mubr.f32.mxu0 %v10892_v0  ;;  %v8484_v26 = vpack.c.bf16 %v1292_v33, %v1290_v44 }
 0x117   : > { %921 = vmatprep.mubr.f32.mxu1 %v10892_v0  ;;  %v8486_v27 = vpack.c.bf16 %v1462_v17, %v1460_v16  ;;  %v7789_v57 = vpack.i.bf16 %v1462_v17, %v750_v11  ;;  %v8650_v17 = vld [vmem:[%s10887_s3 + $0x80] sm:$0xff] }
 0x118   : > { %7770 = vrot.lane.b32.xlu1 %v8471_v62, %s8037_s19 }
 0x119   : > { %7775 = vrot.lane.b32.xlu0 %v8475_v9, %s8037_s19  ;;  %6469 = vmatmul.mubr.msk.f32.gmra.mrb[18].mxu0 %vm802_vm5, %v8467_v52 }
 0x11a   : > { %6465 = vmatmul.mubr.msk.f32.gmra.mrb[22].mxu1 %vm802_vm5, %v8482_v20  ;;  %1040 = vmatprep.mubr.f32.mxu0 %v10892_v0 }
 0x11b   : > { %927 = vmatprep.mubr.f32.mxu1 %v10892_v0 }
 0x11c   : > { %7780 = vrot.lane.b32.xlu1 %v7779_v34, %s8037_s19 }
 0x11d   : > { %7785 = vrot.lane.b32.xlu0 %v7784_v48, %s8037_s19  ;;  %6470 = vmatmul.mubr.msk.f32.gmra.mrb[20].mxu0 %vm802_vm5, %v8504_v31 }
 0x11e   : > { %6466 = vmatmul.mubr.msk.f32.gmra.mrb[24].mxu1 %vm802_vm5, %v8510_v36  ;;  %1046 = vmatprep.mubr.f32.mxu0 %v10892_v0 }
 0x11f   : > { %933 = vmatprep.mubr.f32.mxu1 %v10892_v0 }
 0x120   : > { %7790 = vrot.lane.b32.xlu1 %v7789_v57, %s8037_s19 }
 0x121   : > { %7795 = vrot.lane.b32.xlu0 %v8243_v22, %s8038_s26  ;;  %6471 = vmatmul.mubr.msk.f32.gmra.mrb[22].mxu0 %vm802_vm5, %v8524_v1 }
 0x122   : > { %6467 = vmatmul.mubr.msk.f32.gmra.mrb[26].mxu1 %vm802_vm5, %v8530_v14  ;;  %1052 = vmatprep.mubr.f32.mxu0 %v10892_v0 }
 0x123   : > { %2514 = vmatprep.mubr.f32.mxu1 %v10892_v0 }
 0x124   : > { %7800 = vrot.lane.b32.xlu1 %v8266_v42, %s8038_s26 }
 0x125   : > { %7805 = vrot.lane.b32.xlu0 %v8327_v24, %s8038_s26  ;;  %6472 = vmatmul.mubr.msk.f32.gmra.mrb[24].mxu0 %vm802_vm5, %v8543_v30 }
 0x126   : > { %1058 = vmatprep.mubr.f32.mxu0 %v10892_v0 }
 0x128   : > { %7810 = vrot.lane.b32.xlu1 %v8355_v45, %s8038_s26 }
 0x129   : > { %7815 = vrot.lane.b32.xlu0 %v8298_v61, %s8038_s26  ;;  %6473 = vmatmul.mubr.msk.f32.gmra.mrb[26].mxu0 %vm802_vm5, %v8556_v46 }
 0x12a   : > { %1064 = vmatprep.mubr.f32.mxu0 %v10892_v0 }
 0x12c   : > { %7820 = vrot.lane.b32.xlu1 %v8323_v21, %s8038_s26 }
 0x12d   : > { %7825 = vrot.lane.b32.xlu0 %v8366_v18, %s8038_s26  ;;  %6474 = vmatmul.mubr.msk.f32.gmra.mrb[28].mxu0 %vm802_vm5, %v8568_v56 }
 0x12e   : > { %1070 = vmatprep.mubr.f32.mxu0 %v10892_v0 }
 0x130   : > { %7830 = vrot.lane.b32.xlu1 %v8392_v12, %s8038_s26 }
 0x131   : > { %7835 = vrot.lane.b32.xlu0 %v8243_v22, %s8039_s11  ;;  %6475 = vmatmul.mubr.msk.f32.gmra.mrb[30].mxu0 %vm802_vm5, %v8580_v23  ;;  %v761_v22 = vld [vmem:[%s10888_s4] sm:$0xff] }
 0x132   : > { %1211 = vmatprep.mubr.f32.mxu0 %v10892_v0 }
 0x134   : > { %7840 = vrot.lane.b32.xlu1 %v8266_v42, %s8039_s11  ;;  %v762_v42 = vld [vmem:[%s10888_s4 + $0x8] sm:$0xff] }
 0x135   : > { %7845 = vrot.lane.b32.xlu0 %v8298_v61, %s8039_s11  ;;  %v763_v61 = vld [vmem:[%s10888_s4 + $0x10] sm:$0xff] }
 0x138   : > { %7850 = vrot.lane.b32.xlu1 %v8323_v21, %s8039_s11  ;;  %v764_v21 = vld [vmem:[%s10888_s4 + $0x18] sm:$0xff] }
 0x139   : > { %7855 = vrot.lane.b32.xlu0 %v8327_v24, %s8039_s11  ;;  %v765_v24 = vld [vmem:[%s10888_s4 + $0x20] sm:$0xff] }
 0x13c   : > { %7860 = vrot.lane.b32.xlu1 %v8355_v45, %s8039_s11  ;;  %v768_v45 = vld [vmem:[%s10888_s4 + $0x38] sm:$0xff] }
 0x13d   : > { %7865 = vrot.lane.b32.xlu0 %v8366_v18, %s8039_s11 }
 0x140   : > { %7870 = vrot.lane.b32.xlu1 %v8392_v12, %s8039_s11 }
 0x141   : > { %7875 = vrot.lane.b32.xlu0 %v8409_v19, %s8038_s26 }
 0x144   : > { %7880 = vrot.lane.b32.xlu1 %v8440_v10, %s8038_s26 }
 0x145   : > { %7885 = vrot.lane.b32.xlu0 %v8475_v9, %s8038_s26 }
 0x148   : > { %7890 = vrot.lane.b32.xlu1 %v7779_v34, %s8038_s26 }
 0x149   : > { %7895 = vrot.lane.b32.xlu0 %v8444_v8, %s8038_s26 }
 0x14c   : > { %7905 = vrot.lane.b32.xlu1 %v8471_v62, %s8038_s26 }
 0x14d   : > { %7900 = vrot.lane.b32.xlu0 %v7784_v48, %s8038_s26 }
 0x150   : > { %7910 = vrot.lane.b32.xlu1 %v7789_v57, %s8038_s26 }
 0x151   : > { %7915 = vrot.lane.b32.xlu0 %v8409_v19, %s8039_s11 }
 0x154   : > { %7920 = vrot.lane.b32.xlu1 %v8440_v10, %s8039_s11 }
 0x155   : > { %7925 = vrot.lane.b32.xlu0 %v8444_v8, %s8039_s11 }
 0x158   : > { %7930 = vrot.lane.b32.xlu1 %v8471_v62, %s8039_s11 }
 0x159   : > { %7935 = vrot.lane.b32.xlu0 %v8475_v9, %s8039_s11 }
 0x15c   : > { %7940 = vrot.lane.b32.xlu1 %v7779_v34, %s8039_s11 }
 0x15d   : > { %7945 = vrot.lane.b32.xlu0 %v7784_v48, %s8039_s11 }
 0x160   : > { %7950 = vrot.lane.b32.xlu1 %v7789_v57, %s8039_s11 }
 0x161   : > { %2396 = vperm.xlu0 %7712, %v761_v22  }
 0x164   : > { %2401 = vperm.xlu1 %7713, %v762_v42  }
 0x165   : > { %2406 = vperm.xlu0 %7712, %v763_v61  }
 0x168   : > { %2411 = vperm.xlu1 %7713, %v764_v21  }
 0x169   : > { %2416 = vperm.xlu0 %7712, %v765_v24   ;;  %v8712_v24 = vld [vmem:[%s10887_s3 + $0x98] sm:$0xff] }
 0x16c   : > { %2421 = vperm.xlu1 %7713, %v766_v37  }
 0x16d   : > { %2426 = vperm.xlu0 %7712, %v767_v38  }
 0x16e   : > { %v7716_v49 = vpop.permute.xlu0 %7715 }
 0x16f   : > { %v7718_v50 = vunpack.i.h.bf16 %v7716_v49  ;;  %v7717_v51 = vunpack.i.l.bf16 %v7716_v49 }
 0x170   : > { %2431 = vperm.xlu1 %7713, %v768_v45  }
 0x171   : > { %v1111_v5 = vsel %vm1110_vm6, %v7717_v51, %v7718_v50 }
 0x172   : > { %v7721_v18 = vpop.permute.xlu1 %7720 }
 0x173   : > { %v7723_v32 = vunpack.i.h.bf16 %v7721_v18  ;;  %v7722_v39 = vunpack.i.l.bf16 %v7721_v18  ;;  %v8730_v18 = vld [vmem:[%s10887_s3 + $0xa0] sm:$0xff] }
 0x175   : > { %v1112_v11 = vsel %vm1110_vm6, %v7722_v39, %v7723_v32  ;;  %v6858_v54 = vpack.c.bf16 %v7723_v32, %v7718_v50 }
 0x176   : > { %v6860_v35 = vpack.c.bf16 %v1112_v11, %v1111_v5 }
 0x177   : > { %v7726_v58 = vpop.permute.xlu0 %7725  ;;  %6859 = vmatprep.subr.bf16.mxu0 %v6858_v54  ;;  %6915 = vmatprep.subr.bf16.mxu1 %v6858_v54 }
 0x178   : > { %6861 = vmatpush1.bf16.msra.mxu0 %v6860_v35  ;;  %6917 = vmatpush1.bf16.msra.mxu1 %v6860_v35  ;;  %v7728_v12 = vunpack.i.h.bf16 %v7726_v58  ;;  %v7727_v60 = vunpack.i.l.bf16 %v7726_v58  ;;  %v8747_v35 = vld [vmem:[%s10887_s3 + $0xa8] sm:$0xff] }
 0x17a   : > { %v7731_v19 = vpop.permute.xlu1 %7730  ;;  %v1113_v10 = vsel %vm1110_vm6, %v7727_v60, %v7728_v12 }
 0x17b   : > { %v8639_v25 = vpop.permute.xlu0 %7735  ;;  %v7733_v55 = vunpack.i.h.bf16 %v7731_v19  ;;  %v7732_v44 = vunpack.i.l.bf16 %v7731_v19 }
 0x17c   : > { %v7738_v22 = vunpack.i.h.bf16 %v8639_v25 }
 0x17d   : > { %v1114_v8 = vsel %vm1110_vm6, %v7732_v44, %v7733_v55  ;;  %v6862_v33 = vpack.c.bf16 %v7733_v55, %v7728_v12  ;;  %v7737_v55 = vunpack.i.l.bf16 %v8639_v25  ;;  %v8809_v25 = vld [vmem:[%s10887_s3 + $0xc8] sm:$0xff] }
 0x17e   : > { %v6864_v62 = vpack.c.bf16 %v1114_v8, %v1113_v10  ;;  %v8643_v9 = vpop.permute.xlu1 %7740 }
 0x17f   : > { %v8645_v16 = vpop.permute.xlu0 %7745  ;;  %6863 = vmatprep.subr.bf16.mxu0 %v6862_v33  ;;  %6919 = vmatprep.subr.bf16.mxu1 %v6862_v33  ;;  %v7743_v57 = vunpack.i.h.bf16 %v8643_v9  ;;  %v7742_v19 = vunpack.i.l.bf16 %v8643_v9  ;;  %v2692_v33 = vsel %vm1110_vm6, %v7737_v55, %v7738_v22 }
 0x180   : > { %6865 = vmatpush1.bf16.msra.mxu0 %v6864_v62  ;;  %6921 = vmatpush1.bf16.msra.mxu1 %v6864_v62  ;;  %v7748_v62 = vunpack.i.h.bf16 %v8645_v16  ;;  %v7747_v9 = vunpack.i.l.bf16 %v8645_v16 }
 0x181   : > { %6867 = vmatprep.subr.bf16.mxu0 %v8417_v6  ;;  %6923 = vmatprep.subr.bf16.mxu1 %v8278_v47  ;;  %v8668_v47 = vld [vmem:[%s10887_s3 + $0x88] sm:$0xff]  ;;  %v2693_v44 = vsel %vm1110_vm6, %v7742_v19, %v7743_v57 }
 0x182   : > { %v8654_v34 = vpop.permute.xlu1 %7750  ;;  %v2694_v16 = vsel %vm1110_vm6, %v7747_v9, %v7748_v62  ;;  %v9010_v9 = vld [vmem:[%s10887_s3 + $0x138] sm:$0xff] }
 0x183   : > { %v8656_v48 = vpop.permute.xlu0 %7755  ;;  %6484 = vmatmul.mubr.msk.f32.vlgmr.msra.gmra.mrb[16].mxu0 %vm802_vm5, %v8650_v17  ;;  %6588 = vmatmul.mubr.msk.f32.vlgmr.msra.gmra.mrb[28].mxu1 %vm802_vm5, %v8371_v53  ;;  %v7753_v10 = vunpack.i.h.bf16 %v8654_v34  ;;  %v7752_v8 = vunpack.i.l.bf16 %v8654_v34  ;;  %v6932_v34 = vpack.c.bf16 %v2693_v44, %v2692_v33  ;;  %10921 = vst [vmem:[#allocation7_spill] sm:$0xff] %v9010_v9 }
 0x184   : > { %6869 = vmatpush1.bf16.msra.mxu0 %v8315_v41  ;;  %6925 = vmatpush1.bf16.msra.mxu1 %v8224_v7  ;;  %v6930_v7 = vpack.c.bf16 %v7743_v57, %v7738_v22  ;;  %v7758_v22 = vunpack.i.h.bf16 %v8656_v48 }
 0x185   : > { %6871 = vmatprep.subr.bf16.mxu0 %v8484_v26  ;;  %6927 = vmatprep.subr.bf16.mxu1 %v8332_v28  ;;  %v8692_v28 = vld [vmem:[%s10887_s3 + $0x90] sm:$0xff]  ;;  %v6934_v57 = vpack.c.bf16 %v7753_v10, %v7748_v62 }
 0x186   : > { %v8673_v42 = vpop.permute.xlu1 %7760  ;;  %1217 = vmatprep.mubr.f32.mxu0 %v10892_v0  ;;  %2520 = vmatprep.mubr.f32.mxu1 %v10892_v0 }
 0x187   : > { %v8675_v61 = vpop.permute.xlu0 %7765  ;;  %6485 = vmatmul.mubr.msk.f32.gmra.mrb[18].mxu0 %vm802_vm5, %v8668_v47  ;;  %6589 = vmatmul.mubr.msk.f32.gmra.mrb[30].mxu1 %vm802_vm5, %v8397_v63 }
 0x188   : > { %6873 = vmatpush1.bf16.msra.mxu0 %v8403_v2  ;;  %6929 = vmatpush1.bf16.msra.mxu1 %v8272_v43 }
 0x189   : > { %6875 = vmatprep.subr.bf16.mxu0 %v8427_v29  ;;  %6931 = vmatprep.subr.bf16.mxu1 %v6930_v7  ;;  %v7763_v7 = vunpack.i.h.bf16 %v8673_v42 }
 0x18a   : > { %v8695_v53 = vpop.permute.xlu1 %7770  ;;  %1223 = vmatprep.mubr.f32.mxu0 %v10892_v0  ;;  %2526 = vmatprep.mubr.f32.mxu1 %v10892_v0 }
 0x18b   : > { %v8697_v21 = vpop.permute.xlu0 %7775  ;;  %6486 = vmatmul.mubr.msk.f32.gmra.mrb[20].mxu0 %vm802_vm5, %v8692_v28  ;;  %6590 = vmatmul.mubr.msk.f32.gmra.mrb[32].mxu1 %vm802_vm5, %v8376_v59 }
 0x18c   : > { %v7778_v63 = vunpack.i.h.bf16 %v8697_v21  ;;  %v7777_v43 = vunpack.i.l.bf16 %v8697_v21  ;;  %1229 = vmatprep.mubr.f32.mxu0 %v10892_v0  ;;  %2532 = vmatprep.mubr.f32.mxu1 %v10892_v0  ;;  %v9080_v21 = vld [vmem:[%s10887_s3 + $0x150] sm:$0xff] }
 0x18d   : > { %10928 = vst [vmem:[#allocation14_spill] sm:$0xff] %v9080_v21 }
 0x18e   : > { %v3115_v37 = vsel %vm1110_vm6, %v7777_v43, %v7778_v63  ;;  %v8717_v38 = vpop.permute.xlu1 %7780 }
 0x18f   : > { %v7786_v45 = vpop.permute.xlu0 %7785  ;;  %v7783_v49 = vunpack.i.h.bf16 %v8717_v38  ;;  %v7782_v59 = vunpack.i.l.bf16 %v8717_v38  ;;  %6487 = vmatmul.mubr.msk.f32.gmra.mrb[22].mxu0 %vm802_vm5, %v8712_v24  ;;  %6591 = vmatmul.mubr.msk.f32.gmra.mrb[34].mxu1 %vm802_vm5, %v8415_v4 }
 0x190   : > { %v7788_v50 = vunpack.i.h.bf16 %v7786_v45  ;;  %v7787_v51 = vunpack.i.l.bf16 %v7786_v45  ;;  %1235 = vmatprep.mubr.f32.mxu0 %v10892_v0  ;;  %2538 = vmatprep.mubr.f32.mxu1 %v10892_v0  ;;  %v7762_v45 = vunpack.i.l.bf16 %v8673_v42  ;;  %v7773_v42 = vunpack.i.h.bf16 %v8695_v53 }
 0x191   : > { %v3116_v32 = vsel %vm1110_vm6, %v7782_v59, %v7783_v49  ;;  %v7757_v59 = vunpack.i.l.bf16 %v8656_v48  ;;  %v8903_v48 = vld [vmem:[%s10887_s3 + $0x100] sm:$0xff] }
 0x192   : > { %v3117_v39 = vsel %vm1110_vm6, %v7787_v51, %v7788_v50  ;;  %v8736_v5 = vpack.c.bf16 %v3116_v32, %v3115_v37  ;;  %v7791_v11 = vpop.permute.xlu1 %7790  ;;  %v8826_v37 = vld [vmem:[%s10887_s3 + $0xd0] sm:$0xff]  ;;  %v7772_v51 = vunpack.i.l.bf16 %v8695_v53  ;;  %v7768_v53 = vunpack.i.h.bf16 %v8675_v61 }
 0x193   : > { %v7793_v54 = vunpack.i.h.bf16 %v7791_v11  ;;  %v7792_v4 = vunpack.i.l.bf16 %v7791_v11  ;;  %6488 = vmatmul.mubr.msk.f32.gmra.mrb[24].mxu0 %vm802_vm5, %v8730_v18  ;;  %6592 = vmatmul.mubr.msk.f32.gmra.mrb[36].mxu1 %vm802_vm5, %v8455_v15  ;;  %v8763_v15 = vld [vmem:[%s10887_s3 + $0xb0] sm:$0xff]  ;;  %v1649_v32 = vsel %vm1110_vm6, %v7757_v59, %v7758_v22 }
 0x194   : > { %1241 = vmatprep.mubr.f32.mxu0 %v10892_v0  ;;  %2544 = vmatprep.mubr.f32.mxu1 %v10892_v0 }
 0x195   : > { %v3118_v58 = vsel %vm1110_vm6, %v7792_v4, %v7793_v54  ;;  %v8750_v12 = vpack.c.bf16 %v7793_v54, %v7788_v50  ;;  %v1650_v50 = vsel %vm1110_vm6, %v7762_v45, %v7763_v7  ;;  %v1652_v54 = vsel %vm1110_vm6, %v7772_v51, %v7773_v42 }
 0x196   : > { %v8752_v60 = vpack.c.bf16 %v3118_v58, %v3117_v39  ;;  %v7767_v39 = vunpack.i.l.bf16 %v8675_v61  ;;  %v8908_v11 = vpack.c.bf16 %v1650_v50, %v1649_v32  ;;  %v8913_v4 = vpack.c.bf16 %v7773_v42, %v7768_v53  ;;  %v8925_v61 = vld [vmem:[%s10887_s3 + $0x108] sm:$0xff] }
 0x197   : > { %6489 = vmatmul.mubr.msk.f32.gmra.mrb[26].mxu0 %vm802_vm5, %v8747_v35  ;;  %6593 = vmatmul.mubr.msk.f32.gmra.mrb[38].mxu1 %vm802_vm5, %v8482_v20  ;;  %v8775_v20 = vld [vmem:[%s10887_s3 + $0xb8] sm:$0xff]  ;;  %v9045_v32 = vld [vmem:[%s10887_s3 + $0x148] sm:$0xff] }
 0x198   : > { %1247 = vmatprep.mubr.f32.mxu0 %v10892_v0  ;;  %2550 = vmatprep.mubr.f32.mxu1 %v10892_v0  ;;  %v1651_v19 = vsel %vm1110_vm6, %v7767_v39, %v7768_v53  ;;  %10925 = vst [vmem:[#allocation11_spill] sm:$0xff] %v9045_v32 }
 0x199   : > { %v8931_v44 = vpack.c.bf16 %v1652_v54, %v1651_v19 }
 0x19b   : > { %6490 = vmatmul.mubr.msk.f32.gmra.mrb[28].mxu0 %vm802_vm5, %v8763_v15  ;;  %6594 = vmatmul.mubr.msk.f32.gmra.mrb[40].mxu1 %vm802_vm5, %v8510_v36  ;;  %v8792_v36 = vld [vmem:[%s10887_s3 + $0xc0] sm:$0xff] }
 0x19c   : > { %1253 = vmatprep.mubr.f32.mxu0 %v10892_v0  ;;  %2556 = vmatprep.mubr.f32.mxu1 %v10892_v0 }
 0x19f   : > { %6491 = vmatmul.mubr.msk.f32.gmra.mrb[30].mxu0 %vm802_vm5, %v8775_v20  ;;  %6595 = vmatmul.mubr.msk.f32.gmra.mrb[42].mxu1 %vm802_vm5, %v8530_v14  ;;  %v2695_v14 = vsel %vm1110_vm6, %v7752_v8, %v7753_v10  ;;  %v8946_v10 = vld [vmem:[%s10887_s3 + $0x110] sm:$0xff] }
 0x1a0   : > { %1381 = vmatprep.mubr.f32.mxu0 %v10892_v0  ;;  %2627 = vmatprep.mubr.f32.mxu1 %v10892_v0  ;;  %v6936_v43 = vpack.c.bf16 %v2695_v14, %v2694_v16 }
 0x1a3   : > { %6500 = vmatmul.mubr.msk.f32.vlgmr.msra.gmra.mrb[16].mxu0 %vm802_vm5, %v8792_v36  ;;  %6596 = vmatmul.mubr.msk.f32.vlgmr.msra.gmra.mrb[28].mxu1 %vm802_vm5, %v8450_v13  ;;  %v8816_v13 = vpack.c.bf16 %v7763_v7, %v7758_v22 }
 0x1a4   : > { %6877 = vmatpush1.bf16.msra.mxu0 %v8343_v40  ;;  %6933 = vmatpush1.bf16.msra.mxu1 %v6932_v34 }
 0x1a5   : > { %6879 = vmatprep.subr.bf16.mxu0 %v8486_v27  ;;  %6935 = vmatprep.subr.bf16.mxu1 %v6934_v57 }
 0x1a6   : > { %1387 = vmatprep.mubr.f32.mxu0 %v10892_v0  ;;  %2633 = vmatprep.mubr.f32.mxu1 %v10892_v0 }
 0x1a7   : > { %6501 = vmatmul.mubr.msk.f32.gmra.mrb[18].mxu0 %vm802_vm5, %v8809_v25  ;;  %6597 = vmatmul.mubr.msk.f32.gmra.mrb[30].mxu1 %vm802_vm5, %v8467_v52  ;;  %v8841_v52 = vld [vmem:[%s10887_s3 + $0xd8] sm:$0xff] }
 0x1a8   : > { %6881 = vmatpush1.bf16.msra.mxu0 %v8423_v3  ;;  %6937 = vmatpush1.bf16.msra.mxu1 %v6936_v43 }
 0x1a9   : > { %6883 = vmatprep.subr.bf16.mxu0 %v8816_v13  ;;  %6939 = vmatprep.subr.bf16.mxu1 %v8427_v29 }
 0x1aa   : > { %1393 = vmatprep.mubr.f32.mxu0 %v10892_v0  ;;  %2639 = vmatprep.mubr.f32.mxu1 %v10892_v0 }
 0x1ab   : > { %6502 = vmatmul.mubr.msk.f32.gmra.mrb[20].mxu0 %vm802_vm5, %v8826_v37  ;;  %6598 = vmatmul.mubr.msk.f32.gmra.mrb[32].mxu1 %vm802_vm5, %v8504_v31  ;;  %v8852_v31 = vld [vmem:[%s10887_s3 + $0xe0] sm:$0xff] }
 0x1ac   : > { %1399 = vmatprep.mubr.f32.mxu0 %v10892_v0  ;;  %2645 = vmatprep.mubr.f32.mxu1 %v10892_v0 }
 0x1af   : > { %6503 = vmatmul.mubr.msk.f32.gmra.mrb[22].mxu0 %vm802_vm5, %v8841_v52  ;;  %6599 = vmatmul.mubr.msk.f32.gmra.mrb[34].mxu1 %vm802_vm5, %v8524_v1  ;;  %v8863_v1 = vld [vmem:[%s10887_s3 + $0xe8] sm:$0xff] }
 0x1b0   : > { %1405 = vmatprep.mubr.f32.mxu0 %v10892_v0  ;;  %2651 = vmatprep.mubr.f32.mxu1 %v10892_v0 }
 0x1b3   : > { %6504 = vmatmul.mubr.msk.f32.gmra.mrb[24].mxu0 %vm802_vm5, %v8852_v31  ;;  %6600 = vmatmul.mubr.msk.f32.gmra.mrb[36].mxu1 %vm802_vm5, %v8543_v30  ;;  %v8874_v30 = vld [vmem:[%s10887_s3 + $0xf0] sm:$0xff] }
 0x1b4   : > { %1411 = vmatprep.mubr.f32.mxu0 %v10892_v0  ;;  %2657 = vmatprep.mubr.f32.mxu1 %v10892_v0 }
 0x1b7   : > { %6505 = vmatmul.mubr.msk.f32.gmra.mrb[26].mxu0 %vm802_vm5, %v8863_v1  ;;  %6601 = vmatmul.mubr.msk.f32.gmra.mrb[38].mxu1 %vm802_vm5, %v8556_v46  ;;  %v8886_v46 = vld [vmem:[%s10887_s3 + $0xf8] sm:$0xff] }
 0x1b8   : > { %1417 = vmatprep.mubr.f32.mxu0 %v10892_v0  ;;  %2663 = vmatprep.mubr.f32.mxu1 %v10892_v0 }
 0x1bb   : > { %6506 = vmatmul.mubr.msk.f32.gmra.mrb[28].mxu0 %vm802_vm5, %v8874_v30  ;;  %6602 = vmatmul.mubr.msk.f32.gmra.mrb[40].mxu1 %vm802_vm5, %v8568_v56  ;;  %v8896_v56 = vpop.permute.xlu1 %7800 }
 0x1bc   : > { %1423 = vmatprep.mubr.f32.mxu0 %v10892_v0  ;;  %2669 = vmatprep.mubr.f32.mxu1 %v10892_v0  ;;  %v7803_v58 = vunpack.i.h.bf16 %v8896_v56  ;;  %v7802_v62 = vunpack.i.l.bf16 %v8896_v56 }
 0x1be   : > { %v1841_v57 = vsel %vm1839_vm7, %v7802_v62, %v7803_v58 }
 0x1bf   : > { %6507 = vmatmul.mubr.msk.f32.gmra.mrb[30].mxu0 %vm802_vm5, %v8886_v46  ;;  %6603 = vmatmul.mubr.msk.f32.gmra.mrb[42].mxu1 %vm802_vm5, %v8580_v23  ;;  %v8910_v23 = vpop.permute.xlu0 %7795  ;;  %v8985_v8 = vpop.permute.xlu1 %7810 }
 0x1c0   : > { %1551 = vmatprep.mubr.f32.mxu0 %v10892_v0  ;;  %2768 = vmatprep.mubr.f32.mxu1 %v10892_v0  ;;  %v7798_v55 = vunpack.i.h.bf16 %v8910_v23  ;;  %v7797_v34 = vunpack.i.l.bf16 %v8910_v23 }
 0x1c2   : > { %v1840_v43 = vsel %vm1839_vm7, %v7797_v34, %v7798_v55 }
 0x1c3   : > { %6516 = vmatmul.mubr.msk.f32.vlgmr.msra.gmra.mrb[16].mxu0 %vm802_vm5, %v8903_v48  ;;  %6604 = vmatmul.mubr.msk.f32.vlgmr.msra.gmra.mrb[28].mxu1 %vm802_vm5, %v8650_v17  ;;  %v8935_v17 = vpack.c.bf16 %v7803_v58, %v7798_v55  ;;  %v8991_v33 = vpop.permute.xlu0 %7805  ;;  %v9030_v42 = vpack.c.bf16 %v1841_v57, %v1840_v43  ;;  %v9063_v58 = vpack.c.bf16 %v7783_v49, %v7778_v63  ;;  %v9099_v49 = vld [vmem:[%s10887_s3 + $0x158] sm:$0xff] }
 0x1c4   : > { %6885 = vmatpush1.bf16.msra.mxu0 %v8908_v11  ;;  %6941 = vmatpush1.bf16.msra.mxu1 %v8343_v40  ;;  %v10891_v39 = vunpack.i.h.bf16 %v8991_v33  ;;  %10931 = vst [vmem:[#allocation17_spill] sm:$0xff] %v9099_v49  ;;  %v9156_v43 = vld [vmem:[%s10887_s3 + $0x178] sm:$0xff] }
 0x1c5   : > { %6887 = vmatprep.subr.bf16.mxu0 %v8913_v4  ;;  %6943 = vmatprep.subr.bf16.mxu1 %v8486_v27  ;;  %10941 = vst [vmem:[#allocation27_spill] sm:$0xff] %v9156_v43 }
 0x1c6   : > { %1557 = vmatprep.mubr.f32.mxu0 %v10892_v0  ;;  %2774 = vmatprep.mubr.f32.mxu1 %v10892_v0 }
 0x1c7   : > { %6517 = vmatmul.mubr.msk.f32.gmra.mrb[18].mxu0 %vm802_vm5, %v8925_v61  ;;  %6605 = vmatmul.mubr.msk.f32.gmra.mrb[30].mxu1 %vm802_vm5, %v8668_v47  ;;  %v8961_v47 = vld [vmem:[%s10887_s3 + $0x118] sm:$0xff]  ;;  %v7816_v14 = vpop.permute.xlu0 %7815 }
 0x1c8   : > { %6889 = vmatpush1.bf16.msra.mxu0 %v8931_v44  ;;  %6945 = vmatpush1.bf16.msra.mxu1 %v8423_v3  ;;  %10917 = vst [vmem:[#allocation3_spill] sm:$0xff] %v8961_v47  ;;  %v7818_v45 = vunpack.i.h.bf16 %v7816_v14  ;;  %v7817_v59 = vunpack.i.l.bf16 %v7816_v14 }
 0x1c9   : > { %6891 = vmatprep.subr.bf16.mxu0 %v8935_v17  ;;  %6947 = vmatprep.subr.bf16.mxu1 %v8816_v13 }
 0x1ca   : > { %1563 = vmatprep.mubr.f32.mxu0 %v10892_v0  ;;  %2780 = vmatprep.mubr.f32.mxu1 %v10892_v0  ;;  %v1842_v23 = vsel %vm1839_vm7, %v7817_v59, %v7818_v45 }
 0x1cb   : > { %6518 = vmatmul.mubr.msk.f32.gmra.mrb[20].mxu0 %vm802_vm5, %v8946_v10  ;;  %6606 = vmatmul.mubr.msk.f32.gmra.mrb[32].mxu1 %vm802_vm5, %v8692_v28  ;;  %v8972_v28 = vld [vmem:[%s10887_s3 + $0x120] sm:$0xff] }
 0x1cc   : > { %1569 = vmatprep.mubr.f32.mxu0 %v10892_v0  ;;  %2786 = vmatprep.mubr.f32.mxu1 %v10892_v0  ;;  %10918 = vst [vmem:[#allocation4_spill] sm:$0xff] %v8972_v28 }
 0x1cf   : > { %6519 = vmatmul.mubr.msk.f32.gmra.mrb[22].mxu0 %vm802_vm5, %v8961_v47  ;;  %6607 = vmatmul.mubr.msk.f32.gmra.mrb[34].mxu1 %vm802_vm5, %v8712_v24  ;;  %v8983_v24 = vld [vmem:[%s10887_s3 + $0x128] sm:$0xff] }
 0x1d0   : > { %1575 = vmatprep.mubr.f32.mxu0 %v10892_v0  ;;  %2792 = vmatprep.mubr.f32.mxu1 %v10892_v0  ;;  %10919 = vst [vmem:[#allocation5_spill] sm:$0xff] %v8983_v24 }
 0x1d3   : > { %6520 = vmatmul.mubr.msk.f32.gmra.mrb[24].mxu0 %vm802_vm5, %v8972_v28  ;;  %6608 = vmatmul.mubr.msk.f32.gmra.mrb[36].mxu1 %vm802_vm5, %v8730_v18  ;;  %v8998_v18 = vld [vmem:[%s10887_s3 + $0x130] sm:$0xff] }
 0x1d4   : > { %1581 = vmatprep.mubr.f32.mxu0 %v10892_v0  ;;  %2798 = vmatprep.mubr.f32.mxu1 %v10892_v0  ;;  %10920 = vst [vmem:[#allocation6_spill] sm:$0xff] %v8998_v18 }
 0x1d7   : > { %6521 = vmatmul.mubr.msk.f32.gmra.mrb[26].mxu0 %vm802_vm5, %v8983_v24  ;;  %6609 = vmatmul.mubr.msk.f32.gmra.mrb[38].mxu1 %vm802_vm5, %v8747_v35  ;;  %v7821_v35 = vpop.permute.xlu1 %7820 }
 0x1d8   : > { %1587 = vmatprep.mubr.f32.mxu0 %v10892_v0  ;;  %2804 = vmatprep.mubr.f32.mxu1 %v10892_v0  ;;  %v7823_v7 = vunpack.i.h.bf16 %v7821_v35  ;;  %v7822_v16 = vunpack.i.l.bf16 %v7821_v35 }
 0x1da   : > { %v1843_v51 = vsel %vm1839_vm7, %v7822_v16, %v7823_v7  ;;  %v9034_v56 = vpack.c.bf16 %v7823_v7, %v7818_v45  ;;  %v7812_v7 = vunpack.i.l.bf16 %v8985_v8  ;;  %v7826_v16 = vpop.permute.xlu0 %7825  ;;  %v7807_v45 = vunpack.i.l.bf16 %v8991_v33 }
 0x1db   : > { %6522 = vmatmul.mubr.msk.f32.gmra.mrb[28].mxu0 %vm802_vm5, %v8998_v18  ;;  %6610 = vmatmul.mubr.msk.f32.gmra.mrb[40].mxu1 %vm802_vm5, %v8763_v15  ;;  %v9023_v15 = vld [vmem:[%s10887_s3 + $0x140] sm:$0xff]  ;;  %v9055_v54 = vpack.c.bf16 %v1843_v51, %v1842_v23  ;;  %v7831_v57 = vpop.permute.xlu1 %7830 }
 0x1dc   : > { %1593 = vmatprep.mubr.f32.mxu0 %v10892_v0  ;;  %2810 = vmatprep.mubr.f32.mxu1 %v10892_v0  ;;  %10922 = vst [vmem:[#allocation8_spill] sm:$0xff] %v9023_v15  ;;  %v7833_v51 = vunpack.i.h.bf16 %v7831_v57  ;;  %v7832_v23 = vunpack.i.l.bf16 %v7831_v57 }
 0x1df   : > { %6523 = vmatmul.mubr.msk.f32.gmra.mrb[30].mxu0 %vm802_vm5, %v9010_v9  ;;  %6611 = vmatmul.mubr.msk.f32.gmra.mrb[42].mxu1 %vm802_vm5, %v8775_v20  ;;  %v7813_v20 = vunpack.i.h.bf16 %v8985_v8  ;;  %v9173_v8 = vld [vmem:[%s10887_s3 + $0x180] sm:$0xff] }
 0x1e0   : > { %1749 = vmatprep.mubr.f32.mxu0 %v10892_v0  ;;  %2897 = vmatprep.mubr.f32.mxu1 %v10892_v0  ;;  %10942 = vst [vmem:[#allocation28_spill] sm:$0xff] %v9173_v8 }
 0x1e1   : > { %v9025_v22 = vpop.f32.mrb[16].mxu1  ;;  %v9069_v19 = vpack.c.bf16 %v7813_v20, %v10891_v39  ;;  %v2039_v59 = vsel %vm1839_vm7, %v7812_v7, %v7813_v20  ;;  %v9166_v39 = vpop.permute.xlu1 %7840  ;;  %v10943_v20 = vunpack.i.h.bf16 %v8991_v33  ;;  %v7828_v7 = vunpack.i.h.bf16 %v7826_v16  ;;  %v9195_v33 = vld [vmem:[%s10887_s3 + $0x188] sm:$0xff] }
 0x1e2   : > { %10923 = vst [vmem:[#allocation9_spill] sm:$0xff] %v9025_v22  ;;  %v9028_v50 = vpop.f32.mrb[17].mxu1  ;;  %10944 = vst [vmem:[#allocation29_spill] sm:$0xff] %v9195_v33 }
 0x1e3   : > { %10924 = vst [vmem:[#allocation10_spill] sm:$0xff] %v9028_v50  ;;  %6532 = vmatmul.mubr.msk.f32.vlgmr.msra.gmra.mrb[16].mxu0 %vm802_vm5, %v9023_v15  ;;  %6612 = vmatmul.mubr.msk.f32.vlgmr.msra.gmra.mrb[28].mxu1 %vm802_vm5, %v8792_v36  ;;  %v2038_v57 = vsel %vm1839_vm7, %v7807_v45, %v10943_v20  ;;  %v9242_v20 = vld [vmem:[%s10887_s3 + $0x1a0] sm:$0xff] }
 0x1e4   : > { %6893 = vmatpush1.bf16.msra.mxu0 %v9030_v42  ;;  %6949 = vmatpush1.bf16.msra.mxu1 %v8908_v11  ;;  %10948 = vst [vmem:[#allocation32_spill] sm:$0xff] %v9242_v20 }
 0x1e5   : > { %v9047_v53 = vpop.f32.mrb[18].mxu1  ;;  %6895 = vmatprep.subr.bf16.mxu0 %v9034_v56  ;;  %6951 = vmatprep.subr.bf16.mxu1 %v8913_v4 }
 0x1e6   : > { %10926 = vst [vmem:[#allocation12_spill] sm:$0xff] %v9047_v53  ;;  %v9053_v36 = vpop.f32.mrb[19].mxu1  ;;  %1755 = vmatprep.mubr.f32.mxu0 %v10892_v0  ;;  %2903 = vmatprep.mubr.f32.mxu1 %v10892_v0 }
 0x1e7   : > { %10927 = vst [vmem:[#allocation13_spill] sm:$0xff] %v9053_v36  ;;  %6533 = vmatmul.mubr.msk.f32.gmra.mrb[18].mxu0 %vm802_vm5, %v9045_v32  ;;  %6613 = vmatmul.mubr.msk.f32.gmra.mrb[30].mxu1 %vm802_vm5, %v8809_v25 }
 0x1e8   : > { %6897 = vmatpush1.bf16.msra.mxu0 %v9055_v54  ;;  %6953 = vmatpush1.bf16.msra.mxu1 %v8931_v44 }
 0x1e9   : > { %v9082_v63 = vpop.f32.mrb[20].mxu1  ;;  %6899 = vmatprep.subr.bf16.mxu0 %v9069_v19  ;;  %6955 = vmatprep.subr.bf16.mxu1 %v9063_v58 }
 0x1ea   : > { %10929 = vst [vmem:[#allocation15_spill] sm:$0xff] %v9082_v63  ;;  %v9086_v38 = vpop.f32.mrb[21].mxu1  ;;  %1761 = vmatprep.mubr.f32.mxu0 %v10892_v0  ;;  %2909 = vmatprep.mubr.f32.mxu1 %v10892_v0 }
 0x1eb   : > { %10930 = vst [vmem:[#allocation16_spill] sm:$0xff] %v9086_v38  ;;  %6534 = vmatmul.mubr.msk.f32.gmra.mrb[20].mxu0 %vm802_vm5, %v9080_v21  ;;  %6614 = vmatmul.mubr.msk.f32.gmra.mrb[32].mxu1 %vm802_vm5, %v8826_v37  ;;  %v9114_v37 = vld [vmem:[%s10887_s3 + $0x160] sm:$0xff]  ;;  %v9276_v38 = vld [vmem:[%s10887_s3 + $0x1b8] sm:$0xff] }
 0x1ec   : > { %1767 = vmatprep.mubr.f32.mxu0 %v10892_v0  ;;  %2915 = vmatprep.mubr.f32.mxu1 %v10892_v0  ;;  %10934 = vst [vmem:[#allocation20_spill] sm:$0xff] %v9114_v37 }
 0x1ed   : > { %v9101_v25 = vpop.f32.mrb[22].mxu1 }
 0x1ee   : > { %10932 = vst [vmem:[#allocation18_spill] sm:$0xff] %v9101_v25  ;;  %v9103_v55 = vpop.f32.mrb[23].mxu1  ;;  %v7851_v25 = vpop.permute.xlu1 %7850 }
 0x1ef   : > { %10933 = vst [vmem:[#allocation19_spill] sm:$0xff] %v9103_v55  ;;  %6535 = vmatmul.mubr.msk.f32.gmra.mrb[22].mxu0 %vm802_vm5, %v9099_v49  ;;  %6615 = vmatmul.mubr.msk.f32.gmra.mrb[34].mxu1 %vm802_vm5, %v8841_v52  ;;  %v9129_v52 = vld [vmem:[%s10887_s3 + $0x168] sm:$0xff]  ;;  %v9183_v55 = vpack.c.bf16 %v7833_v51, %v7828_v7  ;;  %v7853_v53 = vunpack.i.h.bf16 %v7851_v25  ;;  %v7852_v50 = vunpack.i.l.bf16 %v7851_v25 }
 0x1f0   : > { %1773 = vmatprep.mubr.f32.mxu0 %v10892_v0  ;;  %2921 = vmatprep.mubr.f32.mxu1 %v10892_v0  ;;  %10937 = vst [vmem:[#allocation23_spill] sm:$0xff] %v9129_v52 }
 0x1f1   : > { %v9116_v62 = vpop.f32.mrb[24].mxu1 }
 0x1f2   : > { %10935 = vst [vmem:[#allocation21_spill] sm:$0xff] %v9116_v62  ;;  %v9118_v35 = vpop.f32.mrb[25].mxu1  ;;  %v2041_v62 = vsel %vm1839_vm7, %v7832_v23, %v7833_v51  ;;  %v10945_v51 = vmov 0.0  }
 0x1f3   : > { %10936 = vst [vmem:[#allocation22_spill] sm:$0xff] %v9118_v35  ;;  %6536 = vmatmul.mubr.msk.f32.gmra.mrb[24].mxu0 %vm802_vm5, %v9114_v37  ;;  %6616 = vmatmul.mubr.msk.f32.gmra.mrb[36].mxu1 %vm802_vm5, %v8852_v31  ;;  %v9144_v31 = vld [vmem:[%s10887_s3 + $0x170] sm:$0xff]  ;;  %v9180_v35 = vpop.permute.xlu0 %7835 }
 0x1f4   : > { %1779 = vmatprep.mubr.f32.mxu0 %v10892_v0  ;;  %2927 = vmatprep.mubr.f32.mxu1 %v10892_v0  ;;  %10940 = vst [vmem:[#allocation26_spill] sm:$0xff] %v9144_v31  ;;  %v7838_v45 = vunpack.i.h.bf16 %v9180_v35  ;;  %v7837_v63 = vunpack.i.l.bf16 %v9180_v35  ;;  %v9289_v35 = vld [vmem:[%s10887_s3 + $0x1c0] sm:$0xff] }
 0x1f5   : > { %v9131_v34 = vpop.f32.mrb[26].mxu1 }
 0x1f6   : > { %10938 = vst [vmem:[#allocation24_spill] sm:$0xff] %v9131_v34  ;;  %v9133_v14 = vpop.f32.mrb[27].mxu1  ;;  %v9178_v34 = vpack.c.bf16 %v2039_v59, %v2038_v57  ;;  %v9253_v57 = vld [vmem:[%s10887_s3 + $0x1a8] sm:$0xff]  ;;  %v2229_v22 = vsel %vm2228_vm8, %v7837_v63, %v7838_v45 }
 0x1f7   : > { %10939 = vst [vmem:[#allocation25_spill] sm:$0xff] %v9133_v14  ;;  %6537 = vmatmul.mubr.msk.f32.gmra.mrb[26].mxu0 %vm802_vm5, %v9129_v52  ;;  %6617 = vmatmul.mubr.msk.f32.gmra.mrb[38].mxu1 %vm802_vm5, %v8863_v1  ;;  %v7827_v14 = vunpack.i.l.bf16 %v7826_v16  ;;  %10949 = vst [vmem:[#allocation33_spill] sm:$0xff] %v9253_v57  ;;  %v9306_v63 = vld [vmem:[%s10887_s3 + $0x1c8] sm:$0xff] }
 0x1f8   : > { %1785 = vmatprep.mubr.f32.mxu0 %v10892_v0  ;;  %2933 = vmatprep.mubr.f32.mxu1 %v10892_v0 }
 0x1f9   : > { %v2040_v16 = vsel %vm1839_vm7, %v7827_v14, %v7828_v7  ;;  %v9231_v14 = vld [vmem:[%s10887_s3 + $0x198] sm:$0xff]  ;;  %v9264_v7 = vld [vmem:[%s10887_s3 + $0x1b0] sm:$0xff] }
 0x1fa   : > { %v9201_v59 = vpack.c.bf16 %v2041_v62, %v2040_v16  ;;  %v9216_v62 = vld [vmem:[%s10887_s3 + $0x190] sm:$0xff]  ;;  %10947 = vst [vmem:[#allocation31_spill] sm:$0xff] %v9231_v14  ;;  %10950 = vst [vmem:[#allocation34_spill] sm:$0xff] %v9264_v7  ;;  %v7842_v16 = vunpack.i.l.bf16 %v9166_v39 }
 0x1fb   : > { %6538 = vmatmul.mubr.msk.f32.gmra.mrb[28].mxu0 %vm802_vm5, %v9144_v31  ;;  %6618 = vmatmul.mubr.msk.f32.gmra.mrb[40].mxu1 %vm802_vm5, %v8874_v30  ;;  %10946 = vst [vmem:[#allocation30_spill] sm:$0xff] %v9216_v62 }
 0x1fc   : > { %1791 = vmatprep.mubr.f32.mxu0 %v10892_v0  ;;  %2939 = vmatprep.mubr.f32.mxu1 %v10892_v0 }
 0x1ff   : > { %6539 = vmatmul.mubr.msk.f32.gmra.mrb[30].mxu0 %vm802_vm5, %v9156_v43  ;;  %6619 = vmatmul.mubr.msk.f32.gmra.mrb[42].mxu1 %vm802_vm5, %v8886_v46 }
 0x200   : > { %1940 = vmatprep.mubr.f32.mxu0 %v10892_v0  ;;  %3026 = vmatprep.mubr.f32.mxu1 %v10892_v0  ;;  %v7843_v0 = vunpack.i.h.bf16 %v9166_v39  ;;  %v7846_v39 = vpop.permute.xlu0 %7845 }
 0x202   : > { %v9205_v23 = vpack.c.bf16 %v7843_v0, %v7838_v45  ;;  %v2230_v36 = vsel %vm2228_vm8, %v7842_v16, %v7843_v0  ;;  %v7848_v0 = vunpack.i.h.bf16 %v7846_v39  ;;  %v7847_v16 = vunpack.i.l.bf16 %v7846_v39  ;;  %v9361_v45 = vld [vmem:[%s10887_s3 + $0x1e8] sm:$0xff]  ;;  %v9372_v39 = vld [vmem:[%s10887_s3 + $0x1f0] sm:$0xff] }
 0x203   : > { %6548 = vmatmul.mubr.msk.f32.vlgmr.msra.gmra.mrb[16].mxu0 %vm802_vm5, %v9173_v8  ;;  %6620 = vmatmul.mubr.msk.f32.vlgmr.msra.gmra.mrb[28].mxu1 %vm802_vm5, %v8903_v48  ;;  %v9292_v25 = vpack.c.bf16 %v2230_v36, %v2229_v22  ;;  %v9350_v36 = vld [vmem:[%s10887_s3 + $0x1e0] sm:$0xff] }
 0x204   : > { %6901 = vmatpush1.bf16.msra.mxu0 %v9178_v34  ;;  %6957 = vmatpush1.bf16.msra.mxu1 %v8736_v5  ;;  %v2231_v22 = vsel %vm2228_vm8, %v7847_v16, %v7848_v0  ;;  %v7861_v16 = vpop.permute.xlu1 %7860 }
 0x205   : > { %6903 = vmatprep.subr.bf16.mxu0 %v9183_v55  ;;  %6959 = vmatprep.subr.bf16.mxu1 %v8750_v12 }
 0x206   : > { %1946 = vmatprep.mubr.f32.mxu0 %v10945_v51  ;;  %3032 = vmatprep.mubr.f32.mxu1 %v10945_v51 }
 0x207   : > { %6549 = vmatmul.mubr.msk.f32.gmra.mrb[18].mxu0 %vm802_vm5, %v9195_v33  ;;  %6621 = vmatmul.mubr.msk.f32.gmra.mrb[30].mxu1 %vm802_vm5, %v8925_v61 }
 0x208   : > { %6905 = vmatpush1.bf16.msra.mxu0 %v9201_v59  ;;  %6961 = vmatpush1.bf16.msra.mxu1 %v8752_v60 }
 0x209   : > { %6907 = vmatprep.subr.bf16.mxu0 %v9205_v23  ;;  %6963 = vmatprep.subr.bf16.mxu1 %v9069_v19 }
 0x20a   : > { %1952 = vmatprep.mubr.f32.mxu0 %v10945_v51  ;;  %3038 = vmatprep.mubr.f32.mxu1 %v10945_v51 }
 0x20b   : > { %6550 = vmatmul.mubr.msk.f32.gmra.mrb[20].mxu0 %vm802_vm5, %v9216_v62  ;;  %6622 = vmatmul.mubr.msk.f32.gmra.mrb[32].mxu1 %vm802_vm5, %v8946_v10 }
 0x20c   : > { %1958 = vmatprep.mubr.f32.mxu0 %v10945_v51  ;;  %3044 = vmatprep.mubr.f32.mxu1 %v10945_v51 }
 0x20f   : > { %6551 = vmatmul.mubr.msk.f32.gmra.mrb[22].mxu0 %vm802_vm5, %v9231_v14  ;;  %6623 = vmatmul.mubr.msk.f32.gmra.mrb[34].mxu1 %vm802_vm5, %v8961_v47 }
 0x210   : > { %1964 = vmatprep.mubr.f32.mxu0 %v10945_v51  ;;  %3050 = vmatprep.mubr.f32.mxu1 %v10945_v51 }
 0x213   : > { %6552 = vmatmul.mubr.msk.f32.gmra.mrb[24].mxu0 %vm802_vm5, %v9242_v20  ;;  %6624 = vmatmul.mubr.msk.f32.gmra.mrb[36].mxu1 %vm802_vm5, %v8972_v28 }
 0x214   : > { %1970 = vmatprep.mubr.f32.mxu0 %v10945_v51  ;;  %3056 = vmatprep.mubr.f32.mxu1 %v10945_v51 }
 0x217   : > { %6553 = vmatmul.mubr.msk.f32.gmra.mrb[26].mxu0 %vm802_vm5, %v9253_v57  ;;  %6625 = vmatmul.mubr.msk.f32.gmra.mrb[38].mxu1 %vm802_vm5, %v8983_v24  ;;  %v9295_v24 = vpack.c.bf16 %v7853_v53, %v7848_v0  ;;  %v9383_v0 = vld [vmem:[%s10887_s3 + $0x1f8] sm:$0xff] }
 0x218   : > { %1976 = vmatprep.mubr.f32.mxu0 %v10945_v51  ;;  %3062 = vmatprep.mubr.f32.mxu1 %v10945_v51 }
 0x21b   : > { %6554 = vmatmul.mubr.msk.f32.gmra.mrb[28].mxu0 %vm802_vm5, %v9264_v7  ;;  %6626 = vmatmul.mubr.msk.f32.gmra.mrb[40].mxu1 %vm802_vm5, %v8998_v18  ;;  %v2232_v18 = vsel %vm2228_vm8, %v7852_v50, %v7853_v53  ;;  %v9324_v53 = vld [vmem:[%s10887_s3 + $0x1d0] sm:$0xff] }
 0x21c   : > { %1982 = vmatprep.mubr.f32.mxu0 %v10945_v51  ;;  %3068 = vmatprep.mubr.f32.mxu1 %v10945_v51  ;;  %v9311_v50 = vpack.c.bf16 %v2232_v18, %v2231_v22  ;;  %v9339_v18 = vld [vmem:[%s10887_s3 + $0x1d8] sm:$0xff]  ;;  %v9394_v22 = vld [vmem:[%s10887_s3 + $0x200] sm:$0xff] }
 0x21f   : > { %6555 = vmatmul.mubr.msk.f32.gmra.mrb[30].mxu0 %vm802_vm5, %v9276_v38  ;;  %6627 = vmatmul.mubr.msk.f32.gmra.mrb[42].mxu1 %vm802_vm5, %v9010_v9 }
 0x220   : > { %2138 = vmatprep.mubr.f32.mxu0 %v10945_v51  ;;  %3191 = vmatprep.mubr.f32.mxu1 %v10945_v51 }
 0x223   : > { %6564 = vmatmul.mubr.msk.f32.vlgmr.msra.gmra.mrb[16].mxu0 %vm802_vm5, %v9289_v35  ;;  %6628 = vmatmul.mubr.msk.f32.vlgmr.msra.gmra.mrb[28].mxu1 %vm802_vm5, %v9023_v15 }
 0x224   : > { %6909 = vmatpush1.bf16.msra.mxu0 %v9292_v25  ;;  %6965 = vmatpush1.bf16.msra.mxu1 %v9178_v34 }
 0x225   : > { %6911 = vmatprep.subr.bf16.mxu0 %v9295_v24  ;;  %6967 = vmatprep.subr.bf16.mxu1 %v9183_v55 }
 0x226   : > { %2144 = vmatprep.mubr.f32.mxu0 %v10945_v51  ;;  %3197 = vmatprep.mubr.f32.mxu1 %v10945_v51 }
 0x227   : > { %6565 = vmatmul.mubr.msk.f32.gmra.mrb[18].mxu0 %vm802_vm5, %v9306_v63  ;;  %6629 = vmatmul.mubr.msk.f32.gmra.mrb[30].mxu1 %vm802_vm5, %v9045_v32 }
 0x228   : > { %6913 = vmatpush1.bf16.msra.mxu0 %v9311_v50  ;;  %6969 = vmatpush1.bf16.msra.mxu1 %v9201_v59 }
 0x229   : > { %6971 = vmatprep.subr.bf16.mxu1 %v9205_v23  ;;  %6987 = vmatprep.subr.bf16.mxu0 %v8427_v29 }
 0x22a   : > { %2150 = vmatprep.mubr.f32.mxu0 %v10945_v51  ;;  %3203 = vmatprep.mubr.f32.mxu1 %v10945_v51 }
 0x22b   : > { %6566 = vmatmul.mubr.msk.f32.gmra.mrb[20].mxu0 %vm802_vm5, %v9324_v53  ;;  %6630 = vmatmul.mubr.msk.f32.gmra.mrb[32].mxu1 %vm802_vm5, %v9080_v21  ;;  %v7871_v21 = vpop.permute.xlu1 %7870 }
 0x22c   : > { %2156 = vmatprep.mubr.f32.mxu0 %v10945_v51  ;;  %3209 = vmatprep.mubr.f32.mxu1 %v10945_v51  ;;  %v7873_v15 = vunpack.i.h.bf16 %v7871_v21  ;;  %v7872_v9 = vunpack.i.l.bf16 %v7871_v21  ;;  %v9501_v21 = vld [vmem:[%s10887_s3 + $0x40] sm:$0xff] }
 0x22f   : > { %6567 = vmatmul.mubr.msk.f32.gmra.mrb[22].mxu0 %vm802_vm5, %v9339_v18  ;;  %6631 = vmatmul.mubr.msk.f32.gmra.mrb[34].mxu1 %vm802_vm5, %v9099_v49 }
 0x230   : > { %2162 = vmatprep.mubr.f32.mxu0 %v10945_v51  ;;  %3215 = vmatprep.mubr.f32.mxu1 %v10945_v51 }
 0x233   : > { %6568 = vmatmul.mubr.msk.f32.gmra.mrb[24].mxu0 %vm802_vm5, %v9350_v36  ;;  %6632 = vmatmul.mubr.msk.f32.gmra.mrb[36].mxu1 %vm802_vm5, %v9114_v37 }
 0x234   : > { %2168 = vmatprep.mubr.f32.mxu0 %v10945_v51  ;;  %3221 = vmatprep.mubr.f32.mxu1 %v10945_v51 }
 0x237   : > { %6569 = vmatmul.mubr.msk.f32.gmra.mrb[26].mxu0 %vm802_vm5, %v9361_v45  ;;  %6633 = vmatmul.mubr.msk.f32.gmra.mrb[38].mxu1 %vm802_vm5, %v9129_v52  ;;  %v7863_v52 = vunpack.i.h.bf16 %v7861_v16 }
 0x238   : > { %2174 = vmatprep.mubr.f32.mxu0 %v10945_v51  ;;  %3227 = vmatprep.mubr.f32.mxu1 %v10945_v51 }
 0x23b   : > { %6570 = vmatmul.mubr.msk.f32.gmra.mrb[28].mxu0 %vm802_vm5, %v9372_v39  ;;  %6634 = vmatmul.mubr.msk.f32.gmra.mrb[40].mxu1 %vm802_vm5, %v9144_v31  ;;  %v7856_v31 = vpop.permute.xlu0 %7855 }
 0x23c   : > { %2180 = vmatprep.mubr.f32.mxu0 %v10945_v51  ;;  %3233 = vmatprep.mubr.f32.mxu1 %v10945_v51  ;;  %v7858_v37 = vunpack.i.h.bf16 %v7856_v31 }
 0x23e   : > { %v9411_v49 = vpack.c.bf16 %v7863_v52, %v7858_v37 }
 0x23f   : > { %6571 = vmatmul.mubr.msk.f32.gmra.mrb[30].mxu0 %vm802_vm5, %v9383_v0  ;;  %6635 = vmatmul.mubr.msk.f32.gmra.mrb[42].mxu1 %vm802_vm5, %v9156_v43  ;;  %v9405_v43 = vld [vmem:[%s10887_s3 + $0x208] sm:$0xff]  ;;  %v7866_v32 = vpop.permute.xlu0 %7865 }
 0x240   : > { %2329 = vmatprep.mubr.f32.mxu0 %v10945_v51  ;;  %3320 = vmatprep.mubr.f32.mxu1 %v10945_v51  ;;  %10951 = vst [vmem:[#allocation35_spill] sm:$0xff] %v9411_v49  ;;  %v7868_v28 = vunpack.i.h.bf16 %v7866_v32  ;;  %v7867_v47 = vunpack.i.l.bf16 %v7866_v32 }
 0x242   : > { %v3532_v32 = vsel %vm2228_vm8, %v7867_v47, %v7868_v28  ;;  %v9578_v47 = vld [vmem:[%s10887_s3 + $0x70] sm:$0xff] }
 0x243   : > { %6580 = vmatmul.mubr.msk.f32.vlgmr.msra.gmra.mrb[16].mxu0 %vm802_vm5, %v9394_v22  ;;  %6636 = vmatmul.mubr.msk.f32.vlgmr.msra.gmra.mrb[28].mxu1 %vm802_vm5, %v9173_v8  ;;  %v9422_v8 = vld [vmem:[%s10887_s3 + $0x210] sm:$0xff] }
 0x244   : > { %6973 = vmatpush1.bf16.msra.mxu1 %v9292_v25  ;;  %6989 = vmatpush1.bf16.msra.mxu0 %v8343_v40 }
 0x245   : > { %6975 = vmatprep.subr.bf16.mxu1 %v9295_v24  ;;  %6991 = vmatprep.subr.bf16.mxu0 %v8486_v27 }
 0x246   : > { %2335 = vmatprep.mubr.f32.mxu0 %v10945_v51  ;;  %3326 = vmatprep.mubr.f32.mxu1 %v10945_v51 }
 0x247   : > { %6581 = vmatmul.mubr.msk.f32.gmra.mrb[18].mxu0 %vm802_vm5, %v9405_v43  ;;  %6637 = vmatmul.mubr.msk.f32.gmra.mrb[30].mxu1 %vm802_vm5, %v9195_v33  ;;  %v9437_v33 = vld [vmem:[%s10887_s3 + $0x218] sm:$0xff] }
 0x248   : > { %6977 = vmatpush1.bf16.msra.mxu1 %v9311_v50  ;;  %6993 = vmatpush1.bf16.msra.mxu0 %v8423_v3 }
 0x249   : > { %6979 = vmatprep.subr.bf16.mxu1 %v9411_v49  ;;  %6995 = vmatprep.subr.bf16.mxu0 %v8417_v6  ;;  %v9448_v6 = vld [vmem:[%s10887_s3 + $0x220] sm:$0xff]  ;;  %v7857_v49 = vunpack.i.l.bf16 %v7856_v31 }
 0x24a   : > { %2341 = vmatprep.mubr.f32.mxu0 %v10945_v51  ;;  %3332 = vmatprep.mubr.f32.mxu1 %v10945_v51 }
 0x24b   : > { %6582 = vmatmul.mubr.msk.f32.gmra.mrb[20].mxu0 %vm802_vm5, %v9422_v8  ;;  %6638 = vmatmul.mubr.msk.f32.gmra.mrb[32].mxu1 %vm802_vm5, %v9216_v62  ;;  %v7862_v62 = vunpack.i.l.bf16 %v7861_v16 }
 0x24c   : > { %2347 = vmatprep.mubr.f32.mxu0 %v10945_v51  ;;  %3338 = vmatprep.mubr.f32.mxu1 %v10945_v51 }
 0x24d   : > { %v3531_v16 = vsel %vm2228_vm8, %v7862_v62, %v7863_v52  ;;  %v3533_v52 = vsel %vm2228_vm8, %v7872_v9, %v7873_v15  ;;  %v9494_v62 = vpack.c.bf16 %v7873_v15, %v7868_v28  ;;  %v9519_v15 = vld [vmem:[%s10887_s3 + $0x48] sm:$0xff]  ;;  %v9589_v28 = vld [vmem:[%s10887_s3 + $0x78] sm:$0xff] }
 0x24e   : > { %v9510_v9 = vpack.c.bf16 %v3533_v52, %v3532_v32  ;;  %v10956_v32 = vld [vmem:[#allocation7_spill] sm:$0xff] }
 0x24f   : > { %6583 = vmatmul.mubr.msk.f32.gmra.mrb[22].mxu0 %vm802_vm5, %v9437_v33  ;;  %6639 = vmatmul.mubr.msk.f32.gmra.mrb[34].mxu1 %vm802_vm5, %v9231_v14  ;;  %v9459_v14 = vld [vmem:[%s10887_s3 + $0x228] sm:$0xff] }
 0x250   : > { %2353 = vmatprep.mubr.f32.mxu0 %v10945_v51  ;;  %3344 = vmatprep.mubr.f32.mxu1 %v10945_v51 }
 0x253   : > { %6584 = vmatmul.mubr.msk.f32.gmra.mrb[24].mxu0 %vm802_vm5, %v9448_v6  ;;  %6640 = vmatmul.mubr.msk.f32.gmra.mrb[36].mxu1 %vm802_vm5, %v9242_v20  ;;  %v9470_v20 = vld [vmem:[%s10887_s3 + $0x230] sm:$0xff] }
 0x254   : > { %2359 = vmatprep.mubr.f32.mxu0 %v10945_v51  ;;  %3350 = vmatprep.mubr.f32.mxu1 %v10945_v51 }
 0x257   : > { %6585 = vmatmul.mubr.msk.f32.gmra.mrb[26].mxu0 %vm802_vm5, %v9459_v14  ;;  %6641 = vmatmul.mubr.msk.f32.gmra.mrb[38].mxu1 %vm802_vm5, %v9253_v57  ;;  %v9481_v57 = vld [vmem:[%s10887_s3 + $0x238] sm:$0xff] }
 0x258   : > { %2365 = vmatprep.mubr.f32.mxu0 %v10945_v51  ;;  %3356 = vmatprep.mubr.f32.mxu1 %v10945_v51 }
 0x25b   : > { %6586 = vmatmul.mubr.msk.f32.gmra.mrb[28].mxu0 %vm802_vm5, %v9470_v20  ;;  %6642 = vmatmul.mubr.msk.f32.gmra.mrb[40].mxu1 %vm802_vm5, %v9264_v7  ;;  %v3530_v7 = vsel %vm2228_vm8, %v7857_v49, %v7858_v37  ;;  %v9600_v49 = vld [vmem:[%s10887_s3] sm:$0xff]  ;;  %v9615_v37 = vld [vmem:[%s10887_s3 + $0x8] sm:$0xff] }
 0x25c   : > { %2371 = vmatprep.mubr.f32.mxu0 %v10945_v51  ;;  %3362 = vmatprep.mubr.f32.mxu1 %v10945_v51  ;;  %v9491_v31 = vpack.c.bf16 %v3531_v16, %v3530_v7 }
 0x25f   : > { %6587 = vmatmul.mubr.msk.f32.gmra.mrb[30].mxu0 %vm802_vm5, %v9481_v57  ;;  %6643 = vmatmul.mubr.msk.f32.gmra.mrb[42].mxu1 %vm802_vm5, %v9276_v38 }
 0x260   : > { %3449 = vmatprep.mubr.f32.mxu1 %v10945_v51  ;;  %3767 = vmatprep.mubr.f32.mxu0 %v10945_v51 }
 0x263   : > { %6644 = vmatmul.mubr.msk.f32.vlgmr.msra.gmra.mrb[28].mxu1 %vm802_vm5, %v9289_v35  ;;  %6660 = vmatmul.mubr.msk.f32.vlgmr.msra.gmra.mrb[32].mxu0 %vm802_vm5, %v9501_v21 }
 0x264   : > { %6981 = vmatpush1.bf16.msra.mxu1 %v9491_v31  ;;  %6997 = vmatpush1.bf16.msra.mxu0 %v8315_v41  ;;  %v9534_v41 = vld [vmem:[%s10887_s3 + $0x50] sm:$0xff] }
 0x265   : > { %6983 = vmatprep.subr.bf16.mxu1 %v9494_v62  ;;  %6999 = vmatprep.subr.bf16.mxu0 %v8484_v26  ;;  %v9556_v26 = vld [vmem:[%s10887_s3 + $0x60] sm:$0xff] }
 0x266   : > { %3455 = vmatprep.mubr.f32.mxu1 %v10945_v51  ;;  %3773 = vmatprep.mubr.f32.mxu0 %v10945_v51 }
 0x267   : > { %6645 = vmatmul.mubr.msk.f32.gmra.mrb[30].mxu1 %vm802_vm5, %v9306_v63  ;;  %6661 = vmatmul.mubr.msk.f32.gmra.mrb[34].mxu0 %vm802_vm5, %v9519_v15 }
 0x268   : > { %6985 = vmatpush1.bf16.msra.mxu1 %v9510_v9  ;;  %7001 = vmatpush1.bf16.msra.mxu0 %v8403_v2  ;;  %v9545_v2 = vld [vmem:[%s10887_s3 + $0x58] sm:$0xff] }
 0x269   : > { %7003 = vmatprep.subr.bf16.mxu0 %v8816_v13  ;;  %7059 = vmatprep.subr.bf16.mxu1 %v8816_v13  ;;  %v9567_v13 = vld [vmem:[%s10887_s3 + $0x68] sm:$0xff] }
 0x26a   : > { %3461 = vmatprep.mubr.f32.mxu1 %v10945_v51  ;;  %3779 = vmatprep.mubr.f32.mxu0 %v10945_v51 }
 0x26b   : > { %6646 = vmatmul.mubr.msk.f32.gmra.mrb[32].mxu1 %vm802_vm5, %v9324_v53  ;;  %6662 = vmatmul.mubr.msk.f32.gmra.mrb[36].mxu0 %vm802_vm5, %v9534_v41 }
 0x26c   : > { %3467 = vmatprep.mubr.f32.mxu1 %v10945_v51  ;;  %3785 = vmatprep.mubr.f32.mxu0 %v10945_v51 }
 0x26f   : > { %6647 = vmatmul.mubr.msk.f32.gmra.mrb[34].mxu1 %vm802_vm5, %v9339_v18  ;;  %6663 = vmatmul.mubr.msk.f32.gmra.mrb[38].mxu0 %vm802_vm5, %v9545_v2 }
 0x270   : > { %3473 = vmatprep.mubr.f32.mxu1 %v10945_v51  ;;  %3791 = vmatprep.mubr.f32.mxu0 %v10945_v51 }
 0x273   : > { %6648 = vmatmul.mubr.msk.f32.gmra.mrb[36].mxu1 %vm802_vm5, %v9350_v36  ;;  %6664 = vmatmul.mubr.msk.f32.gmra.mrb[40].mxu0 %vm802_vm5, %v9556_v26 }
 0x274   : > { %3479 = vmatprep.mubr.f32.mxu1 %v10945_v51  ;;  %3797 = vmatprep.mubr.f32.mxu0 %v10945_v51 }
 0x277   : > { %6649 = vmatmul.mubr.msk.f32.gmra.mrb[38].mxu1 %vm802_vm5, %v9361_v45  ;;  %6665 = vmatmul.mubr.msk.f32.gmra.mrb[42].mxu0 %vm802_vm5, %v9567_v13 }
 0x278   : > { %3485 = vmatprep.mubr.f32.mxu1 %v10945_v51  ;;  %3803 = vmatprep.mubr.f32.mxu0 %v10945_v51 }
 0x27b   : > { %6650 = vmatmul.mubr.msk.f32.gmra.mrb[40].mxu1 %vm802_vm5, %v9372_v39  ;;  %6666 = vmatmul.mubr.msk.f32.gmra.mrb[44].mxu0 %vm802_vm5, %v9578_v47 }
 0x27c   : > { %3491 = vmatprep.mubr.f32.mxu1 %v10945_v51  ;;  %3809 = vmatprep.mubr.f32.mxu0 %v10945_v51 }
 0x27f   : > { %6651 = vmatmul.mubr.msk.f32.gmra.mrb[42].mxu1 %vm802_vm5, %v9383_v0  ;;  %6667 = vmatmul.mubr.msk.f32.gmra.mrb[46].mxu0 %vm802_vm5, %v9589_v28 }
 0x280   : > { %3606 = vmatprep.mubr.f32.mxu1 %v10945_v51  ;;  %3880 = vmatprep.mubr.f32.mxu0 %v10945_v51 }
 0x283   : > { %6652 = vmatmul.mubr.msk.f32.vlgmr.msra.gmra.mrb[28].mxu1 %vm802_vm5, %v9394_v22  ;;  %6668 = vmatmul.mubr.msk.f32.vlgmr.msra.gmra.mrb[32].mxu0 %vm802_vm5, %v9600_v49 }
 0x284   : > { %7005 = vmatpush1.bf16.msra.mxu0 %v8908_v11  ;;  %7061 = vmatpush1.bf16.msra.mxu1 %v8908_v11  ;;  %v9630_v11 = vld [vmem:[%s10887_s3 + $0x10] sm:$0xff] }
 0x285   : > { %7007 = vmatprep.subr.bf16.mxu0 %v8913_v4  ;;  %7063 = vmatprep.subr.bf16.mxu1 %v8913_v4  ;;  %v9652_v4 = vld [vmem:[%s10887_s3 + $0x20] sm:$0xff] }
 0x286   : > { %3612 = vmatprep.mubr.f32.mxu1 %v10945_v51  ;;  %3886 = vmatprep.mubr.f32.mxu0 %v10945_v51 }
 0x287   : > { %6653 = vmatmul.mubr.msk.f32.gmra.mrb[30].mxu1 %vm802_vm5, %v9405_v43  ;;  %6669 = vmatmul.mubr.msk.f32.gmra.mrb[34].mxu0 %vm802_vm5, %v9615_v37  ;;  %v9685_v43 = vld [vmem:[%s10887_s3 + $0x38] sm:$0xff] }
 0x288   : > { %7009 = vmatpush1.bf16.msra.mxu0 %v8931_v44  ;;  %7065 = vmatpush1.bf16.msra.mxu1 %v8931_v44  ;;  %v9663_v44 = vld [vmem:[%s10887_s3 + $0x28] sm:$0xff] }
 0x289   : > { %7011 = vmatprep.subr.bf16.mxu0 %v8935_v17  ;;  %7067 = vmatprep.subr.bf16.mxu1 %v8427_v29  ;;  %v9641_v29 = vld [vmem:[%s10887_s3 + $0x18] sm:$0xff]  ;;  %v9674_v17 = vld [vmem:[%s10887_s3 + $0x30] sm:$0xff] }
 0x28a   : > { %3618 = vmatprep.mubr.f32.mxu1 %v10945_v51  ;;  %3892 = vmatprep.mubr.f32.mxu0 %v10945_v51 }
 0x28b   : > { %6654 = vmatmul.mubr.msk.f32.gmra.mrb[32].mxu1 %vm802_vm5, %v9422_v8  ;;  %6670 = vmatmul.mubr.msk.f32.gmra.mrb[36].mxu0 %vm802_vm5, %v9630_v11  ;;  %v9694_v8 = vld [vmem:[%s10887_s3 + $0x80] sm:$0xff] }
 0x28c   : > { %3624 = vmatprep.mubr.f32.mxu1 %v10945_v51  ;;  %3898 = vmatprep.mubr.f32.mxu0 %v10945_v51 }
 0x28f   : > { %6655 = vmatmul.mubr.msk.f32.gmra.mrb[34].mxu1 %vm802_vm5, %v9437_v33  ;;  %6671 = vmatmul.mubr.msk.f32.gmra.mrb[38].mxu0 %vm802_vm5, %v9641_v29  ;;  %v9709_v33 = vld [vmem:[%s10887_s3 + $0x88] sm:$0xff] }
 0x290   : > { %3630 = vmatprep.mubr.f32.mxu1 %v10945_v51  ;;  %3904 = vmatprep.mubr.f32.mxu0 %v10945_v51 }
 0x293   : > { %6656 = vmatmul.mubr.msk.f32.gmra.mrb[36].mxu1 %vm802_vm5, %v9448_v6  ;;  %6672 = vmatmul.mubr.msk.f32.gmra.mrb[40].mxu0 %vm802_vm5, %v9652_v4 }
 0x294   : > { %3636 = vmatprep.mubr.f32.mxu1 %v10945_v51  ;;  %3910 = vmatprep.mubr.f32.mxu0 %v10945_v51 }
 0x297   : > { %6657 = vmatmul.mubr.msk.f32.gmra.mrb[38].mxu1 %vm802_vm5, %v9459_v14  ;;  %6673 = vmatmul.mubr.msk.f32.gmra.mrb[42].mxu0 %vm802_vm5, %v9663_v44  ;;  %v9805_v14 = vld [vmem:[%s10887_s3 + $0xc8] sm:$0xff] }
 0x298   : > { %3642 = vmatprep.mubr.f32.mxu1 %v10945_v51  ;;  %3916 = vmatprep.mubr.f32.mxu0 %v10945_v51 }
 0x29b   : > { %6658 = vmatmul.mubr.msk.f32.gmra.mrb[40].mxu1 %vm802_vm5, %v9470_v20  ;;  %6674 = vmatmul.mubr.msk.f32.gmra.mrb[44].mxu0 %vm802_vm5, %v9674_v17 }
 0x29c   : > { %3648 = vmatprep.mubr.f32.mxu1 %v10945_v51  ;;  %3922 = vmatprep.mubr.f32.mxu0 %v10945_v51 }
 0x29f   : > { %6659 = vmatmul.mubr.msk.f32.gmra.mrb[42].mxu1 %vm802_vm5, %v9481_v57  ;;  %6675 = vmatmul.mubr.msk.f32.gmra.mrb[46].mxu0 %vm802_vm5, %v9685_v43 }
 0x2a0   : > { %3993 = vmatprep.mubr.f32.mxu0 %v10945_v51  ;;  %5012 = vmatprep.mubr.f32.mxu1 %v10945_v51 }
 0x2a3   : > { %6676 = vmatmul.mubr.msk.f32.vlgmr.msra.gmra.mrb[32].mxu0 %vm802_vm5, %v9694_v8  ;;  %6732 = vmatmul.mubr.msk.f32.vlgmr.msra.gmra.mrb[44].mxu1 %vm802_vm5, %v9501_v21 }
 0x2a4   : > { %7013 = vmatpush1.bf16.msra.mxu0 %v9030_v42  ;;  %7069 = vmatpush1.bf16.msra.mxu1 %v8343_v40  ;;  %v9724_v40 = vld [vmem:[%s10887_s3 + $0x90] sm:$0xff]  ;;  %v9757_v42 = vld [vmem:[%s10887_s3 + $0xa8] sm:$0xff] }
 0x2a5   : > { %7015 = vmatprep.subr.bf16.mxu0 %v9034_v56  ;;  %7071 = vmatprep.subr.bf16.mxu1 %v8486_v27  ;;  %v9746_v27 = vld [vmem:[%s10887_s3 + $0xa0] sm:$0xff]  ;;  %v9768_v56 = vld [vmem:[%s10887_s3 + $0xb0] sm:$0xff] }
 0x2a6   : > { %3999 = vmatprep.mubr.f32.mxu0 %v10945_v51  ;;  %5018 = vmatprep.mubr.f32.mxu1 %v10945_v51 }
 0x2a7   : > { %6677 = vmatmul.mubr.msk.f32.gmra.mrb[34].mxu0 %vm802_vm5, %v9709_v33  ;;  %6733 = vmatmul.mubr.msk.f32.gmra.mrb[46].mxu1 %vm802_vm5, %v9519_v15 }
 0x2a8   : > { %7017 = vmatpush1.bf16.msra.mxu0 %v9055_v54  ;;  %7073 = vmatpush1.bf16.msra.mxu1 %v8423_v3  ;;  %v9735_v3 = vld [vmem:[%s10887_s3 + $0x98] sm:$0xff] }
 0x2a9   : > { %7019 = vmatprep.subr.bf16.mxu0 %v9069_v19  ;;  %7075 = vmatprep.subr.bf16.mxu1 %v9063_v58  ;;  %v9779_v54 = vld [vmem:[%s10887_s3 + $0xb8] sm:$0xff]  ;;  %v9790_v58 = vld [vmem:[%s10887_s3 + $0xc0] sm:$0xff] }
 0x2aa   : > { %4005 = vmatprep.mubr.f32.mxu0 %v10945_v51  ;;  %5024 = vmatprep.mubr.f32.mxu1 %v10945_v51 }
 0x2ab   : > { %6678 = vmatmul.mubr.msk.f32.gmra.mrb[36].mxu0 %vm802_vm5, %v9724_v40  ;;  %6734 = vmatmul.mubr.msk.f32.gmra.mrb[48].mxu1 %vm802_vm5, %v9534_v41 }
 0x2ac   : > { %4011 = vmatprep.mubr.f32.mxu0 %v10945_v51  ;;  %5030 = vmatprep.mubr.f32.mxu1 %v10945_v51 }
 0x2af   : > { %6679 = vmatmul.mubr.msk.f32.gmra.mrb[38].mxu0 %vm802_vm5, %v9735_v3  ;;  %6735 = vmatmul.mubr.msk.f32.gmra.mrb[50].mxu1 %vm802_vm5, %v9545_v2 }
 0x2b0   : > { %4017 = vmatprep.mubr.f32.mxu0 %v10945_v51  ;;  %5036 = vmatprep.mubr.f32.mxu1 %v10945_v51 }
 0x2b3   : > { %6680 = vmatmul.mubr.msk.f32.gmra.mrb[40].mxu0 %vm802_vm5, %v9746_v27  ;;  %6736 = vmatmul.mubr.msk.f32.gmra.mrb[52].mxu1 %vm802_vm5, %v9556_v26 }
 0x2b4   : > { %4023 = vmatprep.mubr.f32.mxu0 %v10945_v51  ;;  %5042 = vmatprep.mubr.f32.mxu1 %v10945_v51 }
 0x2b7   : > { %6681 = vmatmul.mubr.msk.f32.gmra.mrb[42].mxu0 %vm802_vm5, %v9757_v42  ;;  %6737 = vmatmul.mubr.msk.f32.gmra.mrb[54].mxu1 %vm802_vm5, %v9567_v13 }
 0x2b8   : > { %4029 = vmatprep.mubr.f32.mxu0 %v10945_v51  ;;  %5048 = vmatprep.mubr.f32.mxu1 %v10945_v51 }
 0x2bb   : > { %6682 = vmatmul.mubr.msk.f32.gmra.mrb[44].mxu0 %vm802_vm5, %v9768_v56  ;;  %6738 = vmatmul.mubr.msk.f32.gmra.mrb[56].mxu1 %vm802_vm5, %v9578_v47 }
 0x2bc   : > { %4035 = vmatprep.mubr.f32.mxu0 %v10945_v51  ;;  %5054 = vmatprep.mubr.f32.mxu1 %v10945_v51 }
 0x2bf   : > { %6683 = vmatmul.mubr.msk.f32.gmra.mrb[46].mxu0 %vm802_vm5, %v9779_v54  ;;  %6739 = vmatmul.mubr.msk.f32.gmra.mrb[58].mxu1 %vm802_vm5, %v9589_v28 }
 0x2c0   : > { %4122 = vmatprep.mubr.f32.mxu0 %v10945_v51  ;;  %5125 = vmatprep.mubr.f32.mxu1 %v10945_v51 }
 0x2c3   : > { %6684 = vmatmul.mubr.msk.f32.vlgmr.msra.gmra.mrb[32].mxu0 %vm802_vm5, %v9790_v58  ;;  %6740 = vmatmul.mubr.msk.f32.vlgmr.msra.gmra.mrb[44].mxu1 %vm802_vm5, %v9600_v49  ;;  %v10957_v49 = vld [vmem:[#allocation8_spill] sm:$0xff] }
 0x2c4   : > { %7021 = vmatpush1.bf16.msra.mxu0 %v9178_v34  ;;  %7077 = vmatpush1.bf16.msra.mxu1 %v8736_v5  ;;  %v9820_v5 = vld [vmem:[%s10887_s3 + $0xd0] sm:$0xff] }
 0x2c5   : > { %7023 = vmatprep.subr.bf16.mxu0 %v9183_v55  ;;  %7079 = vmatprep.subr.bf16.mxu1 %v8750_v12  ;;  %v9831_v12 = vld [vmem:[%s10887_s3 + $0xd8] sm:$0xff] }
 0x2c6   : > { %4128 = vmatprep.mubr.f32.mxu0 %v10945_v51  ;;  %5131 = vmatprep.mubr.f32.mxu1 %v10945_v51 }
 0x2c7   : > { %6685 = vmatmul.mubr.msk.f32.gmra.mrb[34].mxu0 %vm802_vm5, %v9805_v14  ;;  %6741 = vmatmul.mubr.msk.f32.gmra.mrb[46].mxu1 %vm802_vm5, %v9615_v37 }
 0x2c8   : > { %7025 = vmatpush1.bf16.msra.mxu0 %v9201_v59  ;;  %7081 = vmatpush1.bf16.msra.mxu1 %v8752_v60  ;;  %v9842_v60 = vld [vmem:[%s10887_s3 + $0xe0] sm:$0xff] }
 0x2c9   : > { %7027 = vmatprep.subr.bf16.mxu0 %v9205_v23  ;;  %7083 = vmatprep.subr.bf16.mxu1 %v9069_v19  ;;  %v7876_v19 = vpop.permute.xlu0 %7875 }
 0x2ca   : > { %4134 = vmatprep.mubr.f32.mxu0 %v10945_v51  ;;  %5137 = vmatprep.mubr.f32.mxu1 %v10945_v51  ;;  %v7877_v7 = vunpack.i.l.bf16 %v7876_v19 }
 0x2cb   : > { %6686 = vmatmul.mubr.msk.f32.gmra.mrb[36].mxu0 %vm802_vm5, %v9820_v5  ;;  %6742 = vmatmul.mubr.msk.f32.gmra.mrb[48].mxu1 %vm802_vm5, %v9630_v11 }
 0x2cc   : > { %4140 = vmatprep.mubr.f32.mxu0 %v10945_v51  ;;  %5143 = vmatprep.mubr.f32.mxu1 %v10945_v51 }
 0x2cf   : > { %6687 = vmatmul.mubr.msk.f32.gmra.mrb[38].mxu0 %vm802_vm5, %v9831_v12  ;;  %6743 = vmatmul.mubr.msk.f32.gmra.mrb[50].mxu1 %vm802_vm5, %v9641_v29 }
 0x2d0   : > { %4146 = vmatprep.mubr.f32.mxu0 %v10945_v51  ;;  %5149 = vmatprep.mubr.f32.mxu1 %v10945_v51 }
 0x2d3   : > { %6688 = vmatmul.mubr.msk.f32.gmra.mrb[40].mxu0 %vm802_vm5, %v9842_v60  ;;  %6744 = vmatmul.mubr.msk.f32.gmra.mrb[52].mxu1 %vm802_vm5, %v9652_v4 }
 0x2d4   : > { %4152 = vmatprep.mubr.f32.mxu0 %v10945_v51  ;;  %5155 = vmatprep.mubr.f32.mxu1 %v10945_v51 }
 0x2d7   : > { %6689 = vmatmul.mubr.msk.f32.gmra.mrb[42].mxu0 %vm802_vm5, %v8863_v1  ;;  %6745 = vmatmul.mubr.msk.f32.gmra.mrb[54].mxu1 %vm802_vm5, %v9663_v44  ;;  %v7881_v1 = vpop.permute.xlu1 %7880  ;;  %v10958_v44 = vld [vmem:[#allocation11_spill] sm:$0xff] }
 0x2d8   : > { %4158 = vmatprep.mubr.f32.mxu0 %v10945_v51  ;;  %5161 = vmatprep.mubr.f32.mxu1 %v10945_v51 }
 0x2db   : > { %6690 = vmatmul.mubr.msk.f32.gmra.mrb[44].mxu0 %vm802_vm5, %v8874_v30  ;;  %6746 = vmatmul.mubr.msk.f32.gmra.mrb[56].mxu1 %vm802_vm5, %v9674_v17  ;;  %v7883_v30 = vunpack.i.h.bf16 %v7881_v1  ;;  %v10961_v17 = vld [vmem:[#allocation17_spill] sm:$0xff] }
 0x2dc   : > { %4164 = vmatprep.mubr.f32.mxu0 %v10945_v51  ;;  %5167 = vmatprep.mubr.f32.mxu1 %v10945_v51 }
 0x2df   : > { %6691 = vmatmul.mubr.msk.f32.gmra.mrb[46].mxu0 %vm802_vm5, %v8886_v46  ;;  %6747 = vmatmul.mubr.msk.f32.gmra.mrb[58].mxu1 %vm802_vm5, %v9685_v43  ;;  %v7878_v46 = vunpack.i.h.bf16 %v7876_v19 }
 0x2e0   : > { %4251 = vmatprep.mubr.f32.mxu0 %v10945_v51  ;;  %5238 = vmatprep.mubr.f32.mxu1 %v10945_v51 }
 0x2e1   : > { %v7034_v20 = vpack.c.bf16 %v7883_v30, %v7878_v46  ;;  %v4461_v15 = vsel %vm1839_vm7, %v7877_v7, %v7878_v46 }
 0x2e3   : > { %6692 = vmatmul.mubr.msk.f32.vlgmr.msra.gmra.mrb[32].mxu0 %vm802_vm5, %v8903_v48  ;;  %6748 = vmatmul.mubr.msk.f32.vlgmr.msra.gmra.mrb[44].mxu1 %vm802_vm5, %v9694_v8  ;;  %v10952_v48 = vld [vmem:[#allocation3_spill] sm:$0xff] }
 0x2e4   : > { %7029 = vmatpush1.bf16.msra.mxu0 %v9292_v25  ;;  %7085 = vmatpush1.bf16.msra.mxu1 %v9178_v34  ;;  %v9911_v34 = vpop.permute.xlu0 %7885 }
 0x2e5   : > { %7031 = vmatprep.subr.bf16.mxu0 %v9295_v24  ;;  %7087 = vmatprep.subr.bf16.mxu1 %v9183_v55  ;;  %v10954_v55 = vld [vmem:[#allocation5_spill] sm:$0xff]  ;;  %v7888_v37 = vunpack.i.h.bf16 %v9911_v34 }
 0x2e6   : > { %4257 = vmatprep.mubr.f32.mxu0 %v10945_v51  ;;  %5244 = vmatprep.mubr.f32.mxu1 %v10945_v51 }
 0x2e7   : > { %6693 = vmatmul.mubr.msk.f32.gmra.mrb[34].mxu0 %vm802_vm5, %v8925_v61  ;;  %6749 = vmatmul.mubr.msk.f32.gmra.mrb[46].mxu1 %vm802_vm5, %v9709_v33  ;;  %v10953_v61 = vld [vmem:[#allocation4_spill] sm:$0xff]  ;;  %v10963_v33 = vld [vmem:[#allocation23_spill] sm:$0xff] }
 0x2e8   : > { %7033 = vmatpush1.bf16.msra.mxu0 %v9311_v50  ;;  %7089 = vmatpush1.bf16.msra.mxu1 %v9201_v59  ;;  %v7882_v59 = vunpack.i.l.bf16 %v7881_v1  ;;  %v7896_v6 = vpop.permute.xlu0 %7895 }
 0x2e9   : > { %7035 = vmatprep.subr.bf16.mxu0 %v7034_v20  ;;  %7091 = vmatprep.subr.bf16.mxu1 %v9205_v23  ;;  %v10955_v23 = vld [vmem:[#allocation6_spill] sm:$0xff]  ;;  %v7898_v41 = vunpack.i.h.bf16 %v7896_v6  ;;  %v7897_v2 = vunpack.i.l.bf16 %v7896_v6 }
 0x2ea   : > { %4263 = vmatprep.mubr.f32.mxu0 %v10945_v51  ;;  %5250 = vmatprep.mubr.f32.mxu1 %v10945_v51  ;;  %v4462_v16 = vsel %vm1839_vm7, %v7882_v59, %v7883_v30  ;;  %v10965_v30 = vld [vmem:[#allocation9_spill] sm:$0xff] }
 0x2eb   : > { %6694 = vmatmul.mubr.msk.f32.gmra.mrb[36].mxu0 %vm802_vm5, %v8946_v10  ;;  %6750 = vmatmul.mubr.msk.f32.gmra.mrb[48].mxu1 %vm802_vm5, %v9724_v40  ;;  %v9905_v10 = vpop.permute.xlu1 %7890  ;;  %v7036_v26 = vpack.c.bf16 %v4462_v16, %v4461_v15  ;;  %v4463_v11 = vsel %vm1839_vm7, %v7897_v2, %v7898_v41  ;;  %v7983_v40 = vld [vmem:[%s10887_s3 + $0xe8] sm:$0xff] }
 0x2ec   : > { %4269 = vmatprep.mubr.f32.mxu0 %v10945_v51  ;;  %5256 = vmatprep.mubr.f32.mxu1 %v10945_v51  ;;  %v7893_v13 = vunpack.i.h.bf16 %v9905_v10  ;;  %v10968_v15 = vld [vmem:[#allocation12_spill] sm:$0xff] }
 0x2ee   : > { %v9941_v4 = vpack.c.bf16 %v7893_v13, %v7888_v37 }
 0x2ef   : > { %6695 = vmatmul.mubr.msk.f32.gmra.mrb[38].mxu0 %vm802_vm5, %v10952_v48  ;;  %6751 = vmatmul.mubr.msk.f32.gmra.mrb[50].mxu1 %vm802_vm5, %v9735_v3  ;;  %v7906_v57 = vpop.permute.xlu1 %7905  ;;  %v10966_v48 = vld [vmem:[#allocation27_spill] sm:$0xff] }
 0x2f0   : > { %4275 = vmatprep.mubr.f32.mxu0 %v10945_v51  ;;  %5262 = vmatprep.mubr.f32.mxu1 %v10945_v51  ;;  %v7908_v52 = vunpack.i.h.bf16 %v7906_v57  ;;  %v7907_v21 = vunpack.i.l.bf16 %v7906_v57 }
 0x2f2   : > { %v4464_v47 = vsel %vm1839_vm7, %v7907_v21, %v7908_v52  ;;  %v7038_v28 = vpack.c.bf16 %v7908_v52, %v7898_v41 }
 0x2f3   : > { %6696 = vmatmul.mubr.msk.f32.gmra.mrb[40].mxu0 %vm802_vm5, %v10953_v61  ;;  %6752 = vmatmul.mubr.msk.f32.gmra.mrb[52].mxu1 %vm802_vm5, %v9746_v27  ;;  %v7040_v29 = vpack.c.bf16 %v4464_v47, %v4463_v11  ;;  %v7911_v3 = vpop.permute.xlu1 %7910  ;;  %v7985_v61 = vld [vmem:[%s10887_s3 + $0xf8] sm:$0xff]  ;;  %v10970_v47 = vld [vmem:[#allocation13_spill] sm:$0xff] }
 0x2f4   : > { %4281 = vmatprep.mubr.f32.mxu0 %v10945_v51  ;;  %5268 = vmatprep.mubr.f32.mxu1 %v10945_v51  ;;  %v7913_v1 = vunpack.i.h.bf16 %v7911_v3  ;;  %v7912_v19 = vunpack.i.l.bf16 %v7911_v3  ;;  %v10974_v3 = vld [vmem:[#allocation18_spill] sm:$0xff] }
 0x2f6   : > { %v4621_v52 = vsel %vm1839_vm7, %v7912_v19, %v7913_v1  ;;  %v10978_v19 = vld [vmem:[#allocation31_spill] sm:$0xff] }
 0x2f7   : > { %6697 = vmatmul.mubr.msk.f32.gmra.mrb[42].mxu0 %vm802_vm5, %v10954_v55  ;;  %6753 = vmatmul.mubr.msk.f32.gmra.mrb[54].mxu1 %vm802_vm5, %v9757_v42  ;;  %v7892_v42 = vunpack.i.l.bf16 %v9905_v10  ;;  %v10006_v10 = vpop.permute.xlu1 %7920  ;;  %v10967_v55 = vld [vmem:[#allocation10_spill] sm:$0xff] }
 0x2f8   : > { %4287 = vmatprep.mubr.f32.mxu0 %v10945_v51  ;;  %5274 = vmatprep.mubr.f32.mxu1 %v10945_v51 }
 0x2fb   : > { %6698 = vmatmul.mubr.msk.f32.gmra.mrb[44].mxu0 %vm802_vm5, %v10955_v23  ;;  %6754 = vmatmul.mubr.msk.f32.gmra.mrb[56].mxu1 %vm802_vm5, %v9768_v56 }
 0x2fc   : > { %4293 = vmatprep.mubr.f32.mxu0 %v10945_v51  ;;  %5280 = vmatprep.mubr.f32.mxu1 %v10945_v51 }
 0x2ff   : > { %6699 = vmatmul.mubr.msk.f32.gmra.mrb[46].mxu0 %vm802_vm5, %v10956_v32  ;;  %6755 = vmatmul.mubr.msk.f32.gmra.mrb[58].mxu1 %vm802_vm5, %v9779_v54  ;;  %v10964_v54 = vld [vmem:[#allocation26_spill] sm:$0xff]  ;;  %v7923_v32 = vunpack.i.h.bf16 %v10006_v10 }
 0x300   : > { %4380 = vmatprep.mubr.f32.mxu0 %v10945_v51  ;;  %5367 = vmatprep.mubr.f32.mxu1 %v10945_v51 }
 0x303   : > { %6700 = vmatmul.mubr.msk.f32.vlgmr.msra.gmra.mrb[32].mxu0 %vm802_vm5, %v10957_v49  ;;  %6756 = vmatmul.mubr.msk.f32.vlgmr.msra.gmra.mrb[44].mxu1 %vm802_vm5, %v9790_v58  ;;  %v7984_v58 = vld [vmem:[%s10887_s3 + $0xf0] sm:$0xff] }
 0x304   : > { %7037 = vmatpush1.bf16.msra.mxu0 %v7036_v26  ;;  %7093 = vmatpush1.bf16.msra.mxu1 %v9292_v25  ;;  %v10959_v25 = vld [vmem:[#allocation35_spill] sm:$0xff]  ;;  %v10969_v26 = vld [vmem:[#allocation28_spill] sm:$0xff] }
 0x305   : > { %7039 = vmatprep.subr.bf16.mxu0 %v7038_v28  ;;  %7095 = vmatprep.subr.bf16.mxu1 %v9295_v24  ;;  %v10960_v24 = vld [vmem:[#allocation14_spill] sm:$0xff] }
 0x306   : > { %4386 = vmatprep.mubr.f32.mxu0 %v10945_v51  ;;  %5373 = vmatprep.mubr.f32.mxu1 %v10945_v51 }
 0x307   : > { %6701 = vmatmul.mubr.msk.f32.gmra.mrb[34].mxu0 %vm802_vm5, %v10958_v44  ;;  %6757 = vmatmul.mubr.msk.f32.gmra.mrb[46].mxu1 %vm802_vm5, %v9805_v14  ;;  %v7901_v14 = vpop.permute.xlu0 %7900  ;;  %v10971_v44 = vld [vmem:[#allocation15_spill] sm:$0xff] }
 0x308   : > { %7041 = vmatpush1.bf16.msra.mxu0 %v7040_v29  ;;  %7097 = vmatpush1.bf16.msra.mxu1 %v9311_v50  ;;  %v10962_v50 = vld [vmem:[#allocation20_spill] sm:$0xff]  ;;  %v7903_v23 = vunpack.i.h.bf16 %v7901_v14  ;;  %v7902_v57 = vunpack.i.l.bf16 %v7901_v14  ;;  %v10976_v14 = vld [vmem:[#allocation19_spill] sm:$0xff] }
 0x309   : > { %7043 = vmatprep.subr.bf16.mxu0 %v9941_v4  ;;  %7099 = vmatprep.subr.bf16.mxu1 %v10959_v25 }
 0x30a   : > { %4392 = vmatprep.mubr.f32.mxu0 %v10945_v51  ;;  %5379 = vmatprep.mubr.f32.mxu1 %v10945_v51  ;;  %v10019_v21 = vpack.c.bf16 %v7913_v1, %v7903_v23  ;;  %v4620_v49 = vsel %vm1839_vm7, %v7902_v57, %v7903_v23  ;;  %v10981_v57 = vld [vmem:[#allocation32_spill] sm:$0xff] }
 0x30b   : > { %6702 = vmatmul.mubr.msk.f32.gmra.mrb[36].mxu0 %vm802_vm5, %v10960_v24  ;;  %6758 = vmatmul.mubr.msk.f32.gmra.mrb[48].mxu1 %vm802_vm5, %v9820_v5  ;;  %v7887_v5 = vunpack.i.l.bf16 %v9911_v34  ;;  %v10016_v6 = vpop.permute.xlu0 %7915  ;;  %v10040_v11 = vpack.c.bf16 %v4621_v52, %v4620_v49  ;;  %v10982_v52 = vld [vmem:[#allocation25_spill] sm:$0xff] }
 0x30c   : > { %4398 = vmatprep.mubr.f32.mxu0 %v10945_v51  ;;  %5385 = vmatprep.mubr.f32.mxu1 %v10945_v51  ;;  %v7992_v49 = vld [vmem:[%s10887_s3 + $0x130] sm:$0xff] }
 0x30d   : > { %v4618_v59 = vsel %vm1839_vm7, %v7887_v5, %v7888_v37  ;;  %v7918_v37 = vunpack.i.h.bf16 %v10016_v6 }
 0x30f   : > { %6703 = vmatmul.mubr.msk.f32.gmra.mrb[38].mxu0 %vm802_vm5, %v10961_v17  ;;  %6759 = vmatmul.mubr.msk.f32.gmra.mrb[50].mxu1 %vm802_vm5, %v9831_v12  ;;  %v10972_v17 = vld [vmem:[#allocation29_spill] sm:$0xff] }
 0x310   : > { %4404 = vmatprep.mubr.f32.mxu0 %v10945_v51  ;;  %5391 = vmatprep.mubr.f32.mxu1 %v10945_v51 }
 0x313   : > { %6704 = vmatmul.mubr.msk.f32.gmra.mrb[40].mxu0 %vm802_vm5, %v10962_v50  ;;  %6760 = vmatmul.mubr.msk.f32.gmra.mrb[52].mxu1 %vm802_vm5, %v9842_v60  ;;  %v4619_v60 = vsel %vm1839_vm7, %v7892_v42, %v7893_v13  ;;  %v7986_v13 = vld [vmem:[%s10887_s3 + $0x100] sm:$0xff]  ;;  %v10973_v50 = vld [vmem:[#allocation16_spill] sm:$0xff] }
 0x314   : > { %4410 = vmatprep.mubr.f32.mxu0 %v10945_v51  ;;  %5397 = vmatprep.mubr.f32.mxu1 %v10945_v51  ;;  %v10014_v7 = vpack.c.bf16 %v4619_v60, %v4618_v59 }
 0x316   : > { %v9970_v43 = vpop.f32.mrb[16].mxu0 }
 0x317   : > { %v9972_v8 = vpop.f32.mrb[17].mxu0  ;;  %6705 = vmatmul.mubr.msk.f32.gmra.mrb[42].mxu0 %vm802_vm5, %v10963_v33  ;;  %6761 = vmatmul.mubr.msk.f32.gmra.mrb[54].mxu1 %vm802_vm5, %v7983_v40 }
 0x318   : > { %4416 = vmatprep.mubr.f32.mxu0 %v10945_v51  ;;  %5403 = vmatprep.mubr.f32.mxu1 %v10945_v51 }
 0x31a   : > { %v9982_v27 = vpop.f32.mrb[18].mxu0 }
 0x31b   : > { %v9985_v56 = vpop.f32.mrb[19].mxu0  ;;  %6706 = vmatmul.mubr.msk.f32.gmra.mrb[44].mxu0 %vm802_vm5, %v10964_v54  ;;  %6762 = vmatmul.mubr.msk.f32.gmra.mrb[56].mxu1 %vm802_vm5, %v7984_v58  ;;  %v10975_v58 = vld [vmem:[#allocation30_spill] sm:$0xff] }
 0x31c   : > { %4422 = vmatprep.mubr.f32.mxu0 %v10945_v51  ;;  %5409 = vmatprep.mubr.f32.mxu1 %v10945_v51 }
 0x31e   : > { %v2343_v12 = vpop.f32.mrb[20].mxu0 }
 0x31f   : > { %v9998_v46 = vadd.f32 %v2343_v12, %v10965_v30  ;;  %v2345_v20 = vpop.f32.mrb[21].mxu0  ;;  %6707 = vmatmul.mubr.msk.f32.gmra.mrb[46].mxu0 %vm802_vm5, %v10966_v48  ;;  %6763 = vmatmul.mubr.msk.f32.gmra.mrb[58].mxu1 %vm802_vm5, %v7985_v61  ;;  %v10977_v12 = vld [vmem:[#allocation21_spill] sm:$0xff]  ;;  %v7989_v30 = vld [vmem:[%s10887_s3 + $0x118] sm:$0xff] }
 0x320   : > { %v10009_v34 = vadd.f32 %v2345_v20, %v10967_v55  ;;  %4537 = vmatprep.mubr.f32.mxu0 %v10945_v51  ;;  %5496 = vmatprep.mubr.f32.mxu1 %v10945_v51  ;;  %v10979_v20 = vld [vmem:[#allocation22_spill] sm:$0xff]  ;;  %v10980_v55 = vld [vmem:[#allocation24_spill] sm:$0xff] }
 0x322   : > { %v2349_v16 = vpop.f32.mrb[22].mxu0 }
 0x323   : > { %v10023_v41 = vadd.f32 %v2349_v16, %v10968_v15  ;;  %v2351_v2 = vpop.f32.mrb[23].mxu0  ;;  %6708 = vmatmul.mubr.msk.f32.vlgmr.msra.gmra.mrb[32].mxu0 %vm802_vm5, %v10969_v26  ;;  %6764 = vmatmul.mubr.msk.f32.vlgmr.msra.gmra.mrb[44].mxu1 %vm802_vm5, %v7986_v13  ;;  %v7990_v16 = vld [vmem:[%s10887_s3 + $0x120] sm:$0xff]  ;;  %v7991_v26 = vld [vmem:[%s10887_s3 + $0x128] sm:$0xff]  ;;  %v7922_v13 = vunpack.i.l.bf16 %v10006_v10 }
 0x324   : > { %v10032_v28 = vadd.f32 %v2351_v2, %v10970_v47  ;;  %7045 = vmatpush1.bf16.msra.mxu0 %v10014_v7  ;;  %7101 = vmatpush1.bf16.msra.mxu1 %v9491_v31  ;;  %v10048_v31 = vpack.c.bf16 %v7923_v32, %v7918_v37  ;;  %v10983_v2 = vld [vmem:[#allocation33_spill] sm:$0xff]  ;;  %v10984_v47 = vld [vmem:[#allocation34_spill] sm:$0xff] }
 0x325   : > { %7047 = vmatprep.subr.bf16.mxu0 %v10019_v21  ;;  %7103 = vmatprep.subr.bf16.mxu1 %v9494_v62  ;;  %v7987_v62 = vld [vmem:[%s10887_s3 + $0x108] sm:$0xff] }
 0x326   : > { %v2355_v29 = vpop.f32.mrb[24].mxu0  ;;  %4543 = vmatprep.mubr.f32.mxu0 %v10945_v51  ;;  %5502 = vmatprep.mubr.f32.mxu1 %v10945_v51 }
 0x327   : > { %v10051_v25 = vadd.f32 %v2355_v29, %v10971_v44  ;;  %v2357_v24 = vpop.f32.mrb[25].mxu0  ;;  %6709 = vmatmul.mubr.msk.f32.gmra.mrb[34].mxu0 %vm802_vm5, %v10972_v17  ;;  %6765 = vmatmul.mubr.msk.f32.gmra.mrb[46].mxu1 %vm802_vm5, %v7987_v62  ;;  %v7931_v29 = vpop.permute.xlu1 %7930  ;;  %v7917_v44 = vunpack.i.l.bf16 %v10016_v6  ;;  %v4776_v17 = vsel %vm2228_vm8, %v7922_v13, %v7923_v32 }
 0x328   : > { %v10060_v33 = vadd.f32 %v2357_v24, %v10973_v50  ;;  %7049 = vmatpush1.bf16.msra.mxu0 %v10040_v11  ;;  %7105 = vmatpush1.bf16.msra.mxu1 %v9510_v9  ;;  %v7988_v9 = vld [vmem:[%s10887_s3 + $0x110] sm:$0xff]  ;;  %v7926_v24 = vpop.permute.xlu0 %7925  ;;  %v7933_v62 = vunpack.i.h.bf16 %v7931_v29  ;;  %v7932_v50 = vunpack.i.l.bf16 %v7931_v29  ;;  %v8001_v29 = vld [vmem:[%s10887_s3 + $0x178] sm:$0xff] }
 0x329   : > { %7051 = vmatprep.subr.bf16.mxu0 %v10048_v31  ;;  %7107 = vmatprep.subr.bf16.mxu1 %v9941_v4  ;;  %v4775_v10 = vsel %vm2228_vm8, %v7917_v44, %v7918_v37  ;;  %v7928_v32 = vunpack.i.h.bf16 %v7926_v24 }
 0x32a   : > { %v2361_v40 = vpop.f32.mrb[26].mxu0  ;;  %4549 = vmatprep.mubr.f32.mxu0 %v10945_v51  ;;  %5508 = vmatprep.mubr.f32.mxu1 %v10945_v51 }
 0x32b   : > { %v10069_v42 = vadd.f32 %v2361_v40, %v10974_v3  ;;  %v2363_v54 = vpop.f32.mrb[27].mxu0  ;;  %6710 = vmatmul.mubr.msk.f32.gmra.mrb[36].mxu0 %vm802_vm5, %v10975_v58  ;;  %6766 = vmatmul.mubr.msk.f32.gmra.mrb[48].mxu1 %vm802_vm5, %v7988_v9  ;;  %v7993_v40 = vld [vmem:[%s10887_s3 + $0x138] sm:$0xff]  ;;  %v7927_v3 = vunpack.i.l.bf16 %v7926_v24  ;;  %v10145_v58 = vpack.c.bf16 %v7933_v62, %v7928_v32  ;;  %v7994_v9 = vld [vmem:[%s10887_s3 + $0x140] sm:$0xff] }
 0x32c   : > { %v10078_v4 = vadd.f32 %v2363_v54, %v10976_v14  ;;  %4555 = vmatprep.mubr.f32.mxu0 %v10945_v51  ;;  %5514 = vmatprep.mubr.f32.mxu1 %v10945_v51  ;;  %v10142_v54 = vpack.c.bf16 %v4776_v17, %v4775_v10 }
 0x32d   : > { %v4777_v6 = vsel %vm2228_vm8, %v7927_v3, %v7928_v32  ;;  %v8002_v32 = vld [vmem:[%s10887_s3 + $0x180] sm:$0xff] }
 0x32e   : > { %v2367_v5 = vpop.f32.mrb[28].mxu0 }
 0x32f   : > { %v10083_v60 = vadd.f32 %v2367_v5, %v10977_v12  ;;  %v2369_v1 = vpop.f32.mrb[29].mxu0  ;;  %6711 = vmatmul.mubr.msk.f32.gmra.mrb[38].mxu0 %vm802_vm5, %v10978_v19  ;;  %6767 = vmatmul.mubr.msk.f32.gmra.mrb[50].mxu1 %vm802_vm5, %v7989_v30  ;;  %v7999_v19 = vld [vmem:[%s10887_s3 + $0x168] sm:$0xff] }
 0x330   : > { %v10092_v48 = vadd.f32 %v2369_v1, %v10979_v20  ;;  %4561 = vmatprep.mubr.f32.mxu0 %v10945_v51  ;;  %5520 = vmatprep.mubr.f32.mxu1 %v10945_v51 }
 0x332   : > { %v2373_v61 = vpop.f32.mrb[30].mxu0 }
 0x333   : > { %v10097_v59 = vadd.f32 %v2373_v61, %v10980_v55  ;;  %v2375_v23 = vpop.f32.mrb[31].mxu0  ;;  %6712 = vmatmul.mubr.msk.f32.gmra.mrb[40].mxu0 %vm802_vm5, %v10981_v57  ;;  %6768 = vmatmul.mubr.msk.f32.gmra.mrb[52].mxu1 %vm802_vm5, %v7990_v16  ;;  %v8000_v16 = vld [vmem:[%s10887_s3 + $0x170] sm:$0xff]  ;;  %v8017_v61 = vld [vmem:[%s10887_s3 + $0x1c0] sm:$0xff] }
 0x334   : > { %v10106_v15 = vadd.f32 %v2375_v23, %v10982_v52  ;;  %4567 = vmatprep.mubr.f32.mxu0 %v10945_v51  ;;  %5526 = vmatprep.mubr.f32.mxu1 %v10945_v51 }
 0x337   : > { %6713 = vmatmul.mubr.msk.f32.gmra.mrb[42].mxu0 %vm802_vm5, %v10983_v2  ;;  %6769 = vmatmul.mubr.msk.f32.gmra.mrb[54].mxu1 %vm802_vm5, %v7991_v26 }
 0x338   : > { %4573 = vmatprep.mubr.f32.mxu0 %v10945_v51  ;;  %5532 = vmatprep.mubr.f32.mxu1 %v10945_v51 }
 0x33b   : > { %6714 = vmatmul.mubr.msk.f32.gmra.mrb[44].mxu0 %vm802_vm5, %v10984_v47  ;;  %6770 = vmatmul.mubr.msk.f32.gmra.mrb[56].mxu1 %vm802_vm5, %v7992_v49 }
 0x33c   : > { %4579 = vmatprep.mubr.f32.mxu0 %v10945_v51  ;;  %5538 = vmatprep.mubr.f32.mxu1 %v10945_v51 }
 0x33f   : > { %6715 = vmatmul.mubr.msk.f32.gmra.mrb[46].mxu0 %vm802_vm5, %v9276_v38  ;;  %6771 = vmatmul.mubr.msk.f32.gmra.mrb[58].mxu1 %vm802_vm5, %v7993_v40  ;;  %v4778_v38 = vsel %vm2228_vm8, %v7932_v50, %v7933_v62 }
 0x340   : > { %4694 = vmatprep.mubr.f32.mxu0 %v10945_v51  ;;  %5625 = vmatprep.mubr.f32.mxu1 %v10945_v51  ;;  %v10158_v37 = vpack.c.bf16 %v4778_v38, %v4777_v6 }
 0x343   : > { %6716 = vmatmul.mubr.msk.f32.vlgmr.msra.gmra.mrb[32].mxu0 %vm802_vm5, %v9289_v35  ;;  %6772 = vmatmul.mubr.msk.f32.vlgmr.msra.gmra.mrb[44].mxu1 %vm802_vm5, %v7994_v9  ;;  %v7995_v35 = vld [vmem:[%s10887_s3 + $0x148] sm:$0xff] }
 0x344   : > { %7053 = vmatpush1.bf16.msra.mxu0 %v10142_v54  ;;  %7109 = vmatpush1.bf16.msra.mxu1 %v10014_v7  ;;  %v10179_v7 = vpop.permute.xlu0 %7935 }
 0x345   : > { %7055 = vmatprep.subr.bf16.mxu0 %v10145_v58  ;;  %7111 = vmatprep.subr.bf16.mxu1 %v10019_v21  ;;  %v10183_v21 = vpop.permute.xlu1 %7940  ;;  %v7938_v38 = vunpack.i.h.bf16 %v10179_v7 }
 0x346   : > { %4700 = vmatprep.mubr.f32.mxu0 %v10945_v51  ;;  %5631 = vmatprep.mubr.f32.mxu1 %v10945_v51  ;;  %v7943_v50 = vunpack.i.h.bf16 %v10183_v21 }
 0x347   : > { %6717 = vmatmul.mubr.msk.f32.gmra.mrb[34].mxu0 %vm802_vm5, %v9306_v63  ;;  %6773 = vmatmul.mubr.msk.f32.gmra.mrb[46].mxu1 %vm802_vm5, %v7995_v35  ;;  %v7996_v63 = vld [vmem:[%s10887_s3 + $0x150] sm:$0xff] }
 0x348   : > { %7057 = vmatpush1.bf16.msra.mxu0 %v10158_v37  ;;  %7113 = vmatpush1.bf16.msra.mxu1 %v10040_v11  ;;  %v10193_v11 = vpop.permute.xlu0 %7945 }
 0x349   : > { %7115 = vmatprep.subr.bf16.mxu1 %v10048_v31  ;;  %4706 = vmatprep.mubr.f32.mxu0 %v10945_v51  ;;  %v7998_v31 = vld [vmem:[%s10887_s3 + $0x160] sm:$0xff] }
 0x34a   : > { %5637 = vmatprep.mubr.f32.mxu1 %v10945_v51 }
 0x34b   : > { %6718 = vmatmul.mubr.msk.f32.gmra.mrb[36].mxu0 %vm802_vm5, %v9324_v53  ;;  %6774 = vmatmul.mubr.msk.f32.gmra.mrb[48].mxu1 %vm802_vm5, %v7996_v63  ;;  %v7997_v53 = vld [vmem:[%s10887_s3 + $0x158] sm:$0xff] }
 0x34c   : > { %4712 = vmatprep.mubr.f32.mxu0 %v10945_v51  ;;  %5643 = vmatprep.mubr.f32.mxu1 %v10945_v51  ;;  %v10205_v14 = vpop.permute.xlu0 %2396 }
 0x34d   : > { %v10209_v12 = vadd.f32 %v10205_v14, %v9970_v43  ;;  %v10222_v30 = vadd.f32 %v10205_v14, %v9972_v8 }
 0x34f   : > { %6719 = vmatmul.mubr.msk.f32.gmra.mrb[38].mxu0 %vm802_vm5, %v9339_v18  ;;  %6775 = vmatmul.mubr.msk.f32.gmra.mrb[50].mxu1 %vm802_vm5, %v7997_v53  ;;  %v10203_v18 = vpop.permute.xlu1 %7950  ;;  %v10337_v53 = vld [vmem:[%s10887_s3 + $0x208] sm:$0xff] }
 0x350   : > { %4718 = vmatprep.mubr.f32.mxu0 %v10945_v51  ;;  %5649 = vmatprep.mubr.f32.mxu1 %v10945_v51  ;;  %v10259_v2 = vpop.permute.xlu0 %2406  ;;  %v7952_v17 = vunpack.i.l.bf16 %v10203_v18 }
 0x351   : > { %v10278_v44 = vadd.f32 %v10009_v34, %v10259_v2 }
 0x353   : > { %6720 = vmatmul.mubr.msk.f32.gmra.mrb[40].mxu0 %vm802_vm5, %v9350_v36  ;;  %6776 = vmatmul.mubr.msk.f32.gmra.mrb[52].mxu1 %vm802_vm5, %v7998_v31  ;;  %v10231_v20 = vpop.permute.xlu1 %2401  ;;  %v8004_v31 = vld [vmem:[%s10887_s3 + $0x188] sm:$0xff] }
 0x354   : > { %4724 = vmatprep.mubr.f32.mxu0 %v10945_v51  ;;  %5655 = vmatprep.mubr.f32.mxu1 %v10945_v51  ;;  %v10237_v8 = vadd.f32 %v10231_v20, %v9982_v27  ;;  %v10250_v52 = vadd.f32 %v10231_v20, %v9985_v56  ;;  %v10265_v56 = vadd.f32 %v9998_v46, %v10259_v2  ;;  %v10319_v9 = vpop.permute.xlu0 %2416 }
 0x355   : > { %v10329_v35 = vadd.f32 %v10051_v25, %v10319_v9  ;;  %v10347_v25 = vadd.f32 %v10060_v33, %v10319_v9 }
 0x356   : > { %v3608_v5 = vpop.f32.mrb[28].mxu1 }
 0x357   : > { %v10212_v36 = vadd.f32 %v3608_v5, %v10205_v14  ;;  %v3610_v1 = vpop.f32.mrb[29].mxu1  ;;  %6721 = vmatmul.mubr.msk.f32.gmra.mrb[42].mxu0 %vm802_vm5, %v9361_v45  ;;  %6777 = vmatmul.mubr.msk.f32.gmra.mrb[54].mxu1 %vm802_vm5, %v7999_v19  ;;  %v10287_v24 = vpop.permute.xlu1 %2411 }
 0x358   : > { %v10225_v43 = vadd.f32 %v3610_v1, %v10205_v14  ;;  %4730 = vmatprep.mubr.f32.mxu0 %v10945_v51  ;;  %5661 = vmatprep.mubr.f32.mxu1 %v10945_v51  ;;  %v10294_v34 = vadd.f32 %v10023_v41, %v10287_v24  ;;  %v10307_v3 = vadd.f32 %v10032_v28, %v10287_v24  ;;  %v10475_v1 = vld [vmem:[%s10887_s3 + $0x230] sm:$0xff] }
 0x359   : > { %v3687_v45 = vmax.f32 %v10209_v12, %v10212_v36 }
 0x35a   : > { %v3614_v55 = vpop.f32.mrb[30].mxu1 }
 0x35b   : > { %v10240_v23 = vadd.f32 %v3614_v55, %v10231_v20  ;;  %v3616_v57 = vpop.f32.mrb[31].mxu1  ;;  %6722 = vmatmul.mubr.msk.f32.gmra.mrb[44].mxu0 %vm802_vm5, %v9372_v39  ;;  %6778 = vmatmul.mubr.msk.f32.gmra.mrb[56].mxu1 %vm802_vm5, %v8000_v16  ;;  %v10357_v19 = vpop.permute.xlu1 %2421  ;;  %v10437_v55 = vld [vmem:[%s10887_s3 + $0x220] sm:$0xff] }
 0x35c   : > { %v10253_v27 = vadd.f32 %v3616_v57, %v10231_v20  ;;  %4736 = vmatprep.mubr.f32.mxu0 %v10945_v51  ;;  %5667 = vmatprep.mubr.f32.mxu1 %v10945_v51  ;;  %v10363_v57 = vadd.f32 %v10069_v42, %v10357_v19  ;;  %v10381_v42 = vadd.f32 %v10078_v4, %v10357_v19 }
 0x35e   : > { %v3620_v13 = vpop.f32.mrb[32].mxu1 }
 0x35f   : > { %v10268_v47 = vadd.f32 %v3620_v13, %v10259_v2  ;;  %v3622_v49 = vpop.f32.mrb[33].mxu1  ;;  %6723 = vmatmul.mubr.msk.f32.gmra.mrb[46].mxu0 %vm802_vm5, %v9383_v0  ;;  %6779 = vmatmul.mubr.msk.f32.gmra.mrb[58].mxu1 %vm802_vm5, %v8001_v29  ;;  %v10371_v13 = vld [vmem:[%s10887_s3 + $0x210] sm:$0xff]  ;;  %v8015_v0 = vld [vmem:[%s10887_s3 + $0x238] sm:$0xff] }
 0x360   : > { %v10281_v46 = vadd.f32 %v3622_v49, %v10259_v2  ;;  %4851 = vmatprep.mubr.f32.mxu0 %v10945_v51  ;;  %5754 = vmatprep.mubr.f32.mxu1 %v10945_v51  ;;  %v8006_v49 = vld [vmem:[%s10887_s3 + $0x190] sm:$0xff] }
 0x362   : > { %v3626_v62 = vpop.f32.mrb[34].mxu1 }
 0x363   : > { %v10297_v40 = vadd.f32 %v3626_v62, %v10287_v24  ;;  %v3628_v10 = vpop.f32.mrb[35].mxu1  ;;  %6724 = vmatmul.mubr.msk.f32.vlgmr.msra.gmra.mrb[32].mxu0 %vm802_vm5, %v9394_v22  ;;  %6780 = vmatmul.mubr.msk.f32.vlgmr.msra.gmra.mrb[44].mxu1 %vm802_vm5, %v8002_v32  ;;  %v8010_v32 = vld [vmem:[%s10887_s3 + $0x1a0] sm:$0xff]  ;;  %v7953_v22 = vunpack.i.h.bf16 %v10203_v18  ;;  %v7948_v18 = vunpack.i.h.bf16 %v10193_v11 }
 0x364   : > { %v10310_v41 = vadd.f32 %v3628_v10, %v10287_v24  ;;  %7117 = vmatpush1.bf16.msra.mxu1 %v10142_v54  ;;  %4857 = vmatprep.mubr.f32.mxu0 %v10945_v51  ;;  %v7122_v54 = vpack.c.bf16 %v7943_v50, %v7938_v38  ;;  %v10390_v10 = vpop.permute.xlu0 %2426 }
 0x365   : > { %7119 = vmatprep.subr.bf16.mxu1 %v10145_v58  ;;  %5760 = vmatprep.mubr.f32.mxu1 %v10945_v51  ;;  %v10396_v4 = vadd.f32 %v10083_v60, %v10390_v10  ;;  %v10414_v60 = vadd.f32 %v10092_v48, %v10390_v10  ;;  %v5967_v26 = vsel %vm2228_vm8, %v7952_v17, %v7953_v22  ;;  %v8022_v17 = vld [vmem:[%s10887_s3 + $0x1e8] sm:$0xff] }
 0x366   : > { %v3632_v6 = vpop.f32.mrb[36].mxu1  ;;  %v7126_v39 = vpack.c.bf16 %v7953_v22, %v7948_v18  ;;  %v8023_v22 = vld [vmem:[%s10887_s3 + $0x1f0] sm:$0xff] }
 0x367   : > { %v10332_v63 = vadd.f32 %v3632_v6, %v10319_v9  ;;  %v3634_v58 = vpop.f32.mrb[37].mxu1  ;;  %6725 = vmatmul.mubr.msk.f32.gmra.mrb[34].mxu0 %vm802_vm5, %v10337_v53  ;;  %6781 = vmatmul.mubr.msk.f32.gmra.mrb[46].mxu1 %vm802_vm5, %v8004_v31  ;;  %v10404_v31 = vld [vmem:[%s10887_s3 + $0x218] sm:$0xff] }
 0x368   : > { %v10350_v5 = vadd.f32 %v3634_v58, %v10319_v9  ;;  %7121 = vmatpush1.bf16.msra.mxu1 %v10158_v37  ;;  %4863 = vmatprep.mubr.f32.mxu0 %v10945_v51 }
 0x369   : > { %7123 = vmatprep.subr.bf16.mxu1 %v7122_v54  ;;  %5766 = vmatprep.mubr.f32.mxu1 %v10945_v51 }
 0x36a   : > { %v3638_v33 = vpop.f32.mrb[38].mxu1 }
 0x36b   : > { %v10366_v37 = vadd.f32 %v3638_v33, %v10357_v19  ;;  %v3640_v16 = vpop.f32.mrb[39].mxu1  ;;  %6726 = vmatmul.mubr.msk.f32.gmra.mrb[36].mxu0 %vm802_vm5, %v10371_v13  ;;  %6782 = vmatmul.mubr.msk.f32.gmra.mrb[48].mxu1 %vm802_vm5, %v8006_v49  ;;  %v8008_v33 = vld [vmem:[%s10887_s3 + $0x198] sm:$0xff]  ;;  %v8014_v49 = vld [vmem:[%s10887_s3 + $0x1b0] sm:$0xff] }
 0x36c   : > { %v10384_v29 = vadd.f32 %v3640_v16, %v10357_v19  ;;  %4869 = vmatprep.mubr.f32.mxu0 %v10945_v51  ;;  %5772 = vmatprep.mubr.f32.mxu1 %v10945_v51 }
 0x36e   : > { %v3644_v6 = vpop.f32.mrb[40].mxu1 }
 0x36f   : > { %v10399_v54 = vadd.f32 %v3644_v6, %v10390_v10  ;;  %v3646_v58 = vpop.f32.mrb[41].mxu1  ;;  %6727 = vmatmul.mubr.msk.f32.gmra.mrb[38].mxu0 %vm802_vm5, %v10404_v31  ;;  %6783 = vmatmul.mubr.msk.f32.gmra.mrb[50].mxu1 %vm802_vm5, %v8008_v33  ;;  %v10423_v6 = vpop.permute.xlu1 %2431 }
 0x370   : > { %v10417_v16 = vadd.f32 %v3646_v58, %v10390_v10  ;;  %4875 = vmatprep.mubr.f32.mxu0 %v10945_v51  ;;  %5778 = vmatprep.mubr.f32.mxu1 %v10945_v51  ;;  %v10429_v48 = vadd.f32 %v10097_v59, %v10423_v6  ;;  %v10447_v59 = vadd.f32 %v10106_v15, %v10423_v6  ;;  %v8012_v15 = vld [vmem:[%s10887_s3 + $0x1a8] sm:$0xff] }
 0x372   : > { %v3650_v33 = vpop.f32.mrb[42].mxu1 }
 0x373   : > { %v10432_v58 = vadd.f32 %v3650_v33, %v10423_v6  ;;  %v3652_v62 = vpop.f32.mrb[43].mxu1  ;;  %6728 = vmatmul.mubr.msk.f32.gmra.mrb[40].mxu0 %vm802_vm5, %v10437_v55  ;;  %6784 = vmatmul.mubr.msk.f32.gmra.mrb[52].mxu1 %vm802_vm5, %v8010_v32  ;;  %v10461_v32 = vld [vmem:[%s10887_s3 + $0x228] sm:$0xff] }
 0x374   : > { %v10450_v33 = vadd.f32 %v3652_v62, %v10423_v6  ;;  %4881 = vmatprep.mubr.f32.mxu0 %v10945_v51  ;;  %5784 = vmatprep.mubr.f32.mxu1 %v10945_v51  ;;  %v7942_v62 = vunpack.i.l.bf16 %v10183_v21 }
 0x376   : > { %v5965_v28 = vsel %vm2228_vm8, %v7942_v62, %v7943_v50  ;;  %v7947_v50 = vunpack.i.l.bf16 %v10193_v11  ;;  %v8018_v11 = vld [vmem:[%s10887_s3 + $0x1c8] sm:$0xff] }
 0x377   : > { %6729 = vmatmul.mubr.msk.f32.gmra.mrb[42].mxu0 %vm802_vm5, %v10461_v32  ;;  %6785 = vmatmul.mubr.msk.f32.gmra.mrb[54].mxu1 %vm802_vm5, %v8012_v15  ;;  %v7937_v15 = vunpack.i.l.bf16 %v10179_v7 }
 0x378   : > { %4887 = vmatprep.mubr.f32.mxu0 %v10945_v51  ;;  %5790 = vmatprep.mubr.f32.mxu1 %v10945_v51  ;;  %v5966_v7 = vsel %vm2228_vm8, %v7947_v50, %v7948_v18  ;;  %v6143_v18 = vld [vmem:[%s10889_s5 + $0x30] sm:$0xff] }
 0x379   : > { %v5964_v21 = vsel %vm2228_vm8, %v7937_v15, %v7938_v38  ;;  %v7128_v38 = vpack.c.bf16 %v5967_v26, %v5966_v7  ;;  %v8021_v26 = vld [vmem:[%s10887_s3 + $0x1e0] sm:$0xff]  ;;  %v6148_v7 = vld [vmem:[%s10889_s5 + $0x58] sm:$0xff] }
 0x37a   : > { %v7124_v62 = vpack.c.bf16 %v5965_v28, %v5964_v21  ;;  %v8024_v28 = vld [vmem:[%s10887_s3 + $0x1f8] sm:$0xff]  ;;  %v8025_v15 = vld [vmem:[%s10887_s3 + $0x200] sm:$0xff] }
 0x37b   : > { %6730 = vmatmul.mubr.msk.f32.gmra.mrb[44].mxu0 %vm802_vm5, %v10475_v1  ;;  %6786 = vmatmul.mubr.msk.f32.gmra.mrb[56].mxu1 %vm802_vm5, %v8014_v49  ;;  %v8016_v49 = vld [vmem:[%s10887_s3 + $0x1b8] sm:$0xff]  ;;  %v6141_v21 = vld [vmem:[%s10889_s5 + $0x20] sm:$0xff] }
 0x37c   : > { %4893 = vmatprep.mubr.f32.mxu0 %v10945_v51  ;;  %5796 = vmatprep.mubr.f32.mxu1 %v10945_v51  ;;  %v7136_v50 = vpack.c.bf16 %v6143_v18, %v6141_v21  ;;  %v6157_v18 = vld [vmem:[%s10889_s5 + $0xa0] sm:$0xff] }
 0x37f   : > { %6731 = vmatmul.mubr.msk.f32.gmra.mrb[46].mxu0 %vm802_vm5, %v8015_v0  ;;  %6787 = vmatmul.mubr.msk.f32.gmra.mrb[58].mxu1 %vm802_vm5, %v8016_v49 }
 0x380   : > { %5883 = vmatprep.mubr.f32.mxu1 %v10945_v51 }
 0x383   : > { %6788 = vmatmul.mubr.msk.f32.vlgmr.msra.gmra.mrb[44].mxu1 %vm802_vm5, %v8017_v61  ;;  %v8019_v61 = vld [vmem:[%s10887_s3 + $0x1d0] sm:$0xff] }
 0x384   : > { %7125 = vmatpush1.bf16.msra.mxu1 %v7124_v62  ;;  %5889 = vmatprep.mubr.f32.mxu1 %v10945_v51  ;;  %v6146_v62 = vld [vmem:[%s10889_s5 + $0x48] sm:$0xff] }
 0x385   : > { %7127 = vmatprep.subr.bf16.mxu1 %v7126_v39  ;;  %v8020_v39 = vld [vmem:[%s10887_s3 + $0x1d8] sm:$0xff] }
 0x387   : > { %6789 = vmatmul.mubr.msk.f32.gmra.mrb[46].mxu1 %vm802_vm5, %v8018_v11  ;;  %v6145_v11 = vld [vmem:[%s10889_s5 + $0x40] sm:$0xff] }
 0x388   : > { %7129 = vmatpush1.bf16.msra.mxu1 %v7128_v38  ;;  %5895 = vmatprep.mubr.f32.mxu1 %v10945_v51  ;;  %v7138_v38 = vpack.c.bf16 %v6148_v7, %v6146_v62  ;;  %v6162_v62 = vld [vmem:[%s10889_s5 + $0xc8] sm:$0xff]  ;;  %v6164_v7 = vld [vmem:[%s10889_s5 + $0xd8] sm:$0xff] }
 0x38b   : > { %6790 = vmatmul.mubr.msk.f32.gmra.mrb[48].mxu1 %vm802_vm5, %v8019_v61  ;;  %v6147_v61 = vld [vmem:[%s10889_s5 + $0x50] sm:$0xff] }
 0x38c   : > { %5901 = vmatprep.mubr.f32.mxu1 %v10945_v51 }
 0x38f   : > { %6791 = vmatmul.mubr.msk.f32.gmra.mrb[50].mxu1 %vm802_vm5, %v8020_v39  ;;  %v7140_v39 = vpack.c.bf16 %v6147_v61, %v6145_v11  ;;  %v7154_v11 = vpack.c.bf16 %v6164_v7, %v6162_v62  ;;  %v6161_v61 = vld [vmem:[%s10889_s5 + $0xc0] sm:$0xff]  ;;  %v6175_v62 = vld [vmem:[%s10889_s5 + $0x130] sm:$0xff]  ;;  %v6178_v7 = vld [vmem:[%s10889_s5 + $0x148] sm:$0xff] }
 0x390   : > { %5907 = vmatprep.mubr.f32.mxu1 %v10945_v51 }
 0x393   : > { %6792 = vmatmul.mubr.msk.f32.gmra.mrb[52].mxu1 %vm802_vm5, %v8021_v26  ;;  %v6150_v26 = vld [vmem:[%s10889_s5 + $0x68] sm:$0xff] }
 0x394   : > { %5913 = vmatprep.mubr.f32.mxu1 %v10945_v51 }
 0x397   : > { %6793 = vmatmul.mubr.msk.f32.gmra.mrb[54].mxu1 %vm802_vm5, %v8022_v17  ;;  %v6152_v17 = vld [vmem:[%s10889_s5 + $0x78] sm:$0xff] }
 0x398   : > { %5919 = vmatprep.mubr.f32.mxu1 %v10945_v51 }
 0x39b   : > { %6794 = vmatmul.mubr.msk.f32.gmra.mrb[56].mxu1 %vm802_vm5, %v8023_v22  ;;  %v7142_v22 = vpack.c.bf16 %v6152_v17, %v6150_v26  ;;  %v6166_v26 = vld [vmem:[%s10889_s5 + $0xe8] sm:$0xff]  ;;  %v6168_v17 = vld [vmem:[%s10889_s5 + $0xf8] sm:$0xff] }
 0x39c   : > { %5925 = vmatprep.mubr.f32.mxu1 %v10945_v51 }
 0x39f   : > { %6795 = vmatmul.mubr.msk.f32.gmra.mrb[58].mxu1 %vm802_vm5, %v8024_v28  ;;  %v6149_v28 = vld [vmem:[%s10889_s5 + $0x60] sm:$0xff] }
 0x3a0   : > { %6040 = vmatprep.mubr.f32.mxu1 %v10945_v51 }
 0x3a3   : > { %6796 = vmatmul.mubr.msk.f32.vlgmr.msra.gmra.mrb[44].mxu1 %vm802_vm5, %v8025_v15  ;;  %v6151_v15 = vld [vmem:[%s10889_s5 + $0x70] sm:$0xff] }
 0x3a4   : > { %6046 = vmatprep.mubr.f32.mxu1 %v10945_v51 }
 0x3a7   : > { %6797 = vmatmul.mubr.msk.f32.gmra.mrb[46].mxu1 %vm802_vm5, %v10337_v53  ;;  %v6138_v53 = vld [vmem:[%s10889_s5 + $0x8] sm:$0xff] }
 0x3a8   : > { %6052 = vmatprep.mubr.f32.mxu1 %v10945_v51 }
 0x3ab   : > { %6798 = vmatmul.mubr.msk.f32.gmra.mrb[48].mxu1 %vm802_vm5, %v10371_v13 }
 0x3ac   : > { %6058 = vmatprep.mubr.f32.mxu1 %v10945_v51 }
 0x3af   : > { %6799 = vmatmul.mubr.msk.f32.gmra.mrb[50].mxu1 %vm802_vm5, %v10404_v31  ;;  %v6137_v31 = vld [vmem:[%s10889_s5] sm:$0xff] }
 0x3b0   : > { %6064 = vmatprep.mubr.f32.mxu1 %v10945_v51 }
 0x3b3   : > { %6800 = vmatmul.mubr.msk.f32.gmra.mrb[52].mxu1 %vm802_vm5, %v10437_v55  ;;  %v6140_v55 = vld [vmem:[%s10889_s5 + $0x18] sm:$0xff] }
 0x3b4   : > { %6070 = vmatprep.mubr.f32.mxu1 %v10945_v51  ;;  %v7130_v13 = vpack.c.bf16 %v6140_v55, %v6138_v53  ;;  %v7144_v53 = vpack.c.bf16 %v6151_v15, %v6149_v28  ;;  %v6154_v55 = vld [vmem:[%s10889_s5 + $0x88] sm:$0xff]  ;;  %v7158_v28 = vpack.c.bf16 %v6168_v17, %v6166_v26  ;;  %v6165_v15 = vld [vmem:[%s10889_s5 + $0xe0] sm:$0xff]  ;;  %v6179_v26 = vld [vmem:[%s10889_s5 + $0x150] sm:$0xff] }
 0x3b5   : > { %v6182_v17 = vld [vmem:[%s10889_s5 + $0x168] sm:$0xff] }
 0x3b6   : > { %7131 = vmatprep.subr.bf16.mxu0 %v7130_v13  ;;  %v6156_v13 = vld [vmem:[%s10889_s5 + $0x98] sm:$0xff] }
 0x3b7   : > { %6801 = vmatmul.mubr.msk.f32.gmra.mrb[54].mxu1 %vm802_vm5, %v10461_v32  ;;  %v6144_v32 = vld [vmem:[%s10889_s5 + $0x38] sm:$0xff] }
 0x3b8   : > { %6076 = vmatprep.mubr.f32.mxu1 %v10945_v51 }
 0x3bb   : > { %6802 = vmatmul.mubr.msk.f32.gmra.mrb[56].mxu1 %vm802_vm5, %v10475_v1  ;;  %v6139_v1 = vld [vmem:[%s10889_s5 + $0x10] sm:$0xff] }
 0x3bc   : > { %6082 = vmatprep.mubr.f32.mxu1 %v10945_v51  ;;  %v7132_v51 = vpack.c.bf16 %v6139_v1, %v6137_v31  ;;  %v6153_v31 = vld [vmem:[%s10889_s5 + $0x80] sm:$0xff]  ;;  %v7146_v1 = vpack.c.bf16 %v6156_v13, %v6154_v55  ;;  %v6170_v55 = vld [vmem:[%s10889_s5 + $0x108] sm:$0xff]  ;;  %v6172_v13 = vld [vmem:[%s10889_s5 + $0x118] sm:$0xff] }
 0x3be   : > { %7133 = vmatpush1.bf16.msra.mxu0 %v7132_v51  ;;  %v6155_v51 = vld [vmem:[%s10889_s5 + $0x90] sm:$0xff] }
 0x3bf   : > { %6803 = vmatmul.mubr.msk.f32.gmra.mrb[58].mxu1 %vm802_vm5, %v8015_v0  ;;  %v6142_v0 = vld [vmem:[%s10889_s5 + $0x28] sm:$0xff] }
 0x3c0   : > { %v7134_v49 = vpack.c.bf16 %v6144_v32, %v6142_v0  ;;  %v6158_v0 = vld [vmem:[%s10889_s5 + $0xa8] sm:$0xff]  ;;  %v6160_v32 = vld [vmem:[%s10889_s5 + $0xb8] sm:$0xff] }
 0x3c1   : > { %v7150_v21 = vpack.c.bf16 %v6160_v32, %v6158_v0  ;;  %v6171_v0 = vld [vmem:[%s10889_s5 + $0x110] sm:$0xff]  ;;  %v6174_v32 = vld [vmem:[%s10889_s5 + $0x128] sm:$0xff] }
 0x3c2   : > { %7135 = vmatprep.subr.bf16.mxu0 %v7134_v49  ;;  %v7148_v49 = vpack.c.bf16 %v6155_v51, %v6153_v31  ;;  %v6169_v51 = vld [vmem:[%s10889_s5 + $0x100] sm:$0xff] }
 0x3c3   : > { %7137 = vmatpush1.bf16.msra.mxu0 %v7136_v50  ;;  %v6159_v50 = vld [vmem:[%s10889_s5 + $0xb0] sm:$0xff] }
 0x3c4   : > { %7139 = vmatprep.subr.bf16.mxu0 %v7138_v38  ;;  %v7152_v38 = vpack.c.bf16 %v6159_v50, %v6157_v18  ;;  %v6173_v50 = vld [vmem:[%s10889_s5 + $0x120] sm:$0xff] }
 0x3c7   : > { %7141 = vmatpush1.bf16.msra.mxu0 %v7140_v39  ;;  %v6163_v39 = vld [vmem:[%s10889_s5 + $0xd0] sm:$0xff] }
 0x3c8   : > { %7143 = vmatprep.subr.bf16.mxu0 %v7142_v22  ;;  %v7156_v22 = vpack.c.bf16 %v6163_v39, %v6161_v61  ;;  %v6177_v39 = vld [vmem:[%s10889_s5 + $0x140] sm:$0xff] }
 0x3cb   : > { %7145 = vmatpush1.bf16.msra.mxu0 %v7144_v53  ;;  %v6167_v53 = vld [vmem:[%s10889_s5 + $0xf0] sm:$0xff] }
 0x3cc   : > { %7147 = vmatprep.subr.bf16.mxu0 %v7146_v1  ;;  %v7160_v31 = vpack.c.bf16 %v6167_v53, %v6165_v15  ;;  %v7162_v1 = vpack.c.bf16 %v6172_v13, %v6170_v55  ;;  %v6181_v53 = vld [vmem:[%s10889_s5 + $0x160] sm:$0xff]  ;;  %v6183_v55 = vld [vmem:[%s10889_s5 + $0x170] sm:$0xff] }
 0x3cd   : > { %v7176_v13 = vpack.c.bf16 %v6183_v55, %v6181_v53  ;;  %v10987_v55 = vmax.f32 %v10250_v52, %v10253_v27  ;;  %v10990_v27 = vmax.f32 %v10294_v34, %v10297_v40  ;;  %v10993_v34 = vmax.f32 %v10347_v25, %v10350_v5 }
 0x3cf   : > { %7149 = vmatpush1.bf16.msra.mxu0 %v7148_v49  ;;  %v6176_v49 = vld [vmem:[%s10889_s5 + $0x138] sm:$0xff] }
 0x3d0   : > { %7151 = vmatprep.subr.bf16.mxu0 %v7150_v21  ;;  %v7164_v21 = vpack.c.bf16 %v6171_v0, %v6169_v51  ;;  %v7166_v18 = vpack.c.bf16 %v6176_v49, %v6174_v32  ;;  %v6185_v0 = vld [vmem:[%s10889_s5 + $0x180] sm:$0xff]  ;;  %v6187_v32 = vld [vmem:[%s10889_s5 + $0x190] sm:$0xff] }
 0x3d1   : > { %v7180_v49 = vpack.c.bf16 %v6187_v32, %v6185_v0 }
 0x3d3   : > { %7153 = vmatpush1.bf16.msra.mxu0 %v7152_v38  ;;  %v6180_v38 = vld [vmem:[%s10889_s5 + $0x158] sm:$0xff] }
 0x3d4   : > { %7155 = vmatprep.subr.bf16.mxu0 %v7154_v11  ;;  %v7168_v11 = vpack.c.bf16 %v6175_v62, %v6173_v50  ;;  %v7170_v61 = vpack.c.bf16 %v6180_v38, %v6178_v7 }
 0x3d7   : > { %7157 = vmatpush1.bf16.msra.mxu0 %v7156_v22  ;;  %v6184_v22 = vld [vmem:[%s10889_s5 + $0x178] sm:$0xff] }
 0x3d8   : > { %7159 = vmatprep.subr.bf16.mxu0 %v7158_v28  ;;  %v7172_v28 = vpack.c.bf16 %v6179_v26, %v6177_v39  ;;  %v7174_v15 = vpack.c.bf16 %v6184_v22, %v6182_v17 }
 0x3db   : > { %7161 = vmatpush1.bf16.msra.mxu0 %v7160_v31  ;;  %v6186_v31 = vld [vmem:[%s10889_s5 + $0x188] sm:$0xff] }
 0x3dc   : > { %7163 = vmatprep.subr.bf16.mxu0 %v7162_v1  ;;  %v6188_v1 = vld [vmem:[%s10889_s5 + $0x198] sm:$0xff] }
 0x3dd   : > { %v7178_v51 = vpack.c.bf16 %v6188_v1, %v6186_v31  ;;  %v10989_v1 = vmax.f32 %v10278_v44, %v10281_v46 }
 0x3df   : > { %7165 = vmatpush1.bf16.msra.mxu0 %v7164_v21  ;;  %v6190_v21 = vld [vmem:[%s10889_s5 + $0x1a8] sm:$0x1] }
 0x3e0   : > { %7167 = vmatprep.subr.bf16.mxu0 %v7166_v18  ;;  %v6189_v18 = vld [vmem:[%s10889_s5 + $0x1a0] sm:$0x1] }
 0x3e3   : > { %7169 = vmatpush1.bf16.msra.mxu0 %v7168_v11 }
 0x3e4   : > { %7171 = vmatprep.subr.bf16.mxu0 %v7170_v61  ;;  %v10985_v61 = vmax.f32 %v10222_v30, %v10225_v43  ;;  %v10988_v43 = vmax.f32 %v10265_v56, %v10268_v47 }
 0x3e7   : > { %7173 = vmatpush1.bf16.msra.mxu0 %v7172_v28 }
 0x3e8   : > { %7175 = vmatprep.subr.bf16.mxu0 %v7174_v15  ;;  %v10986_v15 = vmax.f32 %v10237_v8, %v10240_v23 }
 0x3eb   : > { %7177 = vmatpush1.bf16.msra.mxu0 %v7176_v13 }
 0x3ec   : > { %7179 = vmatprep.subr.bf16.mxu0 %v7178_v51 }
 0x3ef   : > { %7181 = vmatpush1.bf16.msra.mxu0 %v7180_v49  ;;  %v10991_v49 = vmax.f32 %v10307_v3, %v10310_v41 }
 0x3f0   : > { %6804 = vmatprep.subr.msk.mxu0 %vm297_vm0, %v6190_v21 }
 0x3f3   : > { %6805 = vmatpush1.msk.msra.mxu0 %vm297_vm0, %v6189_v18  ;;  %v10992_v18 = vmax.f32 %v10329_v35, %v10332_v63  ;;  %v10995_v35 = vmax.f32 %v10381_v42, %v10384_v29 }
 0x436   : > { %v4853_v50 = vpop.f32.mrb[32].mxu0 }
 0x437   : > { %v4916_v62 = vadd.f32 %v4853_v50, %v10205_v14  ;;  %v4855_v7 = vpop.f32.mrb[33].mxu0 }
 0x438   : > { %v4917_v38 = vadd.f32 %v4855_v7, %v10205_v14 }
 0x439   : > { %v4932_v11 = vmax.f32 %v3687_v45, %v4916_v62 }
 0x43a   : > { %v4933_v39 = vmax.f32 %v10985_v61, %v4917_v38  ;;  %v4859_v26 = vpop.f32.mrb[34].mxu0  ;;  %v10994_v38 = vmax.f32 %v10363_v57, %v10366_v37  ;;  %v10997_v57 = vmax.f32 %v10414_v60, %v10417_v16 }
 0x43b   : > { %v4918_v17 = vadd.f32 %v4859_v26, %v10231_v20  ;;  %v4861_v22 = vpop.f32.mrb[35].mxu0 }
 0x43c   : > { %v4919_v28 = vadd.f32 %v4861_v22, %v10231_v20  ;;  %v10996_v22 = vmax.f32 %v10396_v4, %v10399_v54  ;;  %v10999_v4 = vmax.f32 %v10447_v59, %v10450_v33 }
 0x43d   : > { %v4934_v53 = vmax.f32 %v10986_v15, %v4918_v17 }
 0x43e   : > { %v4935_v13 = vmax.f32 %v10987_v55, %v4919_v28  ;;  %v4865_v12 = vpop.f32.mrb[36].mxu0 }
 0x43f   : > { %v4920_v36 = vadd.f32 %v4865_v12, %v10259_v2  ;;  %v4867_v45 = vpop.f32.mrb[37].mxu0  ;;  %v10998_v12 = vmax.f32 %v10429_v48, %v10432_v58 }
 0x440   : > { %v4921_v30 = vadd.f32 %v4867_v45, %v10259_v2 }
 0x441   : > { %v4936_v31 = vmax.f32 %v10988_v43, %v4920_v36 }
 0x442   : > { %v4937_v51 = vmax.f32 %v10989_v1, %v4921_v30  ;;  %v4871_v8 = vpop.f32.mrb[38].mxu0 }
 0x443   : > { %v4922_v23 = vadd.f32 %v4871_v8, %v10287_v24  ;;  %v4873_v0 = vpop.f32.mrb[39].mxu0 }
 0x444   : > { %v4923_v52 = vadd.f32 %v4873_v0, %v10287_v24 }
 0x445   : > { %v10764_v32 = vmax.f32 %v10990_v27, %v4922_v23 }
 0x446   : > { %v4939_v56 = vmax.f32 %v10991_v49, %v4923_v52  ;;  %v4877_v47 = vpop.f32.mrb[40].mxu0 }
 0x447   : > { %v4924_v21 = vadd.f32 %v4877_v47, %v10319_v9  ;;  %v4879_v44 = vpop.f32.mrb[41].mxu0 }
 0x448   : > { %v4925_v46 = vadd.f32 %v4879_v44, %v10319_v9 }
 0x449   : > { %v10774_v50 = vmax.f32 %v10992_v18, %v4924_v21 }
 0x44a   : > { %v10779_v40 = vmax.f32 %v10993_v34, %v4925_v46  ;;  %v4883_v62 = vpop.f32.mrb[42].mxu0 }
 0x44b   : > { %v4926_v3 = vadd.f32 %v4883_v62, %v10357_v19  ;;  %v4885_v41 = vpop.f32.mrb[43].mxu0 }
 0x44c   : > { %v4927_v7 = vadd.f32 %v4885_v41, %v10357_v19 }
 0x44d   : > { %v10786_v61 = vmax.f32 %v10994_v38, %v4926_v3 }
 0x44e   : > { %v10791_v63 = vmax.f32 %v10995_v35, %v4927_v7  ;;  %v4889_v26 = vpop.f32.mrb[44].mxu0 }
 0x44f   : > { %v4928_v25 = vadd.f32 %v4889_v26, %v10390_v10  ;;  %v4891_v5 = vpop.f32.mrb[45].mxu0 }
 0x450   : > { %v4929_v17 = vadd.f32 %v4891_v5, %v10390_v10 }
 0x451   : > { %v10798_v28 = vmax.f32 %v10996_v22, %v4928_v25 }
 0x452   : > { %v10803_v37 = vmax.f32 %v10997_v57, %v4929_v17  ;;  %v4895_v15 = vpop.f32.mrb[46].mxu0 }
 0x453   : > { %v4930_v42 = vadd.f32 %v4895_v15, %v10423_v6  ;;  %v4897_v29 = vpop.f32.mrb[47].mxu0 }
 0x454   : > { %v4931_v55 = vadd.f32 %v4897_v29, %v10423_v6 }
 0x455   : > { %v10810_v36 = vmax.f32 %v10998_v12, %v4930_v42 }
 0x456   : > { %v10815_v54 = vmax.f32 %v10999_v4, %v4931_v55 }
 0x476   : > { %v6042_v45 = vpop.f32.mrb[44].mxu1 }
 0x477   : > { %v6105_v60 = vadd.f32 %v6042_v45, %v10205_v14  ;;  %v6044_v16 = vpop.f32.mrb[45].mxu1 }
 0x478   : > { %v6106_v30 = vadd.f32 %v6044_v16, %v10205_v14 }
 0x479   : > { %v6121_v43 = vmax.f32 %v4932_v11, %v6105_v60 }
 0x47a   : > { %v6122_v1 = vmax.f32 %v4933_v39, %v6106_v30  ;;  %v6048_v8 = vpop.f32.mrb[46].mxu1 }
 0x47b   : > { %v6107_v23 = vadd.f32 %v6048_v8, %v10231_v20  ;;  %v6050_v48 = vpop.f32.mrb[47].mxu1 }
 0x47c   : > { %v6108_v58 = vadd.f32 %v6050_v48, %v10231_v20  ;;  %6806 = vmatprep.mubr.msk.f32.mxu0 %vm6191_vm9, %v6122_v1 }
 0x47d   : > { %v6123_v59 = vmax.f32 %v4934_v53, %v6107_v23  ;;  %6287 = vmatmul.mubr.f32.vlgmr.msra.gmra.mrb[48].mxu0 %v6121_v43 }
 0x47e   : > { %v6124_v33 = vmax.f32 %v4935_v13, %v6108_v58  ;;  %v6054_v0 = vpop.f32.mrb[48].mxu1 }
 0x47f   : > { %v6109_v52 = vadd.f32 %v6054_v0, %v10259_v2  ;;  %v6056_v27 = vpop.f32.mrb[49].mxu1 }
 0x480   : > { %v6110_v14 = vadd.f32 %v6056_v27, %v10259_v2  ;;  %6807 = vmatprep.mubr.msk.f32.mxu0 %vm6191_vm9, %v6124_v33 }
 0x481   : > { %v6125_v11 = vmax.f32 %v4936_v31, %v6109_v52  ;;  %6293 = vmatmul.mubr.f32.gmra.mrb[50].mxu0 %v6123_v59 }
 0x482   : > { %v6126_v39 = vmax.f32 %v4937_v51, %v6110_v14  ;;  %v6060_v49 = vpop.f32.mrb[50].mxu1 }
 0x483   : > { %v6111_v47 = vadd.f32 %v6060_v49, %v10287_v24  ;;  %v6062_v20 = vpop.f32.mrb[51].mxu1 }
 0x484   : > { %v6112_v21 = vadd.f32 %v6062_v20, %v10287_v24  ;;  %6808 = vmatprep.mubr.msk.f32.mxu0 %vm6191_vm9, %v6126_v39 }
 0x485   : > { %v6127_v53 = vmax.f32 %v10764_v32, %v6111_v47  ;;  %6299 = vmatmul.mubr.f32.gmra.mrb[52].mxu0 %v6125_v11 }
 0x486   : > { %v6128_v13 = vmax.f32 %v4939_v56, %v6112_v21  ;;  %v6066_v44 = vpop.f32.mrb[52].mxu1 }
 0x487   : > { %v6113_v2 = vadd.f32 %v6066_v44, %v10319_v9  ;;  %v6068_v46 = vpop.f32.mrb[53].mxu1 }
 0x488   : > { %v6114_v31 = vadd.f32 %v6068_v46, %v10319_v9  ;;  %6809 = vmatprep.mubr.msk.f32.mxu0 %vm6191_vm9, %v6128_v13 }
 0x489   : > { %v6129_v51 = vmax.f32 %v10774_v50, %v6113_v2  ;;  %6305 = vmatmul.mubr.f32.gmra.mrb[54].mxu0 %v6127_v53 }
 0x48a   : > { %v6130_v18 = vmax.f32 %v10779_v40, %v6114_v31  ;;  %v6072_v24 = vpop.f32.mrb[54].mxu1 }
 0x48b   : > { %v6115_v34 = vadd.f32 %v6072_v24, %v10357_v19  ;;  %v6074_v62 = vpop.f32.mrb[55].mxu1 }
 0x48c   : > { %v6116_v32 = vadd.f32 %v6074_v62, %v10357_v19  ;;  %6810 = vmatprep.mubr.msk.f32.mxu0 %vm6191_vm9, %v6130_v18 }
 0x48d   : > { %v6131_v56 = vmax.f32 %v10786_v61, %v6115_v34  ;;  %6311 = vmatmul.mubr.f32.gmra.mrb[56].mxu0 %v6129_v51 }
 0x48e   : > { %v6132_v9 = vmax.f32 %v10791_v63, %v6116_v32  ;;  %v6078_v3 = vpop.f32.mrb[56].mxu1 }
 0x48f   : > { %v6117_v41 = vadd.f32 %v6078_v3, %v10390_v10  ;;  %v6080_v50 = vpop.f32.mrb[57].mxu1 }
 0x490   : > { %v6118_v40 = vadd.f32 %v6080_v50, %v10390_v10  ;;  %6811 = vmatprep.mubr.msk.f32.mxu0 %vm6191_vm9, %v6132_v9 }
 0x491   : > { %v6133_v7 = vmax.f32 %v10798_v28, %v6117_v41  ;;  %6317 = vmatmul.mubr.f32.gmra.mrb[58].mxu0 %v6131_v56 }
 0x492   : > { %v6134_v19 = vmax.f32 %v10803_v37, %v6118_v40  ;;  %v6084_v38 = vpop.f32.mrb[58].mxu1 }
 0x493   : > { %v6119_v61 = vadd.f32 %v6084_v38, %v10423_v6  ;;  %v6086_v35 = vpop.f32.mrb[59].mxu1 }
 0x494   : > { %v6120_v63 = vadd.f32 %v6086_v35, %v10423_v6  ;;  %6812 = vmatprep.mubr.msk.f32.mxu0 %vm6191_vm9, %v6134_v19 }
 0x495   : > { %v6135_v26 = vmax.f32 %v10810_v36, %v6119_v61  ;;  %6323 = vmatmul.mubr.f32.gmra.mrb[60].mxu0 %v6133_v7 }
 0x496   : > { %v6136_v10 = vmax.f32 %v10815_v54, %v6120_v63 }
 0x498   : > { %6813 = vmatprep.mubr.msk.f32.mxu0 %vm6191_vm9, %v6136_v10 }
 0x499   : > { %6329 = vmatmul.mubr.f32.gmra.mrb[62].mxu0 %v6135_v26 }
 0x550   : > { %v6288_v6 = vpop.f32.mrb[48].mxu0 }
 0x551   : > { %6335 = vst [vmem:[%s10855_s16] sm:$0xff] %v6288_v6  ;;  %v6290_v25 = vpop.f32.mrb[49].mxu0 }
 0x552   : > { %6337 = vst.msk [vmem:[%s10855_s16 + $0x8] sm:$0xff] %vm6336_vm10, %v6290_v25 }
 0x554   : > { %v6294_v5 = vpop.f32.mrb[50].mxu0 }
 0x555   : > { %6338 = vst [vmem:[%s10855_s16 + $0x10] sm:$0xff] %v6294_v5  ;;  %v6296_v17 = vpop.f32.mrb[51].mxu0 }
 0x556   : > { %6339 = vst.msk [vmem:[%s10855_s16 + $0x18] sm:$0xff] %vm6336_vm10, %v6296_v17 }
 0x558   : > { %v6300_v22 = vpop.f32.mrb[52].mxu0 }
 0x559   : > { %6340 = vst [vmem:[%s10855_s16 + $0x20] sm:$0xff] %v6300_v22  ;;  %v6302_v28 = vpop.f32.mrb[53].mxu0 }
 0x55a   : > { %6341 = vst.msk [vmem:[%s10855_s16 + $0x28] sm:$0xff] %vm6336_vm10, %v6302_v28 }
 0x55c   : > { %v6306_v57 = vpop.f32.mrb[54].mxu0 }
 0x55d   : > { %6342 = vst [vmem:[%s10855_s16 + $0x30] sm:$0xff] %v6306_v57  ;;  %v6308_v37 = vpop.f32.mrb[55].mxu0 }
 0x55e   : > { %6343 = vst.msk [vmem:[%s10855_s16 + $0x38] sm:$0xff] %vm6336_vm10, %v6308_v37 }
 0x560   : > { %v6312_v15 = vpop.f32.mrb[56].mxu0 }
 0x561   : > { %6344 = vst [vmem:[%s10855_s16 + $0x40] sm:$0xff] %v6312_v15  ;;  %v6314_v42 = vpop.f32.mrb[57].mxu0 }
 0x562   : > { %6345 = vst.msk [vmem:[%s10855_s16 + $0x48] sm:$0xff] %vm6336_vm10, %v6314_v42 }
 0x564   : > { %v6318_v29 = vpop.f32.mrb[58].mxu0 }
 0x565   : > { %6346 = vst [vmem:[%s10855_s16 + $0x50] sm:$0xff] %v6318_v29  ;;  %v6320_v55 = vpop.f32.mrb[59].mxu0 }
 0x566   : > { %6347 = vst.msk [vmem:[%s10855_s16 + $0x58] sm:$0xff] %vm6336_vm10, %v6320_v55 }
 0x568   : > { %v6324_v12 = vpop.f32.mrb[60].mxu0 }
 0x569   : > { %6348 = vst [vmem:[%s10855_s16 + $0x60] sm:$0xff] %v6324_v12  ;;  %v6326_v36 = vpop.f32.mrb[61].mxu0 }
 0x56a   : > { %6349 = vst.msk [vmem:[%s10855_s16 + $0x68] sm:$0xff] %vm6336_vm10, %v6326_v36 }
 0x56c   : > { %v6330_v4 = vpop.f32.mrb[62].mxu0 }
 0x56d   : > { %6350 = vst [vmem:[%s10855_s16 + $0x70] sm:$0xff] %v6330_v4  ;;  %v6332_v54 = vpop.f32.mrb[63].mxu0 }
 0x56e   : > { %6351 = vst.msk [vmem:[%s10855_s16 + $0x78] sm:$0xff] %vm6336_vm10, %v6332_v54 }
 0x56f PF: > { %s16_s21 = sadd.s32 1, %s8032_s21  }
 0x570   : > { %p13_p4 = scmp.ge.s32.totalorder %s16_s21, 4  }
 0x572   :  { %15 = sbr.rel (!%p13_p4) target bundleno = 1 (0x1), region = 88 }

// kernel: lenet_forward.3
= control target key start
LH: loop header
LB: loop body
LE: loop exit
PB: predicated region body
PF: predicated region fallthrough
CT: control target
= control target key end

     0   :  { %v76_v27 = vlaneseq  ;;  %v11831_v35 = vmov 1983009808   ;;  %s14463_s0 = inlined_call_operand.vmem [shape: f32[2,12544], index: 0, kind: input, shape index: {}]   ;;  %s14464_s1 = inlined_call_operand.vmem [shape: bf16[12544,128], index: 1, kind: input, shape index: {}]   ;;  %s14465_s2 = inlined_call_operand.vmem [shape: f32[1,128], index: 2, kind: input, shape index: {}]   ;;  %s14466_s3 = inlined_call_operand.vmem [shape: f32[128,6], index: 3, kind: input, shape index: {}]   ;;  %s14467_s4 = inlined_call_operand.vmem [shape: f32[1,6], index: 4, kind: input, shape index: {}]   ;;  %s14468_s5 = inlined_call_operand.hbm [shape: f32[2,6], index: 5, kind: output, shape index: {}]  }
   0x1   :  { %v10993_v0 = vld [vmem:[%s14464_s1 + $0x40] sm:$0xff]   ;;  %v10997_v4 = vld [vmem:[%s14464_s1 + $0x48] sm:$0xff]   ;;  %v11001_v8 = vld [vmem:[%s14464_s1 + $0x50] sm:$0xff]   ;;  %v74_v36 = vunpack.c.l.s4 %v11831_v35 }
   0x2   :  { %v10994_v1 = vld [vmem:[%s14464_s1] sm:$0xff]   ;;  %9834 = vmatprep.subr.bf16.mxu0 %v10993_v0  ;;  %v10998_v5 = vld [vmem:[%s14464_s1 + $0x8] sm:$0xff]   ;;  %v11002_v9 = vld [vmem:[%s14464_s1 + $0x10] sm:$0xff]   ;;  %v77_v32 = vshrl.u32 %v76_v27, 7 }
   0x3   :  { %v10995_v2 = vld [vmem:[%s14464_s1 + $0xc0] sm:$0xff]   ;;  %9835 = vmatpush3.bf16.msra.mxu0 %v10994_v1  ;;  %v10999_v6 = vld [vmem:[%s14464_s1 + $0xc8] sm:$0xff]   ;;  %v11003_v10 = vld [vmem:[%s14464_s1 + $0xd0] sm:$0xff]   ;;  %v75_v38 = vunpack.c.0.s8 %v74_v36 }
   0x4   :  { %v10996_v3 = vld [vmem:[%s14464_s1 + $0x80] sm:$0xff]   ;;  %9856 = vmatprep.subr.bf16.mxu1 %v10995_v2  ;;  %9836 = vmatprep.subr.bf16.mxu0 %v10997_v4  ;;  %v11000_v7 = vld [vmem:[%s14464_s1 + $0x88] sm:$0xff]   ;;  %v11004_v11 = vld [vmem:[%s14464_s1 + $0x90] sm:$0xff]  }
   0x5   :  { %9857 = vmatpush3.bf16.msra.mxu1 %v10996_v3  ;;  %v11005_v12 = vld [vmem:[%s14464_s1 + $0x58] sm:$0xff]   ;;  %v11009_v16 = vld [vmem:[%s14464_s1 + $0x60] sm:$0xff]   ;;  %v11013_v20 = vld [vmem:[%s14464_s1 + $0x68] sm:$0xff]   ;;  %v11971_v41 = vsub.s32 %v75_v38, %v77_v32 }
   0x6   :  { %9858 = vmatprep.subr.bf16.mxu1 %v10999_v6  ;;  %v11006_v13 = vld [vmem:[%s14464_s1 + $0x18] sm:$0xff]   ;;  %v11010_v17 = vld [vmem:[%s14464_s1 + $0x20] sm:$0xff]   ;;  %v11014_v21 = vld [vmem:[%s14464_s1 + $0x28] sm:$0xff]  }
   0x7   :  { %9837 = vmatpush3.bf16.msra.mxu0 %v10998_v5  ;;  %v11007_v14 = vld [vmem:[%s14464_s1 + $0xd8] sm:$0xff]   ;;  %v11011_v18 = vld [vmem:[%s14464_s1 + $0xe0] sm:$0xff]   ;;  %v11015_v22 = vld [vmem:[%s14464_s1 + $0xe8] sm:$0xff]  }
   0x8   :  { %9838 = vmatprep.subr.bf16.mxu0 %v11001_v8  ;;  %v11008_v15 = vld [vmem:[%s14464_s1 + $0x98] sm:$0xff]   ;;  %v11012_v19 = vld [vmem:[%s14464_s1 + $0xa0] sm:$0xff]   ;;  %v11016_v23 = vld [vmem:[%s14464_s1 + $0xa8] sm:$0xff]  }
   0x9   :  { %9859 = vmatpush3.bf16.msra.mxu1 %v11000_v7  ;;  %v11017_v24 = vld [vmem:[%s14464_s1 + $0x70] sm:$0xff]   ;;  %v11021_v29 = vld [vmem:[%s14464_s1 + $0x78] sm:$0xff]   ;;  %v22_v33 = vld [vmem:[%s14463_s0] sm:$0xff] }
   0xa   :  { %9860 = vmatprep.subr.bf16.mxu1 %v11003_v10  ;;  %v11018_v25 = vld [vmem:[%s14464_s1 + $0x30] sm:$0xff]   ;;  %v11022_v30 = vld [vmem:[%s14464_s1 + $0x38] sm:$0xff]   ;;  %v11025_v37 = vld [vmem:[%s14464_s1 + $0x140] sm:$0xff]   ;;  %v72_v39 = vcombine.high %v22_v33, %v22_v33  ;;  %v79_v42 = vrot.slane %v22_v33, %v11971_v41 }
   0xb   :  { %9839 = vmatpush3.bf16.msra.mxu0 %v11002_v9  ;;  %v11019_v26 = vld [vmem:[%s14464_s1 + $0xf0] sm:$0xff]   ;;  %v11023_v31 = vld [vmem:[%s14464_s1 + $0xf8] sm:$0xff]   ;;  %v11028_v40 = vld [vmem:[%s14464_s1 + $0x1c0] sm:$0xff]  }
   0xc   :  { %9840 = vmatprep.subr.bf16.mxu0 %v11005_v12  ;;  %v11020_v28 = vld [vmem:[%s14464_s1 + $0xb0] sm:$0xff]   ;;  %v11024_v34 = vld [vmem:[%s14464_s1 + $0xb8] sm:$0xff]   ;;  %v86_v43 = vrot.slane %v72_v39, %v11971_v41  ;;  %v87_v44 = vcombine.high %v79_v42, %v79_v42  ;;  %v11027_v46 = vld [vmem:[%s14464_s1 + $0x100] sm:$0xff]   ;;  %v586_v47 = vpack.c.bf16 %v79_v42, %v79_v42 }
   0xd   :  { %9861 = vmatpush3.bf16.msra.mxu1 %v11004_v11  ;;  %v11029_v49 = vld [vmem:[%s14464_s1 + $0x180] sm:$0xff]   ;;  %v11030_v52 = vld [vmem:[%s14464_s1 + $0x148] sm:$0xff]   ;;  %v11034_v56 = vld [vmem:[%s14464_s1 + $0x150] sm:$0xff]  }
   0xe   :  { %9862 = vmatprep.subr.bf16.mxu1 %v11007_v14  ;;  %v88_v45 = vcombine.high %v86_v43, %v86_v43  ;;  %v588_v48 = vpack.c.bf16 %v86_v43, %v86_v43  ;;  %v587_v50 = vpack.c.bf16 %v87_v44, %v87_v44  ;;  %v11032_v53 = vld [vmem:[%s14464_s1 + $0x1c8] sm:$0xff]   ;;  %v11036_v57 = vld [vmem:[%s14464_s1 + $0x1d0] sm:$0xff]   ;;  %v11038_v60 = vld [vmem:[%s14464_s1 + $0x158] sm:$0xff]  }
   0xf   :  { %9841 = vmatpush3.bf16.msra.mxu0 %v11006_v13  ;;  %v11031_v54 = vld [vmem:[%s14464_s1 + $0x108] sm:$0xff]   ;;  %v11035_v58 = vld [vmem:[%s14464_s1 + $0x110] sm:$0xff]   ;;  %v11040_v61 = vld [vmem:[%s14464_s1 + $0x1d8] sm:$0xff]  }
  0x10   :  { %9842 = vmatprep.subr.bf16.mxu0 %v11009_v16  ;;  %v589_v51 = vpack.c.bf16 %v88_v45, %v88_v45  ;;  %6995 = vmatprep.mubr.bf16.mxu0 %v587_v50  ;;  %v11033_v55 = vld [vmem:[%s14464_s1 + $0x188] sm:$0xff]   ;;  %v11037_v59 = vld [vmem:[%s14464_s1 + $0x190] sm:$0xff]   ;;  %v11039_v62 = vld [vmem:[%s14464_s1 + $0x118] sm:$0xff]  }
  0x11   :  { %9863 = vmatpush3.bf16.msra.mxu1 %v11008_v15  ;;  %v11041_v63 = vld [vmem:[%s14464_s1 + $0x198] sm:$0xff]   ;;  %v11042_v0 = vld [vmem:[%s14464_s1 + $0x160] sm:$0xff]   ;;  %v11046_v4 = vld [vmem:[%s14464_s1 + $0x168] sm:$0xff]  }
  0x12   :  { %9864 = vmatprep.subr.bf16.mxu1 %v11011_v18  ;;  %7035 = vmatprep.mubr.bf16.mxu1 %v589_v51  ;;  %v11044_v1 = vld [vmem:[%s14464_s1 + $0x1e0] sm:$0xff]   ;;  %v11048_v5 = vld [vmem:[%s14464_s1 + $0x1e8] sm:$0xff]   ;;  %v11050_v8 = vld [vmem:[%s14464_s1 + $0x170] sm:$0xff]  }
  0x13   :  { %9843 = vmatpush3.bf16.msra.mxu0 %v11010_v17  ;;  %v11043_v2 = vld [vmem:[%s14464_s1 + $0x120] sm:$0xff]   ;;  %v11047_v6 = vld [vmem:[%s14464_s1 + $0x128] sm:$0xff]   ;;  %v11052_v9 = vld [vmem:[%s14464_s1 + $0x1f0] sm:$0xff]  }
  0x14   :  { %9844 = vmatprep.subr.bf16.mxu0 %v11013_v20  ;;  %v11045_v3 = vld [vmem:[%s14464_s1 + $0x1a0] sm:$0xff]   ;;  %v11049_v7 = vld [vmem:[%s14464_s1 + $0x1a8] sm:$0xff]   ;;  %v11051_v11 = vld [vmem:[%s14464_s1 + $0x130] sm:$0xff]  }
  0x15   :  { %9865 = vmatpush3.bf16.msra.mxu1 %v11012_v19  ;;  %v23_v10 = vld [vmem:[%s14463_s0 + $0x8] sm:$0xff]  ;;  %v11053_v14 = vld [vmem:[%s14464_s1 + $0x1b0] sm:$0xff]   ;;  %v11054_v15 = vld [vmem:[%s14464_s1 + $0x178] sm:$0xff]  }
  0x16   :  { %9866 = vmatprep.subr.bf16.mxu1 %v11015_v22  ;;  %v96_v12 = vrot.slane %v23_v10, %v11971_v41  ;;  %v89_v13 = vcombine.high %v23_v10, %v23_v10  ;;  %v11056_v18 = vld [vmem:[%s14464_s1 + $0x1f8] sm:$0xff]   ;;  %v11064_v32 = vld [vmem:[%s14464_s1 + $0x208] sm:$0xff]   ;;  %v11069_v35 = vld [vmem:[%s14464_s1 + $0x2d0] sm:$0xff]  }
  0x17   :  { %9845 = vmatpush3.bf16.msra.mxu0 %v11014_v21  ;;  %v11055_v19 = vld [vmem:[%s14464_s1 + $0x138] sm:$0xff]   ;;  %v11066_v33 = vld [vmem:[%s14464_s1 + $0x288] sm:$0xff]   ;;  %v11068_v36 = vld [vmem:[%s14464_s1 + $0x210] sm:$0xff]  }
  0x18   :  { %9846 = vmatprep.subr.bf16.mxu0 %v11017_v24  ;;  %v104_v16 = vcombine.high %v96_v12, %v96_v12  ;;  %v103_v17 = vrot.slane %v89_v13, %v11971_v41  ;;  %v11057_v22 = vld [vmem:[%s14464_s1 + $0x1b8] sm:$0xff]   ;;  %v590_v27 = vpack.c.bf16 %v96_v12, %v96_v12  ;;  %v11075_v43 = vld [vmem:[%s14464_s1 + $0x260] sm:$0xff]   ;;  %v11082_v50 = vld [vmem:[%s14464_s1 + $0x2a8] sm:$0xff]  }
  0x19   :  { %9867 = vmatpush3.bf16.msra.mxu1 %v11016_v23  ;;  %v11058_v23 = vld [vmem:[%s14464_s1 + $0x240] sm:$0xff]   ;;  %v11071_v38 = vld [vmem:[%s14464_s1 + $0x258] sm:$0xff]   ;;  %v11083_v51 = vld [vmem:[%s14464_s1 + $0x270] sm:$0xff]  }
  0x1a   :  { %9868 = vmatprep.subr.bf16.mxu1 %v11019_v26  ;;  %v591_v20 = vpack.c.bf16 %v104_v16, %v104_v16  ;;  %v105_v21 = vcombine.high %v103_v17, %v103_v17  ;;  %v11060_v26 = vld [vmem:[%s14464_s1 + $0x200] sm:$0xff]   ;;  %v11073_v39 = vld [vmem:[%s14464_s1 + $0x2d8] sm:$0xff]   ;;  %v11098_v10 = vld [vmem:[%s14464_s1 + $0x3c8] sm:$0xff]  }
  0x1b   :  { %9847 = vmatpush3.bf16.msra.mxu0 %v11018_v25  ;;  %v11061_v25 = vld [vmem:[%s14464_s1 + $0x2c0] sm:$0xff]   ;;  %v11074_v42 = vld [vmem:[%s14464_s1 + $0x298] sm:$0xff]   ;;  %v11099_v12 = vld [vmem:[%s14464_s1 + $0x388] sm:$0xff]  }
  0x1c   :  { %9848 = vmatprep.subr.bf16.mxu0 %v11021_v29  ;;  %v593_v24 = vpack.c.bf16 %v105_v21, %v105_v21  ;;  %v11062_v29 = vld [vmem:[%s14464_s1 + $0x280] sm:$0xff]   ;;  %v11100_v13 = vld [vmem:[%s14464_s1 + $0x350] sm:$0xff]  }
  0x1d   :  { %9869 = vmatpush3.bf16.msra.mxu1 %v11020_v28  ;;  %v592_v28 = vpack.c.bf16 %v103_v17, %v103_v17  ;;  %v11077_v44 = vld [vmem:[%s14464_s1 + $0x2e0] sm:$0xff]   ;;  %v11103_v16 = vld [vmem:[%s14464_s1 + $0x390] sm:$0xff]   ;;  %v11104_v17 = vld [vmem:[%s14464_s1 + $0x358] sm:$0xff]  }
  0x1e   :  { %9870 = vmatprep.subr.bf16.mxu1 %v11023_v31  ;;  %v11065_v31 = vld [vmem:[%s14464_s1 + $0x2c8] sm:$0xff]   ;;  %v11076_v45 = vld [vmem:[%s14464_s1 + $0x220] sm:$0xff]  }
  0x1f   :  { %9849 = vmatpush3.bf16.msra.mxu0 %v11022_v30  ;;  %v11063_v30 = vld [vmem:[%s14464_s1 + $0x248] sm:$0xff]   ;;  %v11108_v21 = vld [vmem:[%s14464_s1 + $0x360] sm:$0xff]  }
  0x20   :  { %9878 = vmatprep.subr.bf16.mxu0 %v11025_v37  ;;  %v11070_v37 = vld [vmem:[%s14464_s1 + $0x290] sm:$0xff]  }
  0x21   :  { %9871 = vmatpush3.bf16.msra.mxu1 %v11024_v34  ;;  %v11067_v34 = vld [vmem:[%s14464_s1 + $0x250] sm:$0xff]  }
  0x22   :  { %9900 = vmatprep.subr.bf16.mxu1 %v11028_v40  ;;  %6996 = vmatmul.mubr.bf16.vlgmr.msra.gmra.mrb[0].mxu0 %v586_v47  ;;  %v11072_v40 = vld [vmem:[%s14464_s1 + $0x218] sm:$0xff]   ;;  %v11079_v47 = vld [vmem:[%s14464_s1 + $0x268] sm:$0xff]  }
  0x23   :  { %9879 = vmatpush3.bf16.msra.mxu0 %v11027_v46  ;;  %7075 = vmatprep.mubr.bf16.mxu0 %v591_v20  ;;  %v11078_v46 = vld [vmem:[%s14464_s1 + $0x2a0] sm:$0xff]   ;;  %v11107_v20 = vld [vmem:[%s14464_s1 + $0x398] sm:$0xff]  }
  0x24   :  { %7036 = vmatmul.mubr.bf16.vlgmr.msra.gmra.mrb[0].mxu1 %v588_v48  ;;  %9880 = vmatprep.subr.bf16.mxu0 %v11030_v52  ;;  %v11081_v48 = vld [vmem:[%s14464_s1 + $0x2e8] sm:$0xff]   ;;  %v11085_v52 = vld [vmem:[%s14464_s1 + $0x2f0] sm:$0xff]  }
  0x25   :  { %9901 = vmatpush3.bf16.msra.mxu1 %v11029_v49  ;;  %7115 = vmatprep.mubr.bf16.mxu1 %v593_v24  ;;  %v11080_v49 = vld [vmem:[%s14464_s1 + $0x228] sm:$0xff]   ;;  %v11111_v24 = vld [vmem:[%s14464_s1 + $0x3a0] sm:$0xff]  }
  0x26   :  { %9902 = vmatprep.subr.bf16.mxu1 %v11032_v53  ;;  %v24_v53 = vld [vmem:[%s14463_s0 + $0x10] sm:$0xff] }
  0x27   :  { %9881 = vmatpush3.bf16.msra.mxu0 %v11031_v54  ;;  %v11084_v54 = vld [vmem:[%s14464_s1 + $0x230] sm:$0xff]  }
  0x28   :  { %9882 = vmatprep.subr.bf16.mxu0 %v11034_v56  ;;  %v106_v56 = vcombine.high %v24_v53, %v24_v53 }
  0x29   :  { %9903 = vmatpush3.bf16.msra.mxu1 %v11033_v55  ;;  %v113_v55 = vrot.slane %v24_v53, %v11971_v41  ;;  %v11131_v53 = vld [vmem:[%s14464_s1 + $0x4c8] sm:$0xff]  }
  0x2a   :  { %9904 = vmatprep.subr.bf16.mxu1 %v11036_v57  ;;  %v11086_v57 = vld [vmem:[%s14464_s1 + $0x2b0] sm:$0xff]  }
  0x2b   :  { %9883 = vmatpush3.bf16.msra.mxu0 %v11035_v58  ;;  %v11087_v58 = vld [vmem:[%s14464_s1 + $0x278] sm:$0xff]  }
  0x2c   :  { %9884 = vmatprep.subr.bf16.mxu0 %v11038_v60  ;;  %v120_v60 = vrot.slane %v106_v56, %v11971_v41  ;;  %v11133_v56 = vld [vmem:[%s14464_s1 + $0x450] sm:$0xff]  }
  0x2d   :  { %9905 = vmatpush3.bf16.msra.mxu1 %v11037_v59  ;;  %v121_v59 = vcombine.high %v113_v55, %v113_v55 }
  0x2e   :  { %9906 = vmatprep.subr.bf16.mxu1 %v11040_v61  ;;  %v11089_v61 = vld [vmem:[%s14464_s1 + $0x2f8] sm:$0xff]  }
  0x2f   :  { %9885 = vmatpush3.bf16.msra.mxu0 %v11039_v62  ;;  %v11088_v62 = vld [vmem:[%s14464_s1 + $0x238] sm:$0xff]  }
  0x30   :  { %9886 = vmatprep.subr.bf16.mxu0 %v11042_v0  ;;  %v122_v0 = vcombine.high %v120_v60, %v120_v60 }
  0x31   :  { %9907 = vmatpush3.bf16.msra.mxu1 %v11041_v63  ;;  %v595_v63 = vpack.c.bf16 %v121_v59, %v121_v59  ;;  %v11136_v59 = vld [vmem:[%s14464_s1 + $0x490] sm:$0xff]  }
  0x32   :  { %9908 = vmatprep.subr.bf16.mxu1 %v11044_v1  ;;  %v11090_v1 = vld [vmem:[%s14464_s1 + $0x2b8] sm:$0xff]  }
  0x33   :  { %9887 = vmatpush3.bf16.msra.mxu0 %v11043_v2  ;;  %v11091_v2 = vld [vmem:[%s14464_s1 + $0x340] sm:$0xff]  }
  0x34   :  { %9888 = vmatprep.subr.bf16.mxu0 %v11046_v4  ;;  %v11094_v4 = vld [vmem:[%s14464_s1 + $0x3c0] sm:$0xff]  }
  0x35   :  { %9909 = vmatpush3.bf16.msra.mxu1 %v11045_v3  ;;  %v597_v3 = vpack.c.bf16 %v122_v0, %v122_v0  ;;  %v11141_v0 = vld [vmem:[%s14464_s1 + $0x460] sm:$0xff]  }
  0x36   :  { %9910 = vmatprep.subr.bf16.mxu1 %v11048_v5  ;;  %v11093_v5 = vld [vmem:[%s14464_s1 + $0x300] sm:$0xff]  }
  0x37   :  { %9889 = vmatpush3.bf16.msra.mxu0 %v11047_v6  ;;  %v594_v6 = vpack.c.bf16 %v113_v55, %v113_v55  ;;  %v11132_v55 = vld [vmem:[%s14464_s1 + $0x488] sm:$0xff]  }
  0x38   :  { %9890 = vmatprep.subr.bf16.mxu0 %v11050_v8  ;;  %v11095_v8 = vld [vmem:[%s14464_s1 + $0x380] sm:$0xff]  }
  0x39   :  { %9911 = vmatpush3.bf16.msra.mxu1 %v11049_v7  ;;  %v596_v7 = vpack.c.bf16 %v120_v60, %v120_v60  ;;  %v11137_v60 = vld [vmem:[%s14464_s1 + $0x458] sm:$0xff]  }
  0x3a   :  { %9912 = vmatprep.subr.bf16.mxu1 %v11052_v9  ;;  %v11096_v9 = vld [vmem:[%s14464_s1 + $0x348] sm:$0xff]  }
  0x3b   :  { %9891 = vmatpush3.bf16.msra.mxu0 %v11051_v11  ;;  %v11097_v11 = vld [vmem:[%s14464_s1 + $0x308] sm:$0xff]  }
  0x3c   :  { %9892 = vmatprep.subr.bf16.mxu0 %v11054_v15  ;;  %v11101_v15 = vld [vmem:[%s14464_s1 + $0x310] sm:$0xff]  }
  0x3d   :  { %9913 = vmatpush3.bf16.msra.mxu1 %v11053_v14  ;;  %v11102_v14 = vld [vmem:[%s14464_s1 + $0x3d0] sm:$0xff]  }
  0x3e   :  { %9914 = vmatprep.subr.bf16.mxu1 %v11056_v18  ;;  %v11106_v18 = vld [vmem:[%s14464_s1 + $0x3d8] sm:$0xff]  }
  0x3f   :  { %9893 = vmatpush3.bf16.msra.mxu0 %v11055_v19  ;;  %v11105_v19 = vld [vmem:[%s14464_s1 + $0x318] sm:$0xff]  }
  0x40   :  { %9922 = vmatprep.subr.bf16.mxu0 %v11058_v23  ;;  %v11109_v23 = vld [vmem:[%s14464_s1 + $0x320] sm:$0xff]  }
  0x41   :  { %9915 = vmatpush3.bf16.msra.mxu1 %v11057_v22  ;;  %v11110_v22 = vld [vmem:[%s14464_s1 + $0x3e0] sm:$0xff]  }
  0x42   :  { %9944 = vmatprep.subr.bf16.mxu1 %v11061_v25  ;;  %7076 = vmatmul.mubr.bf16.vlgmr.msra.gmra.mrb[4].mxu0 %v590_v27  ;;  %v11112_v25 = vld [vmem:[%s14464_s1 + $0x368] sm:$0xff]  }
  0x43   :  { %9923 = vmatpush3.bf16.msra.mxu0 %v11060_v26  ;;  %7155 = vmatprep.mubr.bf16.mxu0 %v595_v63  ;;  %v11114_v26 = vld [vmem:[%s14464_s1 + $0x3e8] sm:$0xff]   ;;  %v11140_v63 = vld [vmem:[%s14464_s1 + $0x498] sm:$0xff]  }
  0x44   :  { %7116 = vmatmul.mubr.bf16.vlgmr.msra.gmra.mrb[4].mxu1 %v592_v28  ;;  %9924 = vmatprep.subr.bf16.mxu0 %v11063_v30  ;;  %v11113_v27 = vld [vmem:[%s14464_s1 + $0x328] sm:$0xff]   ;;  %v11118_v30 = vld [vmem:[%s14464_s1 + $0x3f0] sm:$0xff]  }
  0x45   :  { %9945 = vmatpush3.bf16.msra.mxu1 %v11062_v29  ;;  %7195 = vmatprep.mubr.bf16.mxu1 %v597_v3  ;;  %v11115_v28 = vld [vmem:[%s14464_s1 + $0x3a8] sm:$0xff]   ;;  %v11116_v29 = vld [vmem:[%s14464_s1 + $0x370] sm:$0xff]   ;;  %v11144_v3 = vld [vmem:[%s14464_s1 + $0x4a0] sm:$0xff]  }
  0x46   :  { %9946 = vmatprep.subr.bf16.mxu1 %v11065_v31  ;;  %v11117_v31 = vld [vmem:[%s14464_s1 + $0x330] sm:$0xff]  }
  0x47   :  { %9925 = vmatpush3.bf16.msra.mxu0 %v11064_v32  ;;  %v25_v32 = vld [vmem:[%s14463_s0 + $0x18] sm:$0xff] }
  0x48   :  { %9926 = vmatprep.subr.bf16.mxu0 %v11067_v34  ;;  %v130_v34 = vrot.slane %v25_v32, %v11971_v41 }
  0x49   :  { %9947 = vmatpush3.bf16.msra.mxu1 %v11066_v33  ;;  %v11119_v33 = vld [vmem:[%s14464_s1 + $0x3b0] sm:$0xff]  }
  0x4a   :  { %9948 = vmatprep.subr.bf16.mxu1 %v11069_v35  ;;  %v123_v35 = vcombine.high %v25_v32, %v25_v32  ;;  %v11163_v32 = vld [vmem:[%s14464_s1 + $0x508] sm:$0xff]  }
  0x4b   :  { %9927 = vmatpush3.bf16.msra.mxu0 %v11068_v36  ;;  %v11120_v36 = vld [vmem:[%s14464_s1 + $0x378] sm:$0xff]  }
  0x4c   :  { %9928 = vmatprep.subr.bf16.mxu0 %v11071_v38  ;;  %v138_v38 = vcombine.high %v130_v34, %v130_v34 }
  0x4d   :  { %9949 = vmatpush3.bf16.msra.mxu1 %v11070_v37  ;;  %v11122_v37 = vld [vmem:[%s14464_s1 + $0x3f8] sm:$0xff]  }
  0x4e   :  { %9950 = vmatprep.subr.bf16.mxu1 %v11073_v39  ;;  %v137_v39 = vrot.slane %v123_v35, %v11971_v41  ;;  %v11168_v35 = vld [vmem:[%s14464_s1 + $0x5d0] sm:$0xff]  }
  0x4f   :  { %9929 = vmatpush3.bf16.msra.mxu0 %v11072_v40  ;;  %v11121_v40 = vld [vmem:[%s14464_s1 + $0x338] sm:$0xff]  }
  0x50   :  { %9930 = vmatprep.subr.bf16.mxu0 %v11075_v43  ;;  %v11123_v43 = vld [vmem:[%s14464_s1 + $0x3b8] sm:$0xff]  }
  0x51   :  { %9951 = vmatpush3.bf16.msra.mxu1 %v11074_v42  ;;  %v599_v42 = vpack.c.bf16 %v138_v38, %v138_v38  ;;  %v11170_v38 = vld [vmem:[%s14464_s1 + $0x558] sm:$0xff]  }
  0x52   :  { %9952 = vmatprep.subr.bf16.mxu1 %v11077_v44  ;;  %v139_v44 = vcombine.high %v137_v39, %v137_v39 }
  0x53   :  { %9931 = vmatpush3.bf16.msra.mxu0 %v11076_v45  ;;  %v11124_v45 = vld [vmem:[%s14464_s1 + $0x440] sm:$0xff]  }
  0x54   :  { %9932 = vmatprep.subr.bf16.mxu0 %v11079_v47  ;;  %v11127_v47 = vld [vmem:[%s14464_s1 + $0x4c0] sm:$0xff]  }
  0x55   :  { %9953 = vmatpush3.bf16.msra.mxu1 %v11078_v46  ;;  %v601_v46 = vpack.c.bf16 %v139_v44, %v139_v44  ;;  %v11176_v44 = vld [vmem:[%s14464_s1 + $0x5e0] sm:$0xff]  }
  0x56   :  { %9954 = vmatprep.subr.bf16.mxu1 %v11081_v48  ;;  %v11126_v48 = vld [vmem:[%s14464_s1 + $0x400] sm:$0xff]  }
  0x57   :  { %9933 = vmatpush3.bf16.msra.mxu0 %v11080_v49  ;;  %v598_v49 = vpack.c.bf16 %v130_v34, %v130_v34  ;;  %v11166_v34 = vld [vmem:[%s14464_s1 + $0x550] sm:$0xff]  }
  0x58   :  { %9934 = vmatprep.subr.bf16.mxu0 %v11083_v51  ;;  %v11128_v51 = vld [vmem:[%s14464_s1 + $0x480] sm:$0xff]  }
  0x59   :  { %9955 = vmatpush3.bf16.msra.mxu1 %v11082_v50  ;;  %v600_v50 = vpack.c.bf16 %v137_v39, %v137_v39  ;;  %v11172_v39 = vld [vmem:[%s14464_s1 + $0x5d8] sm:$0xff]  }
  0x5a   :  { %9956 = vmatprep.subr.bf16.mxu1 %v11085_v52  ;;  %v11129_v52 = vld [vmem:[%s14464_s1 + $0x448] sm:$0xff]  }
  0x5b   :  { %9935 = vmatpush3.bf16.msra.mxu0 %v11084_v54  ;;  %v11130_v54 = vld [vmem:[%s14464_s1 + $0x408] sm:$0xff]  }
  0x5c   :  { %9936 = vmatprep.subr.bf16.mxu0 %v11087_v58  ;;  %v11134_v58 = vld [vmem:[%s14464_s1 + $0x410] sm:$0xff]  }
  0x5d   :  { %9957 = vmatpush3.bf16.msra.mxu1 %v11086_v57  ;;  %v11135_v57 = vld [vmem:[%s14464_s1 + $0x4d0] sm:$0xff]  }
  0x5e   :  { %9958 = vmatprep.subr.bf16.mxu1 %v11089_v61  ;;  %v11139_v61 = vld [vmem:[%s14464_s1 + $0x4d8] sm:$0xff]  }
  0x5f   :  { %9937 = vmatpush3.bf16.msra.mxu0 %v11088_v62  ;;  %v11138_v62 = vld [vmem:[%s14464_s1 + $0x418] sm:$0xff]  }
  0x60   :  { %9966 = vmatprep.subr.bf16.mxu0 %v11091_v2  ;;  %v11142_v2 = vld [vmem:[%s14464_s1 + $0x420] sm:$0xff]  }
  0x61   :  { %9959 = vmatpush3.bf16.msra.mxu1 %v11090_v1  ;;  %v11143_v1 = vld [vmem:[%s14464_s1 + $0x4e0] sm:$0xff]  }
  0x62   :  { %9988 = vmatprep.subr.bf16.mxu1 %v11094_v4  ;;  %7156 = vmatmul.mubr.bf16.vlgmr.msra.gmra.mrb[8].mxu0 %v594_v6  ;;  %v11145_v4 = vld [vmem:[%s14464_s1 + $0x468] sm:$0xff]  }
  0x63   :  { %9967 = vmatpush3.bf16.msra.mxu0 %v11093_v5  ;;  %7235 = vmatprep.mubr.bf16.mxu0 %v599_v42  ;;  %v11147_v5 = vld [vmem:[%s14464_s1 + $0x4e8] sm:$0xff]   ;;  %v11173_v42 = vld [vmem:[%s14464_s1 + $0x598] sm:$0xff]  }
  0x64   :  { %7196 = vmatmul.mubr.bf16.vlgmr.msra.gmra.mrb[8].mxu1 %v596_v7  ;;  %9968 = vmatprep.subr.bf16.mxu0 %v11096_v9  ;;  %v11146_v6 = vld [vmem:[%s14464_s1 + $0x428] sm:$0xff]   ;;  %v11151_v9 = vld [vmem:[%s14464_s1 + $0x4f0] sm:$0xff]  }
  0x65   :  { %9989 = vmatpush3.bf16.msra.mxu1 %v11095_v8  ;;  %7275 = vmatprep.mubr.bf16.mxu1 %v601_v46  ;;  %v11148_v7 = vld [vmem:[%s14464_s1 + $0x4a8] sm:$0xff]   ;;  %v11149_v8 = vld [vmem:[%s14464_s1 + $0x470] sm:$0xff]   ;;  %v11177_v46 = vld [vmem:[%s14464_s1 + $0x5a0] sm:$0xff]  }
  0x66   :  { %9990 = vmatprep.subr.bf16.mxu1 %v11098_v10  ;;  %v11150_v10 = vld [vmem:[%s14464_s1 + $0x430] sm:$0xff]  }
  0x67   :  { %9969 = vmatpush3.bf16.msra.mxu0 %v11097_v11  ;;  %v26_v11 = vld [vmem:[%s14463_s0 + $0x20] sm:$0xff] }
  0x68   :  { %9970 = vmatprep.subr.bf16.mxu0 %v11100_v13  ;;  %v147_v13 = vrot.slane %v26_v11, %v11971_v41 }
  0x69   :  { %9991 = vmatpush3.bf16.msra.mxu1 %v11099_v12  ;;  %v11152_v12 = vld [vmem:[%s14464_s1 + $0x4b0] sm:$0xff]  }
  0x6a   :  { %9992 = vmatprep.subr.bf16.mxu1 %v11102_v14  ;;  %v140_v14 = vcombine.high %v26_v11, %v26_v11  ;;  %v11196_v11 = vld [vmem:[%s14464_s1 + $0x608] sm:$0xff]  }
  0x6b   :  { %9971 = vmatpush3.bf16.msra.mxu0 %v11101_v15  ;;  %v11153_v15 = vld [vmem:[%s14464_s1 + $0x478] sm:$0xff]  }
  0x6c   :  { %9972 = vmatprep.subr.bf16.mxu0 %v11104_v17  ;;  %v155_v17 = vcombine.high %v147_v13, %v147_v13 }
  0x6d   :  { %9993 = vmatpush3.bf16.msra.mxu1 %v11103_v16  ;;  %v11155_v16 = vld [vmem:[%s14464_s1 + $0x4f8] sm:$0xff]  }
  0x6e   :  { %9994 = vmatprep.subr.bf16.mxu1 %v11106_v18  ;;  %v154_v18 = vrot.slane %v140_v14, %v11971_v41  ;;  %v11201_v14 = vld [vmem:[%s14464_s1 + $0x6d0] sm:$0xff]  }
  0x6f   :  { %9973 = vmatpush3.bf16.msra.mxu0 %v11105_v19  ;;  %v11154_v19 = vld [vmem:[%s14464_s1 + $0x438] sm:$0xff]  }
  0x70   :  { %9974 = vmatprep.subr.bf16.mxu0 %v11108_v21  ;;  %v11156_v21 = vld [vmem:[%s14464_s1 + $0x4b8] sm:$0xff]  }
  0x71   :  { %9995 = vmatpush3.bf16.msra.mxu1 %v11107_v20  ;;  %v603_v20 = vpack.c.bf16 %v155_v17, %v155_v17  ;;  %v11203_v17 = vld [vmem:[%s14464_s1 + $0x658] sm:$0xff]  }
  0x72   :  { %9996 = vmatprep.subr.bf16.mxu1 %v11110_v22  ;;  %v156_v22 = vcombine.high %v154_v18, %v154_v18 }
  0x73   :  { %9975 = vmatpush3.bf16.msra.mxu0 %v11109_v23  ;;  %v11157_v23 = vld [vmem:[%s14464_s1 + $0x540] sm:$0xff]  }
  0x74   :  { %9976 = vmatprep.subr.bf16.mxu0 %v11112_v25  ;;  %v11160_v25 = vld [vmem:[%s14464_s1 + $0x5c0] sm:$0xff]  }
  0x75   :  { %9997 = vmatpush3.bf16.msra.mxu1 %v11111_v24  ;;  %v605_v24 = vpack.c.bf16 %v156_v22, %v156_v22  ;;  %v11209_v22 = vld [vmem:[%s14464_s1 + $0x6e0] sm:$0xff]  }
  0x76   :  { %9998 = vmatprep.subr.bf16.mxu1 %v11114_v26  ;;  %v11159_v26 = vld [vmem:[%s14464_s1 + $0x500] sm:$0xff]  }
  0x77   :  { %9977 = vmatpush3.bf16.msra.mxu0 %v11113_v27  ;;  %v602_v27 = vpack.c.bf16 %v147_v13, %v147_v13  ;;  %v11199_v13 = vld [vmem:[%s14464_s1 + $0x650] sm:$0xff]  }
  0x78   :  { %9978 = vmatprep.subr.bf16.mxu0 %v11116_v29  ;;  %v11161_v29 = vld [vmem:[%s14464_s1 + $0x580] sm:$0xff]  }
  0x79   :  { %9999 = vmatpush3.bf16.msra.mxu1 %v11115_v28  ;;  %v604_v28 = vpack.c.bf16 %v154_v18, %v154_v18  ;;  %v11205_v18 = vld [vmem:[%s14464_s1 + $0x6d8] sm:$0xff]  }
  0x7a   :  { %10000 = vmatprep.subr.bf16.mxu1 %v11118_v30  ;;  %v11162_v30 = vld [vmem:[%s14464_s1 + $0x548] sm:$0xff]  }
  0x7b   :  { %9979 = vmatpush3.bf16.msra.mxu0 %v11117_v31  ;;  %v11164_v31 = vld [vmem:[%s14464_s1 + $0x5c8] sm:$0xff]  }
  0x7c   :  { %9980 = vmatprep.subr.bf16.mxu0 %v11120_v36  ;;  %v11167_v36 = vld [vmem:[%s14464_s1 + $0x510] sm:$0xff]  }
  0x7d   :  { %10001 = vmatpush3.bf16.msra.mxu1 %v11119_v33  ;;  %v11165_v33 = vld [vmem:[%s14464_s1 + $0x588] sm:$0xff]  }
  0x7e   :  { %10002 = vmatprep.subr.bf16.mxu1 %v11122_v37  ;;  %v11169_v37 = vld [vmem:[%s14464_s1 + $0x590] sm:$0xff]  }
  0x7f   :  { %9981 = vmatpush3.bf16.msra.mxu0 %v11121_v40  ;;  %v11171_v40 = vld [vmem:[%s14464_s1 + $0x518] sm:$0xff]  }
  0x80   :  { %10010 = vmatprep.subr.bf16.mxu0 %v11124_v45  ;;  %v11175_v45 = vld [vmem:[%s14464_s1 + $0x520] sm:$0xff]  }
  0x81   :  { %10003 = vmatpush3.bf16.msra.mxu1 %v11123_v43  ;;  %v11174_v43 = vld [vmem:[%s14464_s1 + $0x560] sm:$0xff]  }
  0x82   :  { %10032 = vmatprep.subr.bf16.mxu1 %v11127_v47  ;;  %7236 = vmatmul.mubr.bf16.vlgmr.msra.gmra.mrb[12].mxu0 %v598_v49  ;;  %v11178_v47 = vld [vmem:[%s14464_s1 + $0x568] sm:$0xff]  }
  0x83   :  { %10011 = vmatpush3.bf16.msra.mxu0 %v11126_v48  ;;  %7315 = vmatprep.mubr.bf16.mxu0 %v603_v20  ;;  %v11180_v48 = vld [vmem:[%s14464_s1 + $0x5e8] sm:$0xff]   ;;  %v11206_v20 = vld [vmem:[%s14464_s1 + $0x698] sm:$0xff]  }
  0x84   :  { %7276 = vmatmul.mubr.bf16.vlgmr.msra.gmra.mrb[12].mxu1 %v600_v50  ;;  %10012 = vmatprep.subr.bf16.mxu0 %v11129_v52  ;;  %v11179_v49 = vld [vmem:[%s14464_s1 + $0x528] sm:$0xff]   ;;  %v11184_v52 = vld [vmem:[%s14464_s1 + $0x5f0] sm:$0xff]  }
  0x85   :  { %10033 = vmatpush3.bf16.msra.mxu1 %v11128_v51  ;;  %7355 = vmatprep.mubr.bf16.mxu1 %v605_v24  ;;  %v11181_v50 = vld [vmem:[%s14464_s1 + $0x5a8] sm:$0xff]   ;;  %v11182_v51 = vld [vmem:[%s14464_s1 + $0x570] sm:$0xff]   ;;  %v11210_v24 = vld [vmem:[%s14464_s1 + $0x6a0] sm:$0xff]  }
  0x86   :  { %10034 = vmatprep.subr.bf16.mxu1 %v11131_v53  ;;  %v11183_v53 = vld [vmem:[%s14464_s1 + $0x530] sm:$0xff]  }
  0x87   :  { %10013 = vmatpush3.bf16.msra.mxu0 %v11130_v54  ;;  %v27_v54 = vld [vmem:[%s14463_s0 + $0x28] sm:$0xff] }
  0x88   :  { %10014 = vmatprep.subr.bf16.mxu0 %v11133_v56  ;;  %v164_v56 = vrot.slane %v27_v54, %v11971_v41 }
  0x89   :  { %10035 = vmatpush3.bf16.msra.mxu1 %v11132_v55  ;;  %v11185_v55 = vld [vmem:[%s14464_s1 + $0x5b0] sm:$0xff]  }
  0x8a   :  { %10036 = vmatprep.subr.bf16.mxu1 %v11135_v57  ;;  %v157_v57 = vcombine.high %v27_v54, %v27_v54  ;;  %v11229_v54 = vld [vmem:[%s14464_s1 + $0x708] sm:$0xff]  }
  0x8b   :  { %10015 = vmatpush3.bf16.msra.mxu0 %v11134_v58  ;;  %v11186_v58 = vld [vmem:[%s14464_s1 + $0x578] sm:$0xff]  }
  0x8c   :  { %10016 = vmatprep.subr.bf16.mxu0 %v11137_v60  ;;  %v172_v60 = vcombine.high %v164_v56, %v164_v56 }
  0x8d   :  { %10037 = vmatpush3.bf16.msra.mxu1 %v11136_v59  ;;  %v11188_v59 = vld [vmem:[%s14464_s1 + $0x5f8] sm:$0xff]  }
  0x8e   :  { %10038 = vmatprep.subr.bf16.mxu1 %v11139_v61  ;;  %v171_v61 = vrot.slane %v157_v57, %v11971_v41  ;;  %v11234_v57 = vld [vmem:[%s14464_s1 + $0x7d0] sm:$0xff]  }
  0x8f   :  { %10017 = vmatpush3.bf16.msra.mxu0 %v11138_v62  ;;  %v11187_v62 = vld [vmem:[%s14464_s1 + $0x538] sm:$0xff]  }
  0x90   :  { %10018 = vmatprep.subr.bf16.mxu0 %v11141_v0  ;;  %v11189_v0 = vld [vmem:[%s14464_s1 + $0x5b8] sm:$0xff]  }
  0x91   :  { %10039 = vmatpush3.bf16.msra.mxu1 %v11140_v63  ;;  %v607_v63 = vpack.c.bf16 %v172_v60, %v172_v60  ;;  %v11236_v60 = vld [vmem:[%s14464_s1 + $0x758] sm:$0xff]  }
  0x92   :  { %10040 = vmatprep.subr.bf16.mxu1 %v11143_v1  ;;  %v173_v1 = vcombine.high %v171_v61, %v171_v61 }
  0x93   :  { %10019 = vmatpush3.bf16.msra.mxu0 %v11142_v2  ;;  %v11190_v2 = vld [vmem:[%s14464_s1 + $0x640] sm:$0xff]  }
  0x94   :  { %10020 = vmatprep.subr.bf16.mxu0 %v11145_v4  ;;  %v11193_v4 = vld [vmem:[%s14464_s1 + $0x6c0] sm:$0xff]  }
  0x95   :  { %10041 = vmatpush3.bf16.msra.mxu1 %v11144_v3  ;;  %v609_v3 = vpack.c.bf16 %v173_v1, %v173_v1  ;;  %v11242_v1 = vld [vmem:[%s14464_s1 + $0x7e0] sm:$0xff]  }
  0x96   :  { %10042 = vmatprep.subr.bf16.mxu1 %v11147_v5  ;;  %v11192_v5 = vld [vmem:[%s14464_s1 + $0x600] sm:$0xff]  }
  0x97   :  { %10021 = vmatpush3.bf16.msra.mxu0 %v11146_v6  ;;  %v606_v6 = vpack.c.bf16 %v164_v56, %v164_v56  ;;  %v11232_v56 = vld [vmem:[%s14464_s1 + $0x750] sm:$0xff]  }
  0x98   :  { %10022 = vmatprep.subr.bf16.mxu0 %v11149_v8  ;;  %v11194_v8 = vld [vmem:[%s14464_s1 + $0x680] sm:$0xff]  }
  0x99   :  { %10043 = vmatpush3.bf16.msra.mxu1 %v11148_v7  ;;  %v608_v7 = vpack.c.bf16 %v171_v61, %v171_v61  ;;  %v11238_v61 = vld [vmem:[%s14464_s1 + $0x7d8] sm:$0xff]  }
  0x9a   :  { %10044 = vmatprep.subr.bf16.mxu1 %v11151_v9  ;;  %v11195_v9 = vld [vmem:[%s14464_s1 + $0x648] sm:$0xff]  }
  0x9b   :  { %10023 = vmatpush3.bf16.msra.mxu0 %v11150_v10  ;;  %v11197_v10 = vld [vmem:[%s14464_s1 + $0x6c8] sm:$0xff]  }
  0x9c   :  { %10024 = vmatprep.subr.bf16.mxu0 %v11153_v15  ;;  %v11200_v15 = vld [vmem:[%s14464_s1 + $0x610] sm:$0xff]  }
  0x9d   :  { %10045 = vmatpush3.bf16.msra.mxu1 %v11152_v12  ;;  %v11198_v12 = vld [vmem:[%s14464_s1 + $0x688] sm:$0xff]  }
  0x9e   :  { %10046 = vmatprep.subr.bf16.mxu1 %v11155_v16  ;;  %v11202_v16 = vld [vmem:[%s14464_s1 + $0x690] sm:$0xff]  }
  0x9f   :  { %10025 = vmatpush3.bf16.msra.mxu0 %v11154_v19  ;;  %v11204_v19 = vld [vmem:[%s14464_s1 + $0x618] sm:$0xff]  }
  0xa0   :  { %10054 = vmatprep.subr.bf16.mxu0 %v11157_v23  ;;  %v11208_v23 = vld [vmem:[%s14464_s1 + $0x620] sm:$0xff]  }
  0xa1   :  { %10047 = vmatpush3.bf16.msra.mxu1 %v11156_v21  ;;  %v11207_v21 = vld [vmem:[%s14464_s1 + $0x660] sm:$0xff]  }
  0xa2   :  { %10076 = vmatprep.subr.bf16.mxu1 %v11160_v25  ;;  %7316 = vmatmul.mubr.bf16.vlgmr.msra.gmra.mrb[16].mxu0 %v602_v27  ;;  %v11211_v25 = vld [vmem:[%s14464_s1 + $0x668] sm:$0xff]  }
  0xa3   :  { %10055 = vmatpush3.bf16.msra.mxu0 %v11159_v26  ;;  %7395 = vmatprep.mubr.bf16.mxu0 %v607_v63  ;;  %v11213_v26 = vld [vmem:[%s14464_s1 + $0x6e8] sm:$0xff]   ;;  %v11239_v63 = vld [vmem:[%s14464_s1 + $0x798] sm:$0xff]  }
  0xa4   :  { %7356 = vmatmul.mubr.bf16.vlgmr.msra.gmra.mrb[16].mxu1 %v604_v28  ;;  %10056 = vmatprep.subr.bf16.mxu0 %v11162_v30  ;;  %v11212_v27 = vld [vmem:[%s14464_s1 + $0x628] sm:$0xff]   ;;  %v11217_v30 = vld [vmem:[%s14464_s1 + $0x6f0] sm:$0xff]  }
  0xa5   :  { %10077 = vmatpush3.bf16.msra.mxu1 %v11161_v29  ;;  %7435 = vmatprep.mubr.bf16.mxu1 %v609_v3  ;;  %v11214_v28 = vld [vmem:[%s14464_s1 + $0x6a8] sm:$0xff]   ;;  %v11215_v29 = vld [vmem:[%s14464_s1 + $0x670] sm:$0xff]   ;;  %v11243_v3 = vld [vmem:[%s14464_s1 + $0x7a0] sm:$0xff]  }
  0xa6   :  { %10078 = vmatprep.subr.bf16.mxu1 %v11164_v31  ;;  %v11216_v31 = vld [vmem:[%s14464_s1 + $0x630] sm:$0xff]  }
  0xa7   :  { %10057 = vmatpush3.bf16.msra.mxu0 %v11163_v32  ;;  %v11218_v32 = vld [vmem:[%s14464_s1 + $0x6b0] sm:$0xff]  }
  0xa8   :  { %10058 = vmatprep.subr.bf16.mxu0 %v11166_v34  ;;  %v11219_v34 = vld [vmem:[%s14464_s1 + $0x678] sm:$0xff]  }
  0xa9   :  { %10079 = vmatpush3.bf16.msra.mxu1 %v11165_v33  ;;  %v28_v33 = vld [vmem:[%s14463_s0 + $0x30] sm:$0xff] }
  0xaa   :  { %10080 = vmatprep.subr.bf16.mxu1 %v11168_v35  ;;  %v181_v35 = vrot.slane %v28_v33, %v11971_v41 }
  0xab   :  { %10059 = vmatpush3.bf16.msra.mxu0 %v11167_v36  ;;  %v174_v36 = vcombine.high %v28_v33, %v28_v33  ;;  %v11255_v33 = vld [vmem:[%s14464_s1 + $0x7b8] sm:$0xff]  }
  0xac   :  { %10060 = vmatprep.subr.bf16.mxu0 %v11170_v38  ;;  %v189_v38 = vcombine.high %v181_v35, %v181_v35 }
  0xad   :  { %10081 = vmatpush3.bf16.msra.mxu1 %v11169_v37  ;;  %v11221_v37 = vld [vmem:[%s14464_s1 + $0x6f8] sm:$0xff]  }
  0xae   :  { %10082 = vmatprep.subr.bf16.mxu1 %v11172_v39  ;;  %v188_v39 = vrot.slane %v174_v36, %v11971_v41 }
  0xaf   :  { %10061 = vmatpush3.bf16.msra.mxu0 %v11171_v40  ;;  %v11220_v40 = vld [vmem:[%s14464_s1 + $0x638] sm:$0xff]  }
  0xb0   :  { %10062 = vmatprep.subr.bf16.mxu0 %v11174_v43  ;;  %v11222_v43 = vld [vmem:[%s14464_s1 + $0x6b8] sm:$0xff]  }
  0xb1   :  { %10083 = vmatpush3.bf16.msra.mxu1 %v11173_v42  ;;  %v611_v42 = vpack.c.bf16 %v189_v38, %v189_v38  ;;  %v11259_v38 = vld [vmem:[%s14464_s1 + $0x8c0] sm:$0xff]  }
  0xb2   :  { %10084 = vmatprep.subr.bf16.mxu1 %v11176_v44  ;;  %v190_v44 = vcombine.high %v188_v39, %v188_v39 }
  0xb3   :  { %10063 = vmatpush3.bf16.msra.mxu0 %v11175_v45  ;;  %v11223_v45 = vld [vmem:[%s14464_s1 + $0x740] sm:$0xff]  }
  0xb4   :  { %10064 = vmatprep.subr.bf16.mxu0 %v11178_v47  ;;  %v11225_v47 = vld [vmem:[%s14464_s1 + $0x700] sm:$0xff]  }
  0xb5   :  { %10085 = vmatpush3.bf16.msra.mxu1 %v11177_v46  ;;  %v613_v46 = vpack.c.bf16 %v190_v44, %v190_v44  ;;  %v11261_v44 = vld [vmem:[%s14464_s1 + $0x848] sm:$0xff]  }
  0xb6   :  { %10086 = vmatprep.subr.bf16.mxu1 %v11180_v48  ;;  %v11226_v48 = vld [vmem:[%s14464_s1 + $0x7c0] sm:$0xff]  }
  0xb7   :  { %10065 = vmatpush3.bf16.msra.mxu0 %v11179_v49  ;;  %v610_v49 = vpack.c.bf16 %v181_v35, %v181_v35  ;;  %v11256_v35 = vld [vmem:[%s14464_s1 + $0x840] sm:$0xff]  }
  0xb8   :  { %10066 = vmatprep.subr.bf16.mxu0 %v11182_v51  ;;  %v11227_v51 = vld [vmem:[%s14464_s1 + $0x780] sm:$0xff]  }
  0xb9   :  { %10087 = vmatpush3.bf16.msra.mxu1 %v11181_v50  ;;  %v612_v50 = vpack.c.bf16 %v188_v39, %v188_v39 }
  0xba   :  { %10088 = vmatprep.subr.bf16.mxu1 %v11184_v52  ;;  %v11228_v52 = vld [vmem:[%s14464_s1 + $0x748] sm:$0xff]  }
  0xbb   :  { %10067 = vmatpush3.bf16.msra.mxu0 %v11183_v53  ;;  %v11230_v53 = vld [vmem:[%s14464_s1 + $0x7c8] sm:$0xff]  }
  0xbc   :  { %10068 = vmatprep.subr.bf16.mxu0 %v11186_v58  ;;  %v11233_v58 = vld [vmem:[%s14464_s1 + $0x710] sm:$0xff]  }
  0xbd   :  { %10089 = vmatpush3.bf16.msra.mxu1 %v11185_v55  ;;  %v11231_v55 = vld [vmem:[%s14464_s1 + $0x788] sm:$0xff]  }
  0xbe   :  { %10090 = vmatprep.subr.bf16.mxu1 %v11188_v59  ;;  %v11235_v59 = vld [vmem:[%s14464_s1 + $0x790] sm:$0xff]  }
  0xbf   :  { %10069 = vmatpush3.bf16.msra.mxu0 %v11187_v62  ;;  %v11237_v62 = vld [vmem:[%s14464_s1 + $0x718] sm:$0xff]  }
  0xc0   :  { %10098 = vmatprep.subr.bf16.mxu0 %v11190_v2  ;;  %v11241_v2 = vld [vmem:[%s14464_s1 + $0x720] sm:$0xff]  }
  0xc1   :  { %10091 = vmatpush3.bf16.msra.mxu1 %v11189_v0  ;;  %v11240_v0 = vld [vmem:[%s14464_s1 + $0x760] sm:$0xff]  }
  0xc2   :  { %10120 = vmatprep.subr.bf16.mxu1 %v11193_v4  ;;  %7396 = vmatmul.mubr.bf16.vlgmr.msra.gmra.mrb[20].mxu0 %v606_v6  ;;  %v11244_v4 = vld [vmem:[%s14464_s1 + $0x768] sm:$0xff]  }
  0xc3   :  { %10099 = vmatpush3.bf16.msra.mxu0 %v11192_v5  ;;  %7475 = vmatprep.mubr.bf16.mxu0 %v611_v42  ;;  %v11246_v5 = vld [vmem:[%s14464_s1 + $0x7e8] sm:$0xff]  }
  0xc4   :  { %7436 = vmatmul.mubr.bf16.vlgmr.msra.gmra.mrb[20].mxu1 %v608_v7  ;;  %10100 = vmatprep.subr.bf16.mxu0 %v11195_v9  ;;  %v11245_v6 = vld [vmem:[%s14464_s1 + $0x728] sm:$0xff]   ;;  %v9048_v9 = vld [vmem:[%s14465_s2] ss:$0 sm:$0xff] }
  0xc5   :  { %10121 = vmatpush3.bf16.msra.mxu1 %v11194_v8  ;;  %7515 = vmatprep.mubr.bf16.mxu1 %v613_v46  ;;  %v11247_v7 = vld [vmem:[%s14464_s1 + $0x7a8] sm:$0xff]   ;;  %v11248_v8 = vld [vmem:[%s14464_s1 + $0x770] sm:$0xff]  }
  0xc6   :  { %10122 = vmatprep.subr.bf16.mxu1 %v11197_v10  ;;  %v11250_v10 = vld [vmem:[%s14464_s1 + $0x7f0] sm:$0xff]   ;;  %v11262_v46 = vld [vmem:[%s14464_s1 + $0x808] sm:$0xff]  }
  0xc7   :  { %10101 = vmatpush3.bf16.msra.mxu0 %v11196_v11 }
  0xc8   :  { %10102 = vmatprep.subr.bf16.mxu0 %v11199_v13  ;;  %v11249_v13 = vld [vmem:[%s14464_s1 + $0x730] sm:$0xff]  }
  0xc9   :  { %10123 = vmatpush3.bf16.msra.mxu1 %v11198_v12 }
  0xca   :  { %10124 = vmatprep.subr.bf16.mxu1 %v11201_v14  ;;  %v11251_v14 = vld [vmem:[%s14464_s1 + $0x7b0] sm:$0xff]  }
  0xcb   :  { %10103 = vmatpush3.bf16.msra.mxu0 %v11200_v15 }
  0xcc   :  { %10104 = vmatprep.subr.bf16.mxu0 %v11203_v17  ;;  %v11252_v17 = vld [vmem:[%s14464_s1 + $0x778] sm:$0xff]  }
  0xcd   :  { %10125 = vmatpush3.bf16.msra.mxu1 %v11202_v16 }
  0xce   :  { %10126 = vmatprep.subr.bf16.mxu1 %v11205_v18 }
  0xcf   :  { %10105 = vmatpush3.bf16.msra.mxu0 %v11204_v19 }
  0xd0   :  { %10106 = vmatprep.subr.bf16.mxu0 %v11207_v21  ;;  %v29_v21 = vld [vmem:[%s14463_s0 + $0x38] sm:$0xff] }
  0xd1   :  { %10127 = vmatpush3.bf16.msra.mxu1 %v11206_v20 }
  0xd2   :  { %10128 = vmatprep.subr.bf16.mxu1 %v11209_v22 }
  0xd3   :  { %10107 = vmatpush3.bf16.msra.mxu0 %v11208_v23  ;;  %v11254_v23 = vld [vmem:[%s14464_s1 + $0x7f8] sm:$0xff]  }
  0xd4   :  { %10108 = vmatprep.subr.bf16.mxu0 %v11211_v25  ;;  %v191_v25 = vcombine.high %v29_v21, %v29_v21 }
  0xd5   :  { %10129 = vmatpush3.bf16.msra.mxu1 %v11210_v24  ;;  %v198_v24 = vrot.slane %v29_v21, %v11971_v41 }
  0xd6   :  { %10130 = vmatprep.subr.bf16.mxu1 %v11213_v26 }
  0xd7   :  { %10109 = vmatpush3.bf16.msra.mxu0 %v11212_v27  ;;  %v614_v39 = vpack.c.bf16 %v198_v24, %v198_v24 }
  0xd8   :  { %10110 = vmatprep.subr.bf16.mxu0 %v11215_v29  ;;  %v206_v29 = vcombine.high %v198_v24, %v198_v24  ;;  %v11288_v24 = vld [vmem:[%s14464_s1 + $0x8b8] sm:$0xff]  }
  0xd9   :  { %10131 = vmatpush3.bf16.msra.mxu1 %v11214_v28  ;;  %v11253_v28 = vld [vmem:[%s14464_s1 + $0x738] sm:$0xff]  }
  0xda   :  { %10132 = vmatprep.subr.bf16.mxu1 %v11217_v30  ;;  %v205_v30 = vrot.slane %v191_v25, %v11971_v41 }
  0xdb   :  { %10111 = vmatpush3.bf16.msra.mxu0 %v11216_v31 }
  0xdc   :  { %10112 = vmatprep.subr.bf16.mxu0 %v11219_v34  ;;  %v615_v34 = vpack.c.bf16 %v206_v29, %v206_v29  ;;  %v207_v36 = vcombine.high %v205_v30, %v205_v30  ;;  %v616_v42 = vpack.c.bf16 %v205_v30, %v205_v30  ;;  %v11292_v29 = vld [vmem:[%s14464_s1 + $0x9c0] sm:$0xff]  }
  0xdd   :  { %10133 = vmatpush3.bf16.msra.mxu1 %v11218_v32 }
  0xde   :  { %10134 = vmatprep.subr.bf16.mxu1 %v11221_v37  ;;  %v11258_v37 = vld [vmem:[%s14464_s1 + $0x800] sm:$0xff]  }
  0xdf   :  { %10113 = vmatpush3.bf16.msra.mxu0 %v11220_v40  ;;  %v617_v40 = vpack.c.bf16 %v207_v36, %v207_v36  ;;  %v11295_v36 = vld [vmem:[%s14464_s1 + $0x908] sm:$0xff]  }
  0xe0   :  { %10142 = vmatprep.subr.bf16.mxu0 %v11223_v45  ;;  %v11263_v45 = vld [vmem:[%s14464_s1 + $0x8c8] sm:$0xff]  }
  0xe1   :  { %10135 = vmatpush3.bf16.msra.mxu1 %v11222_v43  ;;  %v11260_v43 = vld [vmem:[%s14464_s1 + $0x880] sm:$0xff]  }
  0xe2   :  { %10164 = vmatprep.subr.bf16.mxu1 %v11226_v48  ;;  %7476 = vmatmul.mubr.bf16.vlgmr.msra.gmra.mrb[24].mxu0 %v610_v49  ;;  %v11265_v48 = vld [vmem:[%s14464_s1 + $0x850] sm:$0xff]  }
  0xe3   :  { %10143 = vmatpush3.bf16.msra.mxu0 %v11225_v47  ;;  %7555 = vmatprep.mubr.bf16.mxu0 %v615_v34  ;;  %v11264_v47 = vld [vmem:[%s14464_s1 + $0x888] sm:$0xff]   ;;  %v11267_v49 = vld [vmem:[%s14464_s1 + $0x8d0] sm:$0xff]  }
  0xe4   :  { %7516 = vmatmul.mubr.bf16.vlgmr.msra.gmra.mrb[24].mxu1 %v612_v50  ;;  %10144 = vmatprep.subr.bf16.mxu0 %v11228_v52  ;;  %v11266_v50 = vld [vmem:[%s14464_s1 + $0x810] sm:$0xff]   ;;  %v11269_v52 = vld [vmem:[%s14464_s1 + $0x858] sm:$0xff]   ;;  %v11294_v34 = vld [vmem:[%s14464_s1 + $0x948] sm:$0xff]  }
  0xe5   :  { %10165 = vmatpush3.bf16.msra.mxu1 %v11227_v51  ;;  %7595 = vmatprep.mubr.bf16.mxu1 %v617_v40  ;;  %v11268_v51 = vld [vmem:[%s14464_s1 + $0x890] sm:$0xff]  }
  0xe6   :  { %10166 = vmatprep.subr.bf16.mxu1 %v11230_v53  ;;  %v11271_v53 = vld [vmem:[%s14464_s1 + $0x8d8] sm:$0xff]   ;;  %v11299_v40 = vld [vmem:[%s14464_s1 + $0x910] sm:$0xff]  }
  0xe7   :  { %10145 = vmatpush3.bf16.msra.mxu0 %v11229_v54  ;;  %v11270_v54 = vld [vmem:[%s14464_s1 + $0x818] sm:$0xff]  }
  0xe8   :  { %10146 = vmatprep.subr.bf16.mxu0 %v11232_v56  ;;  %v11273_v56 = vld [vmem:[%s14464_s1 + $0x860] sm:$0xff]  }
  0xe9   :  { %10167 = vmatpush3.bf16.msra.mxu1 %v11231_v55  ;;  %v11272_v55 = vld [vmem:[%s14464_s1 + $0x898] sm:$0xff]  }
  0xea   :  { %10168 = vmatprep.subr.bf16.mxu1 %v11234_v57  ;;  %v11275_v57 = vld [vmem:[%s14464_s1 + $0x8e0] sm:$0xff]  }
  0xeb   :  { %10147 = vmatpush3.bf16.msra.mxu0 %v11233_v58  ;;  %v11274_v58 = vld [vmem:[%s14464_s1 + $0x820] sm:$0xff]  }
  0xec   :  { %10148 = vmatprep.subr.bf16.mxu0 %v11236_v60  ;;  %v11277_v60 = vld [vmem:[%s14464_s1 + $0x868] sm:$0xff]  }
  0xed   :  { %10169 = vmatpush3.bf16.msra.mxu1 %v11235_v59  ;;  %v11276_v59 = vld [vmem:[%s14464_s1 + $0x8a0] sm:$0xff]  }
  0xee   :  { %10170 = vmatprep.subr.bf16.mxu1 %v11238_v61  ;;  %v11279_v61 = vld [vmem:[%s14464_s1 + $0x8e8] sm:$0xff]  }
  0xef   :  { %10149 = vmatpush3.bf16.msra.mxu0 %v11237_v62  ;;  %v11278_v62 = vld [vmem:[%s14464_s1 + $0x828] sm:$0xff]  }
  0xf0   :  { %10150 = vmatprep.subr.bf16.mxu0 %v11240_v0  ;;  %v11281_v0 = vld [vmem:[%s14464_s1 + $0x870] sm:$0xff]  }
  0xf1   :  { %10171 = vmatpush3.bf16.msra.mxu1 %v11239_v63  ;;  %v11280_v63 = vld [vmem:[%s14464_s1 + $0x8a8] sm:$0xff]  }
  0xf2   :  { %10172 = vmatprep.subr.bf16.mxu1 %v11242_v1  ;;  %v11283_v1 = vld [vmem:[%s14464_s1 + $0x8f0] sm:$0xff]  }
  0xf3   :  { %10151 = vmatpush3.bf16.msra.mxu0 %v11241_v2 }
  0xf4   :  { %10152 = vmatprep.subr.bf16.mxu0 %v11244_v4  ;;  %v11282_v4 = vld [vmem:[%s14464_s1 + $0x830] sm:$0xff]  }
  0xf5   :  { %10173 = vmatpush3.bf16.msra.mxu1 %v11243_v3  ;;  %v9850_v11 = vpop.f32.mrb[0].mxu0 }
  0xf6   :  { %10174 = vmatprep.subr.bf16.mxu1 %v11246_v5  ;;  %v9851_v15 = vpop.f32.mrb[1].mxu0  ;;  %v11284_v5 = vld [vmem:[%s14464_s1 + $0x8b0] sm:$0xff]  }
  0xf7   :  { %v9872_v12 = vpop.f32.mrb[0].mxu1  ;;  %v9852_v18 = vadd.f32 %v9851_v15, %v9850_v11  ;;  %v9853_v19 = vpop.f32.mrb[2].mxu0  ;;  %10153 = vmatpush3.bf16.msra.mxu0 %v11245_v6  ;;  %v11285_v11 = vld [vmem:[%s14464_s1 + $0x878] sm:$0xff]  }
  0xf8   :  { %v9873_v16 = vpop.f32.mrb[1].mxu1  ;;  %v9854_v22 = vpop.f32.mrb[3].mxu0  ;;  %10154 = vmatprep.subr.bf16.mxu0 %v11248_v8  ;;  %v11287_v15 = vld [vmem:[%s14464_s1 + $0x8f8] sm:$0xff]  }
  0xf9   :  { %v9874_v20 = vadd.f32 %v9873_v16, %v9872_v12  ;;  %10175 = vmatpush3.bf16.msra.mxu1 %v11247_v7  ;;  %v6998_v26 = vadd.f32 %v9852_v18, %v9048_v9  ;;  %v9875_v27 = vpop.f32.mrb[2].mxu1  ;;  %v30_v12 = vld [vmem:[%s14463_s0 + $0x40] sm:$0xff] }
  0xfa   :  { %10176 = vmatprep.subr.bf16.mxu1 %v11250_v10  ;;  %v9876_v31 = vpop.f32.mrb[3].mxu1  ;;  %v215_v16 = vrot.slane %v30_v12, %v11971_v41 }
  0xfb   :  { %v12676_v32 = vadd.f32 %v9874_v20, %v6998_v26  ;;  %10155 = vmatpush3.bf16.msra.mxu0 %v11249_v13  ;;  %v11286_v20 = vld [vmem:[%s14464_s1 + $0x838] sm:$0xff]   ;;  %v11289_v26 = vld [vmem:[%s14464_s1 + $0x940] sm:$0xff]  }
  0xfc   :  { %10156 = vmatprep.subr.bf16.mxu0 %v11252_v17  ;;  %v208_v17 = vcombine.high %v30_v12, %v30_v12  ;;  %v223_v21 = vcombine.high %v215_v16, %v215_v16  ;;  %v618_v30 = vpack.c.bf16 %v215_v16, %v215_v16 }
  0xfd   :  { %10177 = vmatpush3.bf16.msra.mxu1 %v11251_v14 }
  0xfe   :  { %10178 = vmatprep.subr.bf16.mxu1 %v11254_v23  ;;  %v222_v22 = vrot.slane %v208_v17, %v11971_v41  ;;  %v619_v25 = vpack.c.bf16 %v223_v21, %v223_v21  ;;  %v11324_v21 = vld [vmem:[%s14464_s1 + $0xa00] sm:$0xff]  }
  0xff   :  { %10157 = vmatpush3.bf16.msra.mxu0 %v11253_v28  ;;  %v11291_v28 = vld [vmem:[%s14464_s1 + $0x900] sm:$0xff]  }
 0x100   :  { %10186 = vmatprep.subr.bf16.mxu0 %v11256_v35  ;;  %v224_v27 = vcombine.high %v222_v22, %v222_v22  ;;  %v11296_v35 = vld [vmem:[%s14464_s1 + $0x9c8] sm:$0xff]  }
 0x101   :  { %10179 = vmatpush3.bf16.msra.mxu1 %v11255_v33  ;;  %v11293_v33 = vld [vmem:[%s14464_s1 + $0x980] sm:$0xff]  }
 0x102   :  { %10208 = vmatprep.subr.bf16.mxu1 %v11259_v38  ;;  %7556 = vmatmul.mubr.bf16.vlgmr.msra.gmra.mrb[28].mxu0 %v614_v39  ;;  %v621_v31 = vpack.c.bf16 %v224_v27, %v224_v27  ;;  %v11298_v38 = vld [vmem:[%s14464_s1 + $0x950] sm:$0xff]   ;;  %v11328_v27 = vld [vmem:[%s14464_s1 + $0xa08] sm:$0xff]  }
 0x103   :  { %10187 = vmatpush3.bf16.msra.mxu0 %v11258_v37  ;;  %7635 = vmatprep.mubr.bf16.mxu0 %v619_v25  ;;  %v11297_v37 = vld [vmem:[%s14464_s1 + $0x988] sm:$0xff]   ;;  %v11300_v39 = vld [vmem:[%s14464_s1 + $0x9d0] sm:$0xff]  }
 0x104   :  { %7596 = vmatmul.mubr.bf16.vlgmr.msra.gmra.mrb[28].mxu1 %v616_v42  ;;  %10188 = vmatprep.subr.bf16.mxu0 %v11261_v44  ;;  %v11301_v42 = vld [vmem:[%s14464_s1 + $0x990] sm:$0xff]   ;;  %v11304_v44 = vld [vmem:[%s14464_s1 + $0x9d8] sm:$0xff]   ;;  %v11327_v25 = vld [vmem:[%s14464_s1 + $0xa48] sm:$0xff]  }
 0x105   :  { %10209 = vmatpush3.bf16.msra.mxu1 %v11260_v43  ;;  %7675 = vmatprep.mubr.bf16.mxu1 %v621_v31  ;;  %v11302_v43 = vld [vmem:[%s14464_s1 + $0x958] sm:$0xff]   ;;  %v11332_v31 = vld [vmem:[%s14464_s1 + $0xa10] sm:$0xff]  }
 0x106   :  { %10210 = vmatprep.subr.bf16.mxu1 %v11263_v45  ;;  %v11303_v45 = vld [vmem:[%s14464_s1 + $0x918] sm:$0xff]  }
 0x107   :  { %10189 = vmatpush3.bf16.msra.mxu0 %v11262_v46  ;;  %v11305_v46 = vld [vmem:[%s14464_s1 + $0x998] sm:$0xff]  }
 0x108   :  { %10190 = vmatprep.subr.bf16.mxu0 %v11265_v48  ;;  %v11308_v48 = vld [vmem:[%s14464_s1 + $0x9e0] sm:$0xff]  }
 0x109   :  { %10211 = vmatpush3.bf16.msra.mxu1 %v11264_v47  ;;  %v11306_v47 = vld [vmem:[%s14464_s1 + $0x960] sm:$0xff]  }
 0x10a   :  { %10212 = vmatprep.subr.bf16.mxu1 %v11267_v49  ;;  %v11307_v49 = vld [vmem:[%s14464_s1 + $0x920] sm:$0xff]  }
 0x10b   :  { %10191 = vmatpush3.bf16.msra.mxu0 %v11266_v50  ;;  %v11309_v50 = vld [vmem:[%s14464_s1 + $0x9a0] sm:$0xff]  }
 0x10c   :  { %10192 = vmatprep.subr.bf16.mxu0 %v11269_v52  ;;  %v11312_v52 = vld [vmem:[%s14464_s1 + $0x9e8] sm:$0xff]  }
 0x10d   :  { %10213 = vmatpush3.bf16.msra.mxu1 %v11268_v51  ;;  %v11310_v51 = vld [vmem:[%s14464_s1 + $0x968] sm:$0xff]  }
 0x10e   :  { %10214 = vmatprep.subr.bf16.mxu1 %v11271_v53  ;;  %v11311_v53 = vld [vmem:[%s14464_s1 + $0x928] sm:$0xff]  }
 0x10f   :  { %10193 = vmatpush3.bf16.msra.mxu0 %v11270_v54  ;;  %v11313_v54 = vld [vmem:[%s14464_s1 + $0x9a8] sm:$0xff]  }
 0x110   :  { %10194 = vmatprep.subr.bf16.mxu0 %v11273_v56  ;;  %v11316_v56 = vld [vmem:[%s14464_s1 + $0x9f0] sm:$0xff]  }
 0x111   :  { %10215 = vmatpush3.bf16.msra.mxu1 %v11272_v55  ;;  %v11314_v55 = vld [vmem:[%s14464_s1 + $0x970] sm:$0xff]  }
 0x112   :  { %10216 = vmatprep.subr.bf16.mxu1 %v11275_v57 }
 0x113   :  { %10195 = vmatpush3.bf16.msra.mxu0 %v11274_v58 }
 0x114   :  { %10196 = vmatprep.subr.bf16.mxu0 %v11277_v60 }
 0x115   :  { %10217 = vmatpush3.bf16.msra.mxu1 %v11276_v59  ;;  %v9894_v2 = vpop.f32.mrb[4].mxu0  ;;  %v11315_v59 = vld [vmem:[%s14464_s1 + $0x930] sm:$0xff]  }
 0x116   :  { %10218 = vmatprep.subr.bf16.mxu1 %v11279_v61  ;;  %v9895_v6 = vpop.f32.mrb[5].mxu0 }
 0x117   :  { %v9916_v3 = vpop.f32.mrb[4].mxu1  ;;  %v9896_v8 = vadd.f32 %v9895_v6, %v9894_v2  ;;  %v9897_v9 = vpop.f32.mrb[6].mxu0  ;;  %10197 = vmatpush3.bf16.msra.mxu0 %v11278_v62  ;;  %v11317_v62 = vld [vmem:[%s14464_s1 + $0x9b0] sm:$0xff]  }
 0x118   :  { %v9917_v7 = vpop.f32.mrb[5].mxu1  ;;  %v9898_v14 = vpop.f32.mrb[7].mxu0  ;;  %10198 = vmatprep.subr.bf16.mxu0 %v11281_v0 }
 0x119   :  { %v9918_v10 = vadd.f32 %v9917_v7, %v9916_v3  ;;  %10219 = vmatpush3.bf16.msra.mxu1 %v11280_v63  ;;  %v9919_v13 = vpop.f32.mrb[6].mxu1  ;;  %v7078_v18 = vadd.f32 %v9896_v8, %v12676_v32  ;;  %v620_v32 = vpack.c.bf16 %v222_v22, %v222_v22  ;;  %v11318_v63 = vld [vmem:[%s14464_s1 + $0x978] sm:$0xff]  }
 0x11a   :  { %10220 = vmatprep.subr.bf16.mxu1 %v11283_v1  ;;  %v9920_v19 = vpop.f32.mrb[7].mxu1  ;;  %v11320_v3 = vld [vmem:[%s14464_s1 + $0x9f8] sm:$0xff]  }
 0x11b   :  { %v12780_v23 = vadd.f32 %v9918_v10, %v7078_v18  ;;  %10199 = vmatpush3.bf16.msra.mxu0 %v11282_v4  ;;  %v11319_v10 = vld [vmem:[%s14464_s1 + $0x938] sm:$0xff]   ;;  %v11325_v18 = vld [vmem:[%s14464_s1 + $0xac0] sm:$0xff]  }
 0x11c   :  { %10200 = vmatprep.subr.bf16.mxu0 %v11285_v11  ;;  %v11321_v14 = vld [vmem:[%s14464_s1 + $0x9b8] sm:$0xff]  }
 0x11d   :  { %10221 = vmatpush3.bf16.msra.mxu1 %v11284_v5  ;;  %v31_v5 = vld [vmem:[%s14463_s0 + $0x48] sm:$0xff] }
 0x11e   :  { %10222 = vmatprep.subr.bf16.mxu1 %v11287_v15  ;;  %v232_v7 = vrot.slane %v31_v5, %v11971_v41  ;;  %v225_v8 = vcombine.high %v31_v5, %v31_v5  ;;  %v11322_v15 = vld [vmem:[%s14464_s1 + $0xa40] sm:$0xff]  }
 0x11f   :  { %10201 = vmatpush3.bf16.msra.mxu0 %v11286_v20 }
 0x120   :  { %10230 = vmatprep.subr.bf16.mxu0 %v11289_v26  ;;  %v240_v13 = vcombine.high %v232_v7, %v232_v7  ;;  %v239_v16 = vrot.slane %v225_v8, %v11971_v41  ;;  %v622_v19 = vpack.c.bf16 %v232_v7, %v232_v7  ;;  %v11329_v26 = vld [vmem:[%s14464_s1 + $0xac8] sm:$0xff]   ;;  %v11358_v8 = vld [vmem:[%s14464_s1 + $0xbc0] sm:$0xff]  }
 0x121   :  { %10223 = vmatpush3.bf16.msra.mxu1 %v11288_v24 }
 0x122   :  { %10252 = vmatprep.subr.bf16.mxu1 %v11292_v29  ;;  %7636 = vmatmul.mubr.bf16.vlgmr.msra.gmra.mrb[32].mxu0 %v618_v30  ;;  %v623_v17 = vpack.c.bf16 %v240_v13, %v240_v13  ;;  %v241_v20 = vcombine.high %v239_v16, %v239_v16  ;;  %v624_v22 = vpack.c.bf16 %v239_v16, %v239_v16  ;;  %v11331_v29 = vld [vmem:[%s14464_s1 + $0xa50] sm:$0xff]   ;;  %v11360_v16 = vld [vmem:[%s14464_s1 + $0xb48] sm:$0xff]  }
 0x123   :  { %10231 = vmatpush3.bf16.msra.mxu0 %v11291_v28  ;;  %v11330_v28 = vld [vmem:[%s14464_s1 + $0xa88] sm:$0xff]   ;;  %v11333_v30 = vld [vmem:[%s14464_s1 + $0xad0] sm:$0xff]  }
 0x124   :  { %7676 = vmatmul.mubr.bf16.vlgmr.msra.gmra.mrb[32].mxu1 %v620_v32  ;;  %10232 = vmatprep.subr.bf16.mxu0 %v11294_v34  ;;  %v625_v24 = vpack.c.bf16 %v241_v20, %v241_v20  ;;  %v11334_v32 = vld [vmem:[%s14464_s1 + $0xa90] sm:$0xff]   ;;  %v11337_v34 = vld [vmem:[%s14464_s1 + $0xad8] sm:$0xff]  }
 0x125   :  { %10253 = vmatpush3.bf16.msra.mxu1 %v11293_v33  ;;  %7715 = vmatprep.mubr.bf16.mxu0 %v623_v17  ;;  %v11335_v33 = vld [vmem:[%s14464_s1 + $0xa58] sm:$0xff]   ;;  %v11362_v17 = vld [vmem:[%s14464_s1 + $0xbc8] sm:$0xff]   ;;  %v11364_v20 = vld [vmem:[%s14464_s1 + $0xb50] sm:$0xff]  }
 0x126   :  { %10254 = vmatprep.subr.bf16.mxu1 %v11296_v35  ;;  %7755 = vmatprep.mubr.bf16.mxu1 %v625_v24  ;;  %v11336_v35 = vld [vmem:[%s14464_s1 + $0xa18] sm:$0xff]  }
 0x127   :  { %10233 = vmatpush3.bf16.msra.mxu0 %v11295_v36  ;;  %v11338_v36 = vld [vmem:[%s14464_s1 + $0xa98] sm:$0xff]  }
 0x128   :  { %10234 = vmatprep.subr.bf16.mxu0 %v11298_v38  ;;  %v11341_v38 = vld [vmem:[%s14464_s1 + $0xae0] sm:$0xff]   ;;  %v11368_v24 = vld [vmem:[%s14464_s1 + $0xb58] sm:$0xff]  }
 0x129   :  { %10255 = vmatpush3.bf16.msra.mxu1 %v11297_v37  ;;  %v11339_v37 = vld [vmem:[%s14464_s1 + $0xa60] sm:$0xff]  }
 0x12a   :  { %10256 = vmatprep.subr.bf16.mxu1 %v11300_v39  ;;  %v11340_v39 = vld [vmem:[%s14464_s1 + $0xa20] sm:$0xff]  }
 0x12b   :  { %10235 = vmatpush3.bf16.msra.mxu0 %v11299_v40  ;;  %v11342_v40 = vld [vmem:[%s14464_s1 + $0xaa0] sm:$0xff]  }
 0x12c   :  { %10236 = vmatprep.subr.bf16.mxu0 %v11302_v43  ;;  %v11345_v43 = vld [vmem:[%s14464_s1 + $0xae8] sm:$0xff]  }
 0x12d   :  { %10257 = vmatpush3.bf16.msra.mxu1 %v11301_v42  ;;  %v11343_v42 = vld [vmem:[%s14464_s1 + $0xa68] sm:$0xff]  }
 0x12e   :  { %10258 = vmatprep.subr.bf16.mxu1 %v11304_v44  ;;  %v11344_v44 = vld [vmem:[%s14464_s1 + $0xa28] sm:$0xff]  }
 0x12f   :  { %10237 = vmatpush3.bf16.msra.mxu0 %v11303_v45  ;;  %v11346_v45 = vld [vmem:[%s14464_s1 + $0xaa8] sm:$0xff]  }
 0x130   :  { %10238 = vmatprep.subr.bf16.mxu0 %v11306_v47 }
 0x131   :  { %10259 = vmatpush3.bf16.msra.mxu1 %v11305_v46  ;;  %v11347_v46 = vld [vmem:[%s14464_s1 + $0xa70] sm:$0xff]  }
 0x132   :  { %10260 = vmatprep.subr.bf16.mxu1 %v11308_v48 }
 0x133   :  { %10239 = vmatpush3.bf16.msra.mxu0 %v11307_v49  ;;  %v11348_v49 = vld [vmem:[%s14464_s1 + $0xa30] sm:$0xff]  }
 0x134   :  { %10240 = vmatprep.subr.bf16.mxu0 %v11310_v51 }
 0x135   :  { %10261 = vmatpush3.bf16.msra.mxu1 %v11309_v50  ;;  %v9938_v57 = vpop.f32.mrb[8].mxu0  ;;  %v11349_v50 = vld [vmem:[%s14464_s1 + $0xaf0] sm:$0xff]  }
 0x136   :  { %10262 = vmatprep.subr.bf16.mxu1 %v11312_v52  ;;  %v9939_v60 = vpop.f32.mrb[9].mxu0 }
 0x137   :  { %v9960_v58 = vpop.f32.mrb[8].mxu1  ;;  %v9940_v0 = vadd.f32 %v9939_v60, %v9938_v57  ;;  %v9941_v1 = vpop.f32.mrb[10].mxu0  ;;  %10241 = vmatpush3.bf16.msra.mxu0 %v11311_v53  ;;  %v11350_v53 = vld [vmem:[%s14464_s1 + $0xab0] sm:$0xff]   ;;  %v11351_v57 = vld [vmem:[%s14464_s1 + $0xa78] sm:$0xff]  }
 0x138   :  { %v9961_v61 = vpop.f32.mrb[9].mxu1  ;;  %v9942_v4 = vpop.f32.mrb[11].mxu0  ;;  %10242 = vmatprep.subr.bf16.mxu0 %v11314_v55 }
 0x139   :  { %v9962_v2 = vadd.f32 %v9961_v61, %v9960_v58  ;;  %10263 = vmatpush3.bf16.msra.mxu1 %v11313_v54  ;;  %v7158_v6 = vadd.f32 %v9940_v0, %v12780_v23  ;;  %v9963_v9 = vpop.f32.mrb[10].mxu1  ;;  %v11326_v23 = vld [vmem:[%s14464_s1 + $0xa80] sm:$0xff]   ;;  %v32_v61 = vld [vmem:[%s14463_s0 + $0x50] sm:$0xff]  ;;  %v11354_v4 = vld [vmem:[%s14464_s1 + $0xab8] sm:$0xff]  }
 0x13a   :  { %10264 = vmatprep.subr.bf16.mxu1 %v11316_v56  ;;  %v9964_v11 = vpop.f32.mrb[11].mxu1  ;;  %v249_v0 = vrot.slane %v32_v61, %v11971_v41  ;;  %v242_v1 = vcombine.high %v32_v61, %v32_v61  ;;  %v11388_v61 = vld [vmem:[%s14464_s1 + $0xc40] sm:$0xff]  }
 0x13b   :  { %v12883_v12 = vadd.f32 %v9962_v2, %v7158_v6  ;;  %10243 = vmatpush3.bf16.msra.mxu0 %v11315_v59  ;;  %v11353_v59 = vld [vmem:[%s14464_s1 + $0xaf8] sm:$0xff]   ;;  %v11355_v6 = vld [vmem:[%s14464_s1 + $0xb40] sm:$0xff]  }
 0x13c   :  { %10244 = vmatprep.subr.bf16.mxu0 %v11318_v63  ;;  %v11352_v63 = vld [vmem:[%s14464_s1 + $0xa38] sm:$0xff]   ;;  %v257_v5 = vcombine.high %v249_v0, %v249_v0  ;;  %v256_v7 = vrot.slane %v242_v1, %v11971_v41 }
 0x13d   :  { %10265 = vmatpush3.bf16.msra.mxu1 %v11317_v62 }
 0x13e   :  { %10266 = vmatprep.subr.bf16.mxu1 %v11320_v3  ;;  %v627_v9 = vpack.c.bf16 %v257_v5, %v257_v5  ;;  %v258_v11 = vcombine.high %v256_v7, %v256_v7  ;;  %v628_v13 = vpack.c.bf16 %v256_v7, %v256_v7  ;;  %v11392_v5 = vld [vmem:[%s14464_s1 + $0xc80] sm:$0xff]   ;;  %v11393_v7 = vld [vmem:[%s14464_s1 + $0xc48] sm:$0xff]  }
 0x13f   :  { %10245 = vmatpush3.bf16.msra.mxu0 %v11319_v10  ;;  %v626_v10 = vpack.c.bf16 %v249_v0, %v249_v0 }
 0x140   :  { %10274 = vmatprep.subr.bf16.mxu0 %v11322_v15  ;;  %v629_v15 = vpack.c.bf16 %v258_v11, %v258_v11  ;;  %v11397_v11 = vld [vmem:[%s14464_s1 + $0xc50] sm:$0xff]  }
 0x141   :  { %10267 = vmatpush3.bf16.msra.mxu1 %v11321_v14  ;;  %v11359_v14 = vld [vmem:[%s14464_s1 + $0xb80] sm:$0xff]  }
 0x142   :  { %10296 = vmatprep.subr.bf16.mxu1 %v11325_v18  ;;  %7716 = vmatmul.mubr.bf16.vlgmr.msra.gmra.mrb[36].mxu0 %v622_v19  ;;  %v11361_v18 = vld [vmem:[%s14464_s1 + $0xb08] sm:$0xff]  }
 0x143   :  { %10275 = vmatpush3.bf16.msra.mxu0 %v11324_v21  ;;  %7795 = vmatprep.mubr.bf16.mxu0 %v627_v9  ;;  %v11363_v19 = vld [vmem:[%s14464_s1 + $0xb88] sm:$0xff]   ;;  %v11366_v21 = vld [vmem:[%s14464_s1 + $0xbd0] sm:$0xff]  }
 0x144   :  { %7756 = vmatmul.mubr.bf16.vlgmr.msra.gmra.mrb[36].mxu1 %v624_v22  ;;  %10276 = vmatprep.subr.bf16.mxu0 %v11327_v25  ;;  %v11365_v22 = vld [vmem:[%s14464_s1 + $0xb10] sm:$0xff]   ;;  %v11370_v25 = vld [vmem:[%s14464_s1 + $0xbd8] sm:$0xff]   ;;  %v11394_v9 = vld [vmem:[%s14464_s1 + $0xc08] sm:$0xff]  }
 0x145   :  { %10297 = vmatpush3.bf16.msra.mxu1 %v11326_v23  ;;  %7835 = vmatprep.mubr.bf16.mxu1 %v629_v15  ;;  %v11367_v23 = vld [vmem:[%s14464_s1 + $0xb90] sm:$0xff]   ;;  %v11401_v15 = vld [vmem:[%s14464_s1 + $0xc58] sm:$0xff]  }
 0x146   :  { %10298 = vmatprep.subr.bf16.mxu1 %v11329_v26  ;;  %v11369_v26 = vld [vmem:[%s14464_s1 + $0xb18] sm:$0xff]  }
 0x147   :  { %10277 = vmatpush3.bf16.msra.mxu0 %v11328_v27  ;;  %v11371_v27 = vld [vmem:[%s14464_s1 + $0xb98] sm:$0xff]  }
 0x148   :  { %10278 = vmatprep.subr.bf16.mxu0 %v11331_v29  ;;  %v11374_v29 = vld [vmem:[%s14464_s1 + $0xbe0] sm:$0xff]  }
 0x149   :  { %10299 = vmatpush3.bf16.msra.mxu1 %v11330_v28  ;;  %v11372_v28 = vld [vmem:[%s14464_s1 + $0xb60] sm:$0xff]  }
 0x14a   :  { %10300 = vmatprep.subr.bf16.mxu1 %v11333_v30  ;;  %v11373_v30 = vld [vmem:[%s14464_s1 + $0xb20] sm:$0xff]  }
 0x14b   :  { %10279 = vmatpush3.bf16.msra.mxu0 %v11332_v31  ;;  %v11375_v31 = vld [vmem:[%s14464_s1 + $0xba0] sm:$0xff]  }
 0x14c   :  { %10280 = vmatprep.subr.bf16.mxu0 %v11335_v33  ;;  %v11378_v33 = vld [vmem:[%s14464_s1 + $0xbe8] sm:$0xff]  }
 0x14d   :  { %10301 = vmatpush3.bf16.msra.mxu1 %v11334_v32  ;;  %v11376_v32 = vld [vmem:[%s14464_s1 + $0xb68] sm:$0xff]  }
 0x14e   :  { %10302 = vmatprep.subr.bf16.mxu1 %v11337_v34  ;;  %v11377_v34 = vld [vmem:[%s14464_s1 + $0xb28] sm:$0xff]  }
 0x14f   :  { %10281 = vmatpush3.bf16.msra.mxu0 %v11336_v35  ;;  %v11379_v35 = vld [vmem:[%s14464_s1 + $0xba8] sm:$0xff]  }
 0x150   :  { %10282 = vmatprep.subr.bf16.mxu0 %v11339_v37 }
 0x151   :  { %10303 = vmatpush3.bf16.msra.mxu1 %v11338_v36  ;;  %v11380_v36 = vld [vmem:[%s14464_s1 + $0xb70] sm:$0xff]  }
 0x152   :  { %10304 = vmatprep.subr.bf16.mxu1 %v11341_v38 }
 0x153   :  { %10283 = vmatpush3.bf16.msra.mxu0 %v11340_v39  ;;  %v11381_v39 = vld [vmem:[%s14464_s1 + $0xb30] sm:$0xff]  }
 0x154   :  { %10284 = vmatprep.subr.bf16.mxu0 %v11343_v42 }
 0x155   :  { %10305 = vmatpush3.bf16.msra.mxu1 %v11342_v40  ;;  %v9982_v47 = vpop.f32.mrb[12].mxu0  ;;  %v11382_v40 = vld [vmem:[%s14464_s1 + $0xbf0] sm:$0xff]  }
 0x156   :  { %10306 = vmatprep.subr.bf16.mxu1 %v11345_v43  ;;  %v9983_v51 = vpop.f32.mrb[13].mxu0 }
 0x157   :  { %v10004_v48 = vpop.f32.mrb[12].mxu1  ;;  %v9984_v54 = vadd.f32 %v9983_v51, %v9982_v47  ;;  %v9985_v55 = vpop.f32.mrb[14].mxu0  ;;  %10285 = vmatpush3.bf16.msra.mxu0 %v11344_v44  ;;  %v11383_v47 = vld [vmem:[%s14464_s1 + $0xbb0] sm:$0xff]   ;;  %v11386_v51 = vld [vmem:[%s14464_s1 + $0xbf8] sm:$0xff]  }
 0x158   :  { %v10005_v52 = vpop.f32.mrb[13].mxu1  ;;  %v9986_v58 = vpop.f32.mrb[15].mxu0  ;;  %10286 = vmatprep.subr.bf16.mxu0 %v11347_v46 }
 0x159   :  { %v10006_v56 = vadd.f32 %v10005_v52, %v10004_v48  ;;  %10307 = vmatpush3.bf16.msra.mxu1 %v11346_v45  ;;  %v7238_v60 = vadd.f32 %v9984_v54, %v12883_v12  ;;  %v10007_v62 = vpop.f32.mrb[14].mxu1  ;;  %v11357_v12 = vld [vmem:[%s14464_s1 + $0xb00] sm:$0xff]   ;;  %v33_v52 = vld [vmem:[%s14463_s0 + $0x58] sm:$0xff] }
 0x15a   :  { %10308 = vmatprep.subr.bf16.mxu1 %v11349_v50  ;;  %v10008_v2 = vpop.f32.mrb[15].mxu1  ;;  %v11385_v54 = vld [vmem:[%s14464_s1 + $0xb38] sm:$0xff]   ;;  %v266_v55 = vrot.slane %v33_v52, %v11971_v41 }
 0x15b   :  { %v12987_v3 = vadd.f32 %v10006_v56, %v7238_v60  ;;  %10287 = vmatpush3.bf16.msra.mxu0 %v11348_v49  ;;  %v11384_v49 = vld [vmem:[%s14464_s1 + $0xb78] sm:$0xff]   ;;  %v259_v56 = vcombine.high %v33_v52, %v33_v52 }
 0x15c   :  { %10288 = vmatprep.subr.bf16.mxu0 %v11351_v57  ;;  %v274_v60 = vcombine.high %v266_v55, %v266_v55  ;;  %v630_v1 = vpack.c.bf16 %v266_v55, %v266_v55 }
 0x15d   :  { %10309 = vmatpush3.bf16.msra.mxu1 %v11350_v53  ;;  %v273_v62 = vrot.slane %v259_v56, %v11971_v41  ;;  %v11424_v56 = vld [vmem:[%s14464_s1 + $0xdc0] sm:$0xff]  }
 0x15e   :  { %10310 = vmatprep.subr.bf16.mxu1 %v11353_v59  ;;  %v11387_v59 = vld [vmem:[%s14464_s1 + $0xbb8] sm:$0xff]   ;;  %v631_v0 = vpack.c.bf16 %v274_v60, %v274_v60 }
 0x15f   :  { %10289 = vmatpush3.bf16.msra.mxu0 %v11352_v63  ;;  %v11391_v63 = vld [vmem:[%s14464_s1 + $0xcc0] sm:$0xff]   ;;  %v275_v2 = vcombine.high %v273_v62, %v273_v62 }
 0x160   :  { %10318 = vmatprep.subr.bf16.mxu0 %v11355_v6 }
 0x161   :  { %10311 = vmatpush3.bf16.msra.mxu1 %v11354_v4  ;;  %v632_v4 = vpack.c.bf16 %v273_v62, %v273_v62  ;;  %v633_v6 = vpack.c.bf16 %v275_v2, %v275_v2  ;;  %v11430_v2 = vld [vmem:[%s14464_s1 + $0xd50] sm:$0xff]  }
 0x162   :  { %10340 = vmatprep.subr.bf16.mxu1 %v11358_v8  ;;  %7796 = vmatmul.mubr.bf16.vlgmr.msra.gmra.mrb[40].mxu0 %v626_v10  ;;  %v11395_v8 = vld [vmem:[%s14464_s1 + $0xcc8] sm:$0xff]  }
 0x163   :  { %10319 = vmatpush3.bf16.msra.mxu0 %v11357_v12  ;;  %7875 = vmatprep.mubr.bf16.mxu0 %v631_v0  ;;  %v11396_v10 = vld [vmem:[%s14464_s1 + $0xc88] sm:$0xff]   ;;  %v11399_v12 = vld [vmem:[%s14464_s1 + $0xcd0] sm:$0xff]  }
 0x164   :  { %7836 = vmatmul.mubr.bf16.vlgmr.msra.gmra.mrb[40].mxu1 %v628_v13  ;;  %10320 = vmatprep.subr.bf16.mxu0 %v11360_v16  ;;  %v11398_v13 = vld [vmem:[%s14464_s1 + $0xc10] sm:$0xff]   ;;  %v11403_v16 = vld [vmem:[%s14464_s1 + $0xcd8] sm:$0xff]   ;;  %v11428_v0 = vld [vmem:[%s14464_s1 + $0xdc8] sm:$0xff]  }
 0x165   :  { %10341 = vmatpush3.bf16.msra.mxu1 %v11359_v14  ;;  %7915 = vmatprep.mubr.bf16.mxu1 %v633_v6  ;;  %v11400_v14 = vld [vmem:[%s14464_s1 + $0xc90] sm:$0xff]   ;;  %v11434_v6 = vld [vmem:[%s14464_s1 + $0xd58] sm:$0xff]  }
 0x166   :  { %10342 = vmatprep.subr.bf16.mxu1 %v11362_v17  ;;  %v11402_v17 = vld [vmem:[%s14464_s1 + $0xc18] sm:$0xff]  }
 0x167   :  { %10321 = vmatpush3.bf16.msra.mxu0 %v11361_v18  ;;  %v11404_v18 = vld [vmem:[%s14464_s1 + $0xc98] sm:$0xff]  }
 0x168   :  { %10322 = vmatprep.subr.bf16.mxu0 %v11364_v20  ;;  %v11407_v20 = vld [vmem:[%s14464_s1 + $0xce0] sm:$0xff]  }
 0x169   :  { %10343 = vmatpush3.bf16.msra.mxu1 %v11363_v19  ;;  %v11405_v19 = vld [vmem:[%s14464_s1 + $0xc60] sm:$0xff]  }
 0x16a   :  { %10344 = vmatprep.subr.bf16.mxu1 %v11366_v21  ;;  %v11406_v21 = vld [vmem:[%s14464_s1 + $0xc20] sm:$0xff]  }
 0x16b   :  { %10323 = vmatpush3.bf16.msra.mxu0 %v11365_v22  ;;  %v11408_v22 = vld [vmem:[%s14464_s1 + $0xca0] sm:$0xff]  }
 0x16c   :  { %10324 = vmatprep.subr.bf16.mxu0 %v11368_v24  ;;  %v11411_v24 = vld [vmem:[%s14464_s1 + $0xce8] sm:$0xff]  }
 0x16d   :  { %10345 = vmatpush3.bf16.msra.mxu1 %v11367_v23  ;;  %v11409_v23 = vld [vmem:[%s14464_s1 + $0xc68] sm:$0xff]  }
 0x16e   :  { %10346 = vmatprep.subr.bf16.mxu1 %v11370_v25  ;;  %v11410_v25 = vld [vmem:[%s14464_s1 + $0xc28] sm:$0xff]  }
 0x16f   :  { %10325 = vmatpush3.bf16.msra.mxu0 %v11369_v26  ;;  %v11412_v26 = vld [vmem:[%s14464_s1 + $0xca8] sm:$0xff]  }
 0x170   :  { %10326 = vmatprep.subr.bf16.mxu0 %v11372_v28 }
 0x171   :  { %10347 = vmatpush3.bf16.msra.mxu1 %v11371_v27  ;;  %v11413_v27 = vld [vmem:[%s14464_s1 + $0xc70] sm:$0xff]  }
 0x172   :  { %10348 = vmatprep.subr.bf16.mxu1 %v11374_v29 }
 0x173   :  { %10327 = vmatpush3.bf16.msra.mxu0 %v11373_v30 }
 0x174   :  { %10328 = vmatprep.subr.bf16.mxu0 %v11376_v32  ;;  %v11414_v32 = vld [vmem:[%s14464_s1 + $0xc30] sm:$0xff]  }
 0x175   :  { %10349 = vmatpush3.bf16.msra.mxu1 %v11375_v31  ;;  %v10026_v37 = vpop.f32.mrb[16].mxu0 }
 0x176   :  { %10350 = vmatprep.subr.bf16.mxu1 %v11378_v33  ;;  %v10027_v42 = vpop.f32.mrb[17].mxu0  ;;  %v11415_v33 = vld [vmem:[%s14464_s1 + $0xcf0] sm:$0xff]  }
 0x177   :  { %v10048_v38 = vpop.f32.mrb[16].mxu1  ;;  %v10028_v44 = vadd.f32 %v10027_v42, %v10026_v37  ;;  %v10029_v45 = vpop.f32.mrb[18].mxu0  ;;  %10329 = vmatpush3.bf16.msra.mxu0 %v11377_v34  ;;  %v11416_v37 = vld [vmem:[%s14464_s1 + $0xcb0] sm:$0xff]   ;;  %v11418_v42 = vld [vmem:[%s14464_s1 + $0xc38] sm:$0xff]  }
 0x178   :  { %v10049_v43 = vpop.f32.mrb[17].mxu1  ;;  %v10030_v48 = vpop.f32.mrb[19].mxu0  ;;  %10330 = vmatprep.subr.bf16.mxu0 %v11380_v36 }
 0x179   :  { %v10050_v46 = vadd.f32 %v10049_v43, %v10048_v38  ;;  %10351 = vmatpush3.bf16.msra.mxu1 %v11379_v35  ;;  %v7318_v50 = vadd.f32 %v10028_v44, %v12987_v3  ;;  %v10051_v53 = vpop.f32.mrb[18].mxu1  ;;  %v11390_v3 = vld [vmem:[%s14464_s1 + $0xc00] sm:$0xff]   ;;  %v11419_v43 = vld [vmem:[%s14464_s1 + $0xcf8] sm:$0xff]  }
 0x17a   :  { %10352 = vmatprep.subr.bf16.mxu1 %v11382_v40  ;;  %v10052_v57 = vpop.f32.mrb[19].mxu1  ;;  %v34_v44 = vld [vmem:[%s14463_s0 + $0x60] sm:$0xff]  ;;  %v11420_v48 = vld [vmem:[%s14464_s1 + $0xcb8] sm:$0xff]  }
 0x17b   :  { %v13091_v58 = vadd.f32 %v10050_v46, %v7318_v50  ;;  %10331 = vmatpush3.bf16.msra.mxu0 %v11381_v39  ;;  %v11417_v39 = vld [vmem:[%s14464_s1 + $0xc78] sm:$0xff]  }
 0x17c   :  { %10332 = vmatprep.subr.bf16.mxu0 %v11384_v49  ;;  %v276_v49 = vcombine.high %v34_v44, %v34_v44 }
 0x17d   :  { %10353 = vmatpush3.bf16.msra.mxu1 %v11383_v47  ;;  %v283_v47 = vrot.slane %v34_v44, %v11971_v41 }
 0x17e   :  { %10354 = vmatprep.subr.bf16.mxu1 %v11386_v51  ;;  %v11421_v51 = vld [vmem:[%s14464_s1 + $0xd40] sm:$0xff]   ;;  %v290_v53 = vrot.slane %v276_v49, %v11971_v41 }
 0x17f   :  { %10333 = vmatpush3.bf16.msra.mxu0 %v11385_v54  ;;  %v291_v52 = vcombine.high %v283_v47, %v283_v47  ;;  %v11423_v54 = vld [vmem:[%s14464_s1 + $0xd00] sm:$0xff]   ;;  %v634_v55 = vpack.c.bf16 %v283_v47, %v283_v47 }
 0x180   :  { %10362 = vmatprep.subr.bf16.mxu0 %v11388_v61  ;;  %v636_v60 = vpack.c.bf16 %v290_v53, %v290_v53  ;;  %v11426_v61 = vld [vmem:[%s14464_s1 + $0xd48] sm:$0xff]   ;;  %v11456_v49 = vld [vmem:[%s14464_s1 + $0xe00] sm:$0xff]  }
 0x181   :  { %10355 = vmatpush3.bf16.msra.mxu1 %v11387_v59  ;;  %v635_v57 = vpack.c.bf16 %v291_v52, %v291_v52  ;;  %v11425_v59 = vld [vmem:[%s14464_s1 + $0xd80] sm:$0xff]  }
 0x182   :  { %10384 = vmatprep.subr.bf16.mxu1 %v11391_v63  ;;  %7876 = vmatmul.mubr.bf16.vlgmr.msra.gmra.mrb[44].mxu0 %v630_v1  ;;  %v11427_v63 = vld [vmem:[%s14464_s1 + $0xd08] sm:$0xff]  }
 0x183   :  { %10363 = vmatpush3.bf16.msra.mxu0 %v11390_v3  ;;  %7955 = vmatprep.mubr.bf16.mxu0 %v635_v57  ;;  %v11429_v1 = vld [vmem:[%s14464_s1 + $0xd88] sm:$0xff]   ;;  %v11431_v3 = vld [vmem:[%s14464_s1 + $0xd10] sm:$0xff]  }
 0x184   :  { %7916 = vmatmul.mubr.bf16.vlgmr.msra.gmra.mrb[44].mxu1 %v632_v4  ;;  %10364 = vmatprep.subr.bf16.mxu0 %v11393_v7  ;;  %v11432_v4 = vld [vmem:[%s14464_s1 + $0xdd0] sm:$0xff]   ;;  %v11435_v7 = vld [vmem:[%s14464_s1 + $0xd18] sm:$0xff]   ;;  %v11462_v57 = vld [vmem:[%s14464_s1 + $0xe88] sm:$0xff]  }
 0x185   :  { %10385 = vmatpush3.bf16.msra.mxu1 %v11392_v5  ;;  %v11433_v5 = vld [vmem:[%s14464_s1 + $0xd90] sm:$0xff]  }
 0x186   :  { %10386 = vmatprep.subr.bf16.mxu1 %v11395_v8  ;;  %v11436_v8 = vld [vmem:[%s14464_s1 + $0xdd8] sm:$0xff]  }
 0x187   :  { %10365 = vmatpush3.bf16.msra.mxu0 %v11394_v9  ;;  %v11437_v9 = vld [vmem:[%s14464_s1 + $0xd98] sm:$0xff]  }
 0x188   :  { %10366 = vmatprep.subr.bf16.mxu0 %v11397_v11  ;;  %v11439_v11 = vld [vmem:[%s14464_s1 + $0xd20] sm:$0xff]  }
 0x189   :  { %10387 = vmatpush3.bf16.msra.mxu1 %v11396_v10  ;;  %v11438_v10 = vld [vmem:[%s14464_s1 + $0xd60] sm:$0xff]  }
 0x18a   :  { %10388 = vmatprep.subr.bf16.mxu1 %v11399_v12  ;;  %v11440_v12 = vld [vmem:[%s14464_s1 + $0xde0] sm:$0xff]  }
 0x18b   :  { %10367 = vmatpush3.bf16.msra.mxu0 %v11398_v13  ;;  %v11441_v13 = vld [vmem:[%s14464_s1 + $0xda0] sm:$0xff]  }
 0x18c   :  { %10368 = vmatprep.subr.bf16.mxu0 %v11401_v15  ;;  %v11443_v15 = vld [vmem:[%s14464_s1 + $0xd28] sm:$0xff]  }
 0x18d   :  { %10389 = vmatpush3.bf16.msra.mxu1 %v11400_v14  ;;  %v11442_v14 = vld [vmem:[%s14464_s1 + $0xd68] sm:$0xff]  }
 0x18e   :  { %10390 = vmatprep.subr.bf16.mxu1 %v11403_v16  ;;  %v11444_v16 = vld [vmem:[%s14464_s1 + $0xde8] sm:$0xff]  }
 0x18f   :  { %10369 = vmatpush3.bf16.msra.mxu0 %v11402_v17  ;;  %v11445_v17 = vld [vmem:[%s14464_s1 + $0xda8] sm:$0xff]  }
 0x190   :  { %10370 = vmatprep.subr.bf16.mxu0 %v11405_v19 }
 0x191   :  { %10391 = vmatpush3.bf16.msra.mxu1 %v11404_v18  ;;  %v11446_v18 = vld [vmem:[%s14464_s1 + $0xd70] sm:$0xff]  }
 0x192   :  { %10392 = vmatprep.subr.bf16.mxu1 %v11407_v20 }
 0x193   :  { %10371 = vmatpush3.bf16.msra.mxu0 %v11406_v21  ;;  %v11447_v21 = vld [vmem:[%s14464_s1 + $0xd30] sm:$0xff]  }
 0x194   :  { %10372 = vmatprep.subr.bf16.mxu0 %v11409_v23 }
 0x195   :  { %10393 = vmatpush3.bf16.msra.mxu1 %v11408_v22  ;;  %v10070_v28 = vpop.f32.mrb[20].mxu0  ;;  %v11448_v22 = vld [vmem:[%s14464_s1 + $0xdf0] sm:$0xff]  }
 0x196   :  { %10394 = vmatprep.subr.bf16.mxu1 %v11411_v24  ;;  %v10071_v30 = vpop.f32.mrb[21].mxu0 }
 0x197   :  { %v10092_v29 = vpop.f32.mrb[20].mxu1  ;;  %v10072_v34 = vadd.f32 %v10071_v30, %v10070_v28  ;;  %v10073_v35 = vpop.f32.mrb[22].mxu0  ;;  %10373 = vmatpush3.bf16.msra.mxu0 %v11410_v25  ;;  %v11449_v28 = vld [vmem:[%s14464_s1 + $0xdb0] sm:$0xff]   ;;  %v11450_v30 = vld [vmem:[%s14464_s1 + $0xd78] sm:$0xff]  }
 0x198   :  { %v10093_v31 = vpop.f32.mrb[21].mxu1  ;;  %v10074_v38 = vpop.f32.mrb[23].mxu0  ;;  %10374 = vmatprep.subr.bf16.mxu0 %v11413_v27 }
 0x199   :  { %v10094_v36 = vadd.f32 %v10093_v31, %v10092_v29  ;;  %10395 = vmatpush3.bf16.msra.mxu1 %v11412_v26  ;;  %v7398_v40 = vadd.f32 %v10072_v34, %v13091_v58  ;;  %v10095_v45 = vpop.f32.mrb[22].mxu1  ;;  %v292_v58 = vcombine.high %v290_v53, %v290_v53  ;;  %v11452_v34 = vld [vmem:[%s14464_s1 + $0xdf8] sm:$0xff]   ;;  %v11458_v53 = vld [vmem:[%s14464_s1 + $0xe80] sm:$0xff]  }
 0x19a   :  { %10396 = vmatprep.subr.bf16.mxu1 %v11415_v33  ;;  %v10096_v50 = vpop.f32.mrb[23].mxu1 }
 0x19b   :  { %v13194_v46 = vadd.f32 %v10094_v36, %v7398_v40  ;;  %10375 = vmatpush3.bf16.msra.mxu0 %v11414_v32  ;;  %v637_v62 = vpack.c.bf16 %v292_v58, %v292_v58  ;;  %v11451_v32 = vld [vmem:[%s14464_s1 + $0xd38] sm:$0xff]   ;;  %v11465_v58 = vld [vmem:[%s14464_s1 + $0xed0] sm:$0xff]  }
 0x19c   :  { %10376 = vmatprep.subr.bf16.mxu0 %v11417_v39  ;;  %v11453_v39 = vld [vmem:[%s14464_s1 + $0xdb8] sm:$0xff]  }
 0x19d   :  { %10397 = vmatpush3.bf16.msra.mxu1 %v11416_v37  ;;  %7995 = vmatprep.mubr.bf16.mxu1 %v637_v62  ;;  %v35_v37 = vld [vmem:[%s14463_s0 + $0x68] sm:$0xff]  ;;  %v11469_v62 = vld [vmem:[%s14464_s1 + $0xed8] sm:$0xff]  }
 0x19e   :  { %10398 = vmatprep.subr.bf16.mxu1 %v11419_v43  ;;  %v300_v38 = vrot.slane %v35_v37, %v11971_v41  ;;  %v293_v40 = vcombine.high %v35_v37, %v35_v37  ;;  %v11490_v37 = vld [vmem:[%s14464_s1 + $0xfc0] sm:$0xff]  }
 0x19f   :  { %10377 = vmatpush3.bf16.msra.mxu0 %v11418_v42  ;;  %v11454_v42 = vld [vmem:[%s14464_s1 + $0xe40] sm:$0xff]  }
 0x1a0   :  { %10406 = vmatprep.subr.bf16.mxu0 %v11421_v51  ;;  %v308_v43 = vcombine.high %v300_v38, %v300_v38  ;;  %v307_v44 = vrot.slane %v293_v40, %v11971_v41  ;;  %v638_v45 = vpack.c.bf16 %v300_v38, %v300_v38  ;;  %v11459_v51 = vld [vmem:[%s14464_s1 + $0xe48] sm:$0xff]   ;;  %v11491_v40 = vld [vmem:[%s14464_s1 + $0xf80] sm:$0xff]  }
 0x1a1   :  { %10399 = vmatpush3.bf16.msra.mxu1 %v11420_v48 }
 0x1a2   :  { %10428 = vmatprep.subr.bf16.mxu1 %v11424_v56  ;;  %7956 = vmatmul.mubr.bf16.vlgmr.msra.gmra.mrb[48].mxu0 %v634_v55  ;;  %v639_v47 = vpack.c.bf16 %v308_v43, %v308_v43  ;;  %v309_v48 = vcombine.high %v307_v44, %v307_v44  ;;  %v640_v50 = vpack.c.bf16 %v307_v44, %v307_v44  ;;  %v11460_v55 = vld [vmem:[%s14464_s1 + $0xe08] sm:$0xff]   ;;  %v11463_v56 = vld [vmem:[%s14464_s1 + $0xe50] sm:$0xff]  }
 0x1a3   :  { %10407 = vmatpush3.bf16.msra.mxu0 %v11423_v54  ;;  %v11461_v54 = vld [vmem:[%s14464_s1 + $0xec8] sm:$0xff]  }
 0x1a4   :  { %7996 = vmatmul.mubr.bf16.vlgmr.msra.gmra.mrb[48].mxu1 %v636_v60  ;;  %10408 = vmatprep.subr.bf16.mxu0 %v11426_v61  ;;  %v641_v52 = vpack.c.bf16 %v309_v48, %v309_v48  ;;  %v11467_v60 = vld [vmem:[%s14464_s1 + $0xe58] sm:$0xff]   ;;  %v11466_v61 = vld [vmem:[%s14464_s1 + $0xe90] sm:$0xff]   ;;  %v11492_v43 = vld [vmem:[%s14464_s1 + $0xf48] sm:$0xff]  }
 0x1a5   :  { %10429 = vmatpush3.bf16.msra.mxu1 %v11425_v59  ;;  %8035 = vmatprep.mubr.bf16.mxu0 %v639_v47  ;;  %v11464_v59 = vld [vmem:[%s14464_s1 + $0xe10] sm:$0xff]   ;;  %v11495_v47 = vld [vmem:[%s14464_s1 + $0xf88] sm:$0xff]  }
 0x1a6   :  { %10430 = vmatprep.subr.bf16.mxu1 %v11428_v0  ;;  %8075 = vmatprep.mubr.bf16.mxu1 %v641_v52  ;;  %v11471_v0 = vld [vmem:[%s14464_s1 + $0xe60] sm:$0xff]   ;;  %v11496_v48 = vld [vmem:[%s14464_s1 + $0xf50] sm:$0xff]   ;;  %v11500_v52 = vld [vmem:[%s14464_s1 + $0xf58] sm:$0xff]  }
 0x1a7   :  { %10409 = vmatpush3.bf16.msra.mxu0 %v11427_v63  ;;  %v11468_v63 = vld [vmem:[%s14464_s1 + $0xe18] sm:$0xff]  }
 0x1a8   :  { %10410 = vmatprep.subr.bf16.mxu0 %v11430_v2  ;;  %v11473_v2 = vld [vmem:[%s14464_s1 + $0xee0] sm:$0xff]  }
 0x1a9   :  { %10431 = vmatpush3.bf16.msra.mxu1 %v11429_v1  ;;  %v11470_v1 = vld [vmem:[%s14464_s1 + $0xe98] sm:$0xff]  }
 0x1aa   :  { %10432 = vmatprep.subr.bf16.mxu1 %v11432_v4  ;;  %v11475_v4 = vld [vmem:[%s14464_s1 + $0xe68] sm:$0xff]  }
 0x1ab   :  { %10411 = vmatpush3.bf16.msra.mxu0 %v11431_v3  ;;  %v11472_v3 = vld [vmem:[%s14464_s1 + $0xe20] sm:$0xff]  }
 0x1ac   :  { %10412 = vmatprep.subr.bf16.mxu0 %v11434_v6  ;;  %v11477_v6 = vld [vmem:[%s14464_s1 + $0xee8] sm:$0xff]  }
 0x1ad   :  { %10433 = vmatpush3.bf16.msra.mxu1 %v11433_v5  ;;  %v11474_v5 = vld [vmem:[%s14464_s1 + $0xea0] sm:$0xff]  }
 0x1ae   :  { %10434 = vmatprep.subr.bf16.mxu1 %v11436_v8 }
 0x1af   :  { %10413 = vmatpush3.bf16.msra.mxu0 %v11435_v7  ;;  %v11476_v7 = vld [vmem:[%s14464_s1 + $0xe28] sm:$0xff]  }
 0x1b0   :  { %10414 = vmatprep.subr.bf16.mxu0 %v11438_v10  ;;  %v11478_v10 = vld [vmem:[%s14464_s1 + $0xea8] sm:$0xff]  }
 0x1b1   :  { %10435 = vmatpush3.bf16.msra.mxu1 %v11437_v9 }
 0x1b2   :  { %10436 = vmatprep.subr.bf16.mxu1 %v11440_v12 }
 0x1b3   :  { %10415 = vmatpush3.bf16.msra.mxu0 %v11439_v11  ;;  %v11479_v11 = vld [vmem:[%s14464_s1 + $0xe70] sm:$0xff]  }
 0x1b4   :  { %10416 = vmatprep.subr.bf16.mxu0 %v11442_v14  ;;  %v11480_v14 = vld [vmem:[%s14464_s1 + $0xe30] sm:$0xff]  }
 0x1b5   :  { %v10114_v19 = vpop.f32.mrb[24].mxu0  ;;  %10437 = vmatpush3.bf16.msra.mxu1 %v11441_v13 }
 0x1b6   :  { %v10115_v23 = vpop.f32.mrb[25].mxu0  ;;  %10438 = vmatprep.subr.bf16.mxu1 %v11444_v16 }
 0x1b7   :  { %v10136_v20 = vpop.f32.mrb[24].mxu1  ;;  %v10116_v25 = vadd.f32 %v10115_v23, %v10114_v19  ;;  %v10117_v26 = vpop.f32.mrb[26].mxu0  ;;  %10417 = vmatpush3.bf16.msra.mxu0 %v11443_v15 }
 0x1b8   :  { %v10137_v24 = vpop.f32.mrb[25].mxu1  ;;  %v10118_v29 = vpop.f32.mrb[27].mxu0  ;;  %10418 = vmatprep.subr.bf16.mxu0 %v11446_v18  ;;  %v11481_v18 = vld [vmem:[%s14464_s1 + $0xef0] sm:$0xff]  }
 0x1b9   :  { %v10138_v27 = vadd.f32 %v10137_v24, %v10136_v20  ;;  %v7478_v31 = vadd.f32 %v10116_v25, %v13194_v46  ;;  %10439 = vmatpush3.bf16.msra.mxu1 %v11445_v17  ;;  %v10139_v33 = vpop.f32.mrb[26].mxu1  ;;  %v11457_v46 = vld [vmem:[%s14464_s1 + $0xec0] sm:$0xff]   ;;  %v11482_v20 = vld [vmem:[%s14464_s1 + $0xeb0] sm:$0xff]   ;;  %v11484_v24 = vld [vmem:[%s14464_s1 + $0xe38] sm:$0xff]  }
 0x1ba   :  { %10440 = vmatprep.subr.bf16.mxu1 %v11448_v22  ;;  %v10140_v35 = vpop.f32.mrb[27].mxu1  ;;  %v11483_v22 = vld [vmem:[%s14464_s1 + $0xe78] sm:$0xff]  }
 0x1bb   :  { %v13295_v36 = vadd.f32 %v10138_v27, %v7478_v31  ;;  %10419 = vmatpush3.bf16.msra.mxu0 %v11447_v21  ;;  %v11485_v27 = vld [vmem:[%s14464_s1 + $0xef8] sm:$0xff]   ;;  %v11489_v35 = vld [vmem:[%s14464_s1 + $0xf00] sm:$0xff]  }
 0x1bc   :  { %10420 = vmatprep.subr.bf16.mxu0 %v11450_v30  ;;  %v11486_v30 = vld [vmem:[%s14464_s1 + $0xeb8] sm:$0xff]  }
 0x1bd   :  { %10441 = vmatpush3.bf16.msra.mxu1 %v11449_v28  ;;  %v36_v28 = vld [vmem:[%s14463_s0 + $0x70] sm:$0xff] }
 0x1be   :  { %10442 = vmatprep.subr.bf16.mxu1 %v11452_v34  ;;  %v317_v29 = vrot.slane %v36_v28, %v11971_v41  ;;  %v310_v31 = vcombine.high %v36_v28, %v36_v28 }
 0x1bf   :  { %10421 = vmatpush3.bf16.msra.mxu0 %v11451_v32  ;;  %v11487_v32 = vld [vmem:[%s14464_s1 + $0xf40] sm:$0xff]  }
 0x1c0   :  { %10450 = vmatprep.subr.bf16.mxu0 %v11454_v42  ;;  %v325_v33 = vcombine.high %v317_v29, %v317_v29  ;;  %v324_v34 = vrot.slane %v310_v31, %v11971_v41 }
 0x1c1   :  { %10443 = vmatpush3.bf16.msra.mxu1 %v11453_v39 }
 0x1c2   :  { %10472 = vmatprep.subr.bf16.mxu1 %v11457_v46  ;;  %8036 = vmatmul.mubr.bf16.vlgmr.msra.gmra.mrb[52].mxu0 %v638_v45  ;;  %v643_v38 = vpack.c.bf16 %v325_v33, %v325_v33  ;;  %v326_v39 = vcombine.high %v324_v34, %v324_v34  ;;  %v644_v42 = vpack.c.bf16 %v324_v34, %v324_v34  ;;  %v11493_v45 = vld [vmem:[%s14464_s1 + $0xf08] sm:$0xff]   ;;  %v11524_v34 = vld [vmem:[%s14464_s1 + $0x1080] sm:$0xff]  }
 0x1c3   :  { %10451 = vmatpush3.bf16.msra.mxu0 %v11456_v49  ;;  %v11494_v46 = vld [vmem:[%s14464_s1 + $0xfc8] sm:$0xff]   ;;  %v11497_v49 = vld [vmem:[%s14464_s1 + $0xf10] sm:$0xff]  }
 0x1c4   :  { %8076 = vmatmul.mubr.bf16.vlgmr.msra.gmra.mrb[52].mxu1 %v640_v50  ;;  %10452 = vmatprep.subr.bf16.mxu0 %v11459_v51  ;;  %v645_v44 = vpack.c.bf16 %v326_v39, %v326_v39  ;;  %v11498_v50 = vld [vmem:[%s14464_s1 + $0xfd0] sm:$0xff]  }
 0x1c5   :  { %10473 = vmatpush3.bf16.msra.mxu1 %v11458_v53  ;;  %8115 = vmatprep.mubr.bf16.mxu0 %v643_v38  ;;  %v11499_v51 = vld [vmem:[%s14464_s1 + $0xf90] sm:$0xff]   ;;  %v11501_v53 = vld [vmem:[%s14464_s1 + $0xf18] sm:$0xff]   ;;  %v11528_v38 = vld [vmem:[%s14464_s1 + $0x1088] sm:$0xff]  }
 0x1c6   :  { %10474 = vmatprep.subr.bf16.mxu1 %v11461_v54  ;;  %8155 = vmatprep.mubr.bf16.mxu1 %v645_v44  ;;  %v11502_v54 = vld [vmem:[%s14464_s1 + $0xfd8] sm:$0xff]   ;;  %v11531_v39 = vld [vmem:[%s14464_s1 + $0x10d0] sm:$0xff]  }
 0x1c7   :  { %10453 = vmatpush3.bf16.msra.mxu0 %v11460_v55  ;;  %v11503_v55 = vld [vmem:[%s14464_s1 + $0xf98] sm:$0xff]  }
 0x1c8   :  { %10454 = vmatprep.subr.bf16.mxu0 %v11463_v56  ;;  %v11504_v56 = vld [vmem:[%s14464_s1 + $0xf60] sm:$0xff]   ;;  %v11535_v44 = vld [vmem:[%s14464_s1 + $0x10d8] sm:$0xff]  }
 0x1c9   :  { %10475 = vmatpush3.bf16.msra.mxu1 %v11462_v57  ;;  %v11505_v57 = vld [vmem:[%s14464_s1 + $0xf20] sm:$0xff]  }
 0x1ca   :  { %10476 = vmatprep.subr.bf16.mxu1 %v11465_v58  ;;  %v11506_v58 = vld [vmem:[%s14464_s1 + $0xfe0] sm:$0xff]  }
 0x1cb   :  { %10455 = vmatpush3.bf16.msra.mxu0 %v11464_v59  ;;  %v11507_v59 = vld [vmem:[%s14464_s1 + $0xfa0] sm:$0xff]  }
 0x1cc   :  { %10456 = vmatprep.subr.bf16.mxu0 %v11467_v60  ;;  %v11508_v60 = vld [vmem:[%s14464_s1 + $0xf68] sm:$0xff]  }
 0x1cd   :  { %10477 = vmatpush3.bf16.msra.mxu1 %v11466_v61  ;;  %v11509_v61 = vld [vmem:[%s14464_s1 + $0xf28] sm:$0xff]  }
 0x1ce   :  { %10478 = vmatprep.subr.bf16.mxu1 %v11469_v62  ;;  %v11510_v62 = vld [vmem:[%s14464_s1 + $0xfe8] sm:$0xff]  }
 0x1cf   :  { %10457 = vmatpush3.bf16.msra.mxu0 %v11468_v63  ;;  %v11511_v63 = vld [vmem:[%s14464_s1 + $0xfa8] sm:$0xff]  }
 0x1d0   :  { %10458 = vmatprep.subr.bf16.mxu0 %v11471_v0 }
 0x1d1   :  { %10479 = vmatpush3.bf16.msra.mxu1 %v11470_v1 }
 0x1d2   :  { %10480 = vmatprep.subr.bf16.mxu1 %v11473_v2 }
 0x1d3   :  { %10459 = vmatpush3.bf16.msra.mxu0 %v11472_v3 }
 0x1d4   :  { %10460 = vmatprep.subr.bf16.mxu0 %v11475_v4  ;;  %v11512_v4 = vld [vmem:[%s14464_s1 + $0xf70] sm:$0xff]  }
 0x1d5   :  { %v10158_v8 = vpop.f32.mrb[28].mxu0  ;;  %10481 = vmatpush3.bf16.msra.mxu1 %v11474_v5  ;;  %v11513_v5 = vld [vmem:[%s14464_s1 + $0xf30] sm:$0xff]  }
 0x1d6   :  { %v10159_v12 = vpop.f32.mrb[29].mxu0  ;;  %10482 = vmatprep.subr.bf16.mxu1 %v11477_v6 }
 0x1d7   :  { %v10180_v9 = vpop.f32.mrb[28].mxu1  ;;  %v10160_v15 = vadd.f32 %v10159_v12, %v10158_v8  ;;  %v10161_v16 = vpop.f32.mrb[30].mxu0  ;;  %10461 = vmatpush3.bf16.msra.mxu0 %v11476_v7 }
 0x1d8   :  { %v10181_v13 = vpop.f32.mrb[29].mxu1  ;;  %v10162_v19 = vpop.f32.mrb[31].mxu0  ;;  %10462 = vmatprep.subr.bf16.mxu0 %v11479_v11  ;;  %v11515_v11 = vld [vmem:[%s14464_s1 + $0xfb0] sm:$0xff]   ;;  %v11517_v16 = vld [vmem:[%s14464_s1 + $0xf38] sm:$0xff]  }
 0x1d9   :  { %v10182_v17 = vadd.f32 %v10181_v13, %v10180_v9  ;;  %v7558_v21 = vadd.f32 %v10160_v15, %v13295_v36  ;;  %v10183_v23 = vpop.f32.mrb[30].mxu1  ;;  %10483 = vmatpush3.bf16.msra.mxu1 %v11478_v10  ;;  %v642_v36 = vpack.c.bf16 %v317_v29, %v317_v29  ;;  %v11514_v9 = vld [vmem:[%s14464_s1 + $0xff0] sm:$0xff]   ;;  %v11516_v13 = vld [vmem:[%s14464_s1 + $0xf78] sm:$0xff]  }
 0x1da   :  { %v10184_v25 = vpop.f32.mrb[31].mxu1  ;;  %10484 = vmatprep.subr.bf16.mxu1 %v11481_v18  ;;  %v11518_v18 = vld [vmem:[%s14464_s1 + $0xff8] sm:$0xff]   ;;  %v11520_v23 = vld [vmem:[%s14464_s1 + $0x1040] sm:$0xff]  }
 0x1db   :  { %v13396_v26 = vadd.f32 %v10182_v17, %v7558_v21  ;;  %10463 = vmatpush3.bf16.msra.mxu0 %v11480_v14  ;;  %v37_v19 = vld [vmem:[%s14463_s0 + $0x78] sm:$0xff] }
 0x1dc   :  { %10464 = vmatprep.subr.bf16.mxu0 %v11483_v22  ;;  %v11519_v21 = vld [vmem:[%s14464_s1 + $0xfb8] sm:$0xff]   ;;  %v327_v22 = vcombine.high %v37_v19, %v37_v19 }
 0x1dd   :  { %10485 = vmatpush3.bf16.msra.mxu1 %v11482_v20  ;;  %v334_v20 = vrot.slane %v37_v19, %v11971_v41  ;;  %v11556_v19 = vld [vmem:[%s14464_s1 + $0x11c0] sm:$0xff]  }
 0x1de   :  { %10486 = vmatprep.subr.bf16.mxu1 %v11485_v27  ;;  %v341_v25 = vrot.slane %v327_v22, %v11971_v41  ;;  %v11523_v27 = vld [vmem:[%s14464_s1 + $0x10c0] sm:$0xff]  }
 0x1df   :  { %10465 = vmatpush3.bf16.msra.mxu0 %v11484_v24  ;;  %v342_v24 = vcombine.high %v334_v20, %v334_v20  ;;  %v11557_v22 = vld [vmem:[%s14464_s1 + $0x1180] sm:$0xff]  }
 0x1e0   :  { %10494 = vmatprep.subr.bf16.mxu0 %v11487_v32  ;;  %v343_v29 = vcombine.high %v341_v25, %v341_v25  ;;  %v648_v31 = vpack.c.bf16 %v341_v25, %v341_v25  ;;  %v11525_v32 = vld [vmem:[%s14464_s1 + $0x1048] sm:$0xff]  }
 0x1e1   :  { %10487 = vmatpush3.bf16.msra.mxu1 %v11486_v30  ;;  %v647_v28 = vpack.c.bf16 %v342_v24, %v342_v24  ;;  %v11522_v30 = vld [vmem:[%s14464_s1 + $0x1000] sm:$0xff]   ;;  %v11558_v24 = vld [vmem:[%s14464_s1 + $0x1148] sm:$0xff]  }
 0x1e2   :  { %8116 = vmatmul.mubr.bf16.vlgmr.msra.gmra.mrb[56].mxu0 %v642_v36  ;;  %10516 = vmatprep.subr.bf16.mxu1 %v11490_v37  ;;  %v649_v33 = vpack.c.bf16 %v343_v29, %v343_v29  ;;  %v11526_v36 = vld [vmem:[%s14464_s1 + $0x1008] sm:$0xff]   ;;  %v11529_v37 = vld [vmem:[%s14464_s1 + $0x1050] sm:$0xff]  }
 0x1e3   :  { %10495 = vmatpush3.bf16.msra.mxu0 %v11489_v35  ;;  %8195 = vmatprep.mubr.bf16.mxu0 %v647_v28  ;;  %v11527_v35 = vld [vmem:[%s14464_s1 + $0x10c8] sm:$0xff]   ;;  %v11562_v29 = vld [vmem:[%s14464_s1 + $0x1150] sm:$0xff]  }
 0x1e4   :  { %8156 = vmatmul.mubr.bf16.vlgmr.msra.gmra.mrb[56].mxu1 %v644_v42  ;;  %10496 = vmatprep.subr.bf16.mxu0 %v11492_v43  ;;  %v11533_v42 = vld [vmem:[%s14464_s1 + $0x1058] sm:$0xff]   ;;  %v11532_v43 = vld [vmem:[%s14464_s1 + $0x1090] sm:$0xff]   ;;  %v11561_v28 = vld [vmem:[%s14464_s1 + $0x1188] sm:$0xff]  }
 0x1e5   :  { %10517 = vmatpush3.bf16.msra.mxu1 %v11491_v40  ;;  %8235 = vmatprep.mubr.bf16.mxu1 %v649_v33  ;;  %v11530_v40 = vld [vmem:[%s14464_s1 + $0x1010] sm:$0xff]   ;;  %v11566_v33 = vld [vmem:[%s14464_s1 + $0x1158] sm:$0xff]  }
 0x1e6   :  { %10518 = vmatprep.subr.bf16.mxu1 %v11494_v46  ;;  %v11537_v46 = vld [vmem:[%s14464_s1 + $0x1060] sm:$0xff]  }
 0x1e7   :  { %10497 = vmatpush3.bf16.msra.mxu0 %v11493_v45  ;;  %v11534_v45 = vld [vmem:[%s14464_s1 + $0x1018] sm:$0xff]  }
 0x1e8   :  { %10498 = vmatprep.subr.bf16.mxu0 %v11496_v48  ;;  %v11539_v48 = vld [vmem:[%s14464_s1 + $0x10e0] sm:$0xff]  }
 0x1e9   :  { %10519 = vmatpush3.bf16.msra.mxu1 %v11495_v47  ;;  %v11536_v47 = vld [vmem:[%s14464_s1 + $0x1098] sm:$0xff]  }
 0x1ea   :  { %10520 = vmatprep.subr.bf16.mxu1 %v11498_v50  ;;  %v11541_v50 = vld [vmem:[%s14464_s1 + $0x1068] sm:$0xff]  }
 0x1eb   :  { %10499 = vmatpush3.bf16.msra.mxu0 %v11497_v49  ;;  %v11538_v49 = vld [vmem:[%s14464_s1 + $0x1020] sm:$0xff]  }
 0x1ec   :  { %10500 = vmatprep.subr.bf16.mxu0 %v11500_v52  ;;  %v11543_v52 = vld [vmem:[%s14464_s1 + $0x10e8] sm:$0xff]  }
 0x1ed   :  { %10521 = vmatpush3.bf16.msra.mxu1 %v11499_v51  ;;  %v11540_v51 = vld [vmem:[%s14464_s1 + $0x10a0] sm:$0xff]  }
 0x1ee   :  { %10522 = vmatprep.subr.bf16.mxu1 %v11502_v54  ;;  %v11542_v54 = vld [vmem:[%s14464_s1 + $0x1028] sm:$0xff]  }
 0x1ef   :  { %10501 = vmatpush3.bf16.msra.mxu0 %v11501_v53 }
 0x1f0   :  { %10502 = vmatprep.subr.bf16.mxu0 %v11504_v56 }
 0x1f1   :  { %10523 = vmatpush3.bf16.msra.mxu1 %v11503_v55 }
 0x1f2   :  { %10524 = vmatprep.subr.bf16.mxu1 %v11506_v58  ;;  %v11545_v58 = vld [vmem:[%s14464_s1 + $0x1070] sm:$0xff]  }
 0x1f3   :  { %10503 = vmatpush3.bf16.msra.mxu0 %v11505_v57  ;;  %v11544_v57 = vld [vmem:[%s14464_s1 + $0x10a8] sm:$0xff]  }
 0x1f4   :  { %10504 = vmatprep.subr.bf16.mxu0 %v11508_v60 }
 0x1f5   :  { %v10202_v0 = vpop.f32.mrb[32].mxu0  ;;  %10525 = vmatpush3.bf16.msra.mxu1 %v11507_v59 }
 0x1f6   :  { %v10203_v2 = vpop.f32.mrb[33].mxu0  ;;  %10526 = vmatprep.subr.bf16.mxu1 %v11510_v62  ;;  %v11546_v62 = vld [vmem:[%s14464_s1 + $0x1030] sm:$0xff]  }
 0x1f7   :  { %v10224_v1 = vpop.f32.mrb[32].mxu1  ;;  %v10204_v6 = vadd.f32 %v10203_v2, %v10202_v0  ;;  %v10205_v7 = vpop.f32.mrb[34].mxu0  ;;  %10505 = vmatpush3.bf16.msra.mxu0 %v11509_v61 }
 0x1f8   :  { %v10225_v3 = vpop.f32.mrb[33].mxu1  ;;  %v10206_v10 = vpop.f32.mrb[35].mxu0  ;;  %10506 = vmatprep.subr.bf16.mxu0 %v11512_v4 }
 0x1f9   :  { %v10226_v8 = vadd.f32 %v10225_v3, %v10224_v1  ;;  %v7638_v12 = vadd.f32 %v10204_v6, %v13396_v26  ;;  %10527 = vmatpush3.bf16.msra.mxu1 %v11511_v63  ;;  %v10227_v14 = vpop.f32.mrb[34].mxu1  ;;  %v646_v26 = vpack.c.bf16 %v334_v20, %v334_v20  ;;  %v11547_v1 = vld [vmem:[%s14464_s1 + $0x10f0] sm:$0xff]   ;;  %v38_v10 = vld [vmem:[%s14463_s0 + $0x80] sm:$0xff] }
 0x1fa   :  { %10528 = vmatprep.subr.bf16.mxu1 %v11514_v9  ;;  %v10228_v17 = vpop.f32.mrb[35].mxu1  ;;  %v11548_v3 = vld [vmem:[%s14464_s1 + $0x10b0] sm:$0xff]   ;;  %v11551_v9 = vld [vmem:[%s14464_s1 + $0x10f8] sm:$0xff]   ;;  %v11553_v14 = vld [vmem:[%s14464_s1 + $0x1140] sm:$0xff]  }
 0x1fb   :  { %v13497_v15 = vadd.f32 %v10226_v8, %v7638_v12  ;;  %10507 = vmatpush3.bf16.msra.mxu0 %v11513_v5  ;;  %v11549_v5 = vld [vmem:[%s14464_s1 + $0x1078] sm:$0xff]   ;;  %v11555_v17 = vld [vmem:[%s14464_s1 + $0x1100] sm:$0xff]  }
 0x1fc   :  { %10508 = vmatprep.subr.bf16.mxu0 %v11516_v13  ;;  %v11550_v8 = vld [vmem:[%s14464_s1 + $0x1038] sm:$0xff]   ;;  %v344_v13 = vcombine.high %v38_v10, %v38_v10 }
 0x1fd   :  { %10529 = vmatpush3.bf16.msra.mxu1 %v11515_v11  ;;  %v351_v11 = vrot.slane %v38_v10, %v11971_v41  ;;  %v11552_v12 = vld [vmem:[%s14464_s1 + $0x10b8] sm:$0xff]   ;;  %v11589_v10 = vld [vmem:[%s14464_s1 + $0x12c0] sm:$0xff]  }
 0x1fe   :  { %10530 = vmatprep.subr.bf16.mxu1 %v11518_v18 }
 0x1ff   :  { %10509 = vmatpush3.bf16.msra.mxu0 %v11517_v16  ;;  %v358_v16 = vrot.slane %v344_v13, %v11971_v41  ;;  %v650_v18 = vpack.c.bf16 %v351_v11, %v351_v11  ;;  %v11590_v13 = vld [vmem:[%s14464_s1 + $0x1280] sm:$0xff]  }
 0x200   :  { %10538 = vmatprep.subr.bf16.mxu0 %v11520_v23 }
 0x201   :  { %10531 = vmatpush3.bf16.msra.mxu1 %v11519_v21  ;;  %v360_v21 = vcombine.high %v358_v16, %v358_v16  ;;  %v652_v23 = vpack.c.bf16 %v358_v16, %v358_v16 }
 0x202   :  { %10560 = vmatprep.subr.bf16.mxu1 %v11523_v27  ;;  %8196 = vmatmul.mubr.bf16.vlgmr.msra.gmra.mrb[60].mxu0 %v646_v26  ;;  %v11559_v26 = vld [vmem:[%s14464_s1 + $0x1108] sm:$0xff]  }
 0x203   :  { %10539 = vmatpush3.bf16.msra.mxu0 %v11522_v30  ;;  %v653_v25 = vpack.c.bf16 %v360_v21, %v360_v21  ;;  %v11560_v27 = vld [vmem:[%s14464_s1 + $0x11c8] sm:$0xff]   ;;  %v11563_v30 = vld [vmem:[%s14464_s1 + $0x1110] sm:$0xff]  }
 0x204   :  { %8236 = vmatmul.mubr.bf16.vlgmr.msra.gmra.mrb[60].mxu1 %v648_v31  ;;  %10540 = vmatprep.subr.bf16.mxu0 %v11525_v32  ;;  %v11564_v31 = vld [vmem:[%s14464_s1 + $0x11d0] sm:$0xff]  }
 0x205   :  { %10561 = vmatpush3.bf16.msra.mxu1 %v11524_v34  ;;  %8315 = vmatprep.mubr.bf16.mxu1 %v653_v25  ;;  %v11565_v32 = vld [vmem:[%s14464_s1 + $0x1190] sm:$0xff]   ;;  %v11567_v34 = vld [vmem:[%s14464_s1 + $0x1118] sm:$0xff]  }
 0x206   :  { %10562 = vmatprep.subr.bf16.mxu1 %v11527_v35  ;;  %v11568_v35 = vld [vmem:[%s14464_s1 + $0x11d8] sm:$0xff]   ;;  %v11596_v21 = vld [vmem:[%s14464_s1 + $0x1210] sm:$0xff]  }
 0x207   :  { %10541 = vmatpush3.bf16.msra.mxu0 %v11526_v36  ;;  %v11569_v36 = vld [vmem:[%s14464_s1 + $0x1198] sm:$0xff]  }
 0x208   :  { %10542 = vmatprep.subr.bf16.mxu0 %v11529_v37  ;;  %v11570_v37 = vld [vmem:[%s14464_s1 + $0x1160] sm:$0xff]   ;;  %v11600_v25 = vld [vmem:[%s14464_s1 + $0x1218] sm:$0xff]  }
 0x209   :  { %10563 = vmatpush3.bf16.msra.mxu1 %v11528_v38  ;;  %v11571_v38 = vld [vmem:[%s14464_s1 + $0x1120] sm:$0xff]  }
 0x20a   :  { %10564 = vmatprep.subr.bf16.mxu1 %v11531_v39  ;;  %v11572_v39 = vld [vmem:[%s14464_s1 + $0x11e0] sm:$0xff]  }
 0x20b   :  { %10543 = vmatpush3.bf16.msra.mxu0 %v11530_v40  ;;  %v11573_v40 = vld [vmem:[%s14464_s1 + $0x11a0] sm:$0xff]  }
 0x20c   :  { %10544 = vmatprep.subr.bf16.mxu0 %v11533_v42  ;;  %v11574_v42 = vld [vmem:[%s14464_s1 + $0x1168] sm:$0xff]  }
 0x20d   :  { %10565 = vmatpush3.bf16.msra.mxu1 %v11532_v43  ;;  %v11575_v43 = vld [vmem:[%s14464_s1 + $0x1128] sm:$0xff]  }
 0x20e   :  { %10566 = vmatprep.subr.bf16.mxu1 %v11535_v44 }
 0x20f   :  { %10545 = vmatpush3.bf16.msra.mxu0 %v11534_v45  ;;  %v11576_v45 = vld [vmem:[%s14464_s1 + $0x11e8] sm:$0xff]  }
 0x210   :  { %10546 = vmatprep.subr.bf16.mxu0 %v11537_v46 }
 0x211   :  { %10567 = vmatpush3.bf16.msra.mxu1 %v11536_v47 }
 0x212   :  { %10568 = vmatprep.subr.bf16.mxu1 %v11539_v48  ;;  %v11577_v48 = vld [vmem:[%s14464_s1 + $0x11a8] sm:$0xff]  }
 0x213   :  { %10547 = vmatpush3.bf16.msra.mxu0 %v11538_v49  ;;  %v11578_v49 = vld [vmem:[%s14464_s1 + $0x1170] sm:$0xff]  }
 0x214   :  { %10548 = vmatprep.subr.bf16.mxu0 %v11541_v50 }
 0x215   :  { %v10246_v53 = vpop.f32.mrb[36].mxu0  ;;  %10569 = vmatpush3.bf16.msra.mxu1 %v11540_v51 }
 0x216   :  { %v10247_v55 = vpop.f32.mrb[37].mxu0  ;;  %10570 = vmatprep.subr.bf16.mxu1 %v11543_v52 }
 0x217   :  { %v10268_v56 = vpop.f32.mrb[36].mxu1  ;;  %v10248_v59 = vadd.f32 %v10247_v55, %v10246_v53  ;;  %v10249_v60 = vpop.f32.mrb[38].mxu0  ;;  %10549 = vmatpush3.bf16.msra.mxu0 %v11542_v54  ;;  %v11579_v55 = vld [vmem:[%s14464_s1 + $0x1130] sm:$0xff]  }
 0x218   :  { %v10269_v61 = vpop.f32.mrb[37].mxu1  ;;  %v10250_v63 = vpop.f32.mrb[39].mxu0  ;;  %10550 = vmatprep.subr.bf16.mxu0 %v11545_v58 }
 0x219   :  { %v10270_v0 = vadd.f32 %v10269_v61, %v10268_v56  ;;  %v7718_v2 = vadd.f32 %v10248_v59, %v13497_v15  ;;  %v10271_v4 = vpop.f32.mrb[38].mxu1  ;;  %10571 = vmatpush3.bf16.msra.mxu1 %v11544_v57  ;;  %v359_v15 = vcombine.high %v351_v11, %v351_v11  ;;  %v11580_v57 = vld [vmem:[%s14464_s1 + $0x11f0] sm:$0xff]   ;;  %v11583_v63 = vld [vmem:[%s14464_s1 + $0x1138] sm:$0xff]  }
 0x21a   :  { %v10272_v6 = vpop.f32.mrb[39].mxu1  ;;  %10572 = vmatprep.subr.bf16.mxu1 %v11547_v1  ;;  %v11581_v59 = vld [vmem:[%s14464_s1 + $0x11b0] sm:$0xff]   ;;  %v39_v1 = vld [vmem:[%s14463_s0 + $0x88] sm:$0xff] }
 0x21b   :  { %v13601_v7 = vadd.f32 %v10270_v0, %v7718_v2  ;;  %10551 = vmatpush3.bf16.msra.mxu0 %v11546_v62  ;;  %v651_v20 = vpack.c.bf16 %v359_v15, %v359_v15  ;;  %v11582_v62 = vld [vmem:[%s14464_s1 + $0x1178] sm:$0xff]   ;;  %v368_v2 = vrot.slane %v39_v1, %v11971_v41  ;;  %v361_v4 = vcombine.high %v39_v1, %v39_v1  ;;  %v11591_v15 = vld [vmem:[%s14464_s1 + $0x1248] sm:$0xff]   ;;  %v11622_v1 = vld [vmem:[%s14464_s1 + $0x13c0] sm:$0xff]  }
 0x21c   :  { %10552 = vmatprep.subr.bf16.mxu0 %v11549_v5  ;;  %v11584_v0 = vld [vmem:[%s14464_s1 + $0x11f8] sm:$0xff]   ;;  %v11586_v5 = vld [vmem:[%s14464_s1 + $0x1240] sm:$0xff]  }
 0x21d   :  { %10573 = vmatpush3.bf16.msra.mxu1 %v11548_v3  ;;  %8275 = vmatprep.mubr.bf16.mxu0 %v651_v20  ;;  %v11585_v3 = vld [vmem:[%s14464_s1 + $0x11b8] sm:$0xff]   ;;  %v376_v6 = vcombine.high %v368_v2, %v368_v2  ;;  %v11595_v20 = vld [vmem:[%s14464_s1 + $0x1250] sm:$0xff]  }
 0x21e   :  { %10574 = vmatprep.subr.bf16.mxu1 %v11551_v9  ;;  %v654_v9 = vpack.c.bf16 %v368_v2, %v368_v2 }
 0x21f   :  { %10553 = vmatpush3.bf16.msra.mxu0 %v11550_v8  ;;  %v11588_v8 = vld [vmem:[%s14464_s1 + $0x1200] sm:$0xff]   ;;  %v655_v11 = vpack.c.bf16 %v376_v6, %v376_v6  ;;  %v11624_v6 = vld [vmem:[%s14464_s1 + $0x1348] sm:$0xff]  }
 0x220   :  { %10582 = vmatprep.subr.bf16.mxu0 %v11553_v14 }
 0x221   :  { %10575 = vmatpush3.bf16.msra.mxu1 %v11552_v12 }
 0x222   :  { %10604 = vmatprep.subr.bf16.mxu1 %v11556_v19  ;;  %8276 = vmatmul.mubr.bf16.vlgmr.msra.gmra.mrb[64].mxu0 %v650_v18  ;;  %v11593_v18 = vld [vmem:[%s14464_s1 + $0x12c8] sm:$0xff]  }
 0x223   :  { %10583 = vmatpush3.bf16.msra.mxu0 %v11555_v17  ;;  %8355 = vmatprep.mubr.bf16.mxu0 %v655_v11  ;;  %v11592_v17 = vld [vmem:[%s14464_s1 + $0x1208] sm:$0xff]   ;;  %v11628_v11 = vld [vmem:[%s14464_s1 + $0x1350] sm:$0xff]  }
 0x224   :  { %8316 = vmatmul.mubr.bf16.vlgmr.msra.gmra.mrb[64].mxu1 %v652_v23  ;;  %10584 = vmatprep.subr.bf16.mxu0 %v11558_v24  ;;  %v11594_v19 = vld [vmem:[%s14464_s1 + $0x1288] sm:$0xff]   ;;  %v11598_v23 = vld [vmem:[%s14464_s1 + $0x1290] sm:$0xff]   ;;  %v11599_v24 = vld [vmem:[%s14464_s1 + $0x1258] sm:$0xff]  }
 0x225   :  { %10605 = vmatpush3.bf16.msra.mxu1 %v11557_v22  ;;  %v11597_v22 = vld [vmem:[%s14464_s1 + $0x12d0] sm:$0xff]  }
 0x226   :  { %10606 = vmatprep.subr.bf16.mxu1 %v11560_v27  ;;  %v11602_v27 = vld [vmem:[%s14464_s1 + $0x1298] sm:$0xff]  }
 0x227   :  { %10585 = vmatpush3.bf16.msra.mxu0 %v11559_v26  ;;  %v11601_v26 = vld [vmem:[%s14464_s1 + $0x12d8] sm:$0xff]  }
 0x228   :  { %10586 = vmatprep.subr.bf16.mxu0 %v11562_v29  ;;  %v11604_v29 = vld [vmem:[%s14464_s1 + $0x1220] sm:$0xff]  }
 0x229   :  { %10607 = vmatpush3.bf16.msra.mxu1 %v11561_v28  ;;  %v11603_v28 = vld [vmem:[%s14464_s1 + $0x1260] sm:$0xff]  }
 0x22a   :  { %10608 = vmatprep.subr.bf16.mxu1 %v11564_v31  ;;  %v11606_v31 = vld [vmem:[%s14464_s1 + $0x12a0] sm:$0xff]  }
 0x22b   :  { %10587 = vmatpush3.bf16.msra.mxu0 %v11563_v30  ;;  %v11605_v30 = vld [vmem:[%s14464_s1 + $0x12e0] sm:$0xff]  }
 0x22c   :  { %10588 = vmatprep.subr.bf16.mxu0 %v11566_v33  ;;  %v11608_v33 = vld [vmem:[%s14464_s1 + $0x1228] sm:$0xff]  }
 0x22d   :  { %10609 = vmatpush3.bf16.msra.mxu1 %v11565_v32  ;;  %v11607_v32 = vld [vmem:[%s14464_s1 + $0x1268] sm:$0xff]  }
 0x22e   :  { %10610 = vmatprep.subr.bf16.mxu1 %v11568_v35  ;;  %v11609_v35 = vld [vmem:[%s14464_s1 + $0x12e8] sm:$0xff]  }
 0x22f   :  { %10589 = vmatpush3.bf16.msra.mxu0 %v11567_v34 }
 0x230   :  { %10590 = vmatprep.subr.bf16.mxu0 %v11570_v37 }
 0x231   :  { %10611 = vmatpush3.bf16.msra.mxu1 %v11569_v36 }
 0x232   :  { %10612 = vmatprep.subr.bf16.mxu1 %v11572_v39 }
 0x233   :  { %10591 = vmatpush3.bf16.msra.mxu0 %v11571_v38 }
 0x234   :  { %10592 = vmatprep.subr.bf16.mxu0 %v11574_v42  ;;  %v11610_v42 = vld [vmem:[%s14464_s1 + $0x12a8] sm:$0xff]  }
 0x235   :  { %v10290_v44 = vpop.f32.mrb[40].mxu0  ;;  %10613 = vmatpush3.bf16.msra.mxu1 %v11573_v40 }
 0x236   :  { %v10291_v46 = vpop.f32.mrb[41].mxu0  ;;  %10614 = vmatprep.subr.bf16.mxu1 %v11576_v45 }
 0x237   :  { %v10312_v47 = vpop.f32.mrb[40].mxu1  ;;  %v10292_v50 = vadd.f32 %v10291_v46, %v10290_v44  ;;  %v10293_v51 = vpop.f32.mrb[42].mxu0  ;;  %10593 = vmatpush3.bf16.msra.mxu0 %v11575_v43  ;;  %v11611_v43 = vld [vmem:[%s14464_s1 + $0x1270] sm:$0xff]  }
 0x238   :  { %v10313_v52 = vpop.f32.mrb[41].mxu1  ;;  %v10294_v53 = vpop.f32.mrb[43].mxu0  ;;  %10594 = vmatprep.subr.bf16.mxu0 %v11578_v49  ;;  %v11612_v46 = vld [vmem:[%s14464_s1 + $0x1230] sm:$0xff]  }
 0x239   :  { %v10314_v54 = vadd.f32 %v10313_v52, %v10312_v47  ;;  %v7798_v56 = vadd.f32 %v10292_v50, %v13601_v7  ;;  %v10315_v58 = vpop.f32.mrb[42].mxu1  ;;  %10615 = vmatpush3.bf16.msra.mxu1 %v11577_v48  ;;  %v375_v7 = vrot.slane %v361_v4, %v11971_v41  ;;  %v11613_v48 = vld [vmem:[%s14464_s1 + $0x12f0] sm:$0xff]   ;;  %v11615_v53 = vld [vmem:[%s14464_s1 + $0x1278] sm:$0xff]   ;;  %v11623_v4 = vld [vmem:[%s14464_s1 + $0x1380] sm:$0xff]  }
 0x23a   :  { %v10316_v60 = vpop.f32.mrb[43].mxu1  ;;  %10616 = vmatprep.subr.bf16.mxu1 %v11580_v57  ;;  %v11614_v51 = vld [vmem:[%s14464_s1 + $0x12b0] sm:$0xff]   ;;  %v11618_v58 = vld [vmem:[%s14464_s1 + $0x12b8] sm:$0xff]  }
 0x23b   :  { %v13702_v61 = vadd.f32 %v10314_v54, %v7798_v56  ;;  %10595 = vmatpush3.bf16.msra.mxu0 %v11579_v55  ;;  %v377_v12 = vcombine.high %v375_v7, %v375_v7  ;;  %v656_v14 = vpack.c.bf16 %v375_v7, %v375_v7  ;;  %v11616_v54 = vld [vmem:[%s14464_s1 + $0x1238] sm:$0xff]   ;;  %v40_v56 = vld [vmem:[%s14463_s0 + $0x90] sm:$0xff]  ;;  %v11619_v60 = vld [vmem:[%s14464_s1 + $0x1340] sm:$0xff]  }
 0x23c   :  { %10596 = vmatprep.subr.bf16.mxu0 %v11582_v62  ;;  %v11617_v55 = vld [vmem:[%s14464_s1 + $0x12f8] sm:$0xff]   ;;  %v385_v57 = vrot.slane %v40_v56, %v11971_v41 }
 0x23d   :  { %10617 = vmatpush3.bf16.msra.mxu1 %v11581_v59  ;;  %v657_v16 = vpack.c.bf16 %v377_v12, %v377_v12  ;;  %v378_v59 = vcombine.high %v40_v56, %v40_v56  ;;  %v11629_v12 = vld [vmem:[%s14464_s1 + $0x1310] sm:$0xff]   ;;  %v11655_v56 = vld [vmem:[%s14464_s1 + $0x14c0] sm:$0xff]  }
 0x23e   :  { %10618 = vmatprep.subr.bf16.mxu1 %v11584_v0  ;;  %v658_v0 = vpack.c.bf16 %v385_v57, %v385_v57 }
 0x23f   :  { %10597 = vmatpush3.bf16.msra.mxu0 %v11583_v63  ;;  %8395 = vmatprep.mubr.bf16.mxu1 %v657_v16  ;;  %v392_v62 = vrot.slane %v378_v59, %v11971_v41  ;;  %v11621_v63 = vld [vmem:[%s14464_s1 + $0x1300] sm:$0xff]   ;;  %v11633_v16 = vld [vmem:[%s14464_s1 + $0x1318] sm:$0xff]  }
 0x240   :  { %10626 = vmatprep.subr.bf16.mxu0 %v11586_v5  ;;  %v11656_v59 = vld [vmem:[%s14464_s1 + $0x1480] sm:$0xff]  }
 0x241   :  { %10619 = vmatpush3.bf16.msra.mxu1 %v11585_v3  ;;  %v394_v3 = vcombine.high %v392_v62, %v392_v62  ;;  %v660_v5 = vpack.c.bf16 %v392_v62, %v392_v62 }
 0x242   :  { %8356 = vmatmul.mubr.bf16.vlgmr.msra.gmra.mrb[68].mxu0 %v654_v9  ;;  %10648 = vmatprep.subr.bf16.mxu1 %v11589_v10  ;;  %v11626_v9 = vld [vmem:[%s14464_s1 + $0x13c8] sm:$0xff]  }
 0x243   :  { %10627 = vmatpush3.bf16.msra.mxu0 %v11588_v8  ;;  %v661_v7 = vpack.c.bf16 %v394_v3, %v394_v3  ;;  %v11625_v8 = vld [vmem:[%s14464_s1 + $0x1308] sm:$0xff]   ;;  %v11662_v3 = vld [vmem:[%s14464_s1 + $0x1410] sm:$0xff]  }
 0x244   :  { %8396 = vmatmul.mubr.bf16.vlgmr.msra.gmra.mrb[68].mxu1 %v656_v14  ;;  %10628 = vmatprep.subr.bf16.mxu0 %v11591_v15  ;;  %v11627_v10 = vld [vmem:[%s14464_s1 + $0x1388] sm:$0xff]   ;;  %v11631_v14 = vld [vmem:[%s14464_s1 + $0x1390] sm:$0xff]   ;;  %v11632_v15 = vld [vmem:[%s14464_s1 + $0x1358] sm:$0xff]  }
 0x245   :  { %10649 = vmatpush3.bf16.msra.mxu1 %v11590_v13  ;;  %8475 = vmatprep.mubr.bf16.mxu1 %v661_v7  ;;  %v11630_v13 = vld [vmem:[%s14464_s1 + $0x13d0] sm:$0xff]   ;;  %v11666_v7 = vld [vmem:[%s14464_s1 + $0x1418] sm:$0xff]  }
 0x246   :  { %10650 = vmatprep.subr.bf16.mxu1 %v11593_v18  ;;  %v11635_v18 = vld [vmem:[%s14464_s1 + $0x1398] sm:$0xff]  }
 0x247   :  { %10629 = vmatpush3.bf16.msra.mxu0 %v11592_v17  ;;  %v11634_v17 = vld [vmem:[%s14464_s1 + $0x13d8] sm:$0xff]  }
 0x248   :  { %10630 = vmatprep.subr.bf16.mxu0 %v11595_v20  ;;  %v11637_v20 = vld [vmem:[%s14464_s1 + $0x1320] sm:$0xff]  }
 0x249   :  { %10651 = vmatpush3.bf16.msra.mxu1 %v11594_v19  ;;  %v11636_v19 = vld [vmem:[%s14464_s1 + $0x1360] sm:$0xff]  }
 0x24a   :  { %10652 = vmatprep.subr.bf16.mxu1 %v11597_v22  ;;  %v11639_v22 = vld [vmem:[%s14464_s1 + $0x13a0] sm:$0xff]  }
 0x24b   :  { %10631 = vmatpush3.bf16.msra.mxu0 %v11596_v21  ;;  %v11638_v21 = vld [vmem:[%s14464_s1 + $0x13e0] sm:$0xff]  }
 0x24c   :  { %10632 = vmatprep.subr.bf16.mxu0 %v11599_v24 }
 0x24d   :  { %10653 = vmatpush3.bf16.msra.mxu1 %v11598_v23  ;;  %v11640_v23 = vld [vmem:[%s14464_s1 + $0x1368] sm:$0xff]  }
 0x24e   :  { %10654 = vmatprep.subr.bf16.mxu1 %v11601_v26 }
 0x24f   :  { %10633 = vmatpush3.bf16.msra.mxu0 %v11600_v25  ;;  %v11641_v25 = vld [vmem:[%s14464_s1 + $0x1328] sm:$0xff]  }
 0x250   :  { %10634 = vmatprep.subr.bf16.mxu0 %v11603_v28 }
 0x251   :  { %10655 = vmatpush3.bf16.msra.mxu1 %v11602_v27  ;;  %v11642_v27 = vld [vmem:[%s14464_s1 + $0x13e8] sm:$0xff]  }
 0x252   :  { %10656 = vmatprep.subr.bf16.mxu1 %v11605_v30 }
 0x253   :  { %10635 = vmatpush3.bf16.msra.mxu0 %v11604_v29 }
 0x254   :  { %10636 = vmatprep.subr.bf16.mxu0 %v11607_v32  ;;  %v11644_v32 = vld [vmem:[%s14464_s1 + $0x1370] sm:$0xff]  }
 0x255   :  { %v10334_v34 = vpop.f32.mrb[44].mxu0  ;;  %10657 = vmatpush3.bf16.msra.mxu1 %v11606_v31  ;;  %v11643_v31 = vld [vmem:[%s14464_s1 + $0x13a8] sm:$0xff]  }
 0x256   :  { %v10335_v36 = vpop.f32.mrb[45].mxu0  ;;  %10658 = vmatprep.subr.bf16.mxu1 %v11609_v35 }
 0x257   :  { %v10356_v37 = vpop.f32.mrb[44].mxu1  ;;  %v10336_v38 = vadd.f32 %v10335_v36, %v10334_v34  ;;  %v10337_v39 = vpop.f32.mrb[46].mxu0  ;;  %10637 = vmatpush3.bf16.msra.mxu0 %v11608_v33 }
 0x258   :  { %v10357_v40 = vpop.f32.mrb[45].mxu1  ;;  %v10338_v44 = vpop.f32.mrb[47].mxu0  ;;  %10638 = vmatprep.subr.bf16.mxu0 %v11611_v43  ;;  %v11646_v39 = vld [vmem:[%s14464_s1 + $0x13f0] sm:$0xff]  }
 0x259   :  { %v10358_v45 = vadd.f32 %v10357_v40, %v10356_v37  ;;  %v7878_v47 = vadd.f32 %v10336_v38, %v13702_v61  ;;  %v10359_v49 = vpop.f32.mrb[46].mxu1  ;;  %10659 = vmatpush3.bf16.msra.mxu1 %v11610_v42  ;;  %v393_v61 = vcombine.high %v385_v57, %v385_v57  ;;  %v11645_v37 = vld [vmem:[%s14464_s1 + $0x1330] sm:$0xff]   ;;  %v11648_v44 = vld [vmem:[%s14464_s1 + $0x1378] sm:$0xff]  }
 0x25a   :  { %v10360_v52 = vpop.f32.mrb[47].mxu1  ;;  %10660 = vmatprep.subr.bf16.mxu1 %v11613_v48  ;;  %v11647_v43 = vld [vmem:[%s14464_s1 + $0x13b0] sm:$0xff]   ;;  %v11651_v49 = vld [vmem:[%s14464_s1 + $0x13b8] sm:$0xff]  }
 0x25b   :  { %v13803_v50 = vadd.f32 %v10358_v45, %v7878_v47  ;;  %10639 = vmatpush3.bf16.msra.mxu0 %v11612_v46  ;;  %v659_v2 = vpack.c.bf16 %v393_v61, %v393_v61  ;;  %v11649_v45 = vld [vmem:[%s14464_s1 + $0x1338] sm:$0xff]   ;;  %v11657_v61 = vld [vmem:[%s14464_s1 + $0x1448] sm:$0xff]  }
 0x25c   :  { %10640 = vmatprep.subr.bf16.mxu0 %v11615_v53  ;;  %v11650_v46 = vld [vmem:[%s14464_s1 + $0x13f8] sm:$0xff]  }
 0x25d   :  { %10661 = vmatpush3.bf16.msra.mxu1 %v11614_v51  ;;  %8435 = vmatprep.mubr.bf16.mxu0 %v659_v2  ;;  %v41_v47 = vld [vmem:[%s14463_s0 + $0x98] sm:$0xff]  ;;  %v11652_v51 = vld [vmem:[%s14464_s1 + $0x1440] sm:$0xff]   ;;  %v11661_v2 = vld [vmem:[%s14464_s1 + $0x1450] sm:$0xff]  }
 0x25e   :  { %10662 = vmatprep.subr.bf16.mxu1 %v11617_v55  ;;  %v402_v48 = vrot.slane %v41_v47, %v11971_v41 }
 0x25f   :  { %10641 = vmatpush3.bf16.msra.mxu0 %v11616_v54  ;;  %v11654_v54 = vld [vmem:[%s14464_s1 + $0x1400] sm:$0xff]  }
 0x260   :  { %10670 = vmatprep.subr.bf16.mxu0 %v11619_v60  ;;  %v410_v52 = vcombine.high %v402_v48, %v402_v48  ;;  %v662_v55 = vpack.c.bf16 %v402_v48, %v402_v48 }
 0x261   :  { %10663 = vmatpush3.bf16.msra.mxu1 %v11618_v58 }
 0x262   :  { %10692 = vmatprep.subr.bf16.mxu1 %v11622_v1  ;;  %8436 = vmatmul.mubr.bf16.vlgmr.msra.gmra.mrb[72].mxu0 %v658_v0  ;;  %v663_v57 = vpack.c.bf16 %v410_v52, %v410_v52  ;;  %v11659_v0 = vld [vmem:[%s14464_s1 + $0x14c8] sm:$0xff]  }
 0x263   :  { %10671 = vmatpush3.bf16.msra.mxu0 %v11621_v63  ;;  %v11658_v63 = vld [vmem:[%s14464_s1 + $0x1408] sm:$0xff]  }
 0x264   :  { %8476 = vmatmul.mubr.bf16.vlgmr.msra.gmra.mrb[72].mxu1 %v660_v5  ;;  %10672 = vmatprep.subr.bf16.mxu0 %v11624_v6  ;;  %v11660_v1 = vld [vmem:[%s14464_s1 + $0x1488] sm:$0xff]   ;;  %v11664_v5 = vld [vmem:[%s14464_s1 + $0x1490] sm:$0xff]   ;;  %v11665_v6 = vld [vmem:[%s14464_s1 + $0x1458] sm:$0xff]  }
 0x265   :  { %10693 = vmatpush3.bf16.msra.mxu1 %v11623_v4  ;;  %8515 = vmatprep.mubr.bf16.mxu0 %v663_v57  ;;  %v11663_v4 = vld [vmem:[%s14464_s1 + $0x14d0] sm:$0xff]   ;;  %v11690_v52 = vld [vmem:[%s14464_s1 + $0x1548] sm:$0xff]  }
 0x266   :  { %10694 = vmatprep.subr.bf16.mxu1 %v11626_v9  ;;  %v11668_v9 = vld [vmem:[%s14464_s1 + $0x1498] sm:$0xff]   ;;  %v11694_v57 = vld [vmem:[%s14464_s1 + $0x1550] sm:$0xff]  }
 0x267   :  { %10673 = vmatpush3.bf16.msra.mxu0 %v11625_v8  ;;  %v11667_v8 = vld [vmem:[%s14464_s1 + $0x14d8] sm:$0xff]  }
 0x268   :  { %10674 = vmatprep.subr.bf16.mxu0 %v11628_v11  ;;  %v11670_v11 = vld [vmem:[%s14464_s1 + $0x1420] sm:$0xff]  }
 0x269   :  { %10695 = vmatpush3.bf16.msra.mxu1 %v11627_v10  ;;  %v11669_v10 = vld [vmem:[%s14464_s1 + $0x1460] sm:$0xff]  }
 0x26a   :  { %10696 = vmatprep.subr.bf16.mxu1 %v11630_v13  ;;  %v11672_v13 = vld [vmem:[%s14464_s1 + $0x14a0] sm:$0xff]  }
 0x26b   :  { %10675 = vmatpush3.bf16.msra.mxu0 %v11629_v12  ;;  %v11671_v12 = vld [vmem:[%s14464_s1 + $0x14e0] sm:$0xff]  }
 0x26c   :  { %10676 = vmatprep.subr.bf16.mxu0 %v11632_v15 }
 0x26d   :  { %10697 = vmatpush3.bf16.msra.mxu1 %v11631_v14  ;;  %v11673_v14 = vld [vmem:[%s14464_s1 + $0x1468] sm:$0xff]  }
 0x26e   :  { %10698 = vmatprep.subr.bf16.mxu1 %v11634_v17 }
 0x26f   :  { %10677 = vmatpush3.bf16.msra.mxu0 %v11633_v16  ;;  %v11674_v16 = vld [vmem:[%s14464_s1 + $0x1428] sm:$0xff]  }
 0x270   :  { %10678 = vmatprep.subr.bf16.mxu0 %v11636_v19 }
 0x271   :  { %10699 = vmatpush3.bf16.msra.mxu1 %v11635_v18  ;;  %v11675_v18 = vld [vmem:[%s14464_s1 + $0x14e8] sm:$0xff]  }
 0x272   :  { %10700 = vmatprep.subr.bf16.mxu1 %v11638_v21 }
 0x273   :  { %10679 = vmatpush3.bf16.msra.mxu0 %v11637_v20 }
 0x274   :  { %10680 = vmatprep.subr.bf16.mxu0 %v11640_v23  ;;  %v11677_v23 = vld [vmem:[%s14464_s1 + $0x1470] sm:$0xff]  }
 0x275   :  { %v10378_v24 = vpop.f32.mrb[48].mxu0  ;;  %10701 = vmatpush3.bf16.msra.mxu1 %v11639_v22  ;;  %v11676_v22 = vld [vmem:[%s14464_s1 + $0x14a8] sm:$0xff]  }
 0x276   :  { %v10379_v26 = vpop.f32.mrb[49].mxu0  ;;  %10702 = vmatprep.subr.bf16.mxu1 %v11642_v27 }
 0x277   :  { %v10380_v28 = vadd.f32 %v10379_v26, %v10378_v24  ;;  %v10381_v29 = vpop.f32.mrb[50].mxu0  ;;  %v10400_v30 = vpop.f32.mrb[48].mxu1  ;;  %10681 = vmatpush3.bf16.msra.mxu0 %v11641_v25 }
 0x278   :  { %v10382_v33 = vpop.f32.mrb[51].mxu0  ;;  %v10401_v34 = vpop.f32.mrb[49].mxu1  ;;  %10682 = vmatprep.subr.bf16.mxu0 %v11644_v32 }
 0x279   :  { %v7958_v35 = vadd.f32 %v10380_v28, %v13803_v50  ;;  %v10402_v36 = vadd.f32 %v10401_v34, %v10400_v30  ;;  %v10403_v38 = vpop.f32.mrb[50].mxu1  ;;  %10703 = vmatpush3.bf16.msra.mxu1 %v11643_v31  ;;  %v395_v50 = vcombine.high %v41_v47, %v41_v47  ;;  %v11678_v28 = vld [vmem:[%s14464_s1 + $0x1430] sm:$0xff]   ;;  %v11681_v34 = vld [vmem:[%s14464_s1 + $0x1478] sm:$0xff]   ;;  %v11688_v47 = vld [vmem:[%s14464_s1 + $0x15c0] sm:$0xff]  }
 0x27a   :  { %v10404_v40 = vpop.f32.mrb[51].mxu1  ;;  %10704 = vmatprep.subr.bf16.mxu1 %v11646_v39  ;;  %v11679_v30 = vld [vmem:[%s14464_s1 + $0x14f0] sm:$0xff]   ;;  %v11684_v39 = vld [vmem:[%s14464_s1 + $0x14b8] sm:$0xff]  }
 0x27b   :  { %v13907_v42 = vadd.f32 %v10402_v36, %v7958_v35  ;;  %10683 = vmatpush3.bf16.msra.mxu0 %v11645_v37  ;;  %v409_v53 = vrot.slane %v395_v50, %v11971_v41  ;;  %v11680_v33 = vld [vmem:[%s14464_s1 + $0x14b0] sm:$0xff]   ;;  %v11682_v35 = vld [vmem:[%s14464_s1 + $0x1438] sm:$0xff]   ;;  %v42_v37 = vld [vmem:[%s14463_s0 + $0xa0] sm:$0xff] }
 0x27c   :  { %10684 = vmatprep.subr.bf16.mxu0 %v11648_v44  ;;  %v11683_v36 = vld [vmem:[%s14464_s1 + $0x14f8] sm:$0xff]   ;;  %v419_v38 = vrot.slane %v42_v37, %v11971_v41  ;;  %v412_v40 = vcombine.high %v42_v37, %v42_v37  ;;  %v11689_v50 = vld [vmem:[%s14464_s1 + $0x1580] sm:$0xff]  }
 0x27d   :  { %10705 = vmatpush3.bf16.msra.mxu1 %v11647_v43  ;;  %v411_v58 = vcombine.high %v409_v53, %v409_v53  ;;  %v664_v60 = vpack.c.bf16 %v409_v53, %v409_v53  ;;  %v11721_v37 = vld [vmem:[%s14464_s1 + $0x16c0] sm:$0xff]  }
 0x27e   :  { %10706 = vmatprep.subr.bf16.mxu1 %v11650_v46  ;;  %v427_v43 = vcombine.high %v419_v38, %v419_v38  ;;  %v426_v44 = vrot.slane %v412_v40, %v11971_v41  ;;  %v666_v46 = vpack.c.bf16 %v419_v38, %v419_v38  ;;  %v11722_v40 = vld [vmem:[%s14464_s1 + $0x1680] sm:$0xff]  }
 0x27f   :  { %10685 = vmatpush3.bf16.msra.mxu0 %v11649_v45  ;;  %v665_v62 = vpack.c.bf16 %v411_v58, %v411_v58  ;;  %v11687_v45 = vld [vmem:[%s14464_s1 + $0x1500] sm:$0xff]   ;;  %v11695_v58 = vld [vmem:[%s14464_s1 + $0x1510] sm:$0xff]  }
 0x280   :  { %10714 = vmatprep.subr.bf16.mxu0 %v11652_v51  ;;  %v667_v48 = vpack.c.bf16 %v427_v43, %v427_v43  ;;  %v668_v51 = vpack.c.bf16 %v426_v44, %v426_v44  ;;  %v11723_v43 = vld [vmem:[%s14464_s1 + $0x1648] sm:$0xff]  }
 0x281   :  { %10707 = vmatpush3.bf16.msra.mxu1 %v11651_v49  ;;  %8555 = vmatprep.mubr.bf16.mxu1 %v665_v62  ;;  %v428_v49 = vcombine.high %v426_v44, %v426_v44  ;;  %v11699_v62 = vld [vmem:[%s14464_s1 + $0x1518] sm:$0xff]  }
 0x282   :  { %10736 = vmatprep.subr.bf16.mxu1 %v11655_v56  ;;  %8516 = vmatmul.mubr.bf16.vlgmr.msra.gmra.mrb[76].mxu0 %v662_v55  ;;  %v11692_v55 = vld [vmem:[%s14464_s1 + $0x15c8] sm:$0xff]  }
 0x283   :  { %10715 = vmatpush3.bf16.msra.mxu0 %v11654_v54  ;;  %8595 = vmatprep.mubr.bf16.mxu0 %v667_v48  ;;  %v669_v53 = vpack.c.bf16 %v428_v49, %v428_v49  ;;  %v11691_v54 = vld [vmem:[%s14464_s1 + $0x1508] sm:$0xff]   ;;  %v11727_v48 = vld [vmem:[%s14464_s1 + $0x1650] sm:$0xff]  }
 0x284   :  { %8556 = vmatmul.mubr.bf16.vlgmr.msra.gmra.mrb[76].mxu1 %v664_v60  ;;  %10716 = vmatprep.subr.bf16.mxu0 %v11657_v61  ;;  %v11693_v56 = vld [vmem:[%s14464_s1 + $0x1588] sm:$0xff]   ;;  %v11697_v60 = vld [vmem:[%s14464_s1 + $0x1590] sm:$0xff]   ;;  %v11698_v61 = vld [vmem:[%s14464_s1 + $0x1558] sm:$0xff]  }
 0x285   :  { %10737 = vmatpush3.bf16.msra.mxu1 %v11656_v59  ;;  %8635 = vmatprep.mubr.bf16.mxu1 %v669_v53  ;;  %v11696_v59 = vld [vmem:[%s14464_s1 + $0x15d0] sm:$0xff]   ;;  %v11732_v53 = vld [vmem:[%s14464_s1 + $0x1618] sm:$0xff]  }
 0x286   :  { %10738 = vmatprep.subr.bf16.mxu1 %v11659_v0  ;;  %v11701_v0 = vld [vmem:[%s14464_s1 + $0x1598] sm:$0xff]   ;;  %v11728_v49 = vld [vmem:[%s14464_s1 + $0x1610] sm:$0xff]  }
 0x287   :  { %10717 = vmatpush3.bf16.msra.mxu0 %v11658_v63  ;;  %v11700_v63 = vld [vmem:[%s14464_s1 + $0x15d8] sm:$0xff]  }
 0x288   :  { %10718 = vmatprep.subr.bf16.mxu0 %v11661_v2  ;;  %v11703_v2 = vld [vmem:[%s14464_s1 + $0x1520] sm:$0xff]  }
 0x289   :  { %10739 = vmatpush3.bf16.msra.mxu1 %v11660_v1  ;;  %v11702_v1 = vld [vmem:[%s14464_s1 + $0x1560] sm:$0xff]  }
 0x28a   :  { %10740 = vmatprep.subr.bf16.mxu1 %v11663_v4  ;;  %v11705_v4 = vld [vmem:[%s14464_s1 + $0x15a0] sm:$0xff]  }
 0x28b   :  { %10719 = vmatpush3.bf16.msra.mxu0 %v11662_v3  ;;  %v11704_v3 = vld [vmem:[%s14464_s1 + $0x15e0] sm:$0xff]  }
 0x28c   :  { %10720 = vmatprep.subr.bf16.mxu0 %v11665_v6 }
 0x28d   :  { %10741 = vmatpush3.bf16.msra.mxu1 %v11664_v5  ;;  %v11706_v5 = vld [vmem:[%s14464_s1 + $0x1568] sm:$0xff]  }
 0x28e   :  { %10742 = vmatprep.subr.bf16.mxu1 %v11667_v8 }
 0x28f   :  { %10721 = vmatpush3.bf16.msra.mxu0 %v11666_v7  ;;  %v11707_v7 = vld [vmem:[%s14464_s1 + $0x1528] sm:$0xff]  }
 0x290   :  { %10722 = vmatprep.subr.bf16.mxu0 %v11669_v10 }
 0x291   :  { %10743 = vmatpush3.bf16.msra.mxu1 %v11668_v9  ;;  %v11708_v9 = vld [vmem:[%s14464_s1 + $0x15e8] sm:$0xff]  }
 0x292   :  { %10744 = vmatprep.subr.bf16.mxu1 %v11671_v12 }
 0x293   :  { %10723 = vmatpush3.bf16.msra.mxu0 %v11670_v11 }
 0x294   :  { %10724 = vmatprep.subr.bf16.mxu0 %v11673_v14 }
 0x295   :  { %v10422_v15 = vpop.f32.mrb[52].mxu0  ;;  %10745 = vmatpush3.bf16.msra.mxu1 %v11672_v13 }
 0x296   :  { %v10423_v17 = vpop.f32.mrb[53].mxu0  ;;  %10746 = vmatprep.subr.bf16.mxu1 %v11675_v18 }
 0x297   :  { %v10424_v19 = vadd.f32 %v10423_v17, %v10422_v15  ;;  %v10425_v20 = vpop.f32.mrb[54].mxu0  ;;  %v10444_v21 = vpop.f32.mrb[52].mxu1  ;;  %10725 = vmatpush3.bf16.msra.mxu0 %v11674_v16  ;;  %v11709_v15 = vld [vmem:[%s14464_s1 + $0x15a8] sm:$0xff]   ;;  %v11710_v16 = vld [vmem:[%s14464_s1 + $0x1570] sm:$0xff]  }
 0x298   :  { %v10426_v24 = vpop.f32.mrb[55].mxu0  ;;  %v10445_v25 = vpop.f32.mrb[53].mxu1  ;;  %10726 = vmatprep.subr.bf16.mxu0 %v11677_v23 }
 0x299   :  { %v8038_v26 = vadd.f32 %v10424_v19, %v13907_v42  ;;  %v10446_v27 = vadd.f32 %v10445_v25, %v10444_v21  ;;  %v10447_v29 = vpop.f32.mrb[54].mxu1  ;;  %10747 = vmatpush3.bf16.msra.mxu1 %v11676_v22  ;;  %v11685_v42 = vld [vmem:[%s14464_s1 + $0x1540] sm:$0xff]   ;;  %v11711_v19 = vld [vmem:[%s14464_s1 + $0x1530] sm:$0xff]   ;;  %v11714_v25 = vld [vmem:[%s14464_s1 + $0x1578] sm:$0xff]  }
 0x29a   :  { %v10448_v31 = vpop.f32.mrb[55].mxu1  ;;  %10748 = vmatprep.subr.bf16.mxu1 %v11679_v30  ;;  %v11712_v22 = vld [vmem:[%s14464_s1 + $0x15f0] sm:$0xff]   ;;  %v11717_v30 = vld [vmem:[%s14464_s1 + $0x15b8] sm:$0xff]  }
 0x29b   :  { %v14011_v32 = vadd.f32 %v10446_v27, %v8038_v26  ;;  %10727 = vmatpush3.bf16.msra.mxu0 %v11678_v28  ;;  %v11713_v24 = vld [vmem:[%s14464_s1 + $0x15b0] sm:$0xff]   ;;  %v11715_v26 = vld [vmem:[%s14464_s1 + $0x1538] sm:$0xff]   ;;  %v43_v28 = vld [vmem:[%s14463_s0 + $0xa8] sm:$0xff] }
 0x29c   :  { %10728 = vmatprep.subr.bf16.mxu0 %v11681_v34  ;;  %v11716_v27 = vld [vmem:[%s14464_s1 + $0x15f8] sm:$0xff]   ;;  %v436_v29 = vrot.slane %v43_v28, %v11971_v41  ;;  %v429_v31 = vcombine.high %v43_v28, %v43_v28 }
 0x29d   :  { %10749 = vmatpush3.bf16.msra.mxu1 %v11680_v33 }
 0x29e   :  { %10750 = vmatprep.subr.bf16.mxu1 %v11683_v36  ;;  %v444_v33 = vcombine.high %v436_v29, %v436_v29  ;;  %v443_v34 = vrot.slane %v429_v31, %v11971_v41  ;;  %v670_v36 = vpack.c.bf16 %v436_v29, %v436_v29 }
 0x29f   :  { %10729 = vmatpush3.bf16.msra.mxu0 %v11682_v35  ;;  %v11720_v35 = vld [vmem:[%s14464_s1 + $0x1600] sm:$0xff]  }
 0x2a0   :  { %10758 = vmatprep.subr.bf16.mxu0 %v11685_v42  ;;  %v671_v38 = vpack.c.bf16 %v444_v33, %v444_v33  ;;  %v672_v42 = vpack.c.bf16 %v443_v34, %v443_v34 }
 0x2a1   :  { %10751 = vmatpush3.bf16.msra.mxu1 %v11684_v39  ;;  %v445_v39 = vcombine.high %v443_v34, %v443_v34  ;;  %v11755_v34 = vld [vmem:[%s14464_s1 + $0x1780] sm:$0xff]  }
 0x2a2   :  { %8596 = vmatmul.mubr.bf16.vlgmr.msra.gmra.mrb[80].mxu0 %v666_v46  ;;  %10780 = vmatprep.subr.bf16.mxu1 %v11688_v47  ;;  %v11725_v46 = vld [vmem:[%s14464_s1 + $0x16c8] sm:$0xff]  }
 0x2a3   :  { %10759 = vmatpush3.bf16.msra.mxu0 %v11687_v45  ;;  %8675 = vmatprep.mubr.bf16.mxu0 %v671_v38  ;;  %v673_v44 = vpack.c.bf16 %v445_v39, %v445_v39  ;;  %v11724_v45 = vld [vmem:[%s14464_s1 + $0x1608] sm:$0xff]   ;;  %v11762_v39 = vld [vmem:[%s14464_s1 + $0x17d0] sm:$0xff]  }
 0x2a4   :  { %8636 = vmatmul.mubr.bf16.vlgmr.msra.gmra.mrb[80].mxu1 %v668_v51  ;;  %10760 = vmatprep.subr.bf16.mxu0 %v11690_v52  ;;  %v11726_v47 = vld [vmem:[%s14464_s1 + $0x1688] sm:$0xff]   ;;  %v11730_v51 = vld [vmem:[%s14464_s1 + $0x1690] sm:$0xff]   ;;  %v11731_v52 = vld [vmem:[%s14464_s1 + $0x1658] sm:$0xff]  }
 0x2a5   :  { %10781 = vmatpush3.bf16.msra.mxu1 %v11689_v50  ;;  %8715 = vmatprep.mubr.bf16.mxu1 %v673_v44  ;;  %v11729_v50 = vld [vmem:[%s14464_s1 + $0x16d0] sm:$0xff]   ;;  %v11759_v38 = vld [vmem:[%s14464_s1 + $0x1788] sm:$0xff]   ;;  %v11766_v44 = vld [vmem:[%s14464_s1 + $0x17d8] sm:$0xff]  }
 0x2a6   :  { %10782 = vmatprep.subr.bf16.mxu1 %v11692_v55  ;;  %v11734_v55 = vld [vmem:[%s14464_s1 + $0x1698] sm:$0xff]  }
 0x2a7   :  { %10761 = vmatpush3.bf16.msra.mxu0 %v11691_v54  ;;  %v11733_v54 = vld [vmem:[%s14464_s1 + $0x16d8] sm:$0xff]  }
 0x2a8   :  { %10762 = vmatprep.subr.bf16.mxu0 %v11694_v57  ;;  %v11736_v57 = vld [vmem:[%s14464_s1 + $0x1620] sm:$0xff]  }
 0x2a9   :  { %10783 = vmatpush3.bf16.msra.mxu1 %v11693_v56  ;;  %v11735_v56 = vld [vmem:[%s14464_s1 + $0x1660] sm:$0xff]  }
 0x2aa   :  { %10784 = vmatprep.subr.bf16.mxu1 %v11696_v59  ;;  %v11738_v59 = vld [vmem:[%s14464_s1 + $0x16a0] sm:$0xff]  }
 0x2ab   :  { %10763 = vmatpush3.bf16.msra.mxu0 %v11695_v58  ;;  %v11737_v58 = vld [vmem:[%s14464_s1 + $0x16e0] sm:$0xff]  }
 0x2ac   :  { %10764 = vmatprep.subr.bf16.mxu0 %v11698_v61 }
 0x2ad   :  { %10785 = vmatpush3.bf16.msra.mxu1 %v11697_v60  ;;  %v11739_v60 = vld [vmem:[%s14464_s1 + $0x1668] sm:$0xff]  }
 0x2ae   :  { %10786 = vmatprep.subr.bf16.mxu1 %v11700_v63 }
 0x2af   :  { %10765 = vmatpush3.bf16.msra.mxu0 %v11699_v62  ;;  %v11740_v62 = vld [vmem:[%s14464_s1 + $0x1628] sm:$0xff]  }
 0x2b0   :  { %10766 = vmatprep.subr.bf16.mxu0 %v11702_v1 }
 0x2b1   :  { %10787 = vmatpush3.bf16.msra.mxu1 %v11701_v0  ;;  %v11741_v0 = vld [vmem:[%s14464_s1 + $0x16e8] sm:$0xff]  }
 0x2b2   :  { %10788 = vmatprep.subr.bf16.mxu1 %v11704_v3 }
 0x2b3   :  { %10767 = vmatpush3.bf16.msra.mxu0 %v11703_v2 }
 0x2b4   :  { %10768 = vmatprep.subr.bf16.mxu0 %v11706_v5  ;;  %v11743_v5 = vld [vmem:[%s14464_s1 + $0x1670] sm:$0xff]  }
 0x2b5   :  { %v10466_v6 = vpop.f32.mrb[56].mxu0  ;;  %10789 = vmatpush3.bf16.msra.mxu1 %v11705_v4  ;;  %v11742_v4 = vld [vmem:[%s14464_s1 + $0x16a8] sm:$0xff]  }
 0x2b6   :  { %v10467_v8 = vpop.f32.mrb[57].mxu0  ;;  %10790 = vmatprep.subr.bf16.mxu1 %v11708_v9 }
 0x2b7   :  { %v10468_v10 = vadd.f32 %v10467_v8, %v10466_v6  ;;  %v10469_v11 = vpop.f32.mrb[58].mxu0  ;;  %v10488_v12 = vpop.f32.mrb[56].mxu1  ;;  %10769 = vmatpush3.bf16.msra.mxu0 %v11707_v7 }
 0x2b8   :  { %v10470_v13 = vpop.f32.mrb[59].mxu0  ;;  %v10489_v14 = vpop.f32.mrb[57].mxu1  ;;  %10770 = vmatprep.subr.bf16.mxu0 %v11710_v16  ;;  %v11747_v16 = vld [vmem:[%s14464_s1 + $0x1678] sm:$0xff]  }
 0x2b9   :  { %v8118_v17 = vadd.f32 %v10468_v10, %v14011_v32  ;;  %v10490_v18 = vadd.f32 %v10489_v14, %v10488_v12  ;;  %v10491_v20 = vpop.f32.mrb[58].mxu1  ;;  %10791 = vmatpush3.bf16.msra.mxu1 %v11709_v15  ;;  %v11718_v32 = vld [vmem:[%s14464_s1 + $0x1640] sm:$0xff]   ;;  %v11744_v10 = vld [vmem:[%s14464_s1 + $0x1630] sm:$0xff]  }
 0x2ba   :  { %v10492_v23 = vpop.f32.mrb[59].mxu1  ;;  %10792 = vmatprep.subr.bf16.mxu1 %v11712_v22  ;;  %v11745_v12 = vld [vmem:[%s14464_s1 + $0x16f0] sm:$0xff]  }
 0x2bb   :  { %v14112_v21 = vadd.f32 %v10490_v18, %v8118_v17  ;;  %10771 = vmatpush3.bf16.msra.mxu0 %v11711_v19  ;;  %v11746_v15 = vld [vmem:[%s14464_s1 + $0x16b0] sm:$0xff]   ;;  %v11748_v17 = vld [vmem:[%s14464_s1 + $0x1638] sm:$0xff]   ;;  %v11751_v23 = vld [vmem:[%s14464_s1 + $0x1740] sm:$0xff]  }
 0x2bc   :  { %10772 = vmatprep.subr.bf16.mxu0 %v11714_v25  ;;  %v11749_v18 = vld [vmem:[%s14464_s1 + $0x16f8] sm:$0xff]   ;;  %v44_v19 = vld [vmem:[%s14463_s0 + $0xb0] sm:$0xff] }
 0x2bd   :  { %10793 = vmatpush3.bf16.msra.mxu1 %v11713_v24  ;;  %v453_v20 = vrot.slane %v44_v19, %v11971_v41  ;;  %v446_v22 = vcombine.high %v44_v19, %v44_v19 }
 0x2be   :  { %10794 = vmatprep.subr.bf16.mxu1 %v11716_v27  ;;  %v11754_v27 = vld [vmem:[%s14464_s1 + $0x17c0] sm:$0xff]  }
 0x2bf   :  { %10773 = vmatpush3.bf16.msra.mxu0 %v11715_v26  ;;  %v461_v24 = vcombine.high %v453_v20, %v453_v20  ;;  %v460_v25 = vrot.slane %v446_v22, %v11971_v41  ;;  %v674_v26 = vpack.c.bf16 %v453_v20, %v453_v20  ;;  %v11786_v20 = vld [vmem:[%s14464_s1 + $0x1800] sm:$0xff]   ;;  %v11787_v22 = vld [vmem:[%s14464_s1 + $0x1848] sm:$0xff]  }
 0x2c0   :  { %10802 = vmatprep.subr.bf16.mxu0 %v11718_v32  ;;  %v11756_v32 = vld [vmem:[%s14464_s1 + $0x1748] sm:$0xff]  }
 0x2c1   :  { %10795 = vmatpush3.bf16.msra.mxu1 %v11717_v30  ;;  %v675_v28 = vpack.c.bf16 %v461_v24, %v461_v24  ;;  %v462_v29 = vcombine.high %v460_v25, %v460_v25  ;;  %v11753_v30 = vld [vmem:[%s14464_s1 + $0x1700] sm:$0xff]   ;;  %v676_v31 = vpack.c.bf16 %v460_v25, %v460_v25  ;;  %v11789_v24 = vld [vmem:[%s14464_s1 + $0x1850] sm:$0xff]  }
 0x2c2   :  { %10824 = vmatprep.subr.bf16.mxu1 %v11721_v37  ;;  %8676 = vmatmul.mubr.bf16.vlgmr.msra.gmra.mrb[84].mxu0 %v670_v36  ;;  %v11757_v36 = vld [vmem:[%s14464_s1 + $0x1708] sm:$0xff]   ;;  %v11760_v37 = vld [vmem:[%s14464_s1 + $0x1750] sm:$0xff]  }
 0x2c3   :  { %10803 = vmatpush3.bf16.msra.mxu0 %v11720_v35  ;;  %8755 = vmatprep.mubr.bf16.mxu0 %v675_v28  ;;  %v677_v33 = vpack.c.bf16 %v462_v29, %v462_v29  ;;  %v11758_v35 = vld [vmem:[%s14464_s1 + $0x17c8] sm:$0xff]   ;;  %v11790_v25 = vld [vmem:[%s14464_s1 + $0x1810] sm:$0xff]   ;;  %v11793_v28 = vld [vmem:[%s14464_s1 + $0x1860] sm:$0xff]  }
 0x2c4   :  { %8716 = vmatmul.mubr.bf16.vlgmr.msra.gmra.mrb[84].mxu1 %v672_v42  ;;  %10804 = vmatprep.subr.bf16.mxu0 %v11723_v43  ;;  %v11764_v42 = vld [vmem:[%s14464_s1 + $0x1758] sm:$0xff]   ;;  %v11763_v43 = vld [vmem:[%s14464_s1 + $0x1790] sm:$0xff]   ;;  %v9047_v29 = vld.sshfl [vmem:[%s14463_s0 + $0xc0] sm:$0x33 pattern:$0x76325410] }
 0x2c5   :  { %10825 = vmatpush3.bf16.msra.mxu1 %v11722_v40  ;;  %8795 = vmatprep.mubr.bf16.mxu1 %v677_v33  ;;  %v11761_v40 = vld [vmem:[%s14464_s1 + $0x1710] sm:$0xff]  }
 0x2c6   :  { %10826 = vmatprep.subr.bf16.mxu1 %v11725_v46  ;;  %v11768_v46 = vld [vmem:[%s14464_s1 + $0x1760] sm:$0xff]  }
 0x2c7   :  { %10805 = vmatpush3.bf16.msra.mxu0 %v11724_v45  ;;  %v11765_v45 = vld [vmem:[%s14464_s1 + $0x1718] sm:$0xff]  }
 0x2c8   :  { %10806 = vmatprep.subr.bf16.mxu0 %v11727_v48  ;;  %v11770_v48 = vld [vmem:[%s14464_s1 + $0x17e0] sm:$0xff]  }
 0x2c9   :  { %10827 = vmatpush3.bf16.msra.mxu1 %v11726_v47  ;;  %v11767_v47 = vld [vmem:[%s14464_s1 + $0x1798] sm:$0xff]  }
 0x2ca   :  { %10828 = vmatprep.subr.bf16.mxu1 %v11729_v50  ;;  %v11772_v50 = vld [vmem:[%s14464_s1 + $0x1768] sm:$0xff]  }
 0x2cb   :  { %10807 = vmatpush3.bf16.msra.mxu0 %v11728_v49  ;;  %v11769_v49 = vld [vmem:[%s14464_s1 + $0x1720] sm:$0xff]  }
 0x2cc   :  { %10808 = vmatprep.subr.bf16.mxu0 %v11731_v52  ;;  %v11771_v52 = vld [vmem:[%s14464_s1 + $0x17a0] sm:$0xff]  }
 0x2cd   :  { %10829 = vmatpush3.bf16.msra.mxu1 %v11730_v51 }
 0x2ce   :  { %10830 = vmatprep.subr.bf16.mxu1 %v11733_v54  ;;  %v11774_v54 = vld [vmem:[%s14464_s1 + $0x17e8] sm:$0xff]  }
 0x2cf   :  { %10809 = vmatpush3.bf16.msra.mxu0 %v11732_v53 }
 0x2d0   :  { %10810 = vmatprep.subr.bf16.mxu0 %v11735_v56 }
 0x2d1   :  { %10831 = vmatpush3.bf16.msra.mxu1 %v11734_v55 }
 0x2d2   :  { %10832 = vmatprep.subr.bf16.mxu1 %v11737_v58  ;;  %v11773_v58 = vld [vmem:[%s14464_s1 + $0x1728] sm:$0xff]  }
 0x2d3   :  { %10811 = vmatpush3.bf16.msra.mxu0 %v11736_v57 }
 0x2d4   :  { %10812 = vmatprep.subr.bf16.mxu0 %v11739_v60 }
 0x2d5   :  { %v10510_v61 = vpop.f32.mrb[60].mxu0  ;;  %10833 = vmatpush3.bf16.msra.mxu1 %v11738_v59  ;;  %v11776_v59 = vld [vmem:[%s14464_s1 + $0x1770] sm:$0xff]  }
 0x2d6   :  { %v10511_v63 = vpop.f32.mrb[61].mxu0  ;;  %10834 = vmatprep.subr.bf16.mxu1 %v11741_v0  ;;  %v11775_v0 = vld [vmem:[%s14464_s1 + $0x17a8] sm:$0xff]  }
 0x2d7   :  { %v10512_v1 = vadd.f32 %v10511_v63, %v10510_v61  ;;  %v10513_v2 = vpop.f32.mrb[62].mxu0  ;;  %v10532_v3 = vpop.f32.mrb[60].mxu1  ;;  %10813 = vmatpush3.bf16.msra.mxu0 %v11740_v62 }
 0x2d8   :  { %v10514_v6 = vpop.f32.mrb[63].mxu0  ;;  %v10533_v7 = vpop.f32.mrb[61].mxu1  ;;  %10814 = vmatprep.subr.bf16.mxu0 %v11743_v5  ;;  %v11778_v2 = vld [vmem:[%s14464_s1 + $0x17f0] sm:$0xff]  }
 0x2d9   :  { %v8198_v8 = vadd.f32 %v10512_v1, %v14112_v21  ;;  %v10534_v9 = vadd.f32 %v10533_v7, %v10532_v3  ;;  %v10535_v11 = vpop.f32.mrb[62].mxu1  ;;  %10835 = vmatpush3.bf16.msra.mxu1 %v11742_v4  ;;  %v11750_v21 = vld [vmem:[%s14464_s1 + $0x16b8] sm:$0xff]   ;;  %v11777_v5 = vld [vmem:[%s14464_s1 + $0x1730] sm:$0xff]  }
 0x2da   :  { %v10536_v13 = vpop.f32.mrb[63].mxu1  ;;  %10836 = vmatprep.subr.bf16.mxu1 %v11745_v12  ;;  %v11780_v6 = vld [vmem:[%s14464_s1 + $0x1778] sm:$0xff]   ;;  %v11779_v7 = vld [vmem:[%s14464_s1 + $0x17b0] sm:$0xff]  }
 0x2db   :  { %v14219_v14 = vadd.f32 %v10534_v9, %v8198_v8  ;;  %10815 = vmatpush3.bf16.msra.mxu0 %v11744_v10  ;;  %v11782_v8 = vld [vmem:[%s14464_s1 + $0x17f8] sm:$0xff]   ;;  %v11784_v13 = vld [vmem:[%s14464_s1 + $0x1840] sm:$0xff]  }
 0x2dc   :  { %10816 = vmatprep.subr.bf16.mxu0 %v11747_v16  ;;  %v45_v9 = vld [vmem:[%s14463_s0 + $0xb8] sm:$0xff] }
 0x2dd   :  { %10837 = vmatpush3.bf16.msra.mxu1 %v11746_v15  ;;  %v11781_v10 = vld [vmem:[%s14464_s1 + $0x1738] sm:$0xff]   ;;  %v470_v11 = vrot.slane %v45_v9, %v11971_v41  ;;  %v463_v12 = vcombine.high %v45_v9, %v45_v9 }
 0x2de   :  { %10838 = vmatprep.subr.bf16.mxu1 %v11749_v18  ;;  %v11783_v15 = vld [vmem:[%s14464_s1 + $0x17b8] sm:$0xff]  }
 0x2df   :  { %10817 = vmatpush3.bf16.msra.mxu0 %v11748_v17  ;;  %v477_v16 = vrot.slane %v463_v12, %v11971_v41  ;;  %v678_v17 = vpack.c.bf16 %v470_v11, %v470_v11  ;;  %v11788_v41 = vld [vmem:[%s14464_s1 + $0x1808] sm:$0xff]  }
 0x2e0   :  { %10846 = vmatprep.subr.bf16.mxu0 %v11751_v23 }
 0x2e1   :  { %10839 = vmatpush3.bf16.msra.mxu1 %v11750_v21  ;;  %v479_v19 = vcombine.high %v477_v16, %v477_v16  ;;  %v680_v21 = vpack.c.bf16 %v477_v16, %v477_v16 }
 0x2e2   :  { %10868 = vmatprep.subr.bf16.mxu1 %v11754_v27  ;;  %8756 = vmatmul.mubr.bf16.vlgmr.msra.gmra.mrb[88].mxu0 %v674_v26  ;;  %v11791_v26 = vld [vmem:[%s14464_s1 + $0x1858] sm:$0xff]  }
 0x2e3   :  { %10847 = vmatpush3.bf16.msra.mxu0 %v11753_v30  ;;  %v681_v23 = vpack.c.bf16 %v479_v19, %v479_v19  ;;  %v11792_v27 = vld [vmem:[%s14464_s1 + $0x1818] sm:$0xff]  }
 0x2e4   :  { %8796 = vmatmul.mubr.bf16.vlgmr.msra.gmra.mrb[88].mxu1 %v676_v31  ;;  %10848 = vmatprep.subr.bf16.mxu0 %v11756_v32 }
 0x2e5   :  { %10869 = vmatpush3.bf16.msra.mxu1 %v11755_v34  ;;  %8875 = vmatprep.mubr.bf16.mxu1 %v681_v23 }
 0x2e6   :  { %10870 = vmatprep.subr.bf16.mxu1 %v11758_v35 }
 0x2e7   :  { %10849 = vmatpush3.bf16.msra.mxu0 %v11757_v36 }
 0x2e8   :  { %10850 = vmatprep.subr.bf16.mxu0 %v11760_v37 }
 0x2e9   :  { %10871 = vmatpush3.bf16.msra.mxu1 %v11759_v38 }
 0x2ea   :  { %10872 = vmatprep.subr.bf16.mxu1 %v11762_v39 }
 0x2eb   :  { %10851 = vmatpush3.bf16.msra.mxu0 %v11761_v40 }
 0x2ec   :  { %10852 = vmatprep.subr.bf16.mxu0 %v11764_v42 }
 0x2ed   :  { %10873 = vmatpush3.bf16.msra.mxu1 %v11763_v43 }
 0x2ee   :  { %10874 = vmatprep.subr.bf16.mxu1 %v11766_v44 }
 0x2ef   :  { %10853 = vmatpush3.bf16.msra.mxu0 %v11765_v45 }
 0x2f0   :  { %10854 = vmatprep.subr.bf16.mxu0 %v11768_v46 }
 0x2f1   :  { %10875 = vmatpush3.bf16.msra.mxu1 %v11767_v47 }
 0x2f2   :  { %10876 = vmatprep.subr.bf16.mxu1 %v11770_v48 }
 0x2f3   :  { %10855 = vmatpush3.bf16.msra.mxu0 %v11769_v49 }
 0x2f4   :  { %10856 = vmatprep.subr.bf16.mxu0 %v11772_v50 }
 0x2f5   :  { %v10554_v51 = vpop.f32.mrb[64].mxu0  ;;  %10877 = vmatpush3.bf16.msra.mxu1 %v11771_v52 }
 0x2f6   :  { %v10555_v53 = vpop.f32.mrb[65].mxu0  ;;  %10878 = vmatprep.subr.bf16.mxu1 %v11774_v54 }
 0x2f7   :  { %v10556_v55 = vadd.f32 %v10555_v53, %v10554_v51  ;;  %v10557_v56 = vpop.f32.mrb[66].mxu0  ;;  %v10576_v57 = vpop.f32.mrb[64].mxu1  ;;  %10857 = vmatpush3.bf16.msra.mxu0 %v11773_v58 }
 0x2f8   :  { %v10558_v60 = vpop.f32.mrb[67].mxu0  ;;  %v10577_v61 = vpop.f32.mrb[65].mxu1  ;;  %10858 = vmatprep.subr.bf16.mxu0 %v11776_v59 }
 0x2f9   :  { %v8278_v62 = vadd.f32 %v10556_v55, %v14219_v14  ;;  %v10578_v63 = vadd.f32 %v10577_v61, %v10576_v57  ;;  %v10579_v1 = vpop.f32.mrb[66].mxu1  ;;  %10879 = vmatpush3.bf16.msra.mxu1 %v11775_v0  ;;  %v478_v14 = vcombine.high %v470_v11, %v470_v11 }
 0x2fa   :  { %v10580_v3 = vpop.f32.mrb[67].mxu1  ;;  %10880 = vmatprep.subr.bf16.mxu1 %v11778_v2 }
 0x2fb   :  { %v14320_v4 = vadd.f32 %v10578_v63, %v8278_v62  ;;  %10859 = vmatpush3.bf16.msra.mxu0 %v11777_v5  ;;  %v679_v18 = vpack.c.bf16 %v478_v14, %v478_v14 }
 0x2fc   :  { %10860 = vmatprep.subr.bf16.mxu0 %v11780_v6 }
 0x2fd   :  { %10881 = vmatpush3.bf16.msra.mxu1 %v11779_v7  ;;  %8835 = vmatprep.mubr.bf16.mxu0 %v679_v18 }
 0x2fe   :  { %10882 = vmatprep.subr.bf16.mxu1 %v11782_v8 }
 0x2ff   :  { %10861 = vmatpush3.bf16.msra.mxu0 %v11781_v10 }
 0x300   :  { %10890 = vmatprep.subr.bf16.mxu0 %v11784_v13 }
 0x301   :  { %10883 = vmatpush3.bf16.msra.mxu1 %v11783_v15 }
 0x302   :  { %8836 = vmatmul.mubr.bf16.vlgmr.msra.gmra.mrb[92].mxu0 %v678_v17 }
 0x303   :  { %10891 = vmatpush3.bf16.msra.mxu0 %v11786_v20 }
 0x304   :  { %8876 = vmatmul.mubr.bf16.vlgmr.msra.gmra.mrb[92].mxu1 %v680_v21  ;;  %10892 = vmatprep.subr.bf16.mxu0 %v11787_v22 }
 0x307   :  { %10893 = vmatpush3.bf16.msra.mxu0 %v11788_v41 }
 0x308   :  { %10894 = vmatprep.subr.bf16.mxu0 %v11789_v24 }
 0x30b   :  { %10895 = vmatpush3.bf16.msra.mxu0 %v11790_v25 }
 0x30c   :  { %10896 = vmatprep.subr.bf16.mxu0 %v11791_v26 }
 0x30d   :  { %10 = vsyncpa [#allocation3], 0  ;;  %v487_v30 = vcombine.high %v9047_v29, %v9047_v29  ;;  %v11794_v31 = vld [vmem:[%s14464_s1 + $0x1820] sm:$0xff]   ;;  %v11795_v33 = vld [vmem:[%s14464_s1 + $0x1868] sm:$0xff]   ;;  %v682_v52 = vpack.c.bf16 %v9047_v29, %v9047_v29  ;;  %v11832_v16 = vmov 0.0|0.0   ;;  %vm11833_vm0 = vmmov 0  }
 0x30e   :  { %v11796_v39 = vld [vmem:[%s14464_s1 + $0x1828] sm:$0xff]   ;;  %v11797_v43 = vld [vmem:[%s14464_s1 + $0x1870] sm:$0xff]   ;;  %v11799_v50 = vld [vmem:[%s14464_s1 + $0x1878] sm:$0xff]   ;;  %10964 = vmatprep.subr.bf16.mxu1 %v11832_v16  ;;  %vm9017_vm1 = vcmask 41984  }
 0x30f   :  { %10897 = vmatpush3.bf16.msra.mxu0 %v11792_v27  ;;  %v683_v32 = vpack.c.bf16 %v487_v30, %v487_v30  ;;  %v11798_v49 = vld [vmem:[%s14464_s1 + $0x1830] sm:$0xff]   ;;  %v11800_v51 = vld [vmem:[%s14464_s1 + $0x1838] sm:$0xff]   ;;  %v8924_v13 = vld [vmem:[%s14466_s3] sm:$0xff] }
 0x310   :  { %10898 = vmatprep.subr.bf16.mxu0 %v11793_v28  ;;  %v8925_v14 = vld [vmem:[%s14466_s3 + $0x8] sm:$0xff]  ;;  %v8926_v15 = vld [vmem:[%s14466_s3 + $0x10] sm:$0xff]  ;;  %v8927_v18 = vld [vmem:[%s14466_s3 + $0x18] sm:$0xff] }
 0x311   :  { %8915 = vmatprep.mubr.bf16.mxu0 %v683_v32  ;;  %v10965_v17 = vpack.c.bf16 %v8925_v14, %v8924_v13  ;;  %v10968_v19 = vpack.c.bf16 %v8927_v18, %v8926_v15  ;;  %v8928_v20 = vld [vmem:[%s14466_s3 + $0x20] sm:$0xff]  ;;  %v8929_v21 = vld [vmem:[%s14466_s3 + $0x28] sm:$0xff]  ;;  %v8930_v23 = vld [vmem:[%s14466_s3 + $0x30] sm:$0xff] }
 0x312   :  { %v10971_v22 = vpack.c.bf16 %v8929_v21, %v8928_v20  ;;  %v8931_v41 = vld [vmem:[%s14466_s3 + $0x38] sm:$0xff]  ;;  %v8932_v25 = vld [vmem:[%s14466_s3 + $0x40] sm:$0xff]  ;;  %v8933_v26 = vld [vmem:[%s14466_s3 + $0x48] sm:$0xff] }
 0x313   :  { %10899 = vmatpush3.bf16.msra.mxu0 %v11794_v31  ;;  %10966 = vmatpush3.bf16.msra.mxu1 %v10965_v17  ;;  %v10974_v24 = vpack.c.bf16 %v8931_v41, %v8930_v23  ;;  %v10977_v27 = vpack.c.bf16 %v8933_v26, %v8932_v25  ;;  %v8934_v28 = vld [vmem:[%s14466_s3 + $0x50] sm:$0xff]  ;;  %v8935_v29 = vld [vmem:[%s14466_s3 + $0x58] sm:$0xff]  ;;  %v8936_v32 = vld [vmem:[%s14466_s3 + $0x60] sm:$0xff] }
 0x314   :  { %10900 = vmatprep.subr.bf16.mxu0 %v11795_v33  ;;  %10967 = vmatprep.subr.bf16.mxu1 %v11832_v16  ;;  %v10980_v30 = vpack.c.bf16 %v8935_v29, %v8934_v28  ;;  %v8937_v33 = vld [vmem:[%s14466_s3 + $0x68] sm:$0xff]  ;;  %v9833_v29 = vld [vmem:[%s14467_s4] ss:$0 sm:$0xff]  ;;  %s11835_s4 = smov [#allocation2]  }
 0x315   :  { %v10598_v34 = vpop.f32.mrb[68].mxu0  ;;  %s9039_s23 = sshll.u32 %s11835_s4, 4  ;;  %s9040_s23 = int_to_ptr.vmem [resolvable:$true] %s9039_s23 }
 0x316   :  { %v10599_v35 = vpop.f32.mrb[69].mxu0  ;;  %s11807_s24 = scalar_lea.vmem %s9040_s23, 32  ;;  %p11812_p1 = scmp.lt.s32.totalorder %s9040_s23, %s9040_s23 }
 0x317   :  { %v10600_v36 = vadd.f32 %v10599_v35, %v10598_v34  ;;  %v10601_v37 = vpop.f32.mrb[70].mxu0  ;;  %v10620_v38 = vpop.f32.mrb[68].mxu1  ;;  %10901 = vmatpush3.bf16.msra.mxu0 %v11796_v39  ;;  %10969 = vmatpush3.bf16.msra.mxu1 %v10968_v19  ;;  %v10983_v35 = vpack.c.bf16 %v8937_v33, %v8936_v32  ;;  %p11808_p0 = scmp.ne.s32.totalorder %s9040_s23, %s11807_s24  ;;  %p11813_p2 = scmp.lt.s32.totalorder %s11807_s24, %s11807_s24 }
 0x318   :  { %v10602_v40 = vpop.f32.mrb[71].mxu0  ;;  %v10621_v42 = vpop.f32.mrb[69].mxu1  ;;  %10902 = vmatprep.subr.bf16.mxu0 %v11797_v43  ;;  %10970 = vmatprep.subr.bf16.mxu1 %v11832_v16 }
 0x319   :  { %v8358_v44 = vadd.f32 %v10600_v36, %v14320_v4  ;;  %v10622_v45 = vadd.f32 %v10621_v42, %v10620_v38  ;;  %v10623_v46 = vpop.f32.mrb[70].mxu1  ;;  %p11814_p3 = por %p11813_p2, %p11812_p1 }
 0x31a   :  { %v10624_v47 = vpop.f32.mrb[71].mxu1  ;;  %v8939_v46 = vld [vmem:[%s14466_s3 + $0x78] sm:$0xff] }
 0x31b   :  { %v8398_v48 = vadd.f32 %v10622_v45, %v8358_v44  ;;  %10903 = vmatpush3.bf16.msra.mxu0 %v11798_v49  ;;  %10972 = vmatpush3.bf16.msra.mxu1 %v10971_v22  ;;  %v8938_v45 = vld [vmem:[%s14466_s3 + $0x70] sm:$0xff]  ;;  %p11815_p4 = pnand %p11814_p3, %p11808_p0 }
 0x31c   :  { %10904 = vmatprep.subr.bf16.mxu0 %v11799_v50  ;;  %10973 = vmatprep.subr.bf16.mxu1 %v11832_v16  ;;  %v11834_v50 = vmov 0.0  }
 0x31d   :  { %10961 = vmatprep.mubr.msk.f32.mxu1 %vm11833_vm0, %v11834_v50 }
 0x31f   :  { %10905 = vmatpush3.bf16.msra.mxu0 %v11800_v51  ;;  %10975 = vmatpush3.bf16.msra.mxu1 %v10974_v24 }
 0x320   :  { %10976 = vmatprep.subr.bf16.mxu1 %v11832_v16 }
 0x322   :  { %8916 = vmatmul.mubr.bf16.vlgmr.msra.gmra.mrb[96].mxu0 %v682_v52 }
 0x323   :  { %10978 = vmatpush3.bf16.msra.mxu1 %v10977_v27 }
 0x324   :  { %10979 = vmatprep.subr.bf16.mxu1 %v11832_v16 }
 0x327   :  { %10981 = vmatpush3.bf16.msra.mxu1 %v10980_v30 }
 0x328   :  { %10982 = vmatprep.subr.bf16.mxu1 %v11832_v16 }
 0x32b   :  { %10984 = vmatpush3.bf16.msra.mxu1 %v10983_v35 }
 0x32c   :  { %10985 = vmatprep.subr.bf16.mxu1 %v11832_v16 }
 0x335   :  { %v10642_v53 = vpop.f32.mrb[72].mxu0 }
 0x336   :  { %v10643_v54 = vpop.f32.mrb[73].mxu0 }
 0x337   :  { %v10644_v55 = vadd.f32 %v10643_v54, %v10642_v53  ;;  %v10645_v56 = vpop.f32.mrb[74].mxu0  ;;  %v10664_v57 = vpop.f32.mrb[72].mxu1 }
 0x338   :  { %v10646_v58 = vpop.f32.mrb[75].mxu0  ;;  %v10665_v59 = vpop.f32.mrb[73].mxu1 }
 0x339   :  { %v8438_v60 = vadd.f32 %v10644_v55, %v8398_v48  ;;  %v10666_v61 = vadd.f32 %v10665_v59, %v10664_v57  ;;  %v10667_v62 = vpop.f32.mrb[74].mxu1  ;;  %v10986_v48 = vpack.c.bf16 %v8939_v46, %v8938_v45 }
 0x33a   :  { %v10668_v63 = vpop.f32.mrb[75].mxu1 }
 0x33b   :  { %v8478_v0 = vadd.f32 %v10666_v61, %v8438_v60  ;;  %10987 = vmatpush3.bf16.msra.mxu1 %v10986_v48 }
 0x355   :  { %v10686_v1 = vpop.f32.mrb[76].mxu0 }
 0x356   :  { %v10687_v2 = vpop.f32.mrb[77].mxu0 }
 0x357   :  { %v10688_v3 = vadd.f32 %v10687_v2, %v10686_v1  ;;  %v10689_v4 = vpop.f32.mrb[78].mxu0  ;;  %v10708_v5 = vpop.f32.mrb[76].mxu1 }
 0x358   :  { %v10690_v6 = vpop.f32.mrb[79].mxu0  ;;  %v10709_v7 = vpop.f32.mrb[77].mxu1 }
 0x359   :  { %v8518_v8 = vadd.f32 %v10688_v3, %v8478_v0  ;;  %v10710_v9 = vadd.f32 %v10709_v7, %v10708_v5  ;;  %v10711_v10 = vpop.f32.mrb[78].mxu1 }
 0x35a   :  { %v10712_v11 = vpop.f32.mrb[79].mxu1 }
 0x35b   :  { %v8558_v12 = vadd.f32 %v10710_v9, %v8518_v8 }
 0x375   :  { %v10730_v31 = vpop.f32.mrb[80].mxu0 }
 0x376   :  { %v10731_v34 = vpop.f32.mrb[81].mxu0 }
 0x377   :  { %v10732_v36 = vadd.f32 %v10731_v34, %v10730_v31  ;;  %v10733_v37 = vpop.f32.mrb[82].mxu0  ;;  %v10752_v38 = vpop.f32.mrb[80].mxu1 }
 0x378   :  { %v10734_v39 = vpop.f32.mrb[83].mxu0  ;;  %v10753_v40 = vpop.f32.mrb[81].mxu1 }
 0x379   :  { %v8598_v42 = vadd.f32 %v10732_v36, %v8558_v12  ;;  %v10754_v43 = vadd.f32 %v10753_v40, %v10752_v38  ;;  %v10755_v44 = vpop.f32.mrb[82].mxu1 }
 0x37a   :  { %v10756_v47 = vpop.f32.mrb[83].mxu1 }
 0x37b   :  { %v8638_v49 = vadd.f32 %v10754_v43, %v8598_v42 }
 0x395   :  { %v10774_v51 = vpop.f32.mrb[84].mxu0 }
 0x396   :  { %v10775_v52 = vpop.f32.mrb[85].mxu0 }
 0x397   :  { %v10776_v53 = vadd.f32 %v10775_v52, %v10774_v51  ;;  %v10777_v54 = vpop.f32.mrb[86].mxu0  ;;  %v10796_v55 = vpop.f32.mrb[84].mxu1 }
 0x398   :  { %v10778_v56 = vpop.f32.mrb[87].mxu0  ;;  %v10797_v57 = vpop.f32.mrb[85].mxu1 }
 0x399   :  { %v8678_v58 = vadd.f32 %v10776_v53, %v8638_v49  ;;  %v10798_v59 = vadd.f32 %v10797_v57, %v10796_v55  ;;  %v10799_v60 = vpop.f32.mrb[86].mxu1 }
 0x39a   :  { %v10800_v61 = vpop.f32.mrb[87].mxu1 }
 0x39b   :  { %v8718_v62 = vadd.f32 %v10798_v59, %v8678_v58 }
 0x3b5   :  { %v10818_v63 = vpop.f32.mrb[88].mxu0 }
 0x3b6   :  { %v10819_v0 = vpop.f32.mrb[89].mxu0 }
 0x3b7   :  { %v10820_v1 = vadd.f32 %v10819_v0, %v10818_v63  ;;  %v10821_v2 = vpop.f32.mrb[90].mxu0  ;;  %v10840_v3 = vpop.f32.mrb[88].mxu1 }
 0x3b8   :  { %v10822_v4 = vpop.f32.mrb[91].mxu0  ;;  %v10841_v5 = vpop.f32.mrb[89].mxu1 }
 0x3b9   :  { %v8758_v6 = vadd.f32 %v10820_v1, %v8718_v62  ;;  %v10842_v7 = vadd.f32 %v10841_v5, %v10840_v3  ;;  %v10843_v8 = vpop.f32.mrb[90].mxu1 }
 0x3ba   :  { %v10844_v9 = vpop.f32.mrb[91].mxu1 }
 0x3bb   :  { %v8798_v10 = vadd.f32 %v10842_v7, %v8758_v6 }
 0x3d5   :  { %v10862_v11 = vpop.f32.mrb[92].mxu0 }
 0x3d6   :  { %v10863_v12 = vpop.f32.mrb[93].mxu0 }
 0x3d7   :  { %v10864_v13 = vadd.f32 %v10863_v12, %v10862_v11  ;;  %v10865_v14 = vpop.f32.mrb[94].mxu0  ;;  %v10884_v15 = vpop.f32.mrb[92].mxu1 }
 0x3d8   :  { %v10866_v16 = vpop.f32.mrb[95].mxu0  ;;  %v10885_v17 = vpop.f32.mrb[93].mxu1 }
 0x3d9   :  { %v8838_v18 = vadd.f32 %v10864_v13, %v8798_v10  ;;  %v10886_v19 = vadd.f32 %v10885_v17, %v10884_v15  ;;  %v10887_v20 = vpop.f32.mrb[94].mxu1 }
 0x3da   :  { %v10888_v21 = vpop.f32.mrb[95].mxu1 }
 0x3db   :  { %v8878_v22 = vadd.f32 %v10886_v19, %v8838_v18 }
 0x3f5   :  { %v10906_v23 = vpop.f32.mrb[96].mxu0 }
 0x3f6   :  { %v10907_v41 = vpop.f32.mrb[97].mxu0 }
 0x3f7   :  { %v10908_v24 = vadd.f32 %v10907_v41, %v10906_v23  ;;  %v10909_v25 = vpop.f32.mrb[98].mxu0 }
 0x3f8   :  { %v10910_v26 = vpop.f32.mrb[99].mxu0 }
 0x3f9   :  { %v8918_v27 = vadd.f32 %v10908_v24, %v8878_v22 }
 0x3fb   :  { %v8923_v28 = vmax.f32 %v8918_v27, 0.0 }
 0x3fd   :  { %10962 = vmatmul.mubr.f32.vlgmr.msra.gmra.mrb[96].mxu1 %v8923_v28 }
 0x4d0   :  { %v9013_v30 = vpop.f32.mrb[96].mxu1 }
 0x4d1   :  { %v9014_v31 = vadd.f32 %v9833_v29, %v9013_v30  ;;  %v10963_v32 = vpop.f32.mrb[97].mxu1 }
 0x4d3   :  { %v9018_v33 = vsel %vm9017_vm1, %v9014_v31, -inf }
 0x4d4   :  { %9019 = vmax.xlane.f32.xlu0 %v9018_v33 }
 0x561   :  { %v9020_v34 = vpop.xlane.xlu0 %9019 }
 0x562   :  { %v9021_v35 = vsub.f32 %v9014_v31, %v9020_v34 }
 0x564   :  { %v9022_v36 = vmul.f32 1.442695, %v9021_v35 }
 0x566   :  { %11801 = vpow2.f32 %v9022_v36 }
 0x570   :  { %v11802_v37 = vpop.eup %11801 }
 0x571   :  { %v9024_v38 = vsel %vm9017_vm1, %v11802_v37, 0.0 }
 0x572   :  { %9025 = vadd.xlane.f32.xlu0 %v9024_v38 }
 0x5ff   :  { %v9026_v39 = vpop.xlane.xlu0 %9025 }
 0x600   :  { %11803 = vlog2.f32 %v9026_v39 }
 0x60a   :  { %v11804_v40 = vpop.eup %11803 }
 0x60b   :  { %v9028_v42 = vmul.f32 0.6931472, %v11804_v40 }
 0x60d   :  { %v9029_v43 = vsub.f32 %v9021_v35, %v9028_v42 }
 0x60f   :  { %v9030_v44 = vmul.f32 1.442695, %v9029_v43 }
 0x611   :  { %11805 = vpow2.f32 %v9030_v44 }
 0x61b   :  { %v11806_v45 = vpop.eup %11805 }
 0x61c   :  { %9032 = vst.msk [vmem:[#allocation2] sm:$0x3] %vm9017_vm1, %v11806_v45 }
 0x61d   :  { %11818 = shalt.err (!%p11815_p4)
}
 0x61e   :  { %s11819_s27 = scalar_lea.hbm %s14468_s5, 32 }
 0x61f   :  { %p11820_p5 = scmp.ne.s32.totalorder %s14468_s5, %s11819_s27  ;;  %p11823_p6 = scmp.lt.u32.totalorder %s11819_s27, %s14468_s5 }
 0x621   :  { %p11825_p7 = pnand %p11823_p6, %p11820_p5 }
 0x623   :  { %11828 = shalt.err (!%p11825_p7)
}
 0x624   :  { %9042 = dma.vmem_to_hbm [thread:$0]  %s9040_s23, 32, %s14468_s5, [#allocation3]  }
 0x625   :  { %11829 = dma.done.wait [#allocation3], 32  }
 0x626   :  { %11830 = vsyncadd [#allocation3], 4294967264 }
 0x627   :  { %9046 = vsyncpa [#allocation3], 1 }

</bundles_post_ra>
